<compile_context>
chip_gen: v5e
topology: v5e:2x2
jax: 0.10.0
libtpu: 0.0.40
codegen_flags: <defaults>
</compile_context>

<pallas_src>
import functools
import math

import jax
import jax.numpy as jnp
from jax.experimental import pallas as pl
from jax.experimental.pallas import tpu as pltpu

EPS = 1e-5
LANE = 128          # lane-dense channel padding
TILE_A = 256        # pass-A (matmul + stats) row tile
TILE_B = 1024       # pass-B (element-wise BN + add + ReLU) row tile


def _rup(x, m):
    return ((x + m - 1) // m) * m


def _bytes(shape, itemsize):
    return int(math.prod(shape)) * int(itemsize)


# ----------------------------------------------------------------------------
# Optional single-buffering of grid-invariant operands (weights / scales).
# pl.Buffered(1) support is probed once (including a numeric check); fall back
# to default double buffering if the installed Pallas/Mosaic rejects it.
# ----------------------------------------------------------------------------
_BUFFERED_OK = None


def _probe_buffered_support():
    def kern(x_ref, w_ref, w3_ref, o_ref):
        o_ref[...] = x_ref[...] + w_ref[...] + w3_ref[0]

    try:
        out = pl.pallas_call(
            kern,
            out_shape=jax.ShapeDtypeStruct((16, 128), jnp.float32),
            grid=(2,),
            in_specs=[pl.BlockSpec((8, 128), lambda i: (i, 0)),
                      pl.BlockSpec((8, 128), lambda i: (0, 0),
                                   pipeline_mode=pl.Buffered(1)),
                      pl.BlockSpec((2, 8, 128), lambda i: (0, 0, 0),
                                   pipeline_mode=pl.Buffered(1))],
            out_specs=pl.BlockSpec((8, 128), lambda i: (i, 0)),
        )(jnp.zeros((16, 128), jnp.float32),
          jnp.ones((8, 128), jnp.float32),
          jnp.ones((2, 8, 128), jnp.float32))
        out = jax.block_until_ready(out)
        return bool(jnp.allclose(out, 2.0))
    except Exception:           # any failure -> fall back to double buffering
        return False


def _const_spec(block_shape, index_map):
    """BlockSpec for grid-invariant operands; single-buffered when supported."""
    global _BUFFERED_OK
    if _BUFFERED_OK is None:
        _BUFFERED_OK = _probe_buffered_support()
    if _BUFFERED_OK:
        return pl.BlockSpec(block_shape, index_map, pipeline_mode=pl.Buffered(1))
    return pl.BlockSpec(block_shape, index_map)


def _cparams(vmem_need_bytes):
    # Explicit scoped-VMEM limit sized from the actual per-step buffers plus
    # headroom for in-kernel f32 temporaries, clamped so it is legal on every
    # generation (v7x has 64 MiB physical VMEM).
    limit = int(min(max(2 * int(vmem_need_bytes) + 8 * 2**20, 32 * 2**20), 60 * 2**20))
    return pltpu.CompilerParams(dimension_semantics=("parallel",),
                                vmem_limit_bytes=limit)


# ----------------------------------------------------------------------------
# Pallas kernels
# ----------------------------------------------------------------------------
def _mm_stats_kernel(x_ref, w_ref, y_ref, s_ref, q_ref):
    """Pass A: y = x @ w (bf16 operands, f32 acc); stats from the f32 acc,
    activation stored as bf16 (halves the HBM write)."""
    y = jnp.dot(x_ref[...], w_ref[...], preferred_element_type=jnp.float32)
    s_ref[...] = jnp.sum(y, axis=0, keepdims=True)
    q_ref[...] = jnp.sum(y * y, axis=0, keepdims=True)
    y_ref[...] = y.astype(y_ref.dtype)


def _conv2_fused_kernel(y1_ref, sc1_ref, sh1_ref, pmask_ref, w_ref, cmask_ref,
                        y2_ref, s_ref, q_ref, x_scr, *, taps, rows):
    """3x3 conv pass A with conv1's BN+ReLU fused in.

    y1_ref is one image's raw conv1 output laid out as a spatially padded
    (and, for stride 2, parity decomposed) slab.  BN1+ReLU is applied to the
    whole slab; pmask zeroes the halo / tail-pad positions so they stay exact
    zeros.  The nine taps are contiguous row-shifted slices of the slab and
    are accumulated in f32; cmask drops padded output rows from BN2's stats.
    """
    xin = y1_ref[...].astype(jnp.float32) * sc1_ref[...] + sh1_ref[...]
    x_scr[...] = (jnp.maximum(xin, 0.0) * pmask_ref[...]).astype(x_scr.dtype)
    acc = None
    for t, off in enumerate(taps):
        d = jnp.dot(x_scr[pl.ds(off, rows), :], w_ref[t],
                    preferred_element_type=jnp.float32)
        acc = d if acc is None else acc + d
    ym = acc * cmask_ref[...]
    s_ref[...] = jnp.sum(ym, axis=0, keepdims=True)
    q_ref[...] = jnp.sum(ym * acc, axis=0, keepdims=True)
    y2_ref[...] = acc.astype(y2_ref.dtype)


def _conv3s_fused_kernel(y2_ref, sc2_ref, sh2_ref, m_ref, w3_ref, xr_ref, ws_ref,
                         y3_ref, ys_ref, s3_ref, q3_ref, ss_ref, qs_ref):
    """conv3 + shortcut pass A with conv2's BN+ReLU fused in.

    The row mask is applied BEFORE the matmul so padded rows contribute zero
    to y3/ys and to both sets of BN statistics."""
    o2 = jnp.maximum(y2_ref[...].astype(jnp.float32) * sc2_ref[...] + sh2_ref[...], 0.0)
    o2 = (o2 * m_ref[...]).astype(jnp.bfloat16)
    y3 = jnp.dot(o2, w3_ref[...], preferred_element_type=jnp.float32)
    ys = jnp.dot(xr_ref[...], ws_ref[...], preferred_element_type=jnp.float32)
    s3_ref[...] = jnp.sum(y3, axis=0, keepdims=True)
    q3_ref[...] = jnp.sum(y3 * y3, axis=0, keepdims=True)
    ss_ref[...] = jnp.sum(ys, axis=0, keepdims=True)
    qs_ref[...] = jnp.sum(ys * ys, axis=0, keepdims=True)
    y3_ref[...] = y3.astype(y3_ref.dtype)
    ys_ref[...] = ys.astype(ys_ref.dtype)


def _conv3_fused_kernel(y2_ref, sc2_ref, sh2_ref, m_ref, w3_ref,
                        y3_ref, s3_ref, q3_ref):
    """conv3 pass A (identity shortcut) with conv2's BN+ReLU fused in."""
    o2 = jnp.maximum(y2_ref[...].astype(jnp.float32) * sc2_ref[...] + sh2_ref[...], 0.0)
    o2 = (o2 * m_ref[...]).astype(jnp.bfloat16)
    y3 = jnp.dot(o2, w3_ref[...], preferred_element_type=jnp.float32)
    s3_ref[...] = jnp.sum(y3, axis=0, keepdims=True)
    q3_ref[...] = jnp.sum(y3 * y3, axis=0, keepdims=True)
    y3_ref[...] = y3.astype(y3_ref.dtype)


def _bn_add_relu_kernel(y_ref, sc_ref, sh_ref, r_ref, rsc_ref, rsh_ref, o_ref):
    """Final pass B: ReLU(BN3(y3) + BN_s(residual)); identity shortcut passes
    the residual through with rscale=1, rshift=0."""
    y = y_ref[...].astype(jnp.float32) * sc_ref[...] + sh_ref[...]
    r = r_ref[...].astype(jnp.float32) * rsc_ref[...] + rsh_ref[...]
    o_ref[...] = jnp.maximum(y + r, 0.0).astype(o_ref.dtype)


# ----------------------------------------------------------------------------
# pallas_call wrappers
# ----------------------------------------------------------------------------
def matmul_stats(x, w):
    """x:(Mp,K) bf16 @ w:(K,C) bf16 -> y:(Mp,C) bf16 raw + (2,C) f32 col stats."""
    Mp, K = x.shape
    _, C = w.shape
    nt = Mp // TILE_A
    vmem = (2 * _bytes((TILE_A, K), 2) + _bytes((K, C), 2)
            + 2 * _bytes((TILE_A, C), 2) + _bytes((TILE_A, C), 4) + 8 * C * 4)
    y, s, q = pl.pallas_call(
        _mm_stats_kernel,
        out_shape=(jax.ShapeDtypeStruct((Mp, C), jnp.bfloat16),
                   jax.ShapeDtypeStruct((nt, 1, C), jnp.float32),
                   jax.ShapeDtypeStruct((nt, 1, C), jnp.float32)),
        grid=(nt,),
        in_specs=[pl.BlockSpec((TILE_A, K), lambda i: (i, 0)),
                  _const_spec((K, C), lambda i: (0, 0))],
        out_specs=(pl.BlockSpec((TILE_A, C), lambda i: (i, 0)),
                   pl.BlockSpec((None, 1, C), lambda i: (i, 0, 0)),
                   pl.BlockSpec((None, 1, C), lambda i: (i, 0, 0))),
        compiler_params=_cparams(vmem),
        cost_estimate=pl.CostEstimate(
            flops=2 * Mp * K * C, transcendentals=0,
            bytes_accessed=_bytes((Mp, K), 2) + _bytes((K, C), 2)
                           + _bytes((Mp, C), 2) + 2 * nt * C * 4),
    )(x, w)
    stats = jnp.stack([s.sum(axis=(0, 1)), q.sum(axis=(0, 1))])
    return y, stats


def conv2_fused(y1_planes, sc1, sh1, pmask, w_taps, cmask, g):
    """Per-image fused BN1+ReLU + 3x3 conv (stride folded into the layout)."""
    N, stot, C = y1_planes.shape
    _, _, P = w_taps.shape
    rows = g["m_out_pad"]
    kernel = functools.partial(_conv2_fused_kernel, taps=g["taps"], rows=rows)
    vmem = (2 * _bytes((stot, C), 2) + _bytes((9, C, P), 2)
            + _bytes((stot, C), 2) + _bytes((stot, C), 4)
            + 2 * _bytes((rows, P), 2) + 2 * _bytes((rows, P), 4)
            + _bytes((stot, 1), 4) + _bytes((rows, 1), 4))
    y2, s, q = pl.pallas_call(
        kernel,
        out_shape=(jax.ShapeDtypeStruct((N, rows, P), jnp.bfloat16),
                   jax.ShapeDtypeStruct((N, 1, P), jnp.float32),
                   jax.ShapeDtypeStruct((N, 1, P), jnp.float32)),
        grid=(N,),
        in_specs=[pl.BlockSpec((None, stot, C), lambda n: (n, 0, 0)),
                  _const_spec((1, C), lambda n: (0, 0)),
                  _const_spec((1, C), lambda n: (0, 0)),
                  _const_spec((stot, 1), lambda n: (0, 0)),
                  _const_spec((9, C, P), lambda n: (0, 0, 0)),
                  _const_spec((rows, 1), lambda n: (0, 0))],
        out_specs=(pl.BlockSpec((None, rows, P), lambda n: (n, 0, 0)),
                   pl.BlockSpec((None, 1, P), lambda n: (n, 0, 0)),
                   pl.BlockSpec((None, 1, P), lambda n: (n, 0, 0))),
        scratch_shapes=[pltpu.VMEM((stot, C), jnp.bfloat16)],
        compiler_params=_cparams(vmem),
        cost_estimate=pl.CostEstimate(
            flops=N * (9 * 2 * rows * C * P + 6 * stot * C),
            transcendentals=0,
            bytes_accessed=N * (_bytes((stot, C), 2) + _bytes((rows, P), 2)
                                + 2 * P * 4) + _bytes((9, C, P), 2)),
    )(y1_planes, sc1, sh1, pmask, w_taps, cmask)
    stats = jnp.stack([s.sum(axis=(0, 1)), q.sum(axis=(0, 1))])
    return y2, stats


def conv3_shortcut_fused(y2, sc2, sh2, rmask, w3, xr, ws):
    Mp, P = y2.shape
    _, C = w3.shape
    K = xr.shape[1]
    nt = Mp // TILE_A
    vmem = (2 * (_bytes((TILE_A, P), 2) + _bytes((TILE_A, K), 2)
                 + 2 * _bytes((TILE_A, C), 2) + _bytes((TILE_A, 1), 4))
            + _bytes((P, C), 2) + _bytes((K, C), 2)
            + 3 * _bytes((TILE_A, C), 4))
    y3, ys, s3, q3, ss, qs = pl.pallas_call(
        _conv3s_fused_kernel,
        out_shape=(jax.ShapeDtypeStruct((Mp, C), jnp.bfloat16),
                   jax.ShapeDtypeStruct((Mp, C), jnp.bfloat16),
                   jax.ShapeDtypeStruct((nt, 1, C), jnp.float32),
                   jax.ShapeDtypeStruct((nt, 1, C), jnp.float32),
                   jax.ShapeDtypeStruct((nt, 1, C), jnp.float32),
                   jax.ShapeDtypeStruct((nt, 1, C), jnp.float32)),
        grid=(nt,),
        in_specs=[pl.BlockSpec((TILE_A, P), lambda i: (i, 0)),
                  _const_spec((1, P), lambda i: (0, 0)),
                  _const_spec((1, P), lambda i: (0, 0)),
                  pl.BlockSpec((TILE_A, 1), lambda i: (i, 0)),
                  _const_spec((P, C), lambda i: (0, 0)),
                  pl.BlockSpec((TILE_A, K), lambda i: (i, 0)),
                  _const_spec((K, C), lambda i: (0, 0))],
        out_specs=(pl.BlockSpec((TILE_A, C), lambda i: (i, 0)),
                   pl.BlockSpec((TILE_A, C), lambda i: (i, 0)),
                   pl.BlockSpec((None, 1, C), lambda i: (i, 0, 0)),
                   pl.BlockSpec((None, 1, C), lambda i: (i, 0, 0)),
                   pl.BlockSpec((None, 1, C), lambda i: (i, 0, 0)),
                   pl.BlockSpec((None, 1, C), lambda i: (i, 0, 0))),
        compiler_params=_cparams(vmem),
        cost_estimate=pl.CostEstimate(
            flops=2 * Mp * C * (P + K), transcendentals=0,
            bytes_accessed=_bytes((Mp, P), 2) + _bytes((Mp, K), 2)
                           + 2 * _bytes((Mp, C), 2) + _bytes((P, C), 2)
                           + _bytes((K, C), 2) + 4 * nt * C * 4),
    )(y2, sc2, sh2, rmask, w3, xr, ws)
    st3 = jnp.stack([s3.sum(axis=(0, 1)), q3.sum(axis=(0, 1))])
    sts = jnp.stack([ss.sum(axis=(0, 1)), qs.sum(axis=(0, 1))])
    return y3, ys, st3, sts


def conv3_fused(y2, sc2, sh2, rmask, w3):
    Mp, P = y2.shape
    _, C = w3.shape
    nt = Mp // TILE_A
    vmem = (2 * (_bytes((TILE_A, P), 2) + _bytes((TILE_A, C), 2)
                 + _bytes((TILE_A, 1), 4))
            + _bytes((P, C), 2) + 2 * _bytes((TILE_A, C), 4))
    y3, s3, q3 = pl.pallas_call(
        _conv3_fused_kernel,
        out_shape=(jax.ShapeDtypeStruct((Mp, C), jnp.bfloat16),
                   jax.ShapeDtypeStruct((nt, 1, C), jnp.float32),
                   jax.ShapeDtypeStruct((nt, 1, C), jnp.float32)),
        grid=(nt,),
        in_specs=[pl.BlockSpec((TILE_A, P), lambda i: (i, 0)),
                  _const_spec((1, P), lambda i: (0, 0)),
                  _const_spec((1, P), lambda i: (0, 0)),
                  pl.BlockSpec((TILE_A, 1), lambda i: (i, 0)),
                  _const_spec((P, C), lambda i: (0, 0))],
        out_specs=(pl.BlockSpec((TILE_A, C), lambda i: (i, 0)),
                   pl.BlockSpec((None, 1, C), lambda i: (i, 0, 0)),
                   pl.BlockSpec((None, 1, C), lambda i: (i, 0, 0))),
        compiler_params=_cparams(vmem),
        cost_estimate=pl.CostEstimate(
            flops=2 * Mp * C * P, transcendentals=0,
            bytes_accessed=_bytes((Mp, P), 2) + _bytes((Mp, C), 2)
                           + _bytes((P, C), 2) + 2 * nt * C * 4),
    )(y2, sc2, sh2, rmask, w3)
    st3 = jnp.stack([s3.sum(axis=(0, 1)), q3.sum(axis=(0, 1))])
    return y3, st3


def bn_add_relu(y, sc, sh, r, rsc, rsh):
    M, C = y.shape
    tb = TILE_B
    while M % tb:
        tb //= 2
    nt = M // tb
    vmem = 2 * (3 * _bytes((tb, C), 2)) + 2 * _bytes((tb, C), 4)
    return pl.pallas_call(
        _bn_add_relu_kernel,
        out_shape=jax.ShapeDtypeStruct((M, C), jnp.bfloat16),
        grid=(nt,),
        in_specs=[pl.BlockSpec((tb, C), lambda i: (i, 0)),
                  _const_spec((1, C), lambda i: (0, 0)),
                  _const_spec((1, C), lambda i: (0, 0)),
                  pl.BlockSpec((tb, C), lambda i: (i, 0)),
                  _const_spec((1, C), lambda i: (0, 0)),
                  _const_spec((1, C), lambda i: (0, 0))],
        out_specs=pl.BlockSpec((tb, C), lambda i: (i, 0)),
        compiler_params=_cparams(vmem),
        cost_estimate=pl.CostEstimate(
            flops=6 * M * C, transcendentals=0,
            bytes_accessed=3 * _bytes((M, C), 2)),
    )(y, sc, sh, r, rsc, rsh)


# ----------------------------------------------------------------------------
# conv2 slab geometry (spatial pad + stride parity decomposition + tap offsets)
# ----------------------------------------------------------------------------
def _plane_geom(H, W, stride, row_align):
    S = stride
    Hq, Wq = H + 2, W + 2
    Hqp = _rup(Hq, S)
    Wqp = _rup(Wq, 8 * S)                  # Ws = Wqp // S is a multiple of 8
    Hs, Ws = Hqp // S, Wqp // S
    Ho = (Hq - 3) // S + 1
    Wo = (Wq - 3) // S + 1
    m_out = Ho * Ws
    m_out_pad = _rup(m_out, row_align)     # divisible by the downstream M tile
    mplane = _rup(max(Hs * Ws, m_out_pad) + 2 * Ws + 2, 8)
    taps = tuple(((dy % S) * S + (dx % S)) * mplane + (dy // S) * Ws + (dx // S)
                 for dy in range(3) for dx in range(3))
    return dict(S=S, Hqp=Hqp, Wqp=Wqp, Hs=Hs, Ws=Ws, Ho=Ho, Wo=Wo,
                m_out=m_out, m_out_pad=m_out_pad, mplane=mplane, taps=taps,
                stot=S * S * mplane)


def _to_planes(x_nhwc, g):
    """(N,H,W,C) -> (N, S*S*mplane, C): spatial pad (1 left/top, aligned right/
    bottom), parity decomposition for stride 2, flatten, tail pad."""
    N, H, W, C = x_nhwc.shape
    S, Hqp, Wqp = g["S"], g["Hqp"], g["Wqp"]
    Hs, Ws, mplane = g["Hs"], g["Ws"], g["mplane"]
    xp = jnp.pad(x_nhwc, ((0, 0), (1, Hqp - H - 1), (1, Wqp - W - 1), (0, 0)))
    if S == 1:                              # skip the layout-identity transpose
        planes = xp.reshape(N, 1, Hs * Ws, C)
    else:
        planes = xp.reshape(N, Hs, S, Ws, S, C).transpose(0, 2, 4, 1, 3, 5)
        planes = planes.reshape(N, S * S, Hs * Ws, C)
    planes = jnp.pad(planes, ((0, 0), (0, 0), (0, mplane - Hs * Ws), (0, 0)))
    return planes.reshape(N, S * S * mplane, C)


def _fold_bn(stats, gamma, beta, count):
    """Fold batch statistics into a single (scale, shift) pair (f32)."""
    mean = stats[0] / count
    var = jnp.maximum(stats[1] / count - mean * mean, 0.0)
    scale = gamma * jax.lax.rsqrt(var + EPS)
    shift = beta - mean * scale
    return scale.reshape(1, -1), shift.reshape(1, -1)


# ----------------------------------------------------------------------------
# Bottleneck forward (glue in plain JAX, all heavy compute in Pallas kernels)
# ----------------------------------------------------------------------------
def bottleneck_forward(x_nchw, prep, *, stride, out_planes):
    x_nhwc = jnp.transpose(x_nchw, (0, 2, 3, 1))
    N, H, W, Cin = x_nhwc.shape
    Cp, Pp = prep["w1"].shape
    Op = prep["w3"].shape[1]
    x_bf = x_nhwc.astype(jnp.bfloat16)                      # single cast of x

    g = _plane_geom(H, W, stride, TILE_A)
    Ho, Wo, Ws = g["Ho"], g["Wo"], g["Ws"]
    m_out, m_out_pad = g["m_out"], g["m_out_pad"]

    # --- conv1 (1x1) pass A ---------------------------------------------------
    M1 = N * H * W
    Mp1 = _rup(M1, TILE_A)
    x1 = jnp.pad(x_bf.reshape(M1, Cin), ((0, Mp1 - M1), (0, Cp - Cin)))
    y1, st1 = matmul_stats(x1, prep["w1"])                  # bf16 raw conv1 out
    sc1, sh1 = _fold_bn(st1, prep["g1"], prep["b1"], float(M1))

    # --- conv2 (3x3, stride, pad=1) with BN1+ReLU fused in --------------------
    y1_img = y1[:M1].reshape(N, H, W, Pp)
    y1_planes = _to_planes(y1_img, g)                       # (N, stot, Pp) bf16
    pmask = _to_planes(jnp.ones((1, H, W, 1), jnp.float32), g)[0]   # (stot, 1)
    ridx = jnp.arange(m_out_pad)
    cmask = (((ridx % Ws) < Wo) & (ridx < m_out)).astype(jnp.float32).reshape(-1, 1)

    y2, st2 = conv2_fused(y1_planes, sc1, sh1, pmask, prep["w2"], cmask, g)
    M2 = N * Ho * Wo
    sc2, sh2 = _fold_bn(st2, prep["g2"], prep["b2"], float(M2))

    # --- conv3 (1x1) + fused shortcut, with BN2+ReLU fused in ------------------
    MP3 = N * m_out_pad
    y2_flat = y2.reshape(MP3, Pp)
    rmask = jnp.tile(cmask, (N, 1))                         # (MP3, 1)

    if stride != 1 or Cin != out_planes:
        xs = x_bf[:, ::stride, ::stride, :]                 # (N, Ho, Wo, Cin)
        xr = jnp.pad(xs, ((0, 0), (0, 0), (0, Ws - Wo), (0, Cp - Cin)))
        xr = jnp.pad(xr.reshape(N, m_out, Cp),
                     ((0, 0), (0, m_out_pad - m_out), (0, 0))).reshape(MP3, Cp)
        y3, ys, st3, sts = conv3_shortcut_fused(y2_flat, sc2, sh2, rmask,
                                                prep["w3"], xr, prep["ws"])
        sc3, sh3 = _fold_bn(st3, prep["g3"], prep["b3"], float(M2))
        scs, shs = _fold_bn(sts, prep["gs"], prep["bs"], float(M2))
        res, rsc, rsh = ys, scs, shs
    else:
        y3, st3 = conv3_fused(y2_flat, sc2, sh2, rmask, prep["w3"])
        sc3, sh3 = _fold_bn(st3, prep["g3"], prep["b3"], float(M2))
        res = jnp.pad(x_bf, ((0, 0), (0, 0), (0, Ws - W), (0, Op - Cin)))
        res = jnp.pad(res.reshape(N, m_out, Op),
                      ((0, 0), (0, m_out_pad - m_out), (0, 0))).reshape(MP3, Op)
        rsc = jnp.ones((1, Op), jnp.float32)
        rsh = jnp.zeros((1, Op), jnp.float32)

    out = bn_add_relu(y3, sc3, sh3, res, rsc, rsh)          # (MP3, Op) bf16
    out = out.reshape(N, m_out_pad, Op)[:, :m_out, :]
    out = out.reshape(N, Ho, Ws, Op)[:, :, :Wo, :out_planes]
    # TODO(synk): when chaining blocks, keep activations NHWC/bf16 and drop
    # this transpose + f32 cast at every block boundary.
    return jnp.transpose(out, (0, 3, 1, 2)).astype(jnp.float32)


# ----------------------------------------------------------------------------
# Parameters: logical (for the reference) + padded/bf16 kernel layout
# ----------------------------------------------------------------------------
def init_params(key, in_planes, planes, stride, expansion=4):
    k1, k2, k3, k4 = jax.random.split(key, 4)
    out_planes = expansion * planes
    params = {
        # conv weights stored pre-transposed for matmul:
        #   w1: (Cin, planes), w2: (9*planes, planes) in (dy,dx,cin) order,
        #   w3: (planes, 4*planes), ws: (Cin, 4*planes)
        "w1": 0.1 * jax.random.normal(k1, (in_planes, planes), jnp.float32),
        "w2": 0.1 * jax.random.normal(k2, (9 * planes, planes), jnp.float32),
        "w3": 0.1 * jax.random.normal(k3, (planes, out_planes), jnp.float32),
        "g1": jnp.ones((planes,), jnp.float32), "b1": jnp.zeros((planes,), jnp.float32),
        "g2": jnp.ones((planes,), jnp.float32), "b2": jnp.zeros((planes,), jnp.float32),
        "g3": jnp.ones((out_planes,), jnp.float32), "b3": jnp.zeros((out_planes,), jnp.float32),
    }
    if stride != 1 or in_planes != out_planes:
        params["ws"] = 0.1 * jax.random.normal(k4, (in_planes, out_planes), jnp.float32)
        params["gs"] = jnp.ones((out_planes,), jnp.float32)
        params["bs"] = jnp.zeros((out_planes,), jnp.float32)
    return params


def prepare_params(params, in_planes, planes, out_planes):
    """Pad channels to multiples of 128 (lane-dense) and cast weights to bf16."""
    Cp, Pp, Op = _rup(in_planes, LANE), _rup(planes, LANE), _rup(out_planes, LANE)

    def padw(w, r, c):
        return jnp.pad(w, ((0, r - w.shape[0]), (0, c - w.shape[1]))).astype(jnp.bfloat16)

    def padv(v, c):          # gamma padded with 0 -> padded channels stay exactly 0
        return jnp.pad(v.reshape(-1), ((0, c - v.size),)).astype(jnp.float32)

    w2 = params["w2"].reshape(9, planes, planes)
    w2 = jnp.pad(w2, ((0, 0), (0, Pp - planes), (0, Pp - planes))).astype(jnp.bfloat16)
    prep = {
        "w1": padw(params["w1"], Cp, Pp),
        "w2": w2,
        "w3": padw(params["w3"], Pp, Op),
        "g1": padv(params["g1"], Pp), "b1": padv(params["b1"], Pp),
        "g2": padv(params["g2"], Pp), "b2": padv(params["b2"], Pp),
        "g3": padv(params["g3"], Op), "b3": padv(params["b3"], Op),
    }
    if "ws" in params:
        prep["ws"] = padw(params["ws"], Cp, Op)
        prep["gs"] = padv(params["gs"], Op)
        prep["bs"] = padv(params["bs"], Op)
    return prep


# ----------------------------------------------------------------------------
# Pure-JAX reference (training-mode BatchNorm, matches nn.Module forward)
# ----------------------------------------------------------------------------
def _im2col_3x3(x_nhwc, stride):
    N, H, W, C = x_nhwc.shape
    xp = jnp.pad(x_nhwc, ((0, 0), (1, 1), (1, 1), (0, 0)))
    Ho = (H + 2 - 3) // stride + 1
    Wo = (W + 2 - 3) // stride + 1
    taps = []
    for dy in range(3):
        for dx in range(3):
            taps.append(xp[:, dy:dy + (Ho - 1) * stride + 1:stride,
                           dx:dx + (Wo - 1) * stride + 1:stride, :])
    patches = jnp.concatenate(taps, axis=-1)
    return patches.reshape(N * Ho * Wo, 9 * C), Ho, Wo


def _bn_ref(y, gamma, beta):
    mean = jnp.mean(y, axis=0, keepdims=True)
    var = jnp.mean(jnp.square(y - mean), axis=0, keepdims=True)
    return (y - mean) * jax.lax.rsqrt(var + EPS) * gamma + beta


def bottleneck_ref(x_nchw, params, *, stride):
    x = jnp.transpose(x_nchw, (0, 2, 3, 1)).astype(jnp.float32)
    N, H, W, Cin = x.shape
    planes = params["w1"].shape[1]
    out_planes = params["w3"].shape[1]
    hp = jax.lax.Precision.HIGHEST

    o1 = jnp.maximum(_bn_ref(jnp.dot(x.reshape(-1, Cin), params["w1"], precision=hp),
                             params["g1"], params["b1"]), 0.0)
    o1 = o1.reshape(N, H, W, planes)
    patches, Ho, Wo = _im2col_3x3(o1, stride)
    o2 = jnp.maximum(_bn_ref(jnp.dot(patches, params["w2"], precision=hp),
                             params["g2"], params["b2"]), 0.0)
    if stride != 1 or Cin != out_planes:
        xs = x[:, ::stride, ::stride, :].reshape(-1, Cin)
        res = _bn_ref(jnp.dot(xs, params["ws"], precision=hp), params["gs"], params["bs"])
    else:
        res = x.reshape(-1, Cin)
    o3 = jnp.maximum(_bn_ref(jnp.dot(o2, params["w3"], precision=hp),
                             params["g3"], params["b3"]) + res, 0.0)
    return jnp.transpose(o3.reshape(N, Ho, Wo, out_planes), (0, 3, 1, 2))


# ----------------------------------------------------------------------------
if __name__ == "__main__":
    key = jax.random.PRNGKey(0)
    kx, kp1, kp2 = jax.random.split(key, 3)

    # Small shapes consistent with the module: N=2, in_planes=4, planes=4, 16x16
    in_planes, planes, expansion = 4, 4, 4
    out_planes = expansion * planes
    x = jax.random.normal(kx, (2, in_planes, 16, 16), jnp.float32)

    # Warm the pl.Buffered(1) support probe outside of any jit trace.
    _ = _const_spec((8, 128), lambda i: (0, 0))

    ok = True
    for stride, kp in ((1, kp1), (2, kp2)):
        params = init_params(kp, in_planes=in_planes, planes=planes, stride=stride)
        prep = prepare_params(params, in_planes, planes, out_planes)
        fwd = jax.jit(functools.partial(bottleneck_forward,
                                        stride=stride, out_planes=out_planes))
        out = jax.block_until_ready(fwd(x, prep))
        ref = jax.block_until_ready(bottleneck_ref(x, params, stride=stride))
        hw = 16 if stride == 1 else 8
        if out.shape != (2, out_planes, hw, hw):
            ok = False
            print("shape mismatch:", out.shape)
        # bf16 matmul operands and bf16-stored intermediates (f32 accumulation
        # and f32 BN statistics) -> slightly looser tolerance vs f32 reference.
        if not jnp.allclose(out, ref, atol=7.5e-2, rtol=7.5e-2):
            ok = False
            print("value mismatch: max abs err =",
                  float(jnp.max(jnp.abs(out - ref))))

    if ok:
        print("KERNEL_OK")
</pallas_src>

<mosaic_0001>
module attributes {stable_mosaic.version = 11 : i64} {
  func.func @kern(%arg0: i32, %arg1: memref<8x128xf32, #tpu.memory_space<vmem>>, %arg2: memref<8x128xf32, #tpu.memory_space<vmem>>, %arg3: memref<2x8x128xf32, #tpu.memory_space<vmem>>, %arg4: memref<8x128xf32, #tpu.memory_space<vmem>>) attributes {dimension_semantics = [#tpu.dimension_semantics<arbitrary>], iteration_bounds = array<i64: 2>, scalar_prefetch = 0 : i64, scratch_operands = 0 : i64, tpu.core_type = #tpu.core_type<tc>, window_params = [{transform_indices = @transform_0, window_bounds = array<i64: 8, 128>}, {pipeline_mode = #tpu.pipeline_mode<synchronous>, transform_indices = @transform_1, window_bounds = array<i64: 8, 128>}, {pipeline_mode = #tpu.pipeline_mode<synchronous>, transform_indices = @transform_2, window_bounds = array<i64: 2, 8, 128>}, {transform_indices = @transform_3, window_bounds = array<i64: 8, 128>}]} {
    %c0 = arith.constant 0 : index
    %c0_0 = arith.constant 0 : index
    %0 = vector.load %arg1[%c0, %c0_0] : memref<8x128xf32, #tpu.memory_space<vmem>>, vector<8x128xf32>
    %c0_1 = arith.constant 0 : index
    %c0_2 = arith.constant 0 : index
    %1 = vector.load %arg2[%c0_1, %c0_2] : memref<8x128xf32, #tpu.memory_space<vmem>>, vector<8x128xf32>
    %2 = arith.addf %0, %1 : vector<8x128xf32>
    %c0_3 = arith.constant 0 : index
    %c0_4 = arith.constant 0 : index
    %c0_5 = arith.constant 0 : index
    %3 = vector.load %arg3[%c0_3, %c0_4, %c0_5] : memref<2x8x128xf32, #tpu.memory_space<vmem>>, vector<1x8x128xf32>
    %4 = vector.shape_cast %3 : vector<1x8x128xf32> to vector<8x128xf32>
    %5 = arith.addf %2, %4 : vector<8x128xf32>
    %c0_6 = arith.constant 0 : index
    %c0_7 = arith.constant 0 : index
    %6 = vector.load %arg4[%c0_6, %c0_7] : memref<8x128xf32, #tpu.memory_space<vmem>>, vector<8x128xf32>
    tpu.vector_store %arg4[%c0_6, %c0_7], %5 {strides = array<i32>} : memref<8x128xf32, #tpu.memory_space<vmem>>, vector<8x128xf32>,
    return
  }
  func.func @transform_0(%arg0: i32) -> (i32, i32) {
    %c0_i32 = arith.constant 0 : i32
    %c0_i32_0 = arith.constant 0 : i32
    return %arg0, %c0_i32 : i32, i32
  }
  func.func @transform_1(%arg0: i32) -> (i32, i32) {
    %c0_i32 = arith.constant 0 : i32
    %c0_i32_0 = arith.constant 0 : i32
    %c0_i32_1 = arith.constant 0 : i32
    return %c0_i32, %c0_i32_0 : i32, i32
  }
  func.func @transform_2(%arg0: i32) -> (i32, i32, i32) {
    %c0_i32 = arith.constant 0 : i32
    %c0_i32_0 = arith.constant 0 : i32
    %c0_i32_1 = arith.constant 0 : i32
    %c0_i32_2 = arith.constant 0 : i32
    return %c0_i32, %c0_i32_0, %c0_i32_1 : i32, i32, i32
  }
  func.func @transform_3(%arg0: i32) -> (i32, i32) {
    %c0_i32 = arith.constant 0 : i32
    %c0_i32_0 = arith.constant 0 : i32
    return %arg0, %c0_i32 : i32, i32
  }
}

module attributes {stable_mosaic.version = 11 : i64} {
  func.func @_mm_stats_kernel(%arg0: i32, %arg1: memref<256x128xbf16, #tpu.memory_space<vmem>>, %arg2: memref<128x128xbf16, #tpu.memory_space<vmem>>, %arg3: memref<256x128xbf16, #tpu.memory_space<vmem>>, %arg4: memref<1x1x128xf32, #tpu.memory_space<vmem>>, %arg5: memref<1x1x128xf32, #tpu.memory_space<vmem>>) attributes {dimension_semantics = [#tpu.dimension_semantics<parallel>], iteration_bounds = array<i64: 2>, scalar_prefetch = 0 : i64, scratch_operands = 0 : i64, tpu.core_type = #tpu.core_type<tc>, window_params = [{transform_indices = @transform_0, window_bounds = array<i64: 256, 128>}, {pipeline_mode = #tpu.pipeline_mode<synchronous>, transform_indices = @transform_1, window_bounds = array<i64: 128, 128>}, {transform_indices = @transform_2, window_bounds = array<i64: 256, 128>}, {transform_indices = @transform_3, window_bounds = array<i64: 1, 1, 128>}, {transform_indices = @transform_4, window_bounds = array<i64: 1, 1, 128>}]} {
    %c0 = arith.constant 0 : index
    %c0_0 = arith.constant 0 : index
    %0 = vector.load %arg1[%c0, %c0_0] : memref<256x128xbf16, #tpu.memory_space<vmem>>, vector<256x128xbf16>
    %c0_1 = arith.constant 0 : index
    %c0_2 = arith.constant 0 : index
    %1 = vector.load %arg2[%c0_1, %c0_2] : memref<128x128xbf16, #tpu.memory_space<vmem>>, vector<128x128xbf16>
    %cst = arith.constant dense<0.000000e+00> : vector<256x128xf32>
    %2 = tpu.matmul %0, %1, %cst {dimension_numbers = #tpu.dot_dimension_numbers<[1], [0], [0], [1], [0, 0, 1, 1], [], []>} : vector<256x128xbf16>, vector<128x128xbf16>, vector<256x128xf32> -> vector<256x128xf32>
    %cst_3 = arith.constant dense<0.000000e+00> : vector<128xf32>
    %3 = vector.multi_reduction <add>, %2, %cst_3 [0] : vector<256x128xf32> to vector<128xf32>
    %4 = vector.shape_cast %3 : vector<128xf32> to vector<1x128xf32>
    %c0_4 = arith.constant 0 : index
    %c0_5 = arith.constant 0 : index
    %c0_6 = arith.constant 0 : index
    %5 = vector.load %arg4[%c0_4, %c0_5, %c0_6] : memref<1x1x128xf32, #tpu.memory_space<vmem>>, vector<1x1x128xf32>
    %6 = vector.shape_cast %5 : vector<1x1x128xf32> to vector<1x128xf32>
    %7 = vector.shape_cast %4 : vector<1x128xf32> to vector<1x1x128xf32>
    tpu.vector_store %arg4[%c0_4, %c0_5, %c0_6], %7 {strides = array<i32>} : memref<1x1x128xf32, #tpu.memory_space<vmem>>, vector<1x1x128xf32>,
    %8 = arith.mulf %2, %2 : vector<256x128xf32>
    %cst_7 = arith.constant dense<0.000000e+00> : vector<128xf32>
    %9 = vector.multi_reduction <add>, %8, %cst_7 [0] : vector<256x128xf32> to vector<128xf32>
    %10 = vector.shape_cast %9 : vector<128xf32> to vector<1x128xf32>
    %c0_8 = arith.constant 0 : index
    %c0_9 = arith.constant 0 : index
    %c0_10 = arith.constant 0 : index
    %11 = vector.load %arg5[%c0_8, %c0_9, %c0_10] : memref<1x1x128xf32, #tpu.memory_space<vmem>>, vector<1x1x128xf32>
    %12 = vector.shape_cast %11 : vector<1x1x128xf32> to vector<1x128xf32>
    %13 = vector.shape_cast %10 : vector<1x128xf32> to vector<1x1x128xf32>
    tpu.vector_store %arg5[%c0_8, %c0_9, %c0_10], %13 {strides = array<i32>} : memref<1x1x128xf32, #tpu.memory_space<vmem>>, vector<1x1x128xf32>,
    %14 = arith.truncf %2 : vector<256x128xf32> to vector<256x128xbf16>
    %c0_11 = arith.constant 0 : index
    %c0_12 = arith.constant 0 : index
    %15 = vector.load %arg3[%c0_11, %c0_12] : memref<256x128xbf16, #tpu.memory_space<vmem>>, vector<256x128xbf16>
    tpu.vector_store %arg3[%c0_11, %c0_12], %14 {strides = array<i32>} : memref<256x128xbf16, #tpu.memory_space<vmem>>, vector<256x128xbf16>,
    return
  }
  func.func @transform_0(%arg0: i32) -> (i32, i32) {
    %c0_i32 = arith.constant 0 : i32
    %c0_i32_0 = arith.constant 0 : i32
    return %arg0, %c0_i32 : i32, i32
  }
  func.func @transform_1(%arg0: i32) -> (i32, i32) {
    %c0_i32 = arith.constant 0 : i32
    %c0_i32_0 = arith.constant 0 : i32
    %c0_i32_1 = arith.constant 0 : i32
    return %c0_i32, %c0_i32_0 : i32, i32
  }
  func.func @transform_2(%arg0: i32) -> (i32, i32) {
    %c0_i32 = arith.constant 0 : i32
    %c0_i32_0 = arith.constant 0 : i32
    return %arg0, %c0_i32 : i32, i32
  }
  func.func @transform_3(%arg0: i32) -> (i32, i32, i32) {
    %c0_i32 = arith.constant 0 : i32
    %c0_i32_0 = arith.constant 0 : i32
    %c0_i32_1 = arith.constant 0 : i32
    return %arg0, %c0_i32, %c0_i32_0 : i32, i32, i32
  }
  func.func @transform_4(%arg0: i32) -> (i32, i32, i32) {
    %c0_i32 = arith.constant 0 : i32
    %c0_i32_0 = arith.constant 0 : i32
    %c0_i32_1 = arith.constant 0 : i32
    return %arg0, %c0_i32, %c0_i32_0 : i32, i32, i32
  }
}

module attributes {stable_mosaic.version = 11 : i64} {
  func.func @_conv2_fused_kernel(%arg0: i32, %arg1: memref<1x568x128xbf16, #tpu.memory_space<vmem>>, %arg2: memref<1x128xf32, #tpu.memory_space<vmem>>, %arg3: memref<1x128xf32, #tpu.memory_space<vmem>>, %arg4: memref<568x1xf32, #tpu.memory_space<vmem>>, %arg5: memref<9x128x128xbf16, #tpu.memory_space<vmem>>, %arg6: memref<512x1xf32, #tpu.memory_space<vmem>>, %arg7: memref<1x512x128xbf16, #tpu.memory_space<vmem>>, %arg8: memref<1x1x128xf32, #tpu.memory_space<vmem>>, %arg9: memref<1x1x128xf32, #tpu.memory_space<vmem>>, %arg10: memref<568x128xbf16, #tpu.memory_space<vmem>>) attributes {dimension_semantics = [#tpu.dimension_semantics<parallel>], iteration_bounds = array<i64: 2>, scalar_prefetch = 0 : i64, scratch_operands = 1 : i64, tpu.core_type = #tpu.core_type<tc>, window_params = [{transform_indices = @transform_0, window_bounds = array<i64: 1, 568, 128>}, {pipeline_mode = #tpu.pipeline_mode<synchronous>, transform_indices = @transform_1, window_bounds = array<i64: 1, 128>}, {pipeline_mode = #tpu.pipeline_mode<synchronous>, transform_indices = @transform_2, window_bounds = array<i64: 1, 128>}, {pipeline_mode = #tpu.pipeline_mode<synchronous>, transform_indices = @transform_3, window_bounds = array<i64: 568, 1>}, {pipeline_mode = #tpu.pipeline_mode<synchronous>, transform_indices = @transform_4, window_bounds = array<i64: 9, 128, 128>}, {pipeline_mode = #tpu.pipeline_mode<synchronous>, transform_indices = @transform_5, window_bounds = array<i64: 512, 1>}, {transform_indices = @transform_6, window_bounds = array<i64: 1, 512, 128>}, {transform_indices = @transform_7, window_bounds = array<i64: 1, 1, 128>}, {transform_indices = @transform_8, window_bounds = array<i64: 1, 1, 128>}]} {
    %c0 = arith.constant 0 : index
    %c0_0 = arith.constant 0 : index
    %c0_1 = arith.constant 0 : index
    %0 = vector.load %arg1[%c0, %c0_0, %c0_1] : memref<1x568x128xbf16, #tpu.memory_space<vmem>>, vector<1x568x128xbf16>
    %1 = vector.shape_cast %0 : vector<1x568x128xbf16> to vector<568x128xbf16>
    %2 = arith.extf %1 : vector<568x128xbf16> to vector<568x128xf32>
    %c0_2 = arith.constant 0 : index
    %c0_3 = arith.constant 0 : index
    %3 = vector.load %arg2[%c0_2, %c0_3] : memref<1x128xf32, #tpu.memory_space<vmem>>, vector<1x128xf32>
    %4 = vector.broadcast %3 : vector<1x128xf32> to vector<568x128xf32>
    %5 = arith.mulf %2, %4 : vector<568x128xf32>
    %c0_4 = arith.constant 0 : index
    %c0_5 = arith.constant 0 : index
    %6 = vector.load %arg3[%c0_4, %c0_5] : memref<1x128xf32, #tpu.memory_space<vmem>>, vector<1x128xf32>
    %7 = vector.broadcast %6 : vector<1x128xf32> to vector<568x128xf32>
    %8 = arith.addf %5, %7 : vector<568x128xf32>
    %cst = arith.constant 0.000000e+00 : f32
    %9 = vector.broadcast %cst : f32 to vector<568x128xf32>
    %10 = arith.maximumf %8, %9 : vector<568x128xf32>
    %c0_6 = arith.constant 0 : index
    %c0_7 = arith.constant 0 : index
    %11 = vector.load %arg4[%c0_6, %c0_7] : memref<568x1xf32, #tpu.memory_space<vmem>>, vector<568x1xf32>
    %12 = vector.broadcast %11 : vector<568x1xf32> to vector<568x128xf32>
    %13 = arith.mulf %10, %12 : vector<568x128xf32>
    %14 = arith.truncf %13 : vector<568x128xf32> to vector<568x128xbf16>
    %c0_8 = arith.constant 0 : index
    %c0_9 = arith.constant 0 : index
    %15 = vector.load %arg10[%c0_8, %c0_9] : memref<568x128xbf16, #tpu.memory_space<vmem>>, vector<568x128xbf16>
    tpu.vector_store %arg10[%c0_8, %c0_9], %14 {strides = array<i32>} : memref<568x128xbf16, #tpu.memory_space<vmem>>, vector<568x128xbf16>,
    %c0_10 = arith.constant 0 : index
    %c0_11 = arith.constant 0 : index
    %16 = vector.load %arg10[%c0_10, %c0_11] : memref<568x128xbf16, #tpu.memory_space<vmem>>, vector<512x128xbf16>
    %c0_12 = arith.constant 0 : index
    %c0_13 = arith.constant 0 : index
    %c0_14 = arith.constant 0 : index
    %17 = vector.load %arg5[%c0_12, %c0_13, %c0_14] : memref<9x128x128xbf16, #tpu.memory_space<vmem>>, vector<1x128x128xbf16>
    %18 = vector.shape_cast %17 : vector<1x128x128xbf16> to vector<128x128xbf16>
    %cst_15 = arith.constant dense<0.000000e+00> : vector<512x128xf32>
    %19 = tpu.matmul %16, %18, %cst_15 {dimension_numbers = #tpu.dot_dimension_numbers<[1], [0], [0], [1], [0, 0, 1, 1], [], []>} : vector<512x128xbf16>, vector<128x128xbf16>, vector<512x128xf32> -> vector<512x128xf32>
    %c1 = arith.constant 1 : index
    %c0_16 = arith.constant 0 : index
    %20 = vector.load %arg10[%c1, %c0_16] : memref<568x128xbf16, #tpu.memory_space<vmem>>, vector<512x128xbf16>
    %c1_17 = arith.constant 1 : index
    %c0_18 = arith.constant 0 : index
    %c0_19 = arith.constant 0 : index
    %21 = vector.load %arg5[%c1_17, %c0_18, %c0_19] : memref<9x128x128xbf16, #tpu.memory_space<vmem>>, vector<1x128x128xbf16>
    %22 = vector.shape_cast %21 : vector<1x128x128xbf16> to vector<128x128xbf16>
    %cst_20 = arith.constant dense<0.000000e+00> : vector<512x128xf32>
    %23 = tpu.matmul %20, %22, %cst_20 {dimension_numbers = #tpu.dot_dimension_numbers<[1], [0], [0], [1], [0, 0, 1, 1], [], []>} : vector<512x128xbf16>, vector<128x128xbf16>, vector<512x128xf32> -> vector<512x128xf32>
    %24 = arith.addf %19, %23 : vector<512x128xf32>
    %c2 = arith.constant 2 : index
    %c0_21 = arith.constant 0 : index
    %25 = vector.load %arg10[%c2, %c0_21] : memref<568x128xbf16, #tpu.memory_space<vmem>>, vector<512x128xbf16>
    %c2_22 = arith.constant 2 : index
    %c0_23 = arith.constant 0 : index
    %c0_24 = arith.constant 0 : index
    %26 = vector.load %arg5[%c2_22, %c0_23, %c0_24] : memref<9x128x128xbf16, #tpu.memory_space<vmem>>, vector<1x128x128xbf16>
    %27 = vector.shape_cast %26 : vector<1x128x128xbf16> to vector<128x128xbf16>
    %cst_25 = arith.constant dense<0.000000e+00> : vector<512x128xf32>
    %28 = tpu.matmul %25, %27, %cst_25 {dimension_numbers = #tpu.dot_dimension_numbers<[1], [0], [0], [1], [0, 0, 1, 1], [], []>} : vector<512x128xbf16>, vector<128x128xbf16>, vector<512x128xf32> -> vector<512x128xf32>
    %29 = arith.addf %24, %28 : vector<512x128xf32>
    %c24 = arith.constant 24 : index
    %c0_26 = arith.constant 0 : index
    %30 = vector.load %arg10[%c24, %c0_26] : memref<568x128xbf16, #tpu.memory_space<vmem>>, vector<512x128xbf16>
    %c3 = arith.constant 3 : index
    %c0_27 = arith.constant 0 : index
    %c0_28 = arith.constant 0 : index
    %31 = vector.load %arg5[%c3, %c0_27, %c0_28] : memref<9x128x128xbf16, #tpu.memory_space<vmem>>, vector<1x128x128xbf16>
    %32 = vector.shape_cast %31 : vector<1x128x128xbf16> to vector<128x128xbf16>
    %cst_29 = arith.constant dense<0.000000e+00> : vector<512x128xf32>
    %33 = tpu.matmul %30, %32, %cst_29 {dimension_numbers = #tpu.dot_dimension_numbers<[1], [0], [0], [1], [0, 0, 1, 1], [], []>} : vector<512x128xbf16>, vector<128x128xbf16>, vector<512x128xf32> -> vector<512x128xf32>
    %34 = arith.addf %29, %33 : vector<512x128xf32>
    %c25 = arith.constant 25 : index
    %c0_30 = arith.constant 0 : index
    %35 = vector.load %arg10[%c25, %c0_30] : memref<568x128xbf16, #tpu.memory_space<vmem>>, vector<512x128xbf16>
    %c4 = arith.constant 4 : index
    %c0_31 = arith.constant 0 : index
    %c0_32 = arith.constant 0 : index
    %36 = vector.load %arg5[%c4, %c0_31, %c0_32] : memref<9x128x128xbf16, #tpu.memory_space<vmem>>, vector<1x128x128xbf16>
    %37 = vector.shape_cast %36 : vector<1x128x128xbf16> to vector<128x128xbf16>
    %cst_33 = arith.constant dense<0.000000e+00> : vector<512x128xf32>
    %38 = tpu.matmul %35, %37, %cst_33 {dimension_numbers = #tpu.dot_dimension_numbers<[1], [0], [0], [1], [0, 0, 1, 1], [], []>} : vector<512x128xbf16>, vector<128x128xbf16>, vector<512x128xf32> -> vector<512x128xf32>
    %39 = arith.addf %34, %38 : vector<512x128xf32>
    %c26 = arith.constant 26 : index
    %c0_34 = arith.constant 0 : index
    %40 = vector.load %arg10[%c26, %c0_34] : memref<568x128xbf16, #tpu.memory_space<vmem>>, vector<512x128xbf16>
    %c5 = arith.constant 5 : index
    %c0_35 = arith.constant 0 : index
    %c0_36 = arith.constant 0 : index
    %41 = vector.load %arg5[%c5, %c0_35, %c0_36] : memref<9x128x128xbf16, #tpu.memory_space<vmem>>, vector<1x128x128xbf16>
    %42 = vector.shape_cast %41 : vector<1x128x128xbf16> to vector<128x128xbf16>
    %cst_37 = arith.constant dense<0.000000e+00> : vector<512x128xf32>
    %43 = tpu.matmul %40, %42, %cst_37 {dimension_numbers = #tpu.dot_dimension_numbers<[1], [0], [0], [1], [0, 0, 1, 1], [], []>} : vector<512x128xbf16>, vector<128x128xbf16>, vector<512x128xf32> -> vector<512x128xf32>
    %44 = arith.addf %39, %43 : vector<512x128xf32>
    %c48 = arith.constant 48 : index
    %c0_38 = arith.constant 0 : index
    %45 = vector.load %arg10[%c48, %c0_38] : memref<568x128xbf16, #tpu.memory_space<vmem>>, vector<512x128xbf16>
    %c6 = arith.constant 6 : index
    %c0_39 = arith.constant 0 : index
    %c0_40 = arith.constant 0 : index
    %46 = vector.load %arg5[%c6, %c0_39, %c0_40] : memref<9x128x128xbf16, #tpu.memory_space<vmem>>, vector<1x128x128xbf16>
    %47 = vector.shape_cast %46 : vector<1x128x128xbf16> to vector<128x128xbf16>
    %cst_41 = arith.constant dense<0.000000e+00> : vector<512x128xf32>
    %48 = tpu.matmul %45, %47, %cst_41 {dimension_numbers = #tpu.dot_dimension_numbers<[1], [0], [0], [1], [0, 0, 1, 1], [], []>} : vector<512x128xbf16>, vector<128x128xbf16>, vector<512x128xf32> -> vector<512x128xf32>
    %49 = arith.addf %44, %48 : vector<512x128xf32>
    %c49 = arith.constant 49 : index
    %c0_42 = arith.constant 0 : index
    %50 = vector.load %arg10[%c49, %c0_42] : memref<568x128xbf16, #tpu.memory_space<vmem>>, vector<512x128xbf16>
    %c7 = arith.constant 7 : index
    %c0_43 = arith.constant 0 : index
    %c0_44 = arith.constant 0 : index
    %51 = vector.load %arg5[%c7, %c0_43, %c0_44] : memref<9x128x128xbf16, #tpu.memory_space<vmem>>, vector<1x128x128xbf16>
    %52 = vector.shape_cast %51 : vector<1x128x128xbf16> to vector<128x128xbf16>
    %cst_45 = arith.constant dense<0.000000e+00> : vector<512x128xf32>
    %53 = tpu.matmul %50, %52, %cst_45 {dimension_numbers = #tpu.dot_dimension_numbers<[1], [0], [0], [1], [0, 0, 1, 1], [], []>} : vector<512x128xbf16>, vector<128x128xbf16>, vector<512x128xf32> -> vector<512x128xf32>
    %54 = arith.addf %49, %53 : vector<512x128xf32>
    %c50 = arith.constant 50 : index
    %c0_46 = arith.constant 0 : index
    %55 = vector.load %arg10[%c50, %c0_46] : memref<568x128xbf16, #tpu.memory_space<vmem>>, vector<512x128xbf16>
    %c8 = arith.constant 8 : index
    %c0_47 = arith.constant 0 : index
    %c0_48 = arith.constant 0 : index
    %56 = vector.load %arg5[%c8, %c0_47, %c0_48] : memref<9x128x128xbf16, #tpu.memory_space<vmem>>, vector<1x128x128xbf16>
    %57 = vector.shape_cast %56 : vector<1x128x128xbf16> to vector<128x128xbf16>
    %cst_49 = arith.constant dense<0.000000e+00> : vector<512x128xf32>
    %58 = tpu.matmul %55, %57, %cst_49 {dimension_numbers = #tpu.dot_dimension_numbers<[1], [0], [0], [1], [0, 0, 1, 1], [], []>} : vector<512x128xbf16>, vector<128x128xbf16>, vector<512x128xf32> -> vector<512x128xf32>
    %59 = arith.addf %54, %58 : vector<512x128xf32>
    %c0_50 = arith.constant 0 : index
    %c0_51 = arith.constant 0 : index
    %60 = vector.load %arg6[%c0_50, %c0_51] : memref<512x1xf32, #tpu.memory_space<vmem>>, vector<512x1xf32>
    %61 = vector.broadcast %60 : vector<512x1xf32> to vector<512x128xf32>
    %62 = arith.mulf %59, %61 : vector<512x128xf32>
    %cst_52 = arith.constant dense<0.000000e+00> : vector<128xf32>
    %63 = vector.multi_reduction <add>, %62, %cst_52 [0] : vector<512x128xf32> to vector<128xf32>
    %64 = vector.shape_cast %63 : vector<128xf32> to vector<1x128xf32>
    %c0_53 = arith.constant 0 : index
    %c0_54 = arith.constant 0 : index
    %c0_55 = arith.constant 0 : index
    %65 = vector.load %arg8[%c0_53, %c0_54, %c0_55] : memref<1x1x128xf32, #tpu.memory_space<vmem>>, vector<1x1x128xf32>
    %66 = vector.shape_cast %65 : vector<1x1x128xf32> to vector<1x128xf32>
    %67 = vector.shape_cast %64 : vector<1x128xf32> to vector<1x1x128xf32>
    tpu.vector_store %arg8[%c0_53, %c0_54, %c0_55], %67 {strides = array<i32>} : memref<1x1x128xf32, #tpu.memory_space<vmem>>, vector<1x1x128xf32>,
    %68 = arith.mulf %62, %59 : vector<512x128xf32>
    %cst_56 = arith.constant dense<0.000000e+00> : vector<128xf32>
    %69 = vector.multi_reduction <add>, %68, %cst_56 [0] : vector<512x128xf32> to vector<128xf32>
    %70 = vector.shape_cast %69 : vector<128xf32> to vector<1x128xf32>
    %c0_57 = arith.constant 0 : index
    %c0_58 = arith.constant 0 : index
    %c0_59 = arith.constant 0 : index
    %71 = vector.load %arg9[%c0_57, %c0_58, %c0_59] : memref<1x1x128xf32, #tpu.memory_space<vmem>>, vector<1x1x128xf32>
    %72 = vector.shape_cast %71 : vector<1x1x128xf32> to vector<1x128xf32>
    %73 = vector.shape_cast %70 : vector<1x128xf32> to vector<1x1x128xf32>
    tpu.vector_store %arg9[%c0_57, %c0_58, %c0_59], %73 {strides = array<i32>} : memref<1x1x128xf32, #tpu.memory_space<vmem>>, vector<1x1x128xf32>,
    %74 = arith.truncf %59 : vector<512x128xf32> to vector<512x128xbf16>
    %c0_60 = arith.constant 0 : index
    %c0_61 = arith.constant 0 : index
    %c0_62 = arith.constant 0 : index
    %75 = vector.load %arg7[%c0_60, %c0_61, %c0_62] : memref<1x512x128xbf16, #tpu.memory_space<vmem>>, vector<1x512x128xbf16>
    %76 = vector.shape_cast %75 : vector<1x512x128xbf16> to vector<512x128xbf16>
    %77 = vector.shape_cast %74 : vector<512x128xbf16> to vector<1x512x128xbf16>
    tpu.vector_store %arg7[%c0_60, %c0_61, %c0_62], %77 {strides = array<i32>} : memref<1x512x128xbf16, #tpu.memory_space<vmem>>, vector<1x512x128xbf16>,
    return
  }
  func.func @transform_0(%arg0: i32) -> (i32, i32, i32) {
    %c0_i32 = arith.constant 0 : i32
    %c0_i32_0 = arith.constant 0 : i32
    %c0_i32_1 = arith.constant 0 : i32
    return %arg0, %c0_i32, %c0_i32_0 : i32, i32, i32
  }
  func.func @transform_1(%arg0: i32) -> (i32, i32) {
    %c0_i32 = arith.constant 0 : i32
    %c0_i32_0 = arith.constant 0 : i32
    %c0_i32_1 = arith.constant 0 : i32
    return %c0_i32, %c0_i32_0 : i32, i32
  }
  func.func @transform_2(%arg0: i32) -> (i32, i32) {
    %c0_i32 = arith.constant 0 : i32
    %c0_i32_0 = arith.constant 0 : i32
    %c0_i32_1 = arith.constant 0 : i32
    return %c0_i32, %c0_i32_0 : i32, i32
  }
  func.func @transform_3(%arg0: i32) -> (i32, i32) {
    %c0_i32 = arith.constant 0 : i32
    %c0_i32_0 = arith.constant 0 : i32
    %c0_i32_1 = arith.constant 0 : i32
    return %c0_i32, %c0_i32_0 : i32, i32
  }
  func.func @transform_4(%arg0: i32) -> (i32, i32, i32) {
    %c0_i32 = arith.constant 0 : i32
    %c0_i32_0 = arith.constant 0 : i32
    %c0_i32_1 = arith.constant 0 : i32
    %c0_i32_2 = arith.constant 0 : i32
    return %c0_i32, %c0_i32_0, %c0_i32_1 : i32, i32, i32
  }
  func.func @transform_5(%arg0: i32) -> (i32, i32) {
    %c0_i32 = arith.constant 0 : i32
    %c0_i32_0 = arith.constant 0 : i32
    %c0_i32_1 = arith.constant 0 : i32
    return %c0_i32, %c0_i32_0 : i32, i32
  }
  func.func @transform_6(%arg0: i32) -> (i32, i32, i32) {
    %c0_i32 = arith.constant 0 : i32
    %c0_i32_0 = arith.constant 0 : i32
    %c0_i32_1 = arith.constant 0 : i32
    return %arg0, %c0_i32, %c0_i32_0 : i32, i32, i32
  }
  func.func @transform_7(%arg0: i32) -> (i32, i32, i32) {
    %c0_i32 = arith.constant 0 : i32
    %c0_i32_0 = arith.constant 0 : i32
    %c0_i32_1 = arith.constant 0 : i32
    return %arg0, %c0_i32, %c0_i32_0 : i32, i32, i32
  }
  func.func @transform_8(%arg0: i32) -> (i32, i32, i32) {
    %c0_i32 = arith.constant 0 : i32
    %c0_i32_0 = arith.constant 0 : i32
    %c0_i32_1 = arith.constant 0 : i32
    return %arg0, %c0_i32, %c0_i32_0 : i32, i32, i32
  }
}

module attributes {stable_mosaic.version = 11 : i64} {
  func.func @_bn_add_relu_kernel(%arg0: i32, %arg1: memref<1024x128xbf16, #tpu.memory_space<vmem>>, %arg2: memref<1x128xf32, #tpu.memory_space<vmem>>, %arg3: memref<1x128xf32, #tpu.memory_space<vmem>>, %arg4: memref<1024x128xbf16, #tpu.memory_space<vmem>>, %arg5: memref<1x128xf32, #tpu.memory_space<vmem>>, %arg6: memref<1x128xf32, #tpu.memory_space<vmem>>, %arg7: memref<1024x128xbf16, #tpu.memory_space<vmem>>) attributes {dimension_semantics = [#tpu.dimension_semantics<parallel>], iteration_bounds = array<i64: 1>, scalar_prefetch = 0 : i64, scratch_operands = 0 : i64, tpu.core_type = #tpu.core_type<tc>, window_params = [{transform_indices = @transform_0, window_bounds = array<i64: 1024, 128>}, {pipeline_mode = #tpu.pipeline_mode<synchronous>, transform_indices = @transform_1, window_bounds = array<i64: 1, 128>}, {pipeline_mode = #tpu.pipeline_mode<synchronous>, transform_indices = @transform_2, window_bounds = array<i64: 1, 128>}, {transform_indices = @transform_3, window_bounds = array<i64: 1024, 128>}, {pipeline_mode = #tpu.pipeline_mode<synchronous>, transform_indices = @transform_4, window_bounds = array<i64: 1, 128>}, {pipeline_mode = #tpu.pipeline_mode<synchronous>, transform_indices = @transform_5, window_bounds = array<i64: 1, 128>}, {transform_indices = @transform_6, window_bounds = array<i64: 1024, 128>}]} {
    %c0 = arith.constant 0 : index
    %c0_0 = arith.constant 0 : index
    %0 = vector.load %arg1[%c0, %c0_0] : memref<1024x128xbf16, #tpu.memory_space<vmem>>, vector<1024x128xbf16>
    %1 = arith.extf %0 : vector<1024x128xbf16> to vector<1024x128xf32>
    %c0_1 = arith.constant 0 : index
    %c0_2 = arith.constant 0 : index
    %2 = vector.load %arg2[%c0_1, %c0_2] : memref<1x128xf32, #tpu.memory_space<vmem>>, vector<1x128xf32>
    %3 = vector.broadcast %2 : vector<1x128xf32> to vector<1024x128xf32>
    %4 = arith.mulf %1, %3 : vector<1024x128xf32>
    %c0_3 = arith.constant 0 : index
    %c0_4 = arith.constant 0 : index
    %5 = vector.load %arg3[%c0_3, %c0_4] : memref<1x128xf32, #tpu.memory_space<vmem>>, vector<1x128xf32>
    %6 = vector.broadcast %5 : vector<1x128xf32> to vector<1024x128xf32>
    %7 = arith.addf %4, %6 : vector<1024x128xf32>
    %c0_5 = arith.constant 0 : index
    %c0_6 = arith.constant 0 : index
    %8 = vector.load %arg4[%c0_5, %c0_6] : memref<1024x128xbf16, #tpu.memory_space<vmem>>, vector<1024x128xbf16>
    %9 = arith.extf %8 : vector<1024x128xbf16> to vector<1024x128xf32>
    %c0_7 = arith.constant 0 : index
    %c0_8 = arith.constant 0 : index
    %10 = vector.load %arg5[%c0_7, %c0_8] : memref<1x128xf32, #tpu.memory_space<vmem>>, vector<1x128xf32>
    %11 = vector.broadcast %10 : vector<1x128xf32> to vector<1024x128xf32>
    %12 = arith.mulf %9, %11 : vector<1024x128xf32>
    %c0_9 = arith.constant 0 : index
    %c0_10 = arith.constant 0 : index
    %13 = vector.load %arg6[%c0_9, %c0_10] : memref<1x128xf32, #tpu.memory_space<vmem>>, vector<1x128xf32>
    %14 = vector.broadcast %13 : vector<1x128xf32> to vector<1024x128xf32>
    %15 = arith.addf %12, %14 : vector<1024x128xf32>
    %16 = arith.addf %7, %15 : vector<1024x128xf32>
    %cst = arith.constant 0.000000e+00 : f32
    %17 = vector.broadcast %cst : f32 to vector<1024x128xf32>
    %18 = arith.maximumf %16, %17 : vector<1024x128xf32>
    %19 = arith.truncf %18 : vector<1024x128xf32> to vector<1024x128xbf16>
    %c0_11 = arith.constant 0 : index
    %c0_12 = arith.constant 0 : index
    %20 = vector.load %arg7[%c0_11, %c0_12] : memref<1024x128xbf16, #tpu.memory_space<vmem>>, vector<1024x128xbf16>
    tpu.vector_store %arg7[%c0_11, %c0_12], %19 {strides = array<i32>} : memref<1024x128xbf16, #tpu.memory_space<vmem>>, vector<1024x128xbf16>,
    return
  }
  func.func @transform_0(%arg0: i32) -> (i32, i32) {
    %c0_i32 = arith.constant 0 : i32
    %c0_i32_0 = arith.constant 0 : i32
    return %arg0, %c0_i32 : i32, i32
  }
  func.func @transform_1(%arg0: i32) -> (i32, i32) {
    %c0_i32 = arith.constant 0 : i32
    %c0_i32_0 = arith.constant 0 : i32
    %c0_i32_1 = arith.constant 0 : i32
    return %c0_i32, %c0_i32_0 : i32, i32
  }
  func.func @transform_2(%arg0: i32) -> (i32, i32) {
    %c0_i32 = arith.constant 0 : i32
    %c0_i32_0 = arith.constant 0 : i32
    %c0_i32_1 = arith.constant 0 : i32
    return %c0_i32, %c0_i32_0 : i32, i32
  }
  func.func @transform_3(%arg0: i32) -> (i32, i32) {
    %c0_i32 = arith.constant 0 : i32
    %c0_i32_0 = arith.constant 0 : i32
    return %arg0, %c0_i32 : i32, i32
  }
  func.func @transform_4(%arg0: i32) -> (i32, i32) {
    %c0_i32 = arith.constant 0 : i32
    %c0_i32_0 = arith.constant 0 : i32
    %c0_i32_1 = arith.constant 0 : i32
    return %c0_i32, %c0_i32_0 : i32, i32
  }
  func.func @transform_5(%arg0: i32) -> (i32, i32) {
    %c0_i32 = arith.constant 0 : i32
    %c0_i32_0 = arith.constant 0 : i32
    %c0_i32_1 = arith.constant 0 : i32
    return %c0_i32, %c0_i32_0 : i32, i32
  }
  func.func @transform_6(%arg0: i32) -> (i32, i32) {
    %c0_i32 = arith.constant 0 : i32
    %c0_i32_0 = arith.constant 0 : i32
    return %arg0, %c0_i32 : i32, i32
  }
}

module attributes {stable_mosaic.version = 11 : i64} {
  func.func @_conv3s_fused_kernel(%arg0: i32, %arg1: memref<256x128xbf16, #tpu.memory_space<vmem>>, %arg2: memref<1x128xf32, #tpu.memory_space<vmem>>, %arg3: memref<1x128xf32, #tpu.memory_space<vmem>>, %arg4: memref<256x1xf32, #tpu.memory_space<vmem>>, %arg5: memref<128x128xbf16, #tpu.memory_space<vmem>>, %arg6: memref<256x128xbf16, #tpu.memory_space<vmem>>, %arg7: memref<128x128xbf16, #tpu.memory_space<vmem>>, %arg8: memref<256x128xbf16, #tpu.memory_space<vmem>>, %arg9: memref<256x128xbf16, #tpu.memory_space<vmem>>, %arg10: memref<1x1x128xf32, #tpu.memory_space<vmem>>, %arg11: memref<1x1x128xf32, #tpu.memory_space<vmem>>, %arg12: memref<1x1x128xf32, #tpu.memory_space<vmem>>, %arg13: memref<1x1x128xf32, #tpu.memory_space<vmem>>) attributes {dimension_semantics = [#tpu.dimension_semantics<parallel>], iteration_bounds = array<i64: 4>, scalar_prefetch = 0 : i64, scratch_operands = 0 : i64, tpu.core_type = #tpu.core_type<tc>, window_params = [{transform_indices = @transform_0, window_bounds = array<i64: 256, 128>}, {pipeline_mode = #tpu.pipeline_mode<synchronous>, transform_indices = @transform_1, window_bounds = array<i64: 1, 128>}, {pipeline_mode = #tpu.pipeline_mode<synchronous>, transform_indices = @transform_2, window_bounds = array<i64: 1, 128>}, {transform_indices = @transform_3, window_bounds = array<i64: 256, 1>}, {pipeline_mode = #tpu.pipeline_mode<synchronous>, transform_indices = @transform_4, window_bounds = array<i64: 128, 128>}, {transform_indices = @transform_5, window_bounds = array<i64: 256, 128>}, {pipeline_mode = #tpu.pipeline_mode<synchronous>, transform_indices = @transform_6, window_bounds = array<i64: 128, 128>}, {transform_indices = @transform_7, window_bounds = array<i64: 256, 128>}, {transform_indices = @transform_8, window_bounds = array<i64: 256, 128>}, {transform_indices = @transform_9, window_bounds = array<i64: 1, 1, 128>}, {transform_indices = @transform_10, window_bounds = array<i64: 1, 1, 128>}, {transform_indices = @transform_11, window_bounds = array<i64: 1, 1, 128>}, {transform_indices = @transform_12, window_bounds = array<i64: 1, 1, 128>}]} {
    %c0 = arith.constant 0 : index
    %c0_0 = arith.constant 0 : index
    %0 = vector.load %arg1[%c0, %c0_0] : memref<256x128xbf16, #tpu.memory_space<vmem>>, vector<256x128xbf16>
    %1 = arith.extf %0 : vector<256x128xbf16> to vector<256x128xf32>
    %c0_1 = arith.constant 0 : index
    %c0_2 = arith.constant 0 : index
    %2 = vector.load %arg2[%c0_1, %c0_2] : memref<1x128xf32, #tpu.memory_space<vmem>>, vector<1x128xf32>
    %3 = vector.broadcast %2 : vector<1x128xf32> to vector<256x128xf32>
    %4 = arith.mulf %1, %3 : vector<256x128xf32>
    %c0_3 = arith.constant 0 : index
    %c0_4 = arith.constant 0 : index
    %5 = vector.load %arg3[%c0_3, %c0_4] : memref<1x128xf32, #tpu.memory_space<vmem>>, vector<1x128xf32>
    %6 = vector.broadcast %5 : vector<1x128xf32> to vector<256x128xf32>
    %7 = arith.addf %4, %6 : vector<256x128xf32>
    %cst = arith.constant 0.000000e+00 : f32
    %8 = vector.broadcast %cst : f32 to vector<256x128xf32>
    %9 = arith.maximumf %7, %8 : vector<256x128xf32>
    %c0_5 = arith.constant 0 : index
    %c0_6 = arith.constant 0 : index
    %10 = vector.load %arg4[%c0_5, %c0_6] : memref<256x1xf32, #tpu.memory_space<vmem>>, vector<256x1xf32>
    %11 = vector.broadcast %10 : vector<256x1xf32> to vector<256x128xf32>
    %12 = arith.mulf %9, %11 : vector<256x128xf32>
    %13 = arith.truncf %12 : vector<256x128xf32> to vector<256x128xbf16>
    %c0_7 = arith.constant 0 : index
    %c0_8 = arith.constant 0 : index
    %14 = vector.load %arg5[%c0_7, %c0_8] : memref<128x128xbf16, #tpu.memory_space<vmem>>, vector<128x128xbf16>
    %cst_9 = arith.constant dense<0.000000e+00> : vector<256x128xf32>
    %15 = tpu.matmul %13, %14, %cst_9 {dimension_numbers = #tpu.dot_dimension_numbers<[1], [0], [0], [1], [0, 0, 1, 1], [], []>} : vector<256x128xbf16>, vector<128x128xbf16>, vector<256x128xf32> -> vector<256x128xf32>
    %c0_10 = arith.constant 0 : index
    %c0_11 = arith.constant 0 : index
    %16 = vector.load %arg6[%c0_10, %c0_11] : memref<256x128xbf16, #tpu.memory_space<vmem>>, vector<256x128xbf16>
    %c0_12 = arith.constant 0 : index
    %c0_13 = arith.constant 0 : index
    %17 = vector.load %arg7[%c0_12, %c0_13] : memref<128x128xbf16, #tpu.memory_space<vmem>>, vector<128x128xbf16>
    %cst_14 = arith.constant dense<0.000000e+00> : vector<256x128xf32>
    %18 = tpu.matmul %16, %17, %cst_14 {dimension_numbers = #tpu.dot_dimension_numbers<[1], [0], [0], [1], [0, 0, 1, 1], [], []>} : vector<256x128xbf16>, vector<128x128xbf16>, vector<256x128xf32> -> vector<256x128xf32>
    %cst_15 = arith.constant dense<0.000000e+00> : vector<128xf32>
    %19 = vector.multi_reduction <add>, %15, %cst_15 [0] : vector<256x128xf32> to vector<128xf32>
    %20 = vector.shape_cast %19 : vector<128xf32> to vector<1x128xf32>
    %c0_16 = arith.constant 0 : index
    %c0_17 = arith.constant 0 : index
    %c0_18 = arith.constant 0 : index
    %21 = vector.load %arg10[%c0_16, %c0_17, %c0_18] : memref<1x1x128xf32, #tpu.memory_space<vmem>>, vector<1x1x128xf32>
    %22 = vector.shape_cast %21 : vector<1x1x128xf32> to vector<1x128xf32>
    %23 = vector.shape_cast %20 : vector<1x128xf32> to vector<1x1x128xf32>
    tpu.vector_store %arg10[%c0_16, %c0_17, %c0_18], %23 {strides = array<i32>} : memref<1x1x128xf32, #tpu.memory_space<vmem>>, vector<1x1x128xf32>,
    %24 = arith.mulf %15, %15 : vector<256x128xf32>
    %cst_19 = arith.constant dense<0.000000e+00> : vector<128xf32>
    %25 = vector.multi_reduction <add>, %24, %cst_19 [0] : vector<256x128xf32> to vector<128xf32>
    %26 = vector.shape_cast %25 : vector<128xf32> to vector<1x128xf32>
    %c0_20 = arith.constant 0 : index
    %c0_21 = arith.constant 0 : index
    %c0_22 = arith.constant 0 : index
    %27 = vector.load %arg11[%c0_20, %c0_21, %c0_22] : memref<1x1x128xf32, #tpu.memory_space<vmem>>, vector<1x1x128xf32>
    %28 = vector.shape_cast %27 : vector<1x1x128xf32> to vector<1x128xf32>
    %29 = vector.shape_cast %26 : vector<1x128xf32> to vector<1x1x128xf32>
    tpu.vector_store %arg11[%c0_20, %c0_21, %c0_22], %29 {strides = array<i32>} : memref<1x1x128xf32, #tpu.memory_space<vmem>>, vector<1x1x128xf32>,
    %cst_23 = arith.constant dense<0.000000e+00> : vector<128xf32>
    %30 = vector.multi_reduction <add>, %18, %cst_23 [0] : vector<256x128xf32> to vector<128xf32>
    %31 = vector.shape_cast %30 : vector<128xf32> to vector<1x128xf32>
    %c0_24 = arith.constant 0 : index
    %c0_25 = arith.constant 0 : index
    %c0_26 = arith.constant 0 : index
    %32 = vector.load %arg12[%c0_24, %c0_25, %c0_26] : memref<1x1x128xf32, #tpu.memory_space<vmem>>, vector<1x1x128xf32>
    %33 = vector.shape_cast %32 : vector<1x1x128xf32> to vector<1x128xf32>
    %34 = vector.shape_cast %31 : vector<1x128xf32> to vector<1x1x128xf32>
    tpu.vector_store %arg12[%c0_24, %c0_25, %c0_26], %34 {strides = array<i32>} : memref<1x1x128xf32, #tpu.memory_space<vmem>>, vector<1x1x128xf32>,
    %35 = arith.mulf %18, %18 : vector<256x128xf32>
    %cst_27 = arith.constant dense<0.000000e+00> : vector<128xf32>
    %36 = vector.multi_reduction <add>, %35, %cst_27 [0] : vector<256x128xf32> to vector<128xf32>
    %37 = vector.shape_cast %36 : vector<128xf32> to vector<1x128xf32>
    %c0_28 = arith.constant 0 : index
    %c0_29 = arith.constant 0 : index
    %c0_30 = arith.constant 0 : index
    %38 = vector.load %arg13[%c0_28, %c0_29, %c0_30] : memref<1x1x128xf32, #tpu.memory_space<vmem>>, vector<1x1x128xf32>
    %39 = vector.shape_cast %38 : vector<1x1x128xf32> to vector<1x128xf32>
    %40 = vector.shape_cast %37 : vector<1x128xf32> to vector<1x1x128xf32>
    tpu.vector_store %arg13[%c0_28, %c0_29, %c0_30], %40 {strides = array<i32>} : memref<1x1x128xf32, #tpu.memory_space<vmem>>, vector<1x1x128xf32>,
    %41 = arith.truncf %15 : vector<256x128xf32> to vector<256x128xbf16>
    %c0_31 = arith.constant 0 : index
    %c0_32 = arith.constant 0 : index
    %42 = vector.load %arg8[%c0_31, %c0_32] : memref<256x128xbf16, #tpu.memory_space<vmem>>, vector<256x128xbf16>
    tpu.vector_store %arg8[%c0_31, %c0_32], %41 {strides = array<i32>} : memref<256x128xbf16, #tpu.memory_space<vmem>>, vector<256x128xbf16>,
    %43 = arith.truncf %18 : vector<256x128xf32> to vector<256x128xbf16>
    %c0_33 = arith.constant 0 : index
    %c0_34 = arith.constant 0 : index
    %44 = vector.load %arg9[%c0_33, %c0_34] : memref<256x128xbf16, #tpu.memory_space<vmem>>, vector<256x128xbf16>
    tpu.vector_store %arg9[%c0_33, %c0_34], %43 {strides = array<i32>} : memref<256x128xbf16, #tpu.memory_space<vmem>>, vector<256x128xbf16>,
    return
  }
  func.func @transform_0(%arg0: i32) -> (i32, i32) {
    %c0_i32 = arith.constant 0 : i32
    %c0_i32_0 = arith.constant 0 : i32
    return %arg0, %c0_i32 : i32, i32
  }
  func.func @transform_1(%arg0: i32) -> (i32, i32) {
    %c0_i32 = arith.constant 0 : i32
    %c0_i32_0 = arith.constant 0 : i32
    %c0_i32_1 = arith.constant 0 : i32
    return %c0_i32, %c0_i32_0 : i32, i32
  }
  func.func @transform_2(%arg0: i32) -> (i32, i32) {
    %c0_i32 = arith.constant 0 : i32
    %c0_i32_0 = arith.constant 0 : i32
    %c0_i32_1 = arith.constant 0 : i32
    return %c0_i32, %c0_i32_0 : i32, i32
  }
  func.func @transform_3(%arg0: i32) -> (i32, i32) {
    %c0_i32 = arith.constant 0 : i32
    %c0_i32_0 = arith.constant 0 : i32
    return %arg0, %c0_i32 : i32, i32
  }
  func.func @transform_4(%arg0: i32) -> (i32, i32) {
    %c0_i32 = arith.constant 0 : i32
    %c0_i32_0 = arith.constant 0 : i32
    %c0_i32_1 = arith.constant 0 : i32
    return %c0_i32, %c0_i32_0 : i32, i32
  }
  func.func @transform_5(%arg0: i32) -> (i32, i32) {
    %c0_i32 = arith.constant 0 : i32
    %c0_i32_0 = arith.constant 0 : i32
    return %arg0, %c0_i32 : i32, i32
  }
  func.func @transform_6(%arg0: i32) -> (i32, i32) {
    %c0_i32 = arith.constant 0 : i32
    %c0_i32_0 = arith.constant 0 : i32
    %c0_i32_1 = arith.constant 0 : i32
    return %c0_i32, %c0_i32_0 : i32, i32
  }
  func.func @transform_7(%arg0: i32) -> (i32, i32) {
    %c0_i32 = arith.constant 0 : i32
    %c0_i32_0 = arith.constant 0 : i32
    return %arg0, %c0_i32 : i32, i32
  }
  func.func @transform_8(%arg0: i32) -> (i32, i32) {
    %c0_i32 = arith.constant 0 : i32
    %c0_i32_0 = arith.constant 0 : i32
    return %arg0, %c0_i32 : i32, i32
  }
  func.func @transform_9(%arg0: i32) -> (i32, i32, i32) {
    %c0_i32 = arith.constant 0 : i32
    %c0_i32_0 = arith.constant 0 : i32
    %c0_i32_1 = arith.constant 0 : i32
    return %arg0, %c0_i32, %c0_i32_0 : i32, i32, i32
  }
  func.func @transform_10(%arg0: i32) -> (i32, i32, i32) {
    %c0_i32 = arith.constant 0 : i32
    %c0_i32_0 = arith.constant 0 : i32
    %c0_i32_1 = arith.constant 0 : i32
    return %arg0, %c0_i32, %c0_i32_0 : i32, i32, i32
  }
  func.func @transform_11(%arg0: i32) -> (i32, i32, i32) {
    %c0_i32 = arith.constant 0 : i32
    %c0_i32_0 = arith.constant 0 : i32
    %c0_i32_1 = arith.constant 0 : i32
    return %arg0, %c0_i32, %c0_i32_0 : i32, i32, i32
  }
  func.func @transform_12(%arg0: i32) -> (i32, i32, i32) {
    %c0_i32 = arith.constant 0 : i32
    %c0_i32_0 = arith.constant 0 : i32
    %c0_i32_1 = arith.constant 0 : i32
    return %arg0, %c0_i32, %c0_i32_0 : i32, i32, i32
  }
}

</mosaic_0001>

<bundles_post_ra>
// kernel: tpu_custom_call.1
= control target key start
LH: loop header
LB: loop body
LE: loop exit
PB: predicated region body
PF: predicated region fallthrough
CT: control target
= control target key end

     0   :  { %8 = vsyncpa [#allocation3], 0  ;;  %s742_s0 = inlined_call_operand.hbm [shape: f32[16,128], index: 0, kind: input, shape index: {}]   ;;  %s743_s1 = inlined_call_operand.hbm [shape: f32[8,128], index: 1, kind: input, shape index: {}]   ;;  %s744_s2 = inlined_call_operand.hbm [shape: f32[2,8,128], index: 2, kind: input, shape index: {}]   ;;  %s745_s3 = inlined_call_operand.hbm [shape: f32[16,128], index: 3, kind: output, shape index: {}]  }
   0x1   :  { %10 = vsyncpa [#allocation3 + $0x1], 0 }
   0x2   :  { %11 = vsyncpa [#allocation6], 0 }
   0x3   :  { %12 = vsyncpa [#allocation4], 0 }
   0x4   :  { %14 = vsyncpa [#allocation4 + $0x1], 0  ;;  %s601_s12 = smov 0   ;;  %s603_s13 = smov 0  }
   0x5   :  { %s605_s14 = smov 0   ;;  %s607_s15 = smov 0  }
   0x6 LB: > { %s622_s16 = sadd.s32 4294967295, %s575_s15   ;;  %s330_s17 = sadd.s32 4294967294, %s575_s15   ;;  %s575_s15 = sphi %s607_s15, %s755_s15   ;;  %s571_s14 = sphi %s605_s14, %s754_s14   ;;  %s567_s13 = sphi %s603_s13, %s753_s13   ;;  %s563_s12 = sphi %s601_s12, %s752_s12  }
   0x7   : > { %p40_p0 = scmp.ne.s32.totalorder %s567_s13, %s563_s12  ;;  %p41_p1 = scmp.eq.s32.totalorder %s622_s16, 0 }
   0x8   : > { %p106_p2 = scmp.eq.s32.totalorder %s622_s16, 1  ;;  %p112_p3 = scmp.eq.s32.totalorder %s330_s17, 1 }
   0x9   : > { %p631_p4 = por %p41_p1, %p40_p0  ;;  %p331_p5 = scmp.ge.s32.totalorder %s575_s15, 1 }
   0xa   : > { %p636_p6 = por %p112_p3, %p40_p0  ;;  %p119_p7 = scmp.lt.s32.totalorder %s575_s15, 3 }
   0xb   : > { %s131_s22 = sshll.u32 %s743_s1, 4  ;;  %s577_s24 = smov [#allocation5]   ;;  %s132_s22 = int_to_ptr.hbm [resolvable:$true] %s131_s22 }
   0xc   : > { %p644_p8 = pnand %p331_p5, %p119_p7  ;;  %s133_s25 = sshll.u32 %s577_s24, 4  ;;  %s134_s25 = int_to_ptr.vmem [resolvable:$true] %s133_s25 }
   0xd   : > { %s142_s28 = sshll.u32 %s744_s2, 4  ;;  %s578_s29 = smov [#allocation7]   ;;  %s143_s28 = int_to_ptr.hbm [resolvable:$true] %s142_s28 }
   0xe   : > { %p358_p10 = pneg %p644_p8  ;;  %s144_s30 = sshll.u32 %s578_s29, 4  ;;  %s145_s30 = int_to_ptr.vmem [resolvable:$true] %s144_s30 }
   0xf   : > { %s579_s4 = smov 128   ;;  %s580_s5 = smov 8  }
  0x10   : > { %p359_p11 = pnand %p358_p10, %p41_p1  ;;  %s657_s6 = sadd.s32 1, %s575_s15  }
  0x11   : > { %s24_s7 = ssub.s32 %s575_s15, %s657_s6  ;;  %s27_s8 = sadd.s32 1, %s571_s14 }
  0x12   : > { %361 = dma.hbm_to_vmem [thread:$0]  (!%p359_p11), %s132_s22, 128, %s134_s25, [#allocation6]  }
  0x13   : > { %364 = dma.hbm_to_vmem [thread:$0]  (!%p359_p11), %s143_s28, 256, %s145_s30, [#allocation6], %s579_s4, %s579_s4, %s580_s5  }
  0x14   : > { %p25_p12 = scmp.eq.s32.totalorder %s24_s7, 0  ;;  %p34_p13 = scmp.ne.s32.totalorder %s571_s14, %s567_s13 }
  0x15   : > { %p35_p0 = scmp.eq.s32.totalorder %s575_s15, 0  ;;  %p375_p7 = scmp.lt.s32.totalorder %s575_s15, 2 }
  0x16   : > { %s666_s9 = scalar_select %p25_p12, %s571_s14, %s27_s8  }
  0x17   : > { %p36_p3 = por %p35_p0, %p34_p13  ;;  %p670_p5 = por %p106_p2, %p34_p13 }
  0x18   : > { %s158_s11 = sand.u32 1, %s571_s14   ;;  %s336_s20 = sshll.u32 %s575_s15, 3 }
  0x19   : > { %s335_s17 = sshll.u32 %s158_s11, 3  ;;  %s166_s24 = scalar_lea.hbm %s742_s0, %s336_s20 }
  0x1a   : > { %s162_s25 = scalar_lea.vmem [#allocation2], %s335_s17  ;;  %s168_s27 = sshll.u32 %s166_s24, 4  ;;  %s169_s27 = int_to_ptr.hbm [resolvable:$true] %s168_s27 }
  0x1b   : > { %s170_s26 = sshll.u32 %s162_s25, 4  ;;  %p680_p10 = pnand %p375_p7, %p36_p3  ;;  %s171_s26 = int_to_ptr.vmem [resolvable:$true] %s170_s26 }
  0x1c   : > { %s159_s29 = scalar_lea.sflag [#allocation3], %s158_s11  ;;  %s475_s30 = sshra.s32 %s169_s27, 4  ;;  %s476_s30 = int_to_ptr.hbm [resolvable:$true] %s475_s30 }
  0x1d   : > { %s477_s4 = scalar_lea.hbm %s476_s30, 8  ;;  %p479_p11 = pneg %p680_p10 }
  0x1e   : > { %p478_p2 = scmp.ne.s32.totalorder %s476_s30, %s477_s4  ;;  %s482_s8 = scalar_lea.hbm %s742_s0, 16 }
  0x1f   : > { %p483_p0 = scmp.lt.s32.totalorder %s476_s30, %s742_s0  ;;  %p484_p3 = scmp.lt.s32.totalorder %s482_s8, %s477_s4 }
  0x20   : > { %p480_p12 = pnand %p479_p11, %p478_p2 }
  0x21   : > { %p485_p7 = por %p484_p3, %p483_p0 }
  0x22   : > { %p481_p13 = pneg %p480_p12 }
  0x24   : > { %p486_p9 = pnand %p485_p7, %p481_p13 }
  0x26   : > { %489 = shalt.err (!%p486_p9)
}
  0x27   : > { %368 = dma.hbm_to_vmem [thread:$0]  (!%p680_p10), %s169_s27, 128, %s171_s26, %s159_s29  }
  0x28   : > { %179 = sbr.rel (%p644_p8) target bundleno = 63 (0x3f), region = 32  ;;  %s697_s11 = sand.u32 (!%p644_p8), 1, %s567_s13  }
  0x29   : > { %s338_s21 = sshll.u32 (!%p644_p8), %s697_s11, 3  ;;  %s182_s22 = scalar_lea.sflag (!%p644_p8), [#allocation3], %s697_s11 }
  0x2a   : > { %s185_s24 = scalar_lea.vmem (!%p644_p8), [#allocation2], %s338_s21 }
  0x2d   : > { %550 = dma.done.wait (%p631_p4), %s182_s22, 128  }
  0x2e   : > { %552 = vsyncadd (%p631_p4), %s182_s22, 4294967168 }
  0x2f   : > { %554 = dma.done.wait (%p41_p1), [#allocation6], 384  }
  0x30   : > { %556 = vsyncadd (%p41_p1), [#allocation6], 4294966912  ;;  %s343_s23 = sshll.u32 %s622_s16, 3  ;;  %v219_v0 = vld [vmem:[%s185_s24] sm:$0xff]  ;;  %v220_v1 = vld [vmem:[#allocation5] sm:$0xff]  ;;  %s218_s28 = scalar_lea.vmem [#allocation8], %s338_s21 }
  0x31   : > { %s236_s27 = scalar_lea.hbm %s745_s3, %s343_s23  ;;  %v222_v2 = vld [vmem:[#allocation7] sm:$0xff]  ;;  %s238_s18 = sshll.u32 %s218_s28, 4  ;;  %v221_v3 = vadd.f32 %v220_v1, %v219_v0  ;;  %s239_s18 = int_to_ptr.vmem [resolvable:$true] %s238_s18 }
  0x32   : > { %s240_s29 = sshll.u32 %s236_s27, 4  ;;  %s226_s30 = scalar_lea.sflag [#allocation4], %s697_s11  ;;  %s241_s29 = int_to_ptr.hbm [resolvable:$true] %s240_s29 }
  0x33   : > { %v223_v4 = vadd.f32 %v222_v2, %v221_v3  ;;  %s519_s4 = sshra.s32 %s241_s29, 4  ;;  %s525_s8 = scalar_lea.hbm %s745_s3, 16  ;;  %s520_s4 = int_to_ptr.hbm [resolvable:$true] %s519_s4 }
  0x34   : > { %s521_s16 = scalar_lea.hbm %s520_s4, 8  ;;  %p526_p9 = scmp.lt.s32.totalorder %s520_s4, %s745_s3 }
  0x35   : > { %224 = vst [vmem:[%s218_s28] sm:$0xff] %v223_v4  ;;  %p522_p1 = scmp.ne.s32.totalorder %s520_s4, %s521_s16  ;;  %p527_p10 = scmp.lt.s32.totalorder %s525_s8, %s521_s16 }
  0x37   : > { %p523_p4 = pnand %p522_p1, %p670_p5  ;;  %p528_p2 = por %p527_p10, %p526_p9 }
  0x39   : > { %p524_p8 = pneg %p523_p4 }
  0x3b   : > { %p529_p11 = pnand %p528_p2, %p524_p8 }
  0x3d   : > { %532 = shalt.err (!%p529_p11)
}
  0x3e   : > { %356 = dma.vmem_to_hbm [thread:$0]  (%p670_p5), %s239_s18, 128, %s241_s29, %s226_s30  }
  0x3f PF: > { %s252_s11 = sand.u32 1, %s563_s12   ;;  %p751_p12 = scmp.ge.s32.totalorder %s575_s15, 2 }
  0x40   : > { %s253_s21 = scalar_lea.sflag [#allocation4], %s252_s11 }
  0x41   : > { %p370_p13 = pnand %p751_p12, %p636_p6 }
  0x43   : > { %p371_p0 = pneg %p370_p13 }
  0x45   : > { %558 = dma.done.wait (%p371_p0), %s253_s21, 128  }
  0x46   : > { %560 = vsyncadd (%p371_p0), %s253_s21, 4294967168  ;;  %p17_p3 = scmp.ge.s32.totalorder %s657_s6, 4   ;;  %s752_s12 = smov %s567_s13 }
  0x47   : > { %s753_s13 = smov %s571_s14  ;;  %s754_s14 = smov %s666_s9 }
  0x48   : > { %s755_s15 = smov %s657_s6  ;;  %19 = sbr.rel (!%p17_p3) target bundleno = 6 (0x6), region = 85 }
  0x4d   :  { %259 = vsyncpa [#allocation3], 1 }
  0x4e   :  { %261 = vsyncpa [#allocation3 + $0x1], 1 }
  0x4f   :  { %262 = vsyncpa [#allocation6], 1 }
  0x50   :  { %263 = vsyncpa [#allocation4], 1 }
  0x51   :  { %265 = vsyncpa [#allocation4 + $0x1], 1 }

// kernel: bottleneck_forward.4
= control target key start
LH: loop header
LB: loop body
LE: loop exit
PB: predicated region body
PF: predicated region fallthrough
CT: control target
= control target key end

     0   :  { %s1068_s15 = smov 0   ;;  %s1277_s0 = inlined_call_operand.vmem [shape: bf16[512,128], index: 0, kind: input, shape index: {}]   ;;  %s1278_s1 = inlined_call_operand.vmem [shape: bf16[128,128], index: 1, kind: input, shape index: {}]   ;;  %s1279_s2 = inlined_call_operand.vmem [shape: bf16[512,128], index: 2, kind: output, shape index: {0}]   ;;  %s1280_s3 = inlined_call_operand.vmem [shape: f32[2,1,128], index: 3, kind: output, shape index: {1}]   ;;  %s1281_s4 = inlined_call_operand.vmem [shape: f32[2,1,128], index: 4, kind: output, shape index: {2}]  }
   0x1 LB: > { %s1074_s16 = sadd.s32 4294967295, %s1041_s15   ;;  %p781_p0 = scmp.ge.s32.totalorder %s1041_s15, 1  ;;  %s1041_s15 = sphi %s1068_s15, %s15_s15  }
   0x2   : > { %p168_p1 = scmp.lt.s32.totalorder %s1041_s15, 3 }
   0x4   : > { %p169_p2 = pnand %p781_p0, %p168_p1 }
   0x5   : > { %s782_s25 = sshll.u32 (!%p169_p2), %s1074_s16, 5  ;;  %p212_p4 = scmp.lt.s32.totalorder (!%p169_p2), %s1074_s16, 1 }
   0x6   : > { %172 = sbr.rel (%p169_p2) target bundleno = 290 (0x122), region = 28  ;;  %p201_p3 = scmp.lt.s32.totalorder (!%p169_p2), %s782_s25, 63 }
   0xb   : > { %v907_v0 = vld [vmem:[%s1278_s1 + $0x38] sm:$0xff]  ;;  %v906_v1 = vld [vmem:[%s1278_s1 + $0x30] sm:$0xff]  ;;  %v905_v2 = vld [vmem:[%s1278_s1 + $0x28] sm:$0xff]  ;;  %s1283_s25 = smov (!%p201_p3, %s782_s25), 63  ;;  %s1285_s16 = smov (!%p212_p4, %s1074_s16), 1 }
   0xc   : > { %410 = vmatpush.bf16.msra.mxu0 %v907_v0  ;;  %1003 = vmatpush.bf16.msra.mxu1 %v907_v0  ;;  %v904_v3 = vld [vmem:[%s1278_s1 + $0x20] sm:$0xff]  ;;  %v903_v4 = vld [vmem:[%s1278_s1 + $0x18] sm:$0xff]  ;;  %v902_v5 = vld [vmem:[%s1278_s1 + $0x10] sm:$0xff]  ;;  %s783_s6 = sshll.u32 %s1283_s25, 2  ;;  %s214_s19 = scalar_lea.vmem %s1280_s3, %s1285_s16 }
   0xd   : > { %1004 = vmatpush.bf16.msra.mxu2 %v907_v0  ;;  %1005 = vmatpush.bf16.msra.mxu3 %v907_v0  ;;  %v901_v6 = vld [vmem:[%s1278_s1 + $0x8] sm:$0xff]  ;;  %v900_v7 = vld [vmem:[%s1278_s1] sm:$0xff]  ;;  %s1111_s11 = scalar_lea.vmem %s1277_s0, %s783_s6  ;;  %s1138_s14 = scalar_lea.vmem %s1279_s2, %s783_s6 }
   0xe   : > { %v884_v8 = vld [vmem:[%s1111_s11] sm:$0xff]  ;;  %v885_v12 = vld [vmem:[%s1111_s11 + $0x8] sm:$0xff]  ;;  %v886_v16 = vld [vmem:[%s1111_s11 + $0x10] sm:$0xff]  ;;  %s217_s22 = scalar_lea.vmem %s1281_s4, %s1285_s16 }
   0xf   : > { %v888_v9 = vld [vmem:[%s1111_s11 + $0x20] sm:$0xff]  ;;  %v889_v13 = vld [vmem:[%s1111_s11 + $0x28] sm:$0xff]  ;;  %v890_v17 = vld [vmem:[%s1111_s11 + $0x30] sm:$0xff] }
  0x10   : > { %411 = vmatpush.bf16.msra.mxu0 %v906_v1  ;;  %1006 = vmatpush.bf16.msra.mxu1 %v906_v1  ;;  %v892_v10 = vld [vmem:[%s1111_s11 + $0x40] sm:$0xff]  ;;  %v893_v14 = vld [vmem:[%s1111_s11 + $0x48] sm:$0xff]  ;;  %v894_v18 = vld [vmem:[%s1111_s11 + $0x50] sm:$0xff] }
  0x11   : > { %1007 = vmatpush.bf16.msra.mxu2 %v906_v1  ;;  %1008 = vmatpush.bf16.msra.mxu3 %v906_v1  ;;  %v896_v11 = vld [vmem:[%s1111_s11 + $0x60] sm:$0xff]  ;;  %v897_v15 = vld [vmem:[%s1111_s11 + $0x68] sm:$0xff]  ;;  %v898_v19 = vld [vmem:[%s1111_s11 + $0x70] sm:$0xff] }
  0x12   : > { %v887_v20 = vld [vmem:[%s1111_s11 + $0x18] sm:$0xff] }
  0x13   : > { %v891_v21 = vld [vmem:[%s1111_s11 + $0x38] sm:$0xff] }
  0x14   : > { %412 = vmatpush.bf16.msra.mxu0 %v905_v2  ;;  %1009 = vmatpush.bf16.msra.mxu1 %v905_v2  ;;  %v895_v22 = vld [vmem:[%s1111_s11 + $0x58] sm:$0xff] }
  0x15   : > { %1010 = vmatpush.bf16.msra.mxu2 %v905_v2  ;;  %1011 = vmatpush.bf16.msra.mxu3 %v905_v2  ;;  %v899_v23 = vld [vmem:[%s1111_s11 + $0x78] sm:$0xff] }
  0x18   : > { %413 = vmatpush.bf16.msra.mxu0 %v904_v3  ;;  %1012 = vmatpush.bf16.msra.mxu1 %v904_v3 }
  0x19   : > { %1013 = vmatpush.bf16.msra.mxu2 %v904_v3  ;;  %1014 = vmatpush.bf16.msra.mxu3 %v904_v3 }
  0x1c   : > { %414 = vmatpush.bf16.msra.mxu0 %v903_v4  ;;  %1015 = vmatpush.bf16.msra.mxu1 %v903_v4 }
  0x1d   : > { %1016 = vmatpush.bf16.msra.mxu2 %v903_v4  ;;  %1017 = vmatpush.bf16.msra.mxu3 %v903_v4 }
  0x20   : > { %415 = vmatpush.bf16.msra.mxu0 %v902_v5  ;;  %1018 = vmatpush.bf16.msra.mxu1 %v902_v5 }
  0x21   : > { %1019 = vmatpush.bf16.msra.mxu2 %v902_v5  ;;  %1020 = vmatpush.bf16.msra.mxu3 %v902_v5 }
  0x24   : > { %416 = vmatpush.bf16.msra.mxu0 %v901_v6  ;;  %1021 = vmatpush.bf16.msra.mxu1 %v901_v6 }
  0x25   : > { %1022 = vmatpush.bf16.msra.mxu2 %v901_v6  ;;  %1023 = vmatpush.bf16.msra.mxu3 %v901_v6 }
  0x28   : > { %417 = vmatpush.bf16.msra.mxu0 %v900_v7  ;;  %1024 = vmatpush.bf16.msra.mxu1 %v900_v7 }
  0x29   : > { %1025 = vmatpush.bf16.msra.mxu2 %v900_v7  ;;  %1026 = vmatpush.bf16.msra.mxu3 %v900_v7 }
  0x2b   : > { %418 = vmatmul.bf16.vlgmr.msra.gmra.mxu0 %v884_v8  ;;  %438 = vmatmul.bf16.vlgmr.msra.gmra.mxu1 %v888_v9 }
  0x2c   : > { %458 = vmatmul.bf16.vlgmr.msra.gmra.mxu2 %v892_v10  ;;  %478 = vmatmul.bf16.vlgmr.msra.gmra.mxu3 %v896_v11 }
  0x3b   : > { %423 = vmatmul.bf16.gmra.mxu0 %v885_v12  ;;  %443 = vmatmul.bf16.gmra.mxu1 %v889_v13 }
  0x3c   : > { %463 = vmatmul.bf16.gmra.mxu2 %v893_v14  ;;  %483 = vmatmul.bf16.gmra.mxu3 %v897_v15 }
  0x4b   : > { %428 = vmatmul.bf16.gmra.mxu0 %v886_v16  ;;  %448 = vmatmul.bf16.gmra.mxu1 %v890_v17 }
  0x4c   : > { %468 = vmatmul.bf16.gmra.mxu2 %v894_v18  ;;  %488 = vmatmul.bf16.gmra.mxu3 %v898_v19 }
  0x5b   : > { %433 = vmatmul.bf16.gmra.mxu0 %v887_v20  ;;  %453 = vmatmul.bf16.gmra.mxu1 %v891_v21 }
  0x5c   : > { %473 = vmatmul.bf16.gmra.mxu2 %v895_v22  ;;  %493 = vmatmul.bf16.gmra.mxu3 %v899_v23 }
  0xa8   : > { %v419_v24 = vpop.f32.mrf.mxu0  ;;  %v1129_v25 = vpop.f32.mrf.mxu1 }
  0xa9   : > { %v537_v57 = vmul.f32 %v419_v24, %v419_v24 }
  0xaf   : > { %v1131_v26 = vpop.f32.mrf.mxu2  ;;  %v1142_v30 = vpop.f32.mrf.mxu3 }
  0xb0   : > { %v421_v27 = vpop.f32.mrf.mxu0  ;;  %v1140_v28 = vpop.f32.mrf.mxu1 }
  0xb1   : > { %v911_v29 = vpack.c.bf16 %v421_v27, %v419_v24  ;;  %v931_v31 = vpack.c.bf16 %v1140_v28, %v1129_v25  ;;  %v538_v56 = vmul.f32 %v421_v27, %v421_v27  ;;  %v499_v58 = vadd.f32 %v421_v27, %v419_v24 }
  0xb2   : > { %v545_v27 = vmul.f32 %v1129_v25, %v1129_v25 }
  0xb3   : > { %912 = vst [vmem:[%s1138_s14] sm:$0xff] %v911_v29   ;;  %v569_v60 = vadd.f32 %v538_v56, %v537_v57 }
  0xb4   : > { %991 = vst [vmem:[%s1138_s14 + $0x20] sm:$0xff] %v931_v31  }
  0xb7   : > { %v1148_v32 = vpop.f32.mrf.mxu2  ;;  %v1154_v36 = vpop.f32.mrf.mxu3 }
  0xb8   : > { %v424_v33 = vpop.f32.mrf.mxu0  ;;  %v1150_v34 = vpop.f32.mrf.mxu1  ;;  %v951_v35 = vpack.c.bf16 %v1148_v32, %v1131_v26  ;;  %v971_v37 = vpack.c.bf16 %v1154_v36, %v1142_v30 }
  0xb9   : > { %v539_v59 = vmul.f32 %v424_v33, %v424_v33  ;;  %v500_v61 = vadd.f32 %v499_v58, %v424_v33 }
  0xba   : > { %995 = vst [vmem:[%s1138_s14 + $0x40] sm:$0xff] %v951_v35  }
  0xbb   : > { %999 = vst [vmem:[%s1138_s14 + $0x60] sm:$0xff] %v971_v37   ;;  %v570_v3 = vadd.f32 %v569_v60, %v539_v59 }
  0xbf   : > { %v1160_v38 = vpop.f32.mrf.mxu2  ;;  %v1164_v42 = vpop.f32.mrf.mxu3 }
  0xc0   : > { %v426_v39 = vpop.f32.mrf.mxu0  ;;  %v1162_v40 = vpop.f32.mrf.mxu1 }
  0xc1   : > { %v916_v41 = vpack.c.bf16 %v426_v39, %v424_v33  ;;  %v936_v43 = vpack.c.bf16 %v1162_v40, %v1150_v34  ;;  %v540_v62 = vmul.f32 %v426_v39, %v426_v39  ;;  %v501_v4 = vadd.f32 %v500_v61, %v426_v39 }
  0xc2   : > { %v546_v33 = vmul.f32 %v1140_v28, %v1140_v28  ;;  %v547_v39 = vmul.f32 %v1150_v34, %v1150_v34 }
  0xc3   : > { %988 = vst [vmem:[%s1138_s14 + $0x8] sm:$0xff] %v916_v41   ;;  %v571_v8 = vadd.f32 %v570_v3, %v540_v62  ;;  %v553_v3 = vmul.f32 %v1131_v26, %v1131_v26 }
  0xc4   : > { %992 = vst [vmem:[%s1138_s14 + $0x28] sm:$0xff] %v936_v43  }
  0xc7   : > { %v1170_v44 = vpop.f32.mrf.mxu2  ;;  %v1176_v48 = vpop.f32.mrf.mxu3 }
  0xc8   : > { %v429_v45 = vpop.f32.mrf.mxu0  ;;  %v1172_v46 = vpop.f32.mrf.mxu1  ;;  %v956_v47 = vpack.c.bf16 %v1170_v44, %v1160_v38  ;;  %v976_v49 = vpack.c.bf16 %v1176_v48, %v1164_v42 }
  0xc9   : > { %v541_v5 = vmul.f32 %v429_v45, %v429_v45  ;;  %v502_v9 = vadd.f32 %v501_v4, %v429_v45 }
  0xca   : > { %996 = vst [vmem:[%s1138_s14 + $0x48] sm:$0xff] %v956_v47  }
  0xcb   : > { %1000 = vst [vmem:[%s1138_s14 + $0x68] sm:$0xff] %v976_v49   ;;  %v572_v11 = vadd.f32 %v571_v8, %v541_v5  ;;  %v554_v5 = vmul.f32 %v1148_v32, %v1148_v32 }
  0xcf   : > { %v1182_v50 = vpop.f32.mrf.mxu2  ;;  %v1186_v54 = vpop.f32.mrf.mxu3 }
  0xd0   : > { %v431_v51 = vpop.f32.mrf.mxu0  ;;  %v1184_v52 = vpop.f32.mrf.mxu1 }
  0xd1   : > { %v921_v53 = vpack.c.bf16 %v431_v51, %v429_v45  ;;  %v941_v55 = vpack.c.bf16 %v1184_v52, %v1172_v46  ;;  %v542_v10 = vmul.f32 %v431_v51, %v431_v51  ;;  %v503_v12 = vadd.f32 %v502_v9, %v431_v51 }
  0xd3   : > { %989 = vst [vmem:[%s1138_s14 + $0x10] sm:$0xff] %v921_v53   ;;  %v573_v14 = vadd.f32 %v572_v11, %v542_v10  ;;  %v556_v10 = vmul.f32 %v1170_v44, %v1170_v44 }
  0xd4   : > { %993 = vst [vmem:[%s1138_s14 + $0x30] sm:$0xff] %v941_v55   ;;  %v549_v55 = vmul.f32 %v1172_v46, %v1172_v46 }
  0xd7   : > { %v1192_v63 = vpop.f32.mrf.mxu2  ;;  %v1196_v6 = vpop.f32.mrf.mxu3 }
  0xd8   : > { %v434_v0 = vpop.f32.mrf.mxu0  ;;  %v454_v1 = vpop.f32.mrf.mxu1  ;;  %v961_v2 = vpack.c.bf16 %v1192_v63, %v1182_v50  ;;  %v981_v7 = vpack.c.bf16 %v1196_v6, %v1186_v54 }
  0xd9   : > { %v543_v13 = vmul.f32 %v434_v0, %v434_v0  ;;  %v504_v15 = vadd.f32 %v503_v12, %v434_v0  ;;  %v551_v61 = vmul.f32 %v454_v1, %v454_v1 }
  0xda   : > { %997 = vst [vmem:[%s1138_s14 + $0x50] sm:$0xff] %v961_v2  }
  0xdb   : > { %1001 = vst [vmem:[%s1138_s14 + $0x70] sm:$0xff] %v981_v7   ;;  %v574_v19 = vadd.f32 %v573_v14, %v543_v13 }
  0xdf   : > { %v474_v16 = vpop.f32.mrf.mxu2  ;;  %v1202_v23 = vpop.f32.mrf.mxu3 }
  0xe0   : > { %v436_v17 = vpop.f32.mrf.mxu0  ;;  %v456_v18 = vpop.f32.mrf.mxu1 }
  0xe1   : > { %v505_v20 = vadd.f32 %v504_v15, %v436_v17  ;;  %v544_v21 = vmul.f32 %v436_v17, %v436_v17  ;;  %v926_v22 = vpack.c.bf16 %v436_v17, %v434_v0  ;;  %v946_v24 = vpack.c.bf16 %v456_v18, %v454_v1 }
  0xe2   : > { %v552_v2 = vmul.f32 %v456_v18, %v456_v18  ;;  %v558_v15 = vmul.f32 %v1192_v63, %v1192_v63 }
  0xe3   : > { %v506_v29 = vadd.f32 %v505_v20, %v1129_v25  ;;  %v575_v31 = vadd.f32 %v574_v19, %v544_v21  ;;  %990 = vst [vmem:[%s1138_s14 + $0x18] sm:$0xff] %v926_v22   ;;  %v548_v25 = vmul.f32 %v1162_v40, %v1162_v40  ;;  %v559_v19 = vmul.f32 %v474_v16, %v474_v16 }
  0xe4   : > { %994 = vst [vmem:[%s1138_s14 + $0x38] sm:$0xff] %v946_v24  }
  0xe5   : > { %v507_v35 = vadd.f32 %v506_v29, %v1140_v28  ;;  %v576_v37 = vadd.f32 %v575_v31, %v545_v27 }
  0xe7   : > { %v508_v41 = vadd.f32 %v507_v35, %v1150_v34  ;;  %v577_v43 = vadd.f32 %v576_v37, %v546_v33  ;;  %v476_v45 = vpop.f32.mrf.mxu2  ;;  %v496_v53 = vpop.f32.mrf.mxu3  ;;  %v550_v34 = vmul.f32 %v1184_v52, %v1184_v52  ;;  %v564_v35 = vmul.f32 %v1176_v48, %v1176_v48 }
  0xe8   : > { %v966_v47 = vpack.c.bf16 %v476_v45, %v474_v16  ;;  %v986_v28 = vpack.c.bf16 %v496_v53, %v1202_v23  ;;  %v560_v22 = vmul.f32 %v476_v45, %v476_v45 }
  0xe9   : > { %v578_v49 = vadd.f32 %v577_v43, %v547_v39  ;;  %v509_v51 = vadd.f32 %v508_v41, %v1162_v40  ;;  %v565_v39 = vmul.f32 %v1186_v54, %v1186_v54 }
  0xea   : > { %998 = vst [vmem:[%s1138_s14 + $0x58] sm:$0xff] %v966_v47  }
  0xeb   : > { %v510_v56 = vadd.f32 %v509_v51, %v1172_v46  ;;  %v579_v57 = vadd.f32 %v578_v49, %v548_v25  ;;  %1002 = vst [vmem:[%s1138_s14 + $0x78] sm:$0xff] %v986_v28   ;;  %v567_v49 = vmul.f32 %v1202_v23, %v1202_v23  ;;  %v568_v28 = vmul.f32 %v496_v53, %v496_v53 }
  0xed   : > { %v511_v58 = vadd.f32 %v510_v56, %v1184_v52  ;;  %v580_v59 = vadd.f32 %v579_v57, %v549_v55  ;;  %v555_v52 = vmul.f32 %v1160_v38, %v1160_v38 }
  0xef   : > { %v512_v60 = vadd.f32 %v511_v58, %v454_v1  ;;  %v581_v40 = vadd.f32 %v580_v59, %v550_v34 }
  0xf1   : > { %v582_v62 = vadd.f32 %v581_v40, %v551_v61  ;;  %v513_v0 = vadd.f32 %v512_v60, %v456_v18 }
  0xf3   : > { %v514_v4 = vadd.f32 %v513_v0, %v1131_v26  ;;  %v583_v46 = vadd.f32 %v582_v62, %v552_v2  ;;  %v557_v26 = vmul.f32 %v1182_v50, %v1182_v50 }
  0xf5   : > { %v515_v7 = vadd.f32 %v514_v4, %v1148_v32  ;;  %v584_v8 = vadd.f32 %v583_v46, %v553_v3 }
  0xf7   : > { %v516_v1 = vadd.f32 %v515_v7, %v1160_v38  ;;  %v585_v9 = vadd.f32 %v584_v8, %v554_v5 }
  0xf9   : > { %v586_v11 = vadd.f32 %v585_v9, %v555_v52  ;;  %v517_v12 = vadd.f32 %v516_v1, %v1170_v44  ;;  %v561_v44 = vmul.f32 %v1142_v30, %v1142_v30 }
  0xfb   : > { %v518_v13 = vadd.f32 %v517_v12, %v1182_v50  ;;  %v587_v14 = vadd.f32 %v586_v11, %v556_v10  ;;  %v562_v50 = vmul.f32 %v1154_v36, %v1154_v36 }
  0xfd   : > { %v519_v32 = vadd.f32 %v518_v13, %v1192_v63  ;;  %v588_v17 = vadd.f32 %v587_v14, %v557_v26  ;;  %v563_v63 = vmul.f32 %v1164_v42, %v1164_v42 }
  0xff   : > { %v589_v38 = vadd.f32 %v588_v17, %v558_v15  ;;  %v520_v18 = vadd.f32 %v519_v32, %v474_v16 }
 0x101   : > { %v590_v20 = vadd.f32 %v589_v38, %v559_v19  ;;  %v521_v21 = vadd.f32 %v520_v18, %v476_v45 }
 0x103   : > { %v522_v24 = vadd.f32 %v521_v21, %v1142_v30  ;;  %v591_v27 = vadd.f32 %v590_v20, %v560_v22 }
 0x105   : > { %v523_v29 = vadd.f32 %v522_v24, %v1154_v36  ;;  %v592_v31 = vadd.f32 %v591_v27, %v561_v44 }
 0x107   : > { %v524_v16 = vadd.f32 %v523_v29, %v1164_v42  ;;  %v593_v33 = vadd.f32 %v592_v31, %v562_v50  ;;  %v566_v42 = vmul.f32 %v1196_v6, %v1196_v6 }
 0x109   : > { %v594_v37 = vadd.f32 %v593_v33, %v563_v63  ;;  %v525_v30 = vadd.f32 %v524_v16, %v1176_v48 }
 0x10b   : > { %v526_v41 = vadd.f32 %v525_v30, %v1186_v54  ;;  %v595_v36 = vadd.f32 %v594_v37, %v564_v35 }
 0x10d   : > { %v527_v43 = vadd.f32 %v526_v41, %v1196_v6  ;;  %v596_v45 = vadd.f32 %v595_v36, %v565_v39 }
 0x10f   : > { %v597_v47 = vadd.f32 %v596_v45, %v566_v42  ;;  %v528_v25 = vadd.f32 %v527_v43, %v1202_v23 }
 0x111   : > { %v598_v48 = vadd.f32 %v597_v47, %v567_v49  ;;  %v529_v51 = vadd.f32 %v528_v25, %v496_v53 }
 0x113   : > { %v530_v55 = vrot.slane %v529_v51, 4  ;;  %v599_v56 = vadd.f32 %v598_v48, %v568_v28 }
 0x115   : > { %v531_v54 = vadd.f32 %v530_v55, %v529_v51  ;;  %v600_v57 = vrot.slane %v599_v56, 4 }
 0x117   : > { %v532_v34 = vrot.slane %v531_v54, 2  ;;  %v601_v58 = vadd.f32 %v600_v57, %v599_v56 }
 0x119   : > { %v533_v59 = vadd.f32 %v532_v34, %v531_v54  ;;  %v602_v6 = vrot.slane %v601_v58, 2 }
 0x11b   : > { %v534_v60 = vrot.slane %v533_v59, 1  ;;  %v603_v61 = vadd.f32 %v602_v6, %v601_v58 }
 0x11d   : > { %v535_v23 = vadd.f32 %v534_v60, %v533_v59  ;;  %v604_v40 = vrot.slane %v603_v61, 1 }
 0x11f   : > { %536 = vst [vmem:[%s214_s19] sm:$0x1] %v535_v23  ;;  %v605_v53 = vadd.f32 %v604_v40, %v603_v61 }
 0x121   : > { %606 = vst [vmem:[%s217_s22] sm:$0x1] %v605_v53 }
 0x122 PF: > { %s15_s15 = sadd.s32 1, %s1041_s15  }
 0x123   : > { %p12_p5 = scmp.ge.s32.totalorder %s15_s15, 4  }
 0x125   :  { %14 = sbr.rel (!%p12_p5) target bundleno = 1 (0x1), region = 82 }

// kernel: bottleneck_forward.6
= control target key start
LH: loop header
LB: loop body
LE: loop exit
PB: predicated region body
PF: predicated region fallthrough
CT: control target
= control target key end

     0   :  { %s2457_s21 = smov 0   ;;  %s2969_s0 = inlined_call_operand.vmem [shape: bf16[1024,128], index: 0, kind: input, shape index: {}]   ;;  %s2970_s1 = inlined_call_operand.vmem [shape: f32[1,128], index: 1, kind: input, shape index: {}]   ;;  %s2971_s2 = inlined_call_operand.vmem [shape: f32[1,128], index: 2, kind: input, shape index: {}]   ;;  %s2972_s3 = inlined_call_operand.vmem [shape: f32[1024,1], index: 3, kind: input, shape index: {}]   ;;  %s2973_s4 = inlined_call_operand.vmem [shape: bf16[128,128], index: 4, kind: input, shape index: {}]   ;;  %s2974_s5 = inlined_call_operand.vmem [shape: bf16[1024,128], index: 5, kind: input, shape index: {}]   ;;  %s2975_s6 = inlined_call_operand.vmem [shape: bf16[128,128], index: 6, kind: input, shape index: {}]   ;;  %s2976_s7 = inlined_call_operand.vmem [shape: bf16[1024,128], index: 7, kind: output, shape index: {0}]   ;;  %s2977_s8 = inlined_call_operand.vmem [shape: bf16[1024,128], index: 8, kind: output, shape index: {1}]   ;;  %s2978_s9 = inlined_call_operand.vmem [shape: f32[4,1,128], index: 9, kind: output, shape index: {2}]   ;;  %s2979_s10 = inlined_call_operand.vmem [shape: f32[4,1,128], index: 10, kind: output, shape index: {3}]   ;;  %s2980_s11 = inlined_call_operand.vmem [shape: f32[4,1,128], index: 11, kind: output, shape index: {4}]   ;;  %s2981_s12 = inlined_call_operand.vmem [shape: f32[4,1,128], index: 12, kind: output, shape index: {5}]  }
   0x1 LB: > { %s2463_s22 = sadd.s32 4294967295, %s2389_s21   ;;  %p1911_p0 = scmp.ge.s32.totalorder %s2389_s21, 1  ;;  %s2389_s21 = sphi %s2457_s21, %s23_s21  }
   0x2   : > { %p396_p1 = scmp.lt.s32.totalorder %s2389_s21, 5 }
   0x4   : > { %p397_p2 = pnand %p1911_p0, %p396_p1 }
   0x5   : > { %s1912_s25 = sshll.u32 (!%p397_p2), %s2463_s22, 5  ;;  %p495_p4 = scmp.lt.s32.totalorder (!%p397_p2), %s2463_s22, 3 }
   0x6   : > { %400 = sbr.rel (%p397_p2) target bundleno = 438 (0x1b6), region = 48  ;;  %p466_p3 = scmp.lt.s32.totalorder (!%p397_p2), %s1912_s25, 127 }
   0xb   : > { %v2083_v0 = vld [vmem:[%s2975_s6 + $0x38] sm:$0xff]  ;;  %v2391_v1 = vmov 0   ;;  %v2082_v2 = vld [vmem:[%s2975_s6 + $0x30] sm:$0xff]  ;;  %s2983_s25 = smov (!%p466_p3, %s1912_s25), 127  ;;  %v2081_v3 = vld [vmem:[%s2975_s6 + $0x28] sm:$0xff]  ;;  %s2985_s22 = smov (!%p495_p4, %s2463_s22), 3 }
   0xc   : > { %2380 = vset.pattern.permute.xlu2 %v2391_v1  ;;  %2379 = vset.pattern.permute.xlu1 %v2391_v1  ;;  %s1915_s28 = sshll.u32 %s2983_s25, 3  ;;  %v2080_v7 = vld [vmem:[%s2975_s6 + $0x20] sm:$0xff]  ;;  %v2079_v11 = vld [vmem:[%s2975_s6 + $0x18] sm:$0xff]  ;;  %v2078_v12 = vld [vmem:[%s2975_s6 + $0x10] sm:$0xff]  ;;  %s2507_s27 = sshll.u32 %s2983_s25, 2 }
   0xd   : > { %1260 = vmatpush.bf16.msra.mxu1 %v2083_v0  ;;  %2378 = vset.pattern.permute.xlu0 %v2391_v1  ;;  %s2480_s13 = scalar_lea.vmem %s2972_s3, %s1915_s28  ;;  %v2077_v16 = vld [vmem:[%s2975_s6 + $0x8] sm:$0xff]  ;;  %v2076_v17 = vld [vmem:[%s2975_s6] sm:$0xff]  ;;  %s2516_s15 = scalar_lea.vmem %s2974_s5, %s2507_s27  ;;  %v2059_v39 = vld [vmem:[%s2973_s4 + $0x38] sm:$0xff] }
   0xe   : > { %2361 = vmatpush.bf16.msra.mxu3 %v2083_v0  ;;  %v691_v4 = vld [vmem:[%s2480_s13 + $0x80] sm:$0xff]  ;;  %v677_v5 = vld [vmem:[%s2480_s13 + $0x10] sm:$0xff]  ;;  %v692_v8 = vld [vmem:[%s2480_s13 + $0x88] sm:$0xff]  ;;  %979 = vmatpush.bf16.msra.mxu0 %v2059_v39  ;;  %s2564_s29 = scalar_lea.vmem %s2969_s0, %s2507_s27  ;;  %s2640_s30 = scalar_lea.vmem %s2977_s8, %s2507_s27 }
   0xf   : > { %v675_v6 = vld [vmem:[%s2480_s13] sm:$0xff]  ;;  %789 = vperm.xlu2 %2380, %v691_v4   ;;  %719 = vperm.xlu1 %2379, %v677_v5   ;;  %v678_v9 = vld [vmem:[%s2480_s13 + $0x18] sm:$0xff]  ;;  %v676_v10 = vld [vmem:[%s2480_s13 + $0x8] sm:$0xff]  ;;  %s2781_s25 = scalar_lea.vmem %s2976_s7, %s2507_s27  ;;  %s506_s19 = scalar_lea.vmem %s2981_s12, %s2985_s22 }
  0x10   : > { %709 = vperm.xlu0 %2378, %v675_v6   ;;  %v693_v13 = vld [vmem:[%s2480_s13 + $0x90] sm:$0xff]  ;;  %v680_v14 = vld [vmem:[%s2480_s13 + $0x28] sm:$0xff]  ;;  %v679_v15 = vld [vmem:[%s2480_s13 + $0x20] sm:$0xff]  ;;  %2353 = vmatpush.bf16.msra.mxu2 %v2059_v39  ;;  %s497_s24 = scalar_lea.vmem %s2978_s9, %s2985_s22  ;;  %s500_s28 = scalar_lea.vmem %s2979_s10, %s2985_s22 }
  0x11   : > { %1261 = vmatpush.bf16.msra.mxu1 %v2082_v2  ;;  %v682_v18 = vld [vmem:[%s2480_s13 + $0x38] sm:$0xff]  ;;  %v681_v19 = vld [vmem:[%s2480_s13 + $0x30] sm:$0xff]  ;;  %v2060_v20 = vld [vmem:[%s2516_s15] sm:$0xff] }
  0x12   : > { %2362 = vmatpush.bf16.msra.mxu3 %v2082_v2  ;;  %v694_v21 = vld [vmem:[%s2480_s13 + $0x98] sm:$0xff]  ;;  %v2068_v22 = vld [vmem:[%s2516_s15 + $0x40] sm:$0xff]  ;;  %v696_v24 = vld [vmem:[%s2480_s13 + $0xa8] sm:$0xff] }
  0x13   : > { %v683_v23 = vld [vmem:[%s2480_s13 + $0x40] sm:$0xff]  ;;  %v698_v26 = vld [vmem:[%s2480_s13 + $0xb8] sm:$0xff]  ;;  %v697_v27 = vld [vmem:[%s2480_s13 + $0xb0] sm:$0xff] }
  0x14   : > { %v695_v25 = vld [vmem:[%s2480_s13 + $0xa0] sm:$0xff]  ;;  %v2061_v28 = vld [vmem:[%s2516_s15 + $0x8] sm:$0xff]  ;;  %v686_v32 = vld [vmem:[%s2480_s13 + $0x58] sm:$0xff] }
  0x15   : > { %1262 = vmatpush.bf16.msra.mxu1 %v2081_v3  ;;  %v684_v29 = vld [vmem:[%s2480_s13 + $0x48] sm:$0xff]  ;;  %v699_v31 = vld [vmem:[%s2480_s13 + $0xc0] sm:$0xff]  ;;  %v685_v33 = vld [vmem:[%s2480_s13 + $0x50] sm:$0xff] }
  0x16   : > { %2363 = vmatpush.bf16.msra.mxu3 %v2081_v3  ;;  %v2069_v30 = vld [vmem:[%s2516_s15 + $0x48] sm:$0xff]  ;;  %v687_v35 = vld [vmem:[%s2480_s13 + $0x60] sm:$0xff]  ;;  %v2062_v36 = vld [vmem:[%s2516_s15 + $0x10] sm:$0xff] }
  0x17   : > { %794 = vperm.xlu2 %2380, %v692_v8   ;;  %724 = vperm.xlu1 %2379, %v678_v9   ;;  %v688_v34 = vld [vmem:[%s2480_s13 + $0x68] sm:$0xff]  ;;  %v2070_v38 = vld [vmem:[%s2516_s15 + $0x50] sm:$0xff]  ;;  %v702_v41 = vld [vmem:[%s2480_s13 + $0xd8] sm:$0xff] }
  0x18   : > { %714 = vperm.xlu0 %2378, %v676_v10   ;;  %v700_v37 = vld [vmem:[%s2480_s13 + $0xc8] sm:$0xff]  ;;  %v689_v40 = vld [vmem:[%s2480_s13 + $0x70] sm:$0xff]  ;;  %v703_v45 = vld [vmem:[%s2480_s13 + $0xe0] sm:$0xff] }
  0x19   : > { %1263 = vmatpush.bf16.msra.mxu1 %v2080_v7  ;;  %v701_v42 = vld [vmem:[%s2480_s13 + $0xd0] sm:$0xff]  ;;  %v704_v44 = vld [vmem:[%s2480_s13 + $0xe8] sm:$0xff]  ;;  %v2063_v46 = vld [vmem:[%s2516_s15 + $0x18] sm:$0xff] }
  0x1a   : > { %2364 = vmatpush.bf16.msra.mxu3 %v2080_v7  ;;  %v2058_v43 = vld [vmem:[%s2973_s4 + $0x30] sm:$0xff]  ;;  %v690_v47 = vld [vmem:[%s2480_s13 + $0x78] sm:$0xff]  ;;  %v2057_v49 = vld [vmem:[%s2973_s4 + $0x28] sm:$0xff] }
  0x1b   : > { %980 = vmatpush.bf16.msra.mxu0 %v2058_v43  ;;  %2354 = vmatpush.bf16.msra.mxu2 %v2058_v43  ;;  %v2071_v48 = vld [vmem:[%s2516_s15 + $0x58] sm:$0xff]  ;;  %v2056_v50 = vld [vmem:[%s2973_s4 + $0x20] sm:$0xff]  ;;  %v705_v52 = vld [vmem:[%s2480_s13 + $0xf0] sm:$0xff] }
  0x1c   : > { %v706_v51 = vld [vmem:[%s2480_s13 + $0xf8] sm:$0xff]  ;;  %v2315_v53 = vld [vmem:[%s2564_s29 + $0x40] sm:$0xff]   ;;  %v2054_v58 = vld [vmem:[%s2973_s4 + $0x10] sm:$0xff]  ;;  %s503_s13 = scalar_lea.vmem %s2980_s11, %s2985_s22 }
  0x1d   : > { %1264 = vmatpush.bf16.msra.mxu1 %v2079_v11  ;;  %v2055_v54 = vld [vmem:[%s2973_s4 + $0x18] sm:$0xff]  ;;  %v2118_v55 = vunpack.c.l.bf16 %v2315_v53  ;;  %v2574_v56 = vld [vmem:[%s2970_s1] ss:$0 sm:$0xff]  ;;  %v2119_v57 = vunpack.c.h.bf16 %v2315_v53  ;;  %v2053_v62 = vld [vmem:[%s2973_s4 + $0x8] sm:$0xff] }
  0x1e   : > { %2365 = vmatpush.bf16.msra.mxu3 %v2079_v11  ;;  %v2064_v60 = vld [vmem:[%s2516_s15 + $0x20] sm:$0xff]  ;;  %v2065_v10 = vld [vmem:[%s2516_s15 + $0x28] sm:$0xff]  ;;  %v2317_v53 = vld [vmem:[%s2564_s29 + $0x50] sm:$0xff]  }
  0x1f   : > { %799 = vperm.xlu2 %2380, %v693_v13   ;;  %734 = vperm.xlu1 %2379, %v680_v14   ;;  %v591_v59 = vmul.f32 %v2574_v56, %v2118_v55  ;;  %v2072_v61 = vld [vmem:[%s2516_s15 + $0x60] sm:$0xff]  ;;  %v592_v0 = vmul.f32 %v2574_v56, %v2119_v57 }
  0x20   : > { %729 = vperm.xlu0 %2378, %v679_v15   ;;  %981 = vmatpush.bf16.msra.mxu0 %v2057_v49  ;;  %v2588_v63 = vld [vmem:[%s2971_s2] ss:$0 sm:$0xff] }
  0x21   : > { %1265 = vmatpush.bf16.msra.mxu1 %v2078_v12  ;;  %2355 = vmatpush.bf16.msra.mxu2 %v2057_v49  ;;  %v627_v1 = vadd.f32 %v2588_v63, %v591_v59  ;;  %v628_v3 = vadd.f32 %v2588_v63, %v592_v0  ;;  %v2052_v4 = vld [vmem:[%s2973_s4] sm:$0xff]  ;;  %v2126_v0 = vunpack.c.l.bf16 %v2317_v53 }
  0x22   : > { %2366 = vmatpush.bf16.msra.mxu3 %v2078_v12  ;;  %v2073_v12 = vld [vmem:[%s2516_s15 + $0x68] sm:$0xff]  ;;  %v2085_v13 = vld [vmem:[%s2564_s29] sm:$0xff]  }
  0x23   : > { %v659_v5 = vmax.f32 %v627_v1, 0.0  ;;  %v660_v6 = vmax.f32 %v628_v3, 0.0  ;;  %v2086_v14 = vunpack.c.l.bf16 %v2085_v13  ;;  %v2087_v15 = vunpack.c.h.bf16 %v2085_v13 }
  0x24   : > { %982 = vmatpush.bf16.msra.mxu0 %v2056_v50 }
  0x25   : > { %1266 = vmatpush.bf16.msra.mxu1 %v2077_v16  ;;  %2356 = vmatpush.bf16.msra.mxu2 %v2056_v50 }
  0x26   : > { %2367 = vmatpush.bf16.msra.mxu3 %v2077_v16  ;;  %v575_v16 = vmul.f32 %v2574_v56, %v2086_v14 }
  0x27   : > { %744 = vperm.xlu2 %2380, %v682_v18   ;;  %739 = vperm.xlu1 %2379, %v681_v19  }
  0x28   : > { %804 = vperm.xlu0 %2378, %v694_v21   ;;  %983 = vmatpush.bf16.msra.mxu0 %v2055_v54 }
  0x29   : > { %1267 = vmatpush.bf16.msra.mxu1 %v2076_v17  ;;  %2357 = vmatpush.bf16.msra.mxu2 %v2055_v54 }
  0x2a   : > { %2368 = vmatpush.bf16.msra.mxu3 %v2076_v17  ;;  %v576_v17 = vmul.f32 %v2574_v56, %v2087_v15  ;;  %v2310_v15 = vld [vmem:[%s2564_s29 + $0x18] sm:$0xff]  }
  0x2c   : > { %1268 = vmatmul.bf16.vlgmr.msra.gmra.mxu1 %v2060_v20  ;;  %984 = vmatpush.bf16.msra.mxu0 %v2054_v58  ;;  %v611_v20 = vadd.f32 %v2588_v63, %v575_v16  ;;  %v612_v21 = vadd.f32 %v2588_v63, %v576_v17 }
  0x2d   : > { %1308 = vmatmul.bf16.vlgmr.msra.gmra.mxu3 %v2068_v22  ;;  %2358 = vmatpush.bf16.msra.mxu2 %v2054_v58  ;;  %v2066_v22 = vld [vmem:[%s2516_s15 + $0x30] sm:$0xff] }
  0x2f   : > { %749 = vperm.xlu2 %2380, %v683_v23   ;;  %814 = vperm.xlu1 %2379, %v696_v24   ;;  %v2316_v23 = vld [vmem:[%s2564_s29 + $0x48] sm:$0xff]   ;;  %v2074_v24 = vld [vmem:[%s2516_s15 + $0x70] sm:$0xff] }
  0x30   : > { %809 = vperm.xlu0 %2378, %v695_v25   ;;  %985 = vmatpush.bf16.msra.mxu0 %v2053_v62  ;;  %v2308_v25 = vld [vmem:[%s2564_s29 + $0x8] sm:$0xff]  }
  0x31   : > { %2359 = vmatpush.bf16.msra.mxu2 %v2053_v62  ;;  %v2127_v62 = vunpack.c.h.bf16 %v2317_v53 }
  0x34   : > { %986 = vmatpush.bf16.msra.mxu0 %v2052_v4 }
  0x35   : > { %2360 = vmatpush.bf16.msra.mxu2 %v2052_v4 }
  0x37   : > { %824 = vperm.xlu2 %2380, %v698_v26   ;;  %819 = vperm.xlu1 %2379, %v697_v27   ;;  %v643_v26 = vmax.f32 %v611_v20, 0.0  ;;  %v644_v27 = vmax.f32 %v612_v21, 0.0 }
  0x38   : > { %754 = vperm.xlu0 %2378, %v684_v29   ;;  %v2090_v29 = vunpack.c.l.bf16 %v2308_v25 }
  0x3c   : > { %1273 = vmatmul.bf16.gmra.mxu1 %v2061_v28  ;;  %v2122_v28 = vunpack.c.l.bf16 %v2316_v23 }
  0x3d   : > { %1313 = vmatmul.bf16.gmra.mxu3 %v2069_v30 }
  0x3f   : > { %829 = vperm.xlu2 %2380, %v699_v31   ;;  %764 = vperm.xlu1 %2379, %v686_v32   ;;  %v2091_v31 = vunpack.c.h.bf16 %v2308_v25  ;;  %v2098_v25 = vunpack.c.l.bf16 %v2310_v15 }
  0x40   : > { %759 = vperm.xlu0 %2378, %v685_v33  }
  0x47   : > { %774 = vperm.xlu2 %2380, %v688_v34   ;;  %769 = vperm.xlu1 %2379, %v687_v35   ;;  %v2123_v35 = vunpack.c.h.bf16 %v2316_v23  ;;  %v2318_v23 = vld [vmem:[%s2564_s29 + $0x58] sm:$0xff]  }
  0x48   : > { %834 = vperm.xlu0 %2378, %v700_v37   ;;  %v577_v37 = vmul.f32 %v2574_v56, %v2090_v29 }
  0x4c   : > { %1278 = vmatmul.bf16.gmra.mxu1 %v2062_v36  ;;  %v593_v36 = vmul.f32 %v2574_v56, %v2122_v28 }
  0x4d   : > { %1318 = vmatmul.bf16.gmra.mxu3 %v2070_v38  ;;  %v578_v38 = vmul.f32 %v2574_v56, %v2091_v31  ;;  %v2131_v31 = vunpack.c.h.bf16 %v2318_v23 }
  0x4f   : > { %779 = vperm.xlu2 %2380, %v689_v40   ;;  %844 = vperm.xlu1 %2379, %v702_v41   ;;  %v594_v40 = vmul.f32 %v2574_v56, %v2123_v35  ;;  %v629_v41 = vadd.f32 %v2588_v63, %v593_v36  ;;  %v614_v43 = vadd.f32 %v2588_v63, %v578_v38 }
  0x50   : > { %839 = vperm.xlu0 %2378, %v701_v42   ;;  %v613_v42 = vadd.f32 %v2588_v63, %v577_v37  ;;  %v581_v35 = vmul.f32 %v2574_v56, %v2098_v25 }
  0x51   : > { %v646_v50 = vmax.f32 %v614_v43, 0.0  ;;  %v598_v43 = vmul.f32 %v2574_v56, %v2131_v31  ;;  %v2312_v31 = vld [vmem:[%s2564_s29 + $0x28] sm:$0xff]  }
  0x52   : > { %v645_v49 = vmax.f32 %v613_v42, 0.0 }
  0x57   : > { %854 = vperm.xlu2 %2380, %v704_v44   ;;  %849 = vperm.xlu1 %2379, %v703_v45  }
  0x58   : > { %784 = vperm.xlu0 %2378, %v690_v47   ;;  %v661_v47 = vmax.f32 %v629_v41, 0.0 }
  0x5c   : > { %1283 = vmatmul.bf16.gmra.mxu1 %v2063_v46  ;;  %v630_v46 = vadd.f32 %v2588_v63, %v594_v40 }
  0x5d   : > { %1323 = vmatmul.bf16.gmra.mxu3 %v2071_v48  ;;  %v2067_v48 = vld [vmem:[%s2516_s15 + $0x38] sm:$0xff] }
  0x5e   : > { %v662_v55 = vmax.f32 %v630_v46, 0.0 }
  0x5f   : > { %864 = vperm.xlu1 %2379, %v706_v51   ;;  %v2309_v51 = vld [vmem:[%s2564_s29 + $0x10] sm:$0xff]  }
  0x60   : > { %859 = vperm.xlu0 %2378, %v705_v52   ;;  %v2075_v52 = vld [vmem:[%s2516_s15 + $0x78] sm:$0xff]  ;;  %v2095_v58 = vunpack.c.h.bf16 %v2309_v51  ;;  %v2094_v59 = vunpack.c.l.bf16 %v2309_v51 }
  0x62   : > { %v580_v3 = vmul.f32 %v2574_v56, %v2095_v58  ;;  %v579_v4 = vmul.f32 %v2574_v56, %v2094_v59 }
  0x69   : > { %v790_v2 = vpop.permute.xlu2 %789 }
  0x6a   : > { %v883_v7 = vmul.f32 %v790_v2, %v659_v5 }
  0x6c   : > { %1288 = vmatmul.bf16.gmra.mxu1 %v2064_v60 }
  0x6d   : > { %1328 = vmatmul.bf16.gmra.mxu3 %v2072_v61 }
  0x71   : > { %v795_v8 = vpop.permute.xlu2 %794 }
  0x72   : > { %v884_v9 = vmul.f32 %v795_v8, %v660_v6  ;;  %v596_v8 = vmul.f32 %v2574_v56, %v2127_v62 }
  0x74   : > { %v907_v11 = vpack.c.bf16 %v884_v9, %v883_v7  ;;  %v595_v9 = vmul.f32 %v2574_v56, %v2126_v0  ;;  %v2311_v0 = vld [vmem:[%s2564_s29 + $0x20] sm:$0xff]  }
  0x76   : > { %1027 = vmatmul.bf16.vlgmr.msra.gmra.mxu2 %v907_v11  ;;  %v615_v11 = vadd.f32 %v2588_v63, %v579_v4  ;;  %v631_v13 = vadd.f32 %v2588_v63, %v595_v9  ;;  %v2102_v9 = vunpack.c.l.bf16 %v2311_v0 }
  0x78   : > { %v647_v17 = vmax.f32 %v615_v11, 0.0 }
  0x79   : > { %v800_v54 = vpop.permute.xlu2 %799 }
  0x7a   : > { %v885_v57 = vmul.f32 %v800_v54, %v661_v47  ;;  %v617_v47 = vadd.f32 %v2588_v63, %v581_v35 }
  0x7c   : > { %1293 = vmatmul.bf16.gmra.mxu1 %v2065_v10  ;;  %v616_v10 = vadd.f32 %v2588_v63, %v580_v3  ;;  %v649_v53 = vmax.f32 %v617_v47, 0.0 }
  0x7d   : > { %1333 = vmatmul.bf16.gmra.mxu3 %v2073_v12  ;;  %v632_v12 = vadd.f32 %v2588_v63, %v596_v8 }
  0x7e   : > { %v648_v16 = vmax.f32 %v616_v10, 0.0 }
  0x81   : > { %v720_v18 = vpop.permute.xlu1 %719  ;;  %v745_v14 = vpop.permute.xlu2 %744 }
  0x82   : > { %v710_v19 = vpop.permute.xlu0 %709  ;;  %v869_v60 = vmul.f32 %v720_v18, %v645_v49  ;;  %v664_v18 = vmax.f32 %v632_v12, 0.0 }
  0x83   : > { %v867_v33 = vmul.f32 %v710_v19, %v643_v26  ;;  %v663_v19 = vmax.f32 %v631_v13, 0.0  ;;  %v2130_v26 = vunpack.c.l.bf16 %v2318_v23 }
  0x85   : > { %v597_v36 = vmul.f32 %v2574_v56, %v2130_v26 }
  0x89   : > { %v725_v30 = vpop.permute.xlu1 %724 }
  0x8a   : > { %v715_v32 = vpop.permute.xlu0 %714  ;;  %v870_v61 = vmul.f32 %v725_v30, %v646_v50  ;;  %v634_v50 = vadd.f32 %v2588_v63, %v598_v43  ;;  %v2106_v43 = vunpack.c.l.bf16 %v2312_v31 }
  0x8b   : > { %v868_v34 = vmul.f32 %v715_v32, %v644_v27 }
  0x8c   : > { %1298 = vmatmul.bf16.gmra.mxu1 %v2066_v22  ;;  %v900_v6 = vpack.c.bf16 %v870_v61, %v869_v60  ;;  %v666_v61 = vmax.f32 %v634_v50, 0.0 }
  0x8d   : > { %1338 = vmatmul.bf16.gmra.mxu3 %v2074_v24  ;;  %v899_v39 = vpack.c.bf16 %v868_v34, %v867_v33  ;;  %v2099_v24 = vunpack.c.h.bf16 %v2310_v15 }
  0x8f   : > { %987 = vmatmul.bf16.vlgmr.msra.gmra.mxu0 %v899_v39  ;;  %v582_v32 = vmul.f32 %v2574_v56, %v2099_v24 }
  0x91   : > { %v735_v44 = vpop.permute.xlu1 %734 }
  0x92   : > { %v730_v45 = vpop.permute.xlu0 %729  ;;  %v872_v27 = vmul.f32 %v735_v44, %v648_v16  ;;  %v618_v44 = vadd.f32 %v2588_v63, %v582_v32 }
  0x93   : > { %v871_v28 = vmul.f32 %v730_v45, %v647_v17  ;;  %v2644_v45 = vpop.permute.xlu2 %749 }
  0x94   : > { %v650_v51 = vmax.f32 %v618_v44, 0.0 }
  0x95   : > { %v901_v37 = vpack.c.bf16 %v872_v27, %v871_v28 }
  0x96   : > { %v874_v62 = vmul.f32 %v745_v14, %v650_v51 }
  0x99   : > { %v2621_v5 = vpop.permute.xlu1 %739 }
  0x9a   : > { %v805_v1 = vpop.permute.xlu0 %804  ;;  %v873_v3 = vmul.f32 %v2621_v5, %v649_v53 }
  0x9b   : > { %v886_v2 = vmul.f32 %v805_v1, %v662_v55  ;;  %v2319_v1 = vld [vmem:[%s2564_s29 + $0x60] sm:$0xff]   ;;  %v825_v8 = vpop.permute.xlu2 %824 }
  0x9c   : > { %1303 = vmatmul.bf16.gmra.mxu1 %v2067_v48  ;;  %v633_v48 = vadd.f32 %v2588_v63, %v597_v36  ;;  %v890_v10 = vmul.f32 %v825_v8, %v666_v61  ;;  %v2134_v11 = vunpack.c.l.bf16 %v2319_v1  ;;  %v902_v16 = vpack.c.bf16 %v874_v62, %v873_v3 }
  0x9d   : > { %1343 = vmatmul.bf16.gmra.mxu3 %v2075_v52  ;;  %v908_v7 = vpack.c.bf16 %v886_v2, %v885_v57 }
  0x9e   : > { %v665_v54 = vmax.f32 %v633_v48, 0.0 }
  0x9f   : > { %992 = vmatmul.bf16.gmra.mxu0 %v900_v6  ;;  %1032 = vmatmul.bf16.gmra.mxu2 %v908_v7  ;;  %v2103_v6 = vunpack.c.h.bf16 %v2311_v0  ;;  %v2135_v7 = vunpack.c.h.bf16 %v2319_v1 }
  0xa1   : > { %v815_v21 = vpop.permute.xlu1 %814  ;;  %v584_v15 = vmul.f32 %v2574_v56, %v2103_v6  ;;  %v600_v14 = vmul.f32 %v2574_v56, %v2135_v7 }
  0xa2   : > { %v810_v22 = vpop.permute.xlu0 %809  ;;  %v888_v29 = vmul.f32 %v815_v21, %v664_v18  ;;  %v583_v21 = vmul.f32 %v2574_v56, %v2102_v9 }
  0xa3   : > { %v887_v30 = vmul.f32 %v810_v22, %v663_v19  ;;  %v599_v22 = vmul.f32 %v2574_v56, %v2134_v11  ;;  %v620_v24 = vadd.f32 %v2588_v63, %v584_v15  ;;  %v636_v25 = vadd.f32 %v2588_v63, %v600_v14  ;;  %v830_v51 = vpop.permute.xlu2 %829 }
  0xa4   : > { %v619_v27 = vadd.f32 %v2588_v63, %v583_v21 }
  0xa5   : > { %v909_v38 = vpack.c.bf16 %v888_v29, %v887_v30  ;;  %v635_v28 = vadd.f32 %v2588_v63, %v599_v22  ;;  %v652_v30 = vmax.f32 %v620_v24, 0.0  ;;  %v668_v32 = vmax.f32 %v636_v25, 0.0 }
  0xa9   : > { %v1269_v20 = vpop.f32.mrf.mxu1  ;;  %v820_v58 = vpop.permute.xlu1 %819 }
  0xaa   : > { %v1495_v33 = vmul.f32 %v1269_v20, %v1269_v20  ;;  %v755_v49 = vpop.permute.xlu0 %754  ;;  %v889_v4 = vmul.f32 %v820_v58, %v665_v54 }
  0xab   : > { %v775_v6 = vpop.permute.xlu2 %774 }
  0xac   : > { %v910_v17 = vpack.c.bf16 %v890_v10, %v889_v4 }
  0xaf   : > { %997 = vmatmul.bf16.gmra.mxu0 %v901_v37  ;;  %1037 = vmatmul.bf16.gmra.mxu2 %v909_v38  ;;  %v2320_v37 = vld [vmem:[%s2564_s29 + $0x68] sm:$0xff]  }
  0xb0   : > { %v2632_v34 = vpop.f32.mrf.mxu3  ;;  %v2139_v48 = vunpack.c.h.bf16 %v2320_v37  ;;  %v2138_v50 = vunpack.c.l.bf16 %v2320_v37 }
  0xb1   : > { %v1271_v39 = vpop.f32.mrf.mxu1  ;;  %v765_v26 = vpop.permute.xlu1 %764 }
  0xb2   : > { %v1457_v40 = vadd.f32 %v1271_v39, %v1269_v20  ;;  %v1496_v41 = vmul.f32 %v1271_v39, %v1271_v39  ;;  %v2231_v42 = vpack.c.bf16 %v1271_v39, %v1269_v20  ;;  %v2658_v12 = vpop.permute.xlu0 %759 }
  0xb4   : > { %v1527_v46 = vadd.f32 %v1496_v41, %v1495_v33  ;;  %2232 = vst [vmem:[%s2640_s30] sm:$0xff] %v2231_v42   ;;  %v667_v41 = vmax.f32 %v635_v28, 0.0  ;;  %v2107_v42 = vunpack.c.h.bf16 %v2312_v31 }
  0xb6   : > { %v891_v54 = vmul.f32 %v830_v51, %v667_v41 }
  0xb8   : > { %v2650_v52 = vpop.f32.mrf.mxu3 }
  0xb9   : > { %v1274_v55 = vpop.f32.mrf.mxu1  ;;  %v2271_v57 = vpack.c.bf16 %v2650_v52, %v2632_v34  ;;  %v2685_v58 = vpop.permute.xlu1 %769 }
  0xba   : > { %v1458_v59 = vadd.f32 %v1457_v40, %v1274_v55  ;;  %v1497_v60 = vmul.f32 %v1274_v55, %v1274_v55  ;;  %v835_v36 = vpop.permute.xlu0 %834  ;;  %v651_v40 = vmax.f32 %v619_v27, 0.0 }
  0xbb   : > { %2345 = vst [vmem:[%s2640_s30 + $0x40] sm:$0xff] %v2271_v57   ;;  %v892_v47 = vmul.f32 %v835_v36, %v668_v32  ;;  %v585_v57 = vmul.f32 %v2574_v56, %v2106_v43  ;;  %v2715_v36 = vpop.permute.xlu2 %779 }
  0xbc   : > { %v1528_v2 = vadd.f32 %v1527_v46, %v1497_v60  ;;  %v876_v46 = vmul.f32 %v755_v49, %v652_v30  ;;  %v875_v53 = vmul.f32 %v2644_v45, %v651_v40  ;;  %v602_v60 = vmul.f32 %v2574_v56, %v2139_v48 }
  0xbd   : > { %v601_v49 = vmul.f32 %v2574_v56, %v2138_v50  ;;  %v911_v62 = vpack.c.bf16 %v892_v47, %v891_v54 }
  0xbe   : > { %v903_v61 = vpack.c.bf16 %v876_v46, %v875_v53  ;;  %v638_v3 = vadd.f32 %v2588_v63, %v602_v60  ;;  %v2322_v53 = vld [vmem:[%s2564_s29 + $0x78] sm:$0xff]  }
  0xbf   : > { %1002 = vmatmul.bf16.gmra.mxu0 %v902_v16  ;;  %1042 = vmatmul.bf16.gmra.mxu2 %v910_v17  ;;  %v637_v4 = vadd.f32 %v2588_v63, %v601_v49 }
  0xc0   : > { %v2660_v13 = vpop.f32.mrf.mxu3  ;;  %v670_v10 = vmax.f32 %v638_v3, 0.0 }
  0xc1   : > { %v1276_v18 = vpop.f32.mrf.mxu1  ;;  %v669_v11 = vmax.f32 %v637_v4, 0.0  ;;  %v845_v16 = vpop.permute.xlu1 %844 }
  0xc2   : > { %v1459_v5 = vadd.f32 %v1458_v59, %v1276_v18  ;;  %v1498_v19 = vmul.f32 %v1276_v18, %v1276_v18  ;;  %v2236_v20 = vpack.c.bf16 %v1276_v18, %v1274_v55  ;;  %v586_v55 = vmul.f32 %v2574_v56, %v2107_v42  ;;  %v840_v17 = vpop.permute.xlu0 %839  ;;  %v2313_v18 = vld [vmem:[%s2564_s29 + $0x30] sm:$0xff]  }
  0xc3   : > { %v893_v24 = vmul.f32 %v840_v17, %v669_v11  ;;  %v2111_v25 = vunpack.c.h.bf16 %v2313_v18  ;;  %v855_v60 = vpop.permute.xlu2 %854 }
  0xc4   : > { %v1529_v23 = vadd.f32 %v1528_v2, %v1498_v19  ;;  %2338 = vst [vmem:[%s2640_s30 + $0x8] sm:$0xff] %v2236_v20   ;;  %v622_v45 = vadd.f32 %v2588_v63, %v586_v55  ;;  %v621_v2 = vadd.f32 %v2588_v63, %v585_v57  ;;  %v2110_v19 = vunpack.c.l.bf16 %v2313_v18  ;;  %v2314_v55 = vld [vmem:[%s2564_s29 + $0x38] sm:$0xff]  }
  0xc5   : > { %v2115_v49 = vunpack.c.h.bf16 %v2314_v55  ;;  %v2114_v3 = vunpack.c.l.bf16 %v2314_v55 }
  0xc6   : > { %v654_v7 = vmax.f32 %v622_v45, 0.0  ;;  %v653_v9 = vmax.f32 %v621_v2, 0.0  ;;  %v587_v30 = vmul.f32 %v2574_v56, %v2110_v19  ;;  %v2146_v45 = vunpack.c.l.bf16 %v2322_v53 }
  0xc8   : > { %v2671_v29 = vpop.f32.mrf.mxu3  ;;  %v878_v21 = vmul.f32 %v765_v26, %v654_v7  ;;  %v877_v22 = vmul.f32 %v2658_v12, %v653_v9  ;;  %v588_v26 = vmul.f32 %v2574_v56, %v2111_v25  ;;  %v590_v9 = vmul.f32 %v2574_v56, %v2115_v49 }
  0xc9   : > { %v1279_v33 = vpop.f32.mrf.mxu1  ;;  %v2276_v35 = vpack.c.bf16 %v2671_v29, %v2660_v13  ;;  %v850_v51 = vpop.permute.xlu1 %849 }
  0xca   : > { %v2677_v38 = vadd.f32 %v1459_v5, %v1279_v33  ;;  %v1499_v39 = vmul.f32 %v1279_v33, %v1279_v33  ;;  %v2321_v5 = vld [vmem:[%s2564_s29 + $0x70] sm:$0xff]   ;;  %v904_v32 = vpack.c.bf16 %v878_v21, %v877_v22  ;;  %v624_v41 = vadd.f32 %v2588_v63, %v588_v26  ;;  %v785_v7 = vpop.permute.xlu0 %784 }
  0xcb   : > { %2346 = vst [vmem:[%s2640_s30 + $0x48] sm:$0xff] %v2276_v35   ;;  %v2142_v20 = vunpack.c.l.bf16 %v2321_v5  ;;  %v2143_v27 = vunpack.c.h.bf16 %v2321_v5  ;;  %v589_v5 = vmul.f32 %v2574_v56, %v2114_v3 }
  0xcc   : > { %v2680_v44 = vadd.f32 %v1529_v23, %v1499_v39  ;;  %v894_v23 = vmul.f32 %v845_v16, %v670_v10  ;;  %v623_v39 = vadd.f32 %v2588_v63, %v587_v30  ;;  %v656_v54 = vmax.f32 %v624_v41, 0.0 }
  0xcd   : > { %v603_v31 = vmul.f32 %v2574_v56, %v2142_v20  ;;  %v604_v37 = vmul.f32 %v2574_v56, %v2143_v27  ;;  %v625_v21 = vadd.f32 %v2588_v63, %v589_v5 }
  0xce   : > { %v655_v46 = vmax.f32 %v623_v39, 0.0  ;;  %v880_v2 = vmul.f32 %v775_v6, %v656_v54  ;;  %v626_v6 = vadd.f32 %v2588_v63, %v590_v9 }
  0xcf   : > { %1007 = vmatmul.bf16.gmra.mxu0 %v903_v61  ;;  %1047 = vmatmul.bf16.gmra.mxu2 %v911_v62  ;;  %v639_v40 = vadd.f32 %v2588_v63, %v603_v31  ;;  %v640_v42 = vadd.f32 %v2588_v63, %v604_v37 }
  0xd0   : > { %v2687_v59 = vpop.f32.mrf.mxu3  ;;  %v879_v61 = vmul.f32 %v2685_v58, %v655_v46 }
  0xd1   : > { %v2691_v0 = vpop.f32.mrf.mxu1  ;;  %v671_v47 = vmax.f32 %v639_v40, 0.0  ;;  %v672_v57 = vmax.f32 %v640_v42, 0.0  ;;  %v865_v31 = vpop.permute.xlu1 %864 }
  0xd2   : > { %v2241_v1 = vpack.c.bf16 %v2691_v0, %v1279_v33  ;;  %v912_v33 = vpack.c.bf16 %v894_v23, %v893_v24  ;;  %v905_v16 = vpack.c.bf16 %v880_v2, %v879_v61  ;;  %v1500_v22 = vmul.f32 %v2691_v0, %v2691_v0 }
  0xd3   : > { %v895_v62 = vmul.f32 %v850_v51, %v671_v47  ;;  %v896_v4 = vmul.f32 %v855_v60, %v672_v57  ;;  %v658_v24 = vmax.f32 %v626_v6, 0.0 }
  0xd4   : > { %2339 = vst [vmem:[%s2640_s30 + $0x10] sm:$0xff] %v2241_v1   ;;  %v2147_v1 = vunpack.c.h.bf16 %v2322_v53 }
  0xd5   : > { %v913_v17 = vpack.c.bf16 %v896_v4, %v895_v62  ;;  %v882_v37 = vmul.f32 %v785_v7, %v658_v24 }
  0xd6   : > { %v606_v11 = vmul.f32 %v2574_v56, %v2147_v1 }
  0xd8   : > { %v2699_v8 = vpop.f32.mrf.mxu3  ;;  %v642_v19 = vadd.f32 %v2588_v63, %v606_v11 }
  0xd9   : > { %v2701_v15 = vpop.f32.mrf.mxu1  ;;  %v2281_v14 = vpack.c.bf16 %v2699_v8, %v2687_v59 }
  0xda   : > { %v674_v25 = vmax.f32 %v642_v19, 0.0  ;;  %v1501_v26 = vmul.f32 %v2701_v15, %v2701_v15 }
  0xdb   : > { %2347 = vst [vmem:[%s2640_s30 + $0x50] sm:$0xff] %v2281_v14   ;;  %v605_v14 = vmul.f32 %v2574_v56, %v2146_v45 }
  0xdc   : > { %v898_v39 = vmul.f32 %v865_v31, %v674_v25 }
  0xdd   : > { %v641_v20 = vadd.f32 %v2588_v63, %v605_v14  ;;  %v1531_v63 = vadd.f32 %v2680_v44, %v1500_v22 }
  0xdf   : > { %1012 = vmatmul.bf16.gmra.mxu0 %v904_v32  ;;  %1052 = vmatmul.bf16.gmra.mxu2 %v912_v33  ;;  %v673_v56 = vmax.f32 %v641_v20, 0.0  ;;  %v860_v32 = vpop.permute.xlu0 %859  ;;  %v1461_v33 = vadd.f32 %v2677_v38, %v2691_v0  ;;  %v1532_v47 = vadd.f32 %v1531_v63, %v1501_v26 }
  0xe0   : > { %v2709_v28 = vpop.f32.mrf.mxu3 }
  0xe1   : > { %v2713_v35 = vpop.f32.mrf.mxu1  ;;  %v897_v40 = vmul.f32 %v860_v32, %v673_v56  ;;  %v1462_v42 = vadd.f32 %v1461_v33, %v2701_v15 }
  0xe2   : > { %v2246_v12 = vpack.c.bf16 %v2713_v35, %v2701_v15  ;;  %v1502_v38 = vmul.f32 %v2713_v35, %v2713_v35 }
  0xe3   : > { %v1463_v53 = vadd.f32 %v1462_v42, %v2713_v35 }
  0xe4   : > { %2340 = vst [vmem:[%s2640_s30 + $0x18] sm:$0xff] %v2246_v12   ;;  %v657_v12 = vmax.f32 %v625_v21, 0.0  ;;  %v1533_v55 = vadd.f32 %v1532_v47, %v1502_v38 }
  0xe6   : > { %v881_v46 = vmul.f32 %v2715_v36, %v657_v12 }
  0xe8   : > { %v2726_v43 = vpop.f32.mrf.mxu3  ;;  %v906_v44 = vpack.c.bf16 %v882_v37, %v881_v46  ;;  %v1511_v46 = vmul.f32 %v2632_v34, %v2632_v34 }
  0xe9   : > { %v2728_v48 = vpop.f32.mrf.mxu1  ;;  %v2286_v50 = vpack.c.bf16 %v2726_v43, %v2709_v28 }
  0xea   : > { %v1503_v15 = vmul.f32 %v2728_v48, %v2728_v48  ;;  %v1464_v57 = vadd.f32 %v1463_v53, %v2728_v48 }
  0xeb   : > { %2348 = vst [vmem:[%s2640_s30 + $0x58] sm:$0xff] %v2286_v50   ;;  %v914_v50 = vpack.c.bf16 %v898_v39, %v897_v40 }
  0xec   : > { %v1534_v35 = vadd.f32 %v1533_v55, %v1503_v15  ;;  %v1513_v55 = vmul.f32 %v2660_v13, %v2660_v13 }
  0xef   : > { %1017 = vmatmul.bf16.gmra.mxu0 %v905_v16  ;;  %1057 = vmatmul.bf16.gmra.mxu2 %v913_v17 }
  0xf0   : > { %v2737_v10 = vpop.f32.mrf.mxu3 }
  0xf1   : > { %v1291_v18 = vpop.f32.mrf.mxu1 }
  0xf2   : > { %v2251_v58 = vpack.c.bf16 %v1291_v18, %v2728_v48  ;;  %v1504_v49 = vmul.f32 %v1291_v18, %v1291_v18  ;;  %v1465_v1 = vadd.f32 %v1464_v57, %v1291_v18 }
  0xf4   : > { %2341 = vst [vmem:[%s2640_s30 + $0x20] sm:$0xff] %v2251_v58   ;;  %v1535_v45 = vadd.f32 %v1534_v35, %v1504_v49  ;;  %v1514_v49 = vmul.f32 %v2671_v29, %v2671_v29 }
  0xf8   : > { %v2750_v23 = vpop.f32.mrf.mxu3 }
  0xf9   : > { %v1294_v27 = vpop.f32.mrf.mxu1  ;;  %v2291_v30 = vpack.c.bf16 %v2750_v23, %v2737_v10  ;;  %v2760_v41 = vpop.f32.mrf.mxu2 }
  0xfa   : > { %v1505_v2 = vmul.f32 %v1294_v27, %v1294_v27  ;;  %v1466_v48 = vadd.f32 %v1465_v1, %v1294_v27 }
  0xfb   : > { %2349 = vst [vmem:[%s2640_s30 + $0x60] sm:$0xff] %v2291_v30  }
  0xfc   : > { %v1536_v3 = vadd.f32 %v1535_v45, %v1505_v2 }
  0xff   : > { %1022 = vmatmul.bf16.gmra.mxu0 %v906_v44  ;;  %1062 = vmatmul.bf16.gmra.mxu2 %v914_v50 }
 0x100   : > { %v2766_v0 = vpop.f32.mrf.mxu3 }
 0x101   : > { %v1296_v51 = vpop.f32.mrf.mxu1  ;;  %v2772_v36 = vpop.f32.mrf.mxu2 }
 0x102   : > { %v2256_v54 = vpack.c.bf16 %v1296_v51, %v1294_v27  ;;  %v2191_v60 = vpack.c.bf16 %v2772_v36, %v2760_v41  ;;  %v1506_v4 = vmul.f32 %v1296_v51, %v1296_v51  ;;  %v1467_v11 = vadd.f32 %v1466_v48, %v1296_v51 }
 0x103   : > { %v1512_v51 = vmul.f32 %v2650_v52, %v2650_v52 }
 0x104   : > { %2342 = vst [vmem:[%s2640_s30 + $0x28] sm:$0xff] %v2256_v54   ;;  %v1537_v17 = vadd.f32 %v1536_v3, %v1506_v4  ;;  %v1515_v3 = vmul.f32 %v2687_v59, %v2687_v59 }
 0x105   : > { %2330 = vst [vmem:[%s2781_s25 + $0x40] sm:$0xff] %v2191_v60  }
 0x108   : > { %v2784_v62 = vpop.f32.mrf.mxu3 }
 0x109   : > { %v1299_v61 = vpop.f32.mrf.mxu1  ;;  %v2296_v32 = vpack.c.bf16 %v2784_v62, %v2766_v0 }
 0x10a   : > { %v1507_v58 = vmul.f32 %v1299_v61, %v1299_v61  ;;  %v1468_v5 = vadd.f32 %v1467_v11, %v1299_v61 }
 0x10b   : > { %2350 = vst [vmem:[%s2640_s30 + $0x68] sm:$0xff] %v2296_v32   ;;  %v1521_v32 = vmul.f32 %v2766_v0, %v2766_v0 }
 0x10c   : > { %v988_v7 = vpop.f32.mrf.mxu0  ;;  %v1538_v6 = vadd.f32 %v1537_v17, %v1507_v58 }
 0x10d   : > { %v1387_v20 = vmul.f32 %v988_v7, %v988_v7 }
 0x110   : > { %v2786_v16 = vpop.f32.mrf.mxu3 }
 0x111   : > { %v1301_v9 = vpop.f32.mrf.mxu1 }
 0x112   : > { %v2261_v14 = vpack.c.bf16 %v1301_v9, %v1299_v61  ;;  %v1508_v19 = vmul.f32 %v1301_v9, %v1301_v9  ;;  %v1469_v56 = vadd.f32 %v1468_v5, %v1301_v9  ;;  %v1516_v9 = vmul.f32 %v2699_v8, %v2699_v8 }
 0x114   : > { %2343 = vst [vmem:[%s2640_s30 + $0x30] sm:$0xff] %v2261_v14   ;;  %v990_v18 = vpop.f32.mrf.mxu0  ;;  %v1539_v30 = vadd.f32 %v1538_v6, %v1508_v19  ;;  %v1517_v14 = vmul.f32 %v2709_v28, %v2709_v28  ;;  %v1518_v6 = vmul.f32 %v2726_v43, %v2726_v43 }
 0x115   : > { %v1349_v21 = vadd.f32 %v990_v18, %v988_v7  ;;  %v1388_v22 = vmul.f32 %v990_v18, %v990_v18  ;;  %v2151_v24 = vpack.c.bf16 %v990_v18, %v988_v7 }
 0x117   : > { %v1419_v27 = vadd.f32 %v1388_v22, %v1387_v20  ;;  %2152 = vst [vmem:[%s2781_s25] sm:$0xff] %v2151_v24  }
 0x118   : > { %v2792_v33 = vpop.f32.mrf.mxu3 }
 0x119   : > { %v1304_v25 = vpop.f32.mrf.mxu1  ;;  %v2301_v37 = vpack.c.bf16 %v2792_v33, %v2786_v16 }
 0x11a   : > { %v1509_v31 = vmul.f32 %v1304_v25, %v1304_v25  ;;  %v1470_v12 = vadd.f32 %v1469_v56, %v1304_v25 }
 0x11b   : > { %2351 = vst [vmem:[%s2640_s30 + $0x70] sm:$0xff] %v2301_v37   ;;  %v1522_v37 = vmul.f32 %v2784_v62, %v2784_v62 }
 0x11c   : > { %v1540_v63 = vadd.f32 %v1539_v30, %v1509_v31  ;;  %v993_v26 = vpop.f32.mrf.mxu0  ;;  %v1520_v30 = vmul.f32 %v2750_v23, %v2750_v23 }
 0x11d   : > { %v1350_v39 = vadd.f32 %v1349_v21, %v993_v26  ;;  %v1389_v40 = vmul.f32 %v993_v26, %v993_v26 }
 0x11f   : > { %v1420_v50 = vadd.f32 %v1419_v27, %v1389_v40 }
 0x120   : > { %v1344_v35 = vpop.f32.mrf.mxu3 }
 0x121   : > { %v1306_v42 = vpop.f32.mrf.mxu1 }
 0x122   : > { %v1471_v47 = vadd.f32 %v1470_v12, %v1306_v42  ;;  %v1510_v38 = vmul.f32 %v1306_v42, %v1306_v42  ;;  %v2266_v44 = vpack.c.bf16 %v1306_v42, %v1304_v25  ;;  %v2806_v15 = vpop.f32.mrf.mxu2 }
 0x124   : > { %v1472_v53 = vadd.f32 %v1471_v47, %v2632_v34  ;;  %v1541_v54 = vadd.f32 %v1540_v63, %v1510_v38  ;;  %2344 = vst [vmem:[%s2640_s30 + $0x38] sm:$0xff] %v2266_v44   ;;  %v995_v45 = vpop.f32.mrf.mxu0 }
 0x125   : > { %v1351_v34 = vadd.f32 %v1350_v39, %v995_v45  ;;  %v1390_v2 = vmul.f32 %v995_v45, %v995_v45  ;;  %v2156_v48 = vpack.c.bf16 %v995_v45, %v993_v26 }
 0x126   : > { %v1473_v57 = vadd.f32 %v1472_v53, %v2650_v52  ;;  %v1542_v60 = vadd.f32 %v1541_v54, %v1511_v46  ;;  %v1525_v53 = vmul.f32 %v1344_v35, %v1344_v35 }
 0x127   : > { %v1421_v52 = vadd.f32 %v1420_v50, %v1390_v2  ;;  %2323 = vst [vmem:[%s2781_s25 + $0x8] sm:$0xff] %v2156_v48  }
 0x128   : > { %v1474_v61 = vadd.f32 %v1473_v57, %v2660_v13  ;;  %v1543_v1 = vadd.f32 %v1542_v60, %v1512_v51  ;;  %v1346_v22 = vpop.f32.mrf.mxu3 }
 0x129   : > { %v2306_v56 = vpack.c.bf16 %v1346_v22, %v1344_v35  ;;  %v1526_v60 = vmul.f32 %v1346_v22, %v1346_v22 }
 0x12a   : > { %v1475_v4 = vadd.f32 %v1474_v61, %v2671_v29  ;;  %v1544_v7 = vadd.f32 %v1543_v1, %v1513_v55  ;;  %v2822_v5 = vpop.f32.mrf.mxu2 }
 0x12b   : > { %v2196_v29 = vpack.c.bf16 %v2822_v5, %v2806_v15  ;;  %2352 = vst [vmem:[%s2640_s30 + $0x78] sm:$0xff] %v2306_v56  }
 0x12c   : > { %v1476_v11 = vadd.f32 %v1475_v4, %v2687_v59  ;;  %v1545_v13 = vadd.f32 %v1544_v7, %v1514_v49  ;;  %v998_v59 = vpop.f32.mrf.mxu0 }
 0x12d   : > { %2331 = vst [vmem:[%s2781_s25 + $0x48] sm:$0xff] %v2196_v29   ;;  %v2830_v20 = vadd.f32 %v1351_v34, %v998_v59  ;;  %v1391_v21 = vmul.f32 %v998_v59, %v998_v59 }
 0x12e   : > { %v1477_v17 = vadd.f32 %v1476_v11, %v2699_v8  ;;  %v1546_v58 = vadd.f32 %v1545_v13, %v1515_v3  ;;  %v1519_v8 = vmul.f32 %v2737_v10, %v2737_v10 }
 0x12f   : > { %v2835_v27 = vadd.f32 %v1421_v52, %v1391_v21 }
 0x130   : > { %v1547_v19 = vadd.f32 %v1546_v58, %v1516_v9  ;;  %v1478_v18 = vadd.f32 %v1477_v17, %v2709_v28 }
 0x132   : > { %v1479_v24 = vadd.f32 %v1478_v18, %v2726_v43  ;;  %v1548_v25 = vadd.f32 %v1547_v19, %v1517_v14  ;;  %v2844_v26 = vpop.f32.mrf.mxu2 }
 0x134   : > { %v1480_v28 = vadd.f32 %v1479_v24, %v2737_v10  ;;  %v1549_v31 = vadd.f32 %v1548_v25, %v1518_v6  ;;  %v2849_v40 = vpop.f32.mrf.mxu0 }
 0x135   : > { %v2161_v10 = vpack.c.bf16 %v2849_v40, %v998_v59 }
 0x136   : > { %v1481_v12 = vadd.f32 %v1480_v28, %v2750_v23  ;;  %v1550_v63 = vadd.f32 %v1549_v31, %v1519_v8  ;;  %v1523_v23 = vmul.f32 %v2786_v16, %v2786_v16  ;;  %v1392_v31 = vmul.f32 %v2849_v40, %v2849_v40 }
 0x137   : > { %2324 = vst [vmem:[%s2781_s25 + $0x10] sm:$0xff] %v2161_v10  }
 0x138   : > { %v1482_v43 = vadd.f32 %v1481_v12, %v2766_v0  ;;  %v1551_v39 = vadd.f32 %v1550_v63, %v1520_v30  ;;  %v1524_v0 = vmul.f32 %v2792_v33, %v2792_v33 }
 0x13a   : > { %v1483_v42 = vadd.f32 %v1482_v43, %v2784_v62  ;;  %v1552_v46 = vadd.f32 %v1551_v39, %v1521_v32  ;;  %v2860_v51 = vpop.f32.mrf.mxu2  ;;  %v1353_v32 = vadd.f32 %v2830_v20, %v2849_v40  ;;  %v1423_v43 = vadd.f32 %v2835_v27, %v1392_v31 }
 0x13b   : > { %v2201_v62 = vpack.c.bf16 %v2860_v51, %v2844_v26  ;;  %v1406_v31 = vmul.f32 %v2822_v5, %v2822_v5 }
 0x13c   : > { %v1553_v47 = vadd.f32 %v1552_v46, %v1522_v37  ;;  %v1484_v38 = vadd.f32 %v1483_v42, %v2786_v16  ;;  %v1003_v57 = vpop.f32.mrf.mxu0 }
 0x13d   : > { %2332 = vst [vmem:[%s2781_s25 + $0x50] sm:$0xff] %v2201_v62   ;;  %v1393_v12 = vmul.f32 %v1003_v57, %v1003_v57  ;;  %v1354_v37 = vadd.f32 %v1353_v32, %v1003_v57 }
 0x13e   : > { %v1554_v44 = vadd.f32 %v1553_v47, %v1523_v23  ;;  %v1485_v50 = vadd.f32 %v1484_v38, %v2792_v33 }
 0x13f   : > { %v1424_v42 = vadd.f32 %v1423_v43, %v1393_v12  ;;  %v1407_v12 = vmul.f32 %v2844_v26, %v2844_v26 }
 0x140   : > { %v1555_v54 = vadd.f32 %v1554_v44, %v1524_v0  ;;  %v1486_v55 = vadd.f32 %v1485_v50, %v1344_v35 }
 0x142   : > { %v1556_v16 = vadd.f32 %v1555_v54, %v1525_v53  ;;  %v1487_v49 = vadd.f32 %v1486_v55, %v1346_v22  ;;  %v2866_v45 = vpop.f32.mrf.mxu2 }
 0x144   : > { %v1488_v61 = vrot.slane %v1487_v49, 4  ;;  %v1557_v1 = vadd.f32 %v1556_v16, %v1526_v60  ;;  %v1005_v3 = vpop.f32.mrf.mxu0 }
 0x145   : > { %v2166_v35 = vpack.c.bf16 %v1005_v3, %v1003_v57  ;;  %v1394_v39 = vmul.f32 %v1005_v3, %v1005_v3  ;;  %v1355_v46 = vadd.f32 %v1354_v37, %v1005_v3  ;;  %v1408_v37 = vmul.f32 %v2860_v51, %v2860_v51 }
 0x146   : > { %v1489_v33 = vadd.f32 %v1488_v61, %v1487_v49  ;;  %v1558_v34 = vrot.slane %v1557_v1, 4 }
 0x147   : > { %2325 = vst [vmem:[%s2781_s25 + $0x18] sm:$0xff] %v2166_v35   ;;  %v1425_v38 = vadd.f32 %v1424_v42, %v1394_v39 }
 0x148   : > { %v1490_v2 = vrot.slane %v1489_v33, 2  ;;  %v1559_v48 = vadd.f32 %v1558_v34, %v1557_v1 }
 0x14a   : > { %v1491_v4 = vadd.f32 %v1490_v2, %v1489_v33  ;;  %v1560_v7 = vrot.slane %v1559_v48, 2  ;;  %v2876_v14 = vpop.f32.mrf.mxu2 }
 0x14b   : > { %v2206_v17 = vpack.c.bf16 %v2876_v14, %v2866_v45 }
 0x14c   : > { %v1492_v52 = vrot.slane %v1491_v4, 1  ;;  %v1561_v9 = vadd.f32 %v1560_v7, %v1559_v48  ;;  %v1008_v29 = vpop.f32.mrf.mxu0 }
 0x14d   : > { %2333 = vst [vmem:[%s2781_s25 + $0x58] sm:$0xff] %v2206_v17   ;;  %v1395_v23 = vmul.f32 %v1008_v29, %v1008_v29  ;;  %v1356_v0 = vadd.f32 %v1355_v46, %v1008_v29  ;;  %v1403_v17 = vmul.f32 %v2760_v41, %v2760_v41  ;;  %v1410_v46 = vmul.f32 %v2876_v14, %v2876_v14 }
 0x14e   : > { %v1493_v11 = vadd.f32 %v1492_v52, %v1491_v4  ;;  %v1562_v13 = vrot.slane %v1561_v9, 1 }
 0x14f   : > { %v1426_v50 = vadd.f32 %v1425_v38, %v1395_v23 }
 0x150   : > { %1494 = vst [vmem:[%s503_s13] sm:$0x1] %v1493_v11  ;;  %v1563_v58 = vadd.f32 %v1562_v13, %v1561_v9 }
 0x152   : > { %1564 = vst [vmem:[%s506_s19] sm:$0x1] %v1563_v58  ;;  %v2885_v6 = vpop.f32.mrf.mxu2 }
 0x154   : > { %v1010_v19 = vpop.f32.mrf.mxu0 }
 0x155   : > { %v2171_v18 = vpack.c.bf16 %v1010_v19, %v1008_v29  ;;  %v1396_v44 = vmul.f32 %v1010_v19, %v1010_v19  ;;  %v1357_v53 = vadd.f32 %v1356_v0, %v1010_v19  ;;  %v1404_v19 = vmul.f32 %v2772_v36, %v2772_v36 }
 0x157   : > { %2326 = vst [vmem:[%s2781_s25 + $0x20] sm:$0xff] %v2171_v18   ;;  %v1427_v62 = vadd.f32 %v1426_v50, %v1396_v44 }
 0x15a   : > { %v2888_v59 = vpop.f32.mrf.mxu2 }
 0x15b   : > { %v2211_v21 = vpack.c.bf16 %v2888_v59, %v2885_v6 }
 0x15c   : > { %v1013_v22 = vpop.f32.mrf.mxu0 }
 0x15d   : > { %2334 = vst [vmem:[%s2781_s25 + $0x60] sm:$0xff] %v2211_v21   ;;  %v1397_v20 = vmul.f32 %v1013_v22, %v1013_v22  ;;  %v1358_v54 = vadd.f32 %v1357_v53, %v1013_v22 }
 0x15f   : > { %v1428_v60 = vadd.f32 %v1427_v62, %v1397_v20 }
 0x162   : > { %v2893_v8 = vpop.f32.mrf.mxu2 }
 0x164   : > { %v1015_v24 = vpop.f32.mrf.mxu0 }
 0x165   : > { %v2176_v25 = vpack.c.bf16 %v1015_v24, %v1013_v22  ;;  %v1398_v27 = vmul.f32 %v1015_v24, %v1015_v24  ;;  %v1359_v16 = vadd.f32 %v1358_v54, %v1015_v24  ;;  %v1405_v24 = vmul.f32 %v2806_v15, %v2806_v15 }
 0x167   : > { %2327 = vst [vmem:[%s2781_s25 + $0x28] sm:$0xff] %v2176_v25   ;;  %v1429_v61 = vadd.f32 %v1428_v60, %v1398_v27 }
 0x16a   : > { %v2896_v56 = vpop.f32.mrf.mxu2 }
 0x16b   : > { %v2216_v30 = vpack.c.bf16 %v2896_v56, %v2893_v8 }
 0x16c   : > { %v1018_v28 = vpop.f32.mrf.mxu0 }
 0x16d   : > { %2335 = vst [vmem:[%s2781_s25 + $0x68] sm:$0xff] %v2216_v30   ;;  %v1399_v49 = vmul.f32 %v1018_v28, %v1018_v28  ;;  %v1360_v1 = vadd.f32 %v1359_v16, %v1018_v28 }
 0x16f   : > { %v1430_v34 = vadd.f32 %v1429_v61, %v1399_v49 }
 0x172   : > { %v2905_v63 = vpop.f32.mrf.mxu2 }
 0x174   : > { %v1020_v10 = vpop.f32.mrf.mxu0 }
 0x175   : > { %v2181_v47 = vpack.c.bf16 %v1020_v10, %v1018_v28  ;;  %v1400_v33 = vmul.f32 %v1020_v10, %v1020_v10  ;;  %v1361_v2 = vadd.f32 %v1360_v1, %v1020_v10  ;;  %v1409_v10 = vmul.f32 %v2866_v45, %v2866_v45 }
 0x177   : > { %2328 = vst [vmem:[%s2781_s25 + $0x30] sm:$0xff] %v2181_v47   ;;  %v1431_v35 = vadd.f32 %v1430_v34, %v1400_v33 }
 0x17a   : > { %v2909_v40 = vpop.f32.mrf.mxu2 }
 0x17b   : > { %v2221_v55 = vpack.c.bf16 %v2909_v40, %v2905_v63 }
 0x17c   : > { %v1023_v57 = vpop.f32.mrf.mxu0 }
 0x17d   : > { %2336 = vst [vmem:[%s2781_s25 + $0x70] sm:$0xff] %v2221_v55   ;;  %v1401_v48 = vmul.f32 %v1023_v57, %v1023_v57  ;;  %v1362_v4 = vadd.f32 %v1361_v2, %v1023_v57 }
 0x17f   : > { %v1432_v52 = vadd.f32 %v1431_v35, %v1401_v48 }
 0x182   : > { %v1063_v3 = vpop.f32.mrf.mxu2 }
 0x184   : > { %v1025_v7 = vpop.f32.mrf.mxu0 }
 0x185   : > { %v1363_v9 = vadd.f32 %v1362_v4, %v1025_v7  ;;  %v1402_v11 = vmul.f32 %v1025_v7, %v1025_v7  ;;  %v2186_v13 = vpack.c.bf16 %v1025_v7, %v1023_v57 }
 0x187   : > { %v1364_v58 = vadd.f32 %v1363_v9, %v2760_v41  ;;  %v1433_v29 = vadd.f32 %v1432_v52, %v1402_v11  ;;  %2329 = vst [vmem:[%s2781_s25 + $0x38] sm:$0xff] %v2186_v13  }
 0x189   : > { %v1365_v18 = vadd.f32 %v1364_v58, %v2772_v36  ;;  %v1434_v21 = vadd.f32 %v1433_v29, %v1403_v17 }
 0x18a   : > { %v1065_v22 = vpop.f32.mrf.mxu2 }
 0x18b   : > { %v1366_v25 = vadd.f32 %v1365_v18, %v2806_v15  ;;  %v1435_v30 = vadd.f32 %v1434_v21, %v1404_v19  ;;  %v2226_v28 = vpack.c.bf16 %v1065_v22, %v1063_v3 }
 0x18d   : > { %v1367_v41 = vadd.f32 %v1366_v25, %v2822_v5  ;;  %v1436_v32 = vadd.f32 %v1435_v30, %v1405_v24  ;;  %2337 = vst [vmem:[%s2781_s25 + $0x78] sm:$0xff] %v2226_v28  }
 0x18f   : > { %v1368_v36 = vadd.f32 %v1367_v41, %v2844_v26  ;;  %v1437_v43 = vadd.f32 %v1436_v32, %v1406_v31  ;;  %v1411_v26 = vmul.f32 %v2885_v6, %v2885_v6 }
 0x191   : > { %v1369_v15 = vadd.f32 %v1368_v36, %v2860_v51  ;;  %v1438_v39 = vadd.f32 %v1437_v43, %v1407_v12  ;;  %v1412_v51 = vmul.f32 %v2888_v59, %v2888_v59 }
 0x193   : > { %v1370_v42 = vadd.f32 %v1369_v15, %v2866_v45  ;;  %v1439_v5 = vadd.f32 %v1438_v39, %v1408_v37  ;;  %v1413_v45 = vmul.f32 %v2893_v8, %v2893_v8 }
 0x195   : > { %v1440_v23 = vadd.f32 %v1439_v5, %v1409_v10  ;;  %v1371_v47 = vadd.f32 %v1370_v42, %v2876_v14  ;;  %v1414_v14 = vmul.f32 %v2896_v56, %v2896_v56 }
 0x197   : > { %v1372_v38 = vadd.f32 %v1371_v47, %v2885_v6  ;;  %v1441_v0 = vadd.f32 %v1440_v23, %v1410_v46  ;;  %v1415_v6 = vmul.f32 %v2905_v63, %v2905_v63 }
 0x199   : > { %v1373_v44 = vadd.f32 %v1372_v38, %v2888_v59  ;;  %v1442_v50 = vadd.f32 %v1441_v0, %v1411_v26  ;;  %v1416_v59 = vmul.f32 %v2909_v40, %v2909_v40 }
 0x19b   : > { %v1374_v53 = vadd.f32 %v1373_v44, %v2893_v8  ;;  %v1443_v20 = vadd.f32 %v1442_v50, %v1412_v51  ;;  %v1417_v8 = vmul.f32 %v1063_v3, %v1063_v3 }
 0x19d   : > { %v1375_v62 = vadd.f32 %v1374_v53, %v2896_v56  ;;  %v1444_v54 = vadd.f32 %v1443_v20, %v1413_v45  ;;  %v1418_v56 = vmul.f32 %v1065_v22, %v1065_v22 }
 0x19f   : > { %v1376_v27 = vadd.f32 %v1375_v62, %v2905_v63  ;;  %v1445_v55 = vadd.f32 %v1444_v54, %v1414_v14 }
 0x1a1   : > { %v1377_v57 = vadd.f32 %v1376_v27, %v2909_v40  ;;  %v1446_v60 = vadd.f32 %v1445_v55, %v1415_v6 }
 0x1a3   : > { %v1378_v16 = vadd.f32 %v1377_v57, %v1063_v3  ;;  %v1447_v49 = vadd.f32 %v1446_v60, %v1416_v59 }
 0x1a5   : > { %v1379_v61 = vadd.f32 %v1378_v16, %v1065_v22  ;;  %v1448_v1 = vadd.f32 %v1447_v49, %v1417_v8 }
 0x1a7   : > { %v1380_v33 = vrot.slane %v1379_v61, 4  ;;  %v1449_v34 = vadd.f32 %v1448_v1, %v1418_v56 }
 0x1a9   : > { %v1381_v2 = vadd.f32 %v1380_v33, %v1379_v61  ;;  %v1450_v48 = vrot.slane %v1449_v34, 4 }
 0x1ab   : > { %v1382_v63 = vrot.slane %v1381_v2, 2  ;;  %v1451_v35 = vadd.f32 %v1450_v48, %v1449_v34 }
 0x1ad   : > { %v1383_v4 = vadd.f32 %v1382_v63, %v1381_v2  ;;  %v1452_v7 = vrot.slane %v1451_v35, 2 }
 0x1af   : > { %v1384_v52 = vrot.slane %v1383_v4, 1  ;;  %v1453_v9 = vadd.f32 %v1452_v7, %v1451_v35 }
 0x1b1   : > { %v1385_v40 = vadd.f32 %v1384_v52, %v1383_v4  ;;  %v1454_v3 = vrot.slane %v1453_v9, 1 }
 0x1b3   : > { %1386 = vst [vmem:[%s497_s24] sm:$0x1] %v1385_v40  ;;  %v1455_v11 = vadd.f32 %v1454_v3, %v1453_v9 }
 0x1b5   : > { %1456 = vst [vmem:[%s500_s28] sm:$0x1] %v1455_v11 }
 0x1b6 PF: > { %s23_s21 = sadd.s32 1, %s2389_s21  }
 0x1b7   : > { %p20_p5 = scmp.ge.s32.totalorder %s23_s21, 6  }
 0x1b9   :  { %22 = sbr.rel (!%p20_p5) target bundleno = 1 (0x1), region = 144 }

// kernel: bottleneck_forward.7
= control target key start
LH: loop header
LB: loop body
LE: loop exit
PB: predicated region body
PF: predicated region fallthrough
CT: control target
= control target key end

     0   :  { %s3795_s0 = inlined_call_operand.vmem [shape: bf16[1024,128], index: 0, kind: input, shape index: {}]   ;;  %s3796_s1 = inlined_call_operand.vmem [shape: f32[1,128], index: 1, kind: input, shape index: {}]   ;;  %s3797_s2 = inlined_call_operand.vmem [shape: f32[1,128], index: 2, kind: input, shape index: {}]   ;;  %s3798_s3 = inlined_call_operand.vmem [shape: bf16[1024,128], index: 3, kind: input, shape index: {}]   ;;  %s3799_s4 = inlined_call_operand.vmem [shape: f32[1,128], index: 4, kind: input, shape index: {}]   ;;  %s3800_s5 = inlined_call_operand.vmem [shape: f32[1,128], index: 5, kind: input, shape index: {}]   ;;  %s3801_s6 = inlined_call_operand.vmem [shape: bf16[1024,128], index: 6, kind: output, shape index: {}]  }
   0x1   :  { %v1580_v0 = vld [vmem:[%s3795_s0] sm:$0xff]   ;;  %v2411_v12 = vld [vmem:[%s3795_s0 + $0x8] sm:$0xff]   ;;  %v2412_v18 = vld [vmem:[%s3795_s0 + $0x10] sm:$0xff]  }
   0x2   :  { %v2653_v1 = vld [vmem:[%s3796_s1] ss:$0 sm:$0xff]  ;;  %v1581_v2 = vunpack.c.l.bf16 %v1580_v0  ;;  %v1582_v3 = vunpack.c.h.bf16 %v1580_v0  ;;  %v2474_v13 = vld [vmem:[%s3798_s3 + $0x8] sm:$0xff]   ;;  %v1585_v16 = vunpack.c.l.bf16 %v2411_v12  ;;  %v1586_v17 = vunpack.c.h.bf16 %v2411_v12  ;;  %v2475_v31 = vld [vmem:[%s3798_s3 + $0x10] sm:$0xff]  }
   0x3   :  { %v2658_v4 = vld [vmem:[%s3797_s2] ss:$0 sm:$0xff]  ;;  %v1841_v21 = vunpack.c.l.bf16 %v2474_v13  ;;  %v1842_v22 = vunpack.c.h.bf16 %v2474_v13  ;;  %v1589_v29 = vunpack.c.l.bf16 %v2412_v18  ;;  %v1590_v30 = vunpack.c.h.bf16 %v2412_v18  ;;  %v2413_v40 = vld [vmem:[%s3795_s0 + $0x18] sm:$0xff]  }
   0x4   :  { %v1836_v5 = vld [vmem:[%s3798_s3] sm:$0xff]   ;;  %v283_v9 = vmul.f32 %v2653_v1, %v1581_v2  ;;  %v284_v10 = vmul.f32 %v2653_v1, %v1582_v3  ;;  %v285_v25 = vmul.f32 %v2653_v1, %v1585_v16  ;;  %v286_v26 = vmul.f32 %v2653_v1, %v1586_v17  ;;  %v2476_v45 = vld [vmem:[%s3798_s3 + $0x18] sm:$0xff]   ;;  %v2415_v16 = vld [vmem:[%s3795_s0 + $0x28] sm:$0xff]  }
   0x5   :  { %v1837_v6 = vunpack.c.l.bf16 %v1836_v5  ;;  %v1838_v7 = vunpack.c.h.bf16 %v1836_v5  ;;  %v2666_v8 = vld [vmem:[%s3799_s4] ss:$0 sm:$0xff]  ;;  %v287_v38 = vmul.f32 %v2653_v1, %v1589_v29  ;;  %v288_v39 = vmul.f32 %v2653_v1, %v1590_v30  ;;  %v2416_v30 = vld [vmem:[%s3795_s0 + $0x30] sm:$0xff]  }
   0x6   :  { %v2673_v11 = vld [vmem:[%s3800_s5] ss:$0 sm:$0xff]  ;;  %v415_v19 = vadd.f32 %v2658_v4, %v283_v9  ;;  %v416_v20 = vadd.f32 %v2658_v4, %v284_v10  ;;  %v805_v27 = vmul.f32 %v2666_v8, %v1841_v21  ;;  %v806_v28 = vmul.f32 %v2666_v8, %v1842_v22 }
   0x7   :  { %v803_v14 = vmul.f32 %v2666_v8, %v1837_v6  ;;  %v804_v15 = vmul.f32 %v2666_v8, %v1838_v7  ;;  %v417_v34 = vadd.f32 %v2658_v4, %v285_v25  ;;  %v418_v35 = vadd.f32 %v2658_v4, %v286_v26  ;;  %v2414_v54 = vld [vmem:[%s3795_s0 + $0x20] sm:$0xff]   ;;  %v2478_v25 = vld [vmem:[%s3798_s3 + $0x28] sm:$0xff]  }
   0x8   :  { %v937_v36 = vadd.f32 %v2673_v11, %v805_v27  ;;  %v938_v37 = vadd.f32 %v2673_v11, %v806_v28  ;;  %v1845_v43 = vunpack.c.l.bf16 %v2475_v31  ;;  %v1846_v44 = vunpack.c.h.bf16 %v2475_v31  ;;  %v2477_v5 = vld [vmem:[%s3798_s3 + $0x20] sm:$0xff]  }
   0x9   :  { %v935_v23 = vadd.f32 %v2673_v11, %v803_v14  ;;  %v936_v24 = vadd.f32 %v2673_v11, %v804_v15  ;;  %v419_v48 = vadd.f32 %v2658_v4, %v287_v38  ;;  %v420_v49 = vadd.f32 %v2658_v4, %v288_v39 }
   0xa   :  { %v1065_v46 = vadd.f32 %v937_v36, %v417_v34  ;;  %v1066_v47 = vadd.f32 %v938_v37, %v418_v35  ;;  %v807_v51 = vmul.f32 %v2666_v8, %v1845_v43  ;;  %v808_v52 = vmul.f32 %v2666_v8, %v1846_v44  ;;  %v2479_v43 = vld [vmem:[%s3798_s3 + $0x30] sm:$0xff]  }
   0xb   :  { %v1063_v32 = vadd.f32 %v935_v23, %v415_v19  ;;  %v1064_v33 = vadd.f32 %v936_v24, %v416_v20  ;;  %v1593_v53 = vunpack.c.l.bf16 %v2413_v40  ;;  %v1594_v57 = vunpack.c.h.bf16 %v2413_v40 }
   0xc   :  { %v1193_v55 = vmax.f32 %v1065_v46, 0.0  ;;  %v1194_v56 = vmax.f32 %v1066_v47, 0.0  ;;  %v1849_v58 = vunpack.c.l.bf16 %v2476_v45  ;;  %v939_v59 = vadd.f32 %v2673_v11, %v807_v51 }
   0xd   :  { %v1191_v41 = vmax.f32 %v1063_v32, 0.0  ;;  %v1192_v42 = vmax.f32 %v1064_v33, 0.0  ;;  %v940_v60 = vadd.f32 %v2673_v11, %v808_v52  ;;  %v289_v61 = vmul.f32 %v2653_v1, %v1593_v53  ;;  %v2417_v52 = vld [vmem:[%s3795_s0 + $0x38] sm:$0xff]  }
   0xe   :  { %v1850_v62 = vunpack.c.h.bf16 %v2476_v45  ;;  %v2099_v63 = vpack.c.bf16 %v1194_v56, %v1193_v55  ;;  %v290_v0 = vmul.f32 %v2653_v1, %v1594_v57  ;;  %v809_v2 = vmul.f32 %v2666_v8, %v1849_v58 }
   0xf   :  { %v2094_v50 = vpack.c.bf16 %v1192_v42, %v1191_v41  ;;  %v1597_v3 = vunpack.c.l.bf16 %v2414_v54  ;;  %v1067_v6 = vadd.f32 %v939_v59, %v419_v48  ;;  %v1068_v7 = vadd.f32 %v940_v60, %v420_v49 }
  0x10   :  { %v421_v9 = vadd.f32 %v2658_v4, %v289_v61  ;;  %v810_v10 = vmul.f32 %v2666_v8, %v1850_v62  ;;  %2537 = vst [vmem:[%s3801_s6 + $0x8] sm:$0xff] %v2099_v63   ;;  %v422_v12 = vadd.f32 %v2658_v4, %v290_v0  ;;  %v941_v13 = vadd.f32 %v2673_v11, %v809_v2  ;;  %v2480_v2 = vld [vmem:[%s3798_s3 + $0x38] sm:$0xff]  }
  0x11   :  { %2095 = vst [vmem:[%s3801_s6] sm:$0xff] %v2094_v50   ;;  %v1598_v14 = vunpack.c.h.bf16 %v2414_v54  ;;  %v291_v15 = vmul.f32 %v2653_v1, %v1597_v3  ;;  %v1195_v17 = vmax.f32 %v1067_v6, 0.0  ;;  %v1196_v18 = vmax.f32 %v1068_v7, 0.0 }
  0x12   :  { %v942_v19 = vadd.f32 %v2673_v11, %v810_v10  ;;  %v1853_v20 = vunpack.c.l.bf16 %v2477_v5  ;;  %v1069_v21 = vadd.f32 %v941_v13, %v421_v9  ;;  %v1854_v24 = vunpack.c.h.bf16 %v2477_v5  ;;  %v2418_v9 = vld [vmem:[%s3795_s0 + $0x40] sm:$0xff]  }
  0x13   :  { %v292_v22 = vmul.f32 %v2653_v1, %v1598_v14  ;;  %v423_v23 = vadd.f32 %v2658_v4, %v291_v15  ;;  %v2104_v26 = vpack.c.bf16 %v1196_v18, %v1195_v17  ;;  %v1601_v29 = vunpack.c.l.bf16 %v2415_v16 }
  0x14   :  { %v1070_v27 = vadd.f32 %v942_v19, %v422_v12  ;;  %v811_v28 = vmul.f32 %v2666_v8, %v1853_v20  ;;  %v1197_v31 = vmax.f32 %v1069_v21, 0.0  ;;  %v812_v33 = vmul.f32 %v2666_v8, %v1854_v24 }
  0x15   :  { %v424_v32 = vadd.f32 %v2658_v4, %v292_v22  ;;  %v1602_v34 = vunpack.c.h.bf16 %v2415_v16  ;;  %2538 = vst [vmem:[%s3801_s6 + $0x10] sm:$0xff] %v2104_v26   ;;  %v293_v37 = vmul.f32 %v2653_v1, %v1601_v29  ;;  %v1857_v38 = vunpack.c.l.bf16 %v2478_v25 }
  0x16   :  { %v1198_v35 = vmax.f32 %v1070_v27, 0.0  ;;  %v943_v36 = vadd.f32 %v2673_v11, %v811_v28  ;;  %v944_v39 = vadd.f32 %v2673_v11, %v812_v33  ;;  %v1858_v41 = vunpack.c.h.bf16 %v2478_v25  ;;  %v2419_v28 = vld [vmem:[%s3795_s0 + $0x48] sm:$0xff]  }
  0x17   :  { %v294_v40 = vmul.f32 %v2653_v1, %v1602_v34  ;;  %v1605_v42 = vunpack.c.l.bf16 %v2416_v30  ;;  %v425_v46 = vadd.f32 %v2658_v4, %v293_v37  ;;  %v813_v47 = vmul.f32 %v2666_v8, %v1857_v38 }
  0x18   :  { %v2109_v44 = vpack.c.bf16 %v1198_v35, %v1197_v31  ;;  %v1071_v45 = vadd.f32 %v943_v36, %v423_v23  ;;  %v1072_v48 = vadd.f32 %v944_v39, %v424_v32  ;;  %v814_v50 = vmul.f32 %v2666_v8, %v1858_v41  ;;  %v2481_v23 = vld [vmem:[%s3798_s3 + $0x40] sm:$0xff]   ;;  %v2482_v41 = vld [vmem:[%s3798_s3 + $0x48] sm:$0xff]  }
  0x19   :  { %v426_v49 = vadd.f32 %v2658_v4, %v294_v40  ;;  %v1606_v51 = vunpack.c.h.bf16 %v2416_v30  ;;  %v945_v54 = vadd.f32 %v2673_v11, %v813_v47  ;;  %v295_v55 = vmul.f32 %v2653_v1, %v1605_v42 }
  0x1a   :  { %2539 = vst [vmem:[%s3801_s6 + $0x18] sm:$0xff] %v2109_v44   ;;  %v1199_v53 = vmax.f32 %v1071_v45, 0.0  ;;  %v1861_v56 = vunpack.c.l.bf16 %v2479_v43  ;;  %v1200_v57 = vmax.f32 %v1072_v48, 0.0  ;;  %v946_v58 = vadd.f32 %v2673_v11, %v814_v50  ;;  %v2420_v50 = vld [vmem:[%s3795_s0 + $0x50] sm:$0xff]  }
  0x1b   :  { %v296_v59 = vmul.f32 %v2653_v1, %v1606_v51  ;;  %v1862_v60 = vunpack.c.h.bf16 %v2479_v43  ;;  %v1073_v61 = vadd.f32 %v945_v54, %v425_v46  ;;  %v427_v62 = vadd.f32 %v2658_v4, %v295_v55 }
  0x1c   :  { %v815_v63 = vmul.f32 %v2666_v8, %v1861_v56  ;;  %v1609_v0 = vunpack.c.l.bf16 %v2417_v52  ;;  %v2114_v3 = vpack.c.bf16 %v1200_v57, %v1199_v53  ;;  %v1074_v5 = vadd.f32 %v946_v58, %v426_v49 }
  0x1d   :  { %v428_v6 = vadd.f32 %v2658_v4, %v296_v59  ;;  %v816_v7 = vmul.f32 %v2666_v8, %v1862_v60  ;;  %v1201_v10 = vmax.f32 %v1073_v61, 0.0  ;;  %v1610_v13 = vunpack.c.h.bf16 %v2417_v52  ;;  %v2483_v59 = vld [vmem:[%s3798_s3 + $0x50] sm:$0xff]  }
  0x1e   :  { %v947_v12 = vadd.f32 %v2673_v11, %v815_v63  ;;  %v297_v14 = vmul.f32 %v2653_v1, %v1609_v0  ;;  %2540 = vst [vmem:[%s3801_s6 + $0x20] sm:$0xff] %v2114_v3   ;;  %v1202_v15 = vmax.f32 %v1074_v5, 0.0  ;;  %v1865_v17 = vunpack.c.l.bf16 %v2480_v2 }
  0x1f   :  { %v948_v16 = vadd.f32 %v2673_v11, %v816_v7  ;;  %v1866_v18 = vunpack.c.h.bf16 %v2480_v2  ;;  %v298_v20 = vmul.f32 %v2653_v1, %v1610_v13  ;;  %v1613_v22 = vunpack.c.l.bf16 %v2418_v9 }
  0x20   :  { %v1075_v19 = vadd.f32 %v947_v12, %v427_v62  ;;  %v429_v21 = vadd.f32 %v2658_v4, %v297_v14  ;;  %v2119_v24 = vpack.c.bf16 %v1202_v15, %v1201_v10  ;;  %v817_v26 = vmul.f32 %v2666_v8, %v1865_v17 }
  0x21   :  { %v1076_v25 = vadd.f32 %v948_v16, %v428_v6  ;;  %v818_v27 = vmul.f32 %v2666_v8, %v1866_v18  ;;  %v430_v30 = vadd.f32 %v2658_v4, %v298_v20  ;;  %v1614_v31 = vunpack.c.h.bf16 %v2418_v9  ;;  %v2421_v6 = vld [vmem:[%s3795_s0 + $0x58] sm:$0xff]  }
  0x22   :  { %v1203_v29 = vmax.f32 %v1075_v19, 0.0  ;;  %v299_v32 = vmul.f32 %v2653_v1, %v1613_v22  ;;  %2541 = vst [vmem:[%s3801_s6 + $0x28] sm:$0xff] %v2119_v24   ;;  %v949_v34 = vadd.f32 %v2673_v11, %v817_v26  ;;  %v1869_v36 = vunpack.c.l.bf16 %v2481_v23  ;;  %v2422_v26 = vld [vmem:[%s3795_s0 + $0x60] sm:$0xff]  }
  0x23   :  { %v1204_v33 = vmax.f32 %v1076_v25, 0.0  ;;  %v950_v35 = vadd.f32 %v2673_v11, %v818_v27  ;;  %v300_v37 = vmul.f32 %v2653_v1, %v1614_v31  ;;  %v1870_v39 = vunpack.c.h.bf16 %v2481_v23 }
  0x24   :  { %v431_v38 = vadd.f32 %v2658_v4, %v299_v32  ;;  %v1617_v40 = vunpack.c.l.bf16 %v2419_v28  ;;  %v1077_v43 = vadd.f32 %v949_v34, %v429_v21  ;;  %v819_v45 = vmul.f32 %v2666_v8, %v1869_v36  ;;  %v2484_v21 = vld [vmem:[%s3798_s3 + $0x58] sm:$0xff]  }
  0x25   :  { %v2124_v42 = vpack.c.bf16 %v1204_v33, %v1203_v29  ;;  %v1078_v44 = vadd.f32 %v950_v35, %v430_v30  ;;  %v432_v46 = vadd.f32 %v2658_v4, %v300_v37  ;;  %v820_v47 = vmul.f32 %v2666_v8, %v1870_v39  ;;  %v2485_v39 = vld [vmem:[%s3798_s3 + $0x60] sm:$0xff]  }
  0x26   :  { %v1618_v48 = vunpack.c.h.bf16 %v2419_v28  ;;  %v301_v49 = vmul.f32 %v2653_v1, %v1617_v40  ;;  %v1205_v51 = vmax.f32 %v1077_v43, 0.0  ;;  %v951_v53 = vadd.f32 %v2673_v11, %v819_v45 }
  0x27   :  { %2542 = vst [vmem:[%s3801_s6 + $0x30] sm:$0xff] %v2124_v42   ;;  %v1206_v52 = vmax.f32 %v1078_v44, 0.0  ;;  %v1873_v54 = vunpack.c.l.bf16 %v2482_v41  ;;  %v952_v55 = vadd.f32 %v2673_v11, %v820_v47  ;;  %v1874_v58 = vunpack.c.h.bf16 %v2482_v41  ;;  %v2423_v44 = vld [vmem:[%s3795_s0 + $0x68] sm:$0xff]  }
  0x28   :  { %v302_v56 = vmul.f32 %v2653_v1, %v1618_v48  ;;  %v433_v57 = vadd.f32 %v2658_v4, %v301_v49  ;;  %v1079_v61 = vadd.f32 %v951_v53, %v431_v38  ;;  %v1621_v63 = vunpack.c.l.bf16 %v2420_v50 }
  0x29   :  { %v2129_v60 = vpack.c.bf16 %v1206_v52, %v1205_v51  ;;  %v821_v62 = vmul.f32 %v2666_v8, %v1873_v54  ;;  %v1080_v0 = vadd.f32 %v952_v55, %v432_v46  ;;  %v822_v3 = vmul.f32 %v2666_v8, %v1874_v58 }
  0x2a   :  { %v434_v2 = vadd.f32 %v2658_v4, %v302_v56  ;;  %v1622_v5 = vunpack.c.h.bf16 %v2420_v50  ;;  %v1207_v7 = vmax.f32 %v1079_v61, 0.0  ;;  %v303_v10 = vmul.f32 %v2653_v1, %v1621_v63 }
  0x2b   :  { %2543 = vst [vmem:[%s3801_s6 + $0x38] sm:$0xff] %v2129_v60   ;;  %v953_v9 = vadd.f32 %v2673_v11, %v821_v62  ;;  %v1877_v12 = vunpack.c.l.bf16 %v2483_v59  ;;  %v1208_v13 = vmax.f32 %v1080_v0, 0.0  ;;  %v954_v14 = vadd.f32 %v2673_v11, %v822_v3  ;;  %v2424_v3 = vld [vmem:[%s3795_s0 + $0x70] sm:$0xff]  }
  0x2c   :  { %v304_v15 = vmul.f32 %v2653_v1, %v1622_v5  ;;  %v1878_v16 = vunpack.c.h.bf16 %v2483_v59  ;;  %v435_v18 = vadd.f32 %v2658_v4, %v303_v10  ;;  %v1625_v20 = vunpack.c.l.bf16 %v2421_v6 }
  0x2d   :  { %v1081_v17 = vadd.f32 %v953_v9, %v433_v57  ;;  %v823_v19 = vmul.f32 %v2666_v8, %v1877_v12  ;;  %v2134_v22 = vpack.c.bf16 %v1208_v13, %v1207_v7  ;;  %v1082_v23 = vadd.f32 %v954_v14, %v434_v2  ;;  %v2486_v57 = vld [vmem:[%s3798_s3 + $0x68] sm:$0xff]  }
  0x2e   :  { %v436_v24 = vadd.f32 %v2658_v4, %v304_v15  ;;  %v824_v25 = vmul.f32 %v2666_v8, %v1878_v16  ;;  %v1626_v29 = vunpack.c.h.bf16 %v2421_v6  ;;  %v305_v30 = vmul.f32 %v2653_v1, %v1625_v20  ;;  %v2487_v15 = vld [vmem:[%s3798_s3 + $0x70] sm:$0xff]  }
  0x2f   :  { %v1209_v27 = vmax.f32 %v1081_v17, 0.0  ;;  %v955_v28 = vadd.f32 %v2673_v11, %v823_v19  ;;  %2544 = vst [vmem:[%s3801_s6 + $0x40] sm:$0xff] %v2134_v22   ;;  %v1210_v31 = vmax.f32 %v1082_v23, 0.0  ;;  %v1881_v33 = vunpack.c.l.bf16 %v2484_v21 }
  0x30   :  { %v956_v32 = vadd.f32 %v2673_v11, %v824_v25  ;;  %v1882_v34 = vunpack.c.h.bf16 %v2484_v21  ;;  %v306_v36 = vmul.f32 %v2653_v1, %v1626_v29  ;;  %v437_v37 = vadd.f32 %v2658_v4, %v305_v30 }
  0x31   :  { %v1083_v35 = vadd.f32 %v955_v28, %v435_v18  ;;  %v1629_v38 = vunpack.c.l.bf16 %v2422_v26  ;;  %v2139_v40 = vpack.c.bf16 %v1210_v31, %v1209_v27  ;;  %v825_v42 = vmul.f32 %v2666_v8, %v1881_v33 }
  0x32   :  { %v1084_v41 = vadd.f32 %v956_v32, %v436_v24  ;;  %v826_v43 = vmul.f32 %v2666_v8, %v1882_v34  ;;  %v438_v46 = vadd.f32 %v2658_v4, %v306_v36  ;;  %v1630_v47 = vunpack.c.h.bf16 %v2422_v26  ;;  %v2425_v24 = vld [vmem:[%s3795_s0 + $0x78] sm:$0xff]  }
  0x33   :  { %v1211_v45 = vmax.f32 %v1083_v35, 0.0  ;;  %v307_v48 = vmul.f32 %v2653_v1, %v1629_v38  ;;  %2545 = vst [vmem:[%s3801_s6 + $0x48] sm:$0xff] %v2139_v40   ;;  %v957_v50 = vadd.f32 %v2673_v11, %v825_v42  ;;  %v1885_v52 = vunpack.c.l.bf16 %v2485_v39  ;;  %v2426_v42 = vld [vmem:[%s3795_s0 + $0x80] sm:$0xff]  }
  0x34   :  { %v1212_v49 = vmax.f32 %v1084_v41, 0.0  ;;  %v958_v51 = vadd.f32 %v2673_v11, %v826_v43  ;;  %v308_v53 = vmul.f32 %v2653_v1, %v1630_v47  ;;  %v1886_v55 = vunpack.c.h.bf16 %v2485_v39 }
  0x35   :  { %v439_v54 = vadd.f32 %v2658_v4, %v307_v48  ;;  %v1633_v56 = vunpack.c.l.bf16 %v2423_v44  ;;  %v1085_v59 = vadd.f32 %v957_v50, %v437_v37  ;;  %v827_v61 = vmul.f32 %v2666_v8, %v1885_v52  ;;  %v2488_v37 = vld [vmem:[%s3798_s3 + $0x78] sm:$0xff]  }
  0x36   :  { %v2144_v58 = vpack.c.bf16 %v1212_v49, %v1211_v45  ;;  %v1086_v60 = vadd.f32 %v958_v51, %v438_v46  ;;  %v440_v62 = vadd.f32 %v2658_v4, %v308_v53  ;;  %v828_v63 = vmul.f32 %v2666_v8, %v1886_v55  ;;  %v2489_v55 = vld [vmem:[%s3798_s3 + $0x80] sm:$0xff]  }
  0x37   :  { %v1634_v0 = vunpack.c.h.bf16 %v2423_v44  ;;  %v309_v2 = vmul.f32 %v2653_v1, %v1633_v56  ;;  %v1213_v5 = vmax.f32 %v1085_v59, 0.0  ;;  %v959_v7 = vadd.f32 %v2673_v11, %v827_v61 }
  0x38   :  { %2546 = vst [vmem:[%s3801_s6 + $0x50] sm:$0xff] %v2144_v58   ;;  %v1214_v6 = vmax.f32 %v1086_v60, 0.0  ;;  %v1889_v9 = vunpack.c.l.bf16 %v2486_v57  ;;  %v960_v10 = vadd.f32 %v2673_v11, %v828_v63  ;;  %v1890_v14 = vunpack.c.h.bf16 %v2486_v57  ;;  %v2427_v60 = vld [vmem:[%s3795_s0 + $0x88] sm:$0xff]  }
  0x39   :  { %v310_v12 = vmul.f32 %v2653_v1, %v1634_v0  ;;  %v441_v13 = vadd.f32 %v2658_v4, %v309_v2  ;;  %v1087_v17 = vadd.f32 %v959_v7, %v439_v54  ;;  %v1637_v19 = vunpack.c.l.bf16 %v2424_v3 }
  0x3a   :  { %v2149_v16 = vpack.c.bf16 %v1214_v6, %v1213_v5  ;;  %v829_v18 = vmul.f32 %v2666_v8, %v1889_v9  ;;  %v1088_v20 = vadd.f32 %v960_v10, %v440_v62  ;;  %v830_v22 = vmul.f32 %v2666_v8, %v1890_v14 }
  0x3b   :  { %v442_v21 = vadd.f32 %v2658_v4, %v310_v12  ;;  %v1638_v23 = vunpack.c.h.bf16 %v2424_v3  ;;  %v1215_v25 = vmax.f32 %v1087_v17, 0.0  ;;  %v311_v27 = vmul.f32 %v2653_v1, %v1637_v19 }
  0x3c   :  { %2547 = vst [vmem:[%s3801_s6 + $0x58] sm:$0xff] %v2149_v16   ;;  %v961_v26 = vadd.f32 %v2673_v11, %v829_v18  ;;  %v1893_v28 = vunpack.c.l.bf16 %v2487_v15  ;;  %v1216_v29 = vmax.f32 %v1088_v20, 0.0  ;;  %v962_v30 = vadd.f32 %v2673_v11, %v830_v22  ;;  %v2428_v22 = vld [vmem:[%s3795_s0 + $0x90] sm:$0xff]  }
  0x3d   :  { %v312_v31 = vmul.f32 %v2653_v1, %v1638_v23  ;;  %v1894_v32 = vunpack.c.h.bf16 %v2487_v15  ;;  %v443_v34 = vadd.f32 %v2658_v4, %v311_v27  ;;  %v1641_v36 = vunpack.c.l.bf16 %v2425_v24 }
  0x3e   :  { %v1089_v33 = vadd.f32 %v961_v26, %v441_v13  ;;  %v831_v35 = vmul.f32 %v2666_v8, %v1893_v28  ;;  %v2154_v38 = vpack.c.bf16 %v1216_v29, %v1215_v25  ;;  %v1090_v39 = vadd.f32 %v962_v30, %v442_v21  ;;  %v2490_v13 = vld [vmem:[%s3798_s3 + $0x88] sm:$0xff]  }
  0x3f   :  { %v444_v40 = vadd.f32 %v2658_v4, %v312_v31  ;;  %v832_v41 = vmul.f32 %v2666_v8, %v1894_v32  ;;  %v1642_v45 = vunpack.c.h.bf16 %v2425_v24  ;;  %v313_v46 = vmul.f32 %v2653_v1, %v1641_v36  ;;  %v2491_v31 = vld [vmem:[%s3798_s3 + $0x90] sm:$0xff]  }
  0x40   :  { %v1217_v43 = vmax.f32 %v1089_v33, 0.0  ;;  %v963_v44 = vadd.f32 %v2673_v11, %v831_v35  ;;  %2548 = vst [vmem:[%s3801_s6 + $0x60] sm:$0xff] %v2154_v38   ;;  %v1218_v47 = vmax.f32 %v1090_v39, 0.0  ;;  %v1897_v49 = vunpack.c.l.bf16 %v2488_v37 }
  0x41   :  { %v964_v48 = vadd.f32 %v2673_v11, %v832_v41  ;;  %v1898_v50 = vunpack.c.h.bf16 %v2488_v37  ;;  %v314_v52 = vmul.f32 %v2653_v1, %v1642_v45  ;;  %v445_v53 = vadd.f32 %v2658_v4, %v313_v46 }
  0x42   :  { %v1091_v51 = vadd.f32 %v963_v44, %v443_v34  ;;  %v1645_v54 = vunpack.c.l.bf16 %v2426_v42  ;;  %v2159_v56 = vpack.c.bf16 %v1218_v47, %v1217_v43  ;;  %v833_v58 = vmul.f32 %v2666_v8, %v1897_v49 }
  0x43   :  { %v1092_v57 = vadd.f32 %v964_v48, %v444_v40  ;;  %v834_v59 = vmul.f32 %v2666_v8, %v1898_v50  ;;  %v446_v62 = vadd.f32 %v2658_v4, %v314_v52  ;;  %v1646_v63 = vunpack.c.h.bf16 %v2426_v42  ;;  %v2429_v40 = vld [vmem:[%s3795_s0 + $0x98] sm:$0xff]  }
  0x44   :  { %v1219_v61 = vmax.f32 %v1091_v51, 0.0  ;;  %v315_v0 = vmul.f32 %v2653_v1, %v1645_v54  ;;  %2549 = vst [vmem:[%s3801_s6 + $0x68] sm:$0xff] %v2159_v56   ;;  %v965_v3 = vadd.f32 %v2673_v11, %v833_v58  ;;  %v1901_v6 = vunpack.c.l.bf16 %v2489_v55  ;;  %v2430_v58 = vld [vmem:[%s3795_s0 + $0xa0] sm:$0xff]  }
  0x45   :  { %v1220_v2 = vmax.f32 %v1092_v57, 0.0  ;;  %v966_v5 = vadd.f32 %v2673_v11, %v834_v59  ;;  %v316_v7 = vmul.f32 %v2653_v1, %v1646_v63  ;;  %v1902_v10 = vunpack.c.h.bf16 %v2489_v55 }
  0x46   :  { %v447_v9 = vadd.f32 %v2658_v4, %v315_v0  ;;  %v1649_v12 = vunpack.c.l.bf16 %v2427_v60  ;;  %v1093_v15 = vadd.f32 %v965_v3, %v445_v53  ;;  %v835_v17 = vmul.f32 %v2666_v8, %v1901_v6  ;;  %v2492_v53 = vld [vmem:[%s3798_s3 + $0x98] sm:$0xff]  }
  0x47   :  { %v2164_v14 = vpack.c.bf16 %v1220_v2, %v1219_v61  ;;  %v1094_v16 = vadd.f32 %v966_v5, %v446_v62  ;;  %v448_v18 = vadd.f32 %v2658_v4, %v316_v7  ;;  %v836_v19 = vmul.f32 %v2666_v8, %v1902_v10  ;;  %v2493_v10 = vld [vmem:[%s3798_s3 + $0xa0] sm:$0xff]  }
  0x48   :  { %v1650_v20 = vunpack.c.h.bf16 %v2427_v60  ;;  %v317_v21 = vmul.f32 %v2653_v1, %v1649_v12  ;;  %v1221_v23 = vmax.f32 %v1093_v15, 0.0  ;;  %v967_v25 = vadd.f32 %v2673_v11, %v835_v17 }
  0x49   :  { %2550 = vst [vmem:[%s3801_s6 + $0x70] sm:$0xff] %v2164_v14   ;;  %v1222_v24 = vmax.f32 %v1094_v16, 0.0  ;;  %v1905_v26 = vunpack.c.l.bf16 %v2490_v13  ;;  %v968_v27 = vadd.f32 %v2673_v11, %v836_v19  ;;  %v1906_v30 = vunpack.c.h.bf16 %v2490_v13  ;;  %v2431_v16 = vld [vmem:[%s3795_s0 + $0xa8] sm:$0xff]  }
  0x4a   :  { %v318_v28 = vmul.f32 %v2653_v1, %v1650_v20  ;;  %v449_v29 = vadd.f32 %v2658_v4, %v317_v21  ;;  %v1095_v33 = vadd.f32 %v967_v25, %v447_v9  ;;  %v1653_v35 = vunpack.c.l.bf16 %v2428_v22 }
  0x4b   :  { %v2169_v32 = vpack.c.bf16 %v1222_v24, %v1221_v23  ;;  %v837_v34 = vmul.f32 %v2666_v8, %v1905_v26  ;;  %v1096_v36 = vadd.f32 %v968_v27, %v448_v18  ;;  %v838_v38 = vmul.f32 %v2666_v8, %v1906_v30 }
  0x4c   :  { %v450_v37 = vadd.f32 %v2658_v4, %v318_v28  ;;  %v1654_v39 = vunpack.c.h.bf16 %v2428_v22  ;;  %v1223_v41 = vmax.f32 %v1095_v33, 0.0  ;;  %v319_v43 = vmul.f32 %v2653_v1, %v1653_v35 }
  0x4d   :  { %2551 = vst [vmem:[%s3801_s6 + $0x78] sm:$0xff] %v2169_v32   ;;  %v969_v42 = vadd.f32 %v2673_v11, %v837_v34  ;;  %v1909_v44 = vunpack.c.l.bf16 %v2491_v31  ;;  %v1224_v45 = vmax.f32 %v1096_v36, 0.0  ;;  %v970_v46 = vadd.f32 %v2673_v11, %v838_v38  ;;  %v2432_v38 = vld [vmem:[%s3795_s0 + $0xb0] sm:$0xff]  }
  0x4e   :  { %v320_v47 = vmul.f32 %v2653_v1, %v1654_v39  ;;  %v1910_v48 = vunpack.c.h.bf16 %v2491_v31  ;;  %v451_v50 = vadd.f32 %v2658_v4, %v319_v43  ;;  %v1657_v52 = vunpack.c.l.bf16 %v2429_v40 }
  0x4f   :  { %v1097_v49 = vadd.f32 %v969_v42, %v449_v29  ;;  %v839_v51 = vmul.f32 %v2666_v8, %v1909_v44  ;;  %v2174_v54 = vpack.c.bf16 %v1224_v45, %v1223_v41  ;;  %v1098_v55 = vadd.f32 %v970_v46, %v450_v37  ;;  %v2494_v29 = vld [vmem:[%s3798_s3 + $0xa8] sm:$0xff]  }
  0x50   :  { %v452_v56 = vadd.f32 %v2658_v4, %v320_v47  ;;  %v840_v57 = vmul.f32 %v2666_v8, %v1910_v48  ;;  %v1658_v61 = vunpack.c.h.bf16 %v2429_v40  ;;  %v321_v62 = vmul.f32 %v2653_v1, %v1657_v52  ;;  %v2495_v47 = vld [vmem:[%s3798_s3 + $0xb0] sm:$0xff]  }
  0x51   :  { %v1225_v59 = vmax.f32 %v1097_v49, 0.0  ;;  %v971_v60 = vadd.f32 %v2673_v11, %v839_v51  ;;  %2552 = vst [vmem:[%s3801_s6 + $0x80] sm:$0xff] %v2174_v54   ;;  %v1226_v63 = vmax.f32 %v1098_v55, 0.0  ;;  %v1913_v2 = vunpack.c.l.bf16 %v2492_v53 }
  0x52   :  { %v972_v0 = vadd.f32 %v2673_v11, %v840_v57  ;;  %v1914_v3 = vunpack.c.h.bf16 %v2492_v53  ;;  %v322_v6 = vmul.f32 %v2653_v1, %v1658_v61  ;;  %v453_v7 = vadd.f32 %v2658_v4, %v321_v62 }
  0x53   :  { %v1099_v5 = vadd.f32 %v971_v60, %v451_v50  ;;  %v1661_v9 = vunpack.c.l.bf16 %v2430_v58  ;;  %v2179_v12 = vpack.c.bf16 %v1226_v63, %v1225_v59  ;;  %v841_v14 = vmul.f32 %v2666_v8, %v1913_v2 }
  0x54   :  { %v1100_v13 = vadd.f32 %v972_v0, %v452_v56  ;;  %v842_v15 = vmul.f32 %v2666_v8, %v1914_v3  ;;  %v454_v18 = vadd.f32 %v2658_v4, %v322_v6  ;;  %v1662_v19 = vunpack.c.h.bf16 %v2430_v58  ;;  %v2433_v56 = vld [vmem:[%s3795_s0 + $0xb8] sm:$0xff]  }
  0x55   :  { %v1227_v17 = vmax.f32 %v1099_v5, 0.0  ;;  %v323_v20 = vmul.f32 %v2653_v1, %v1661_v9  ;;  %2553 = vst [vmem:[%s3801_s6 + $0x88] sm:$0xff] %v2179_v12   ;;  %v973_v22 = vadd.f32 %v2673_v11, %v841_v14  ;;  %v1917_v24 = vunpack.c.l.bf16 %v2493_v10  ;;  %v2434_v14 = vld [vmem:[%s3795_s0 + $0xc0] sm:$0xff]  }
  0x56   :  { %v1228_v21 = vmax.f32 %v1100_v13, 0.0  ;;  %v974_v23 = vadd.f32 %v2673_v11, %v842_v15  ;;  %v324_v25 = vmul.f32 %v2653_v1, %v1662_v19  ;;  %v1918_v27 = vunpack.c.h.bf16 %v2493_v10 }
  0x57   :  { %v455_v26 = vadd.f32 %v2658_v4, %v323_v20  ;;  %v1665_v28 = vunpack.c.l.bf16 %v2431_v16  ;;  %v1101_v31 = vadd.f32 %v973_v22, %v453_v7  ;;  %v843_v33 = vmul.f32 %v2666_v8, %v1917_v24  ;;  %v2496_v7 = vld [vmem:[%s3798_s3 + $0xb8] sm:$0xff]  }
  0x58   :  { %v2184_v30 = vpack.c.bf16 %v1228_v21, %v1227_v17  ;;  %v1102_v32 = vadd.f32 %v974_v23, %v454_v18  ;;  %v456_v34 = vadd.f32 %v2658_v4, %v324_v25  ;;  %v844_v35 = vmul.f32 %v2666_v8, %v1918_v27  ;;  %v2497_v27 = vld [vmem:[%s3798_s3 + $0xc0] sm:$0xff]  }
  0x59   :  { %v1666_v36 = vunpack.c.h.bf16 %v2431_v16  ;;  %v325_v37 = vmul.f32 %v2653_v1, %v1665_v28  ;;  %v1229_v39 = vmax.f32 %v1101_v31, 0.0  ;;  %v975_v41 = vadd.f32 %v2673_v11, %v843_v33 }
  0x5a   :  { %2554 = vst [vmem:[%s3801_s6 + $0x90] sm:$0xff] %v2184_v30   ;;  %v1230_v40 = vmax.f32 %v1102_v32, 0.0  ;;  %v1921_v42 = vunpack.c.l.bf16 %v2494_v29  ;;  %v976_v43 = vadd.f32 %v2673_v11, %v844_v35  ;;  %v1922_v46 = vunpack.c.h.bf16 %v2494_v29  ;;  %v2435_v32 = vld [vmem:[%s3795_s0 + $0xc8] sm:$0xff]  }
  0x5b   :  { %v326_v44 = vmul.f32 %v2653_v1, %v1666_v36  ;;  %v457_v45 = vadd.f32 %v2658_v4, %v325_v37  ;;  %v1103_v49 = vadd.f32 %v975_v41, %v455_v26  ;;  %v1669_v51 = vunpack.c.l.bf16 %v2432_v38 }
  0x5c   :  { %v2189_v48 = vpack.c.bf16 %v1230_v40, %v1229_v39  ;;  %v845_v50 = vmul.f32 %v2666_v8, %v1921_v42  ;;  %v1104_v52 = vadd.f32 %v976_v43, %v456_v34  ;;  %v846_v54 = vmul.f32 %v2666_v8, %v1922_v46 }
  0x5d   :  { %v458_v53 = vadd.f32 %v2658_v4, %v326_v44  ;;  %v1670_v55 = vunpack.c.h.bf16 %v2432_v38  ;;  %v1231_v57 = vmax.f32 %v1103_v49, 0.0  ;;  %v327_v59 = vmul.f32 %v2653_v1, %v1669_v51 }
  0x5e   :  { %2555 = vst [vmem:[%s3801_s6 + $0x98] sm:$0xff] %v2189_v48   ;;  %v977_v58 = vadd.f32 %v2673_v11, %v845_v50  ;;  %v1925_v60 = vunpack.c.l.bf16 %v2495_v47  ;;  %v1232_v61 = vmax.f32 %v1104_v52, 0.0  ;;  %v978_v62 = vadd.f32 %v2673_v11, %v846_v54  ;;  %v2436_v54 = vld [vmem:[%s3795_s0 + $0xd0] sm:$0xff]  }
  0x5f   :  { %v328_v63 = vmul.f32 %v2653_v1, %v1670_v55  ;;  %v1926_v0 = vunpack.c.h.bf16 %v2495_v47  ;;  %v459_v3 = vadd.f32 %v2658_v4, %v327_v59  ;;  %v1673_v6 = vunpack.c.l.bf16 %v2433_v56 }
  0x60   :  { %v1105_v2 = vadd.f32 %v977_v58, %v457_v45  ;;  %v847_v5 = vmul.f32 %v2666_v8, %v1925_v60  ;;  %v2194_v9 = vpack.c.bf16 %v1232_v61, %v1231_v57  ;;  %v1106_v10 = vadd.f32 %v978_v62, %v458_v53  ;;  %v2498_v45 = vld [vmem:[%s3798_s3 + $0xc8] sm:$0xff]  }
  0x61   :  { %v460_v12 = vadd.f32 %v2658_v4, %v328_v63  ;;  %v848_v13 = vmul.f32 %v2666_v8, %v1926_v0  ;;  %v1674_v17 = vunpack.c.h.bf16 %v2433_v56  ;;  %v329_v18 = vmul.f32 %v2653_v1, %v1673_v6  ;;  %v2499_v63 = vld [vmem:[%s3798_s3 + $0xd0] sm:$0xff]  }
  0x62   :  { %v1233_v15 = vmax.f32 %v1105_v2, 0.0  ;;  %v979_v16 = vadd.f32 %v2673_v11, %v847_v5  ;;  %2556 = vst [vmem:[%s3801_s6 + $0xa0] sm:$0xff] %v2194_v9   ;;  %v1234_v19 = vmax.f32 %v1106_v10, 0.0  ;;  %v1929_v21 = vunpack.c.l.bf16 %v2496_v7 }
  0x63   :  { %v980_v20 = vadd.f32 %v2673_v11, %v848_v13  ;;  %v1930_v22 = vunpack.c.h.bf16 %v2496_v7  ;;  %v330_v24 = vmul.f32 %v2653_v1, %v1674_v17  ;;  %v461_v25 = vadd.f32 %v2658_v4, %v329_v18 }
  0x64   :  { %v1107_v23 = vadd.f32 %v979_v16, %v459_v3  ;;  %v1677_v26 = vunpack.c.l.bf16 %v2434_v14  ;;  %v2199_v28 = vpack.c.bf16 %v1234_v19, %v1233_v15  ;;  %v849_v30 = vmul.f32 %v2666_v8, %v1929_v21  ;;  %v3120_v16 = vld [vmem:[%s3800_s5] ss:$0 sm:$0xff] }
  0x65   :  { %v1108_v29 = vadd.f32 %v980_v20, %v460_v12  ;;  %v850_v31 = vmul.f32 %v2666_v8, %v1930_v22  ;;  %v462_v34 = vadd.f32 %v2658_v4, %v330_v24  ;;  %v1678_v35 = vunpack.c.h.bf16 %v2434_v14  ;;  %v3114_v14 = vld [vmem:[%s3796_s1] ss:$0 sm:$0xff] }
  0x66   :  { %v1235_v33 = vmax.f32 %v1107_v23, 0.0  ;;  %v331_v36 = vmul.f32 %v2653_v1, %v1677_v26  ;;  %2557 = vst [vmem:[%s3801_s6 + $0xa8] sm:$0xff] %v2199_v28   ;;  %v981_v38 = vadd.f32 %v2673_v11, %v849_v30  ;;  %v1933_v40 = vunpack.c.l.bf16 %v2497_v27  ;;  %v3127_v20 = vld [vmem:[%s3797_s2] ss:$0 sm:$0xff] }
  0x67   :  { %v1236_v37 = vmax.f32 %v1108_v29, 0.0  ;;  %v982_v39 = vadd.f32 %v2673_v11, %v850_v31  ;;  %v332_v41 = vmul.f32 %v2653_v1, %v1678_v35  ;;  %v1934_v43 = vunpack.c.h.bf16 %v2497_v27  ;;  %v3133_v22 = vld [vmem:[%s3799_s4] ss:$0 sm:$0xff] }
  0x68   :  { %v463_v42 = vadd.f32 %v2658_v4, %v331_v36  ;;  %v1681_v44 = vunpack.c.l.bf16 %v2435_v32  ;;  %v1109_v47 = vadd.f32 %v981_v38, %v461_v25  ;;  %v851_v49 = vmul.f32 %v2666_v8, %v1933_v40  ;;  %v2500_v25 = vld [vmem:[%s3798_s3 + $0xd8] sm:$0xff]   ;;  %v2438_v30 = vld [vmem:[%s3795_s0 + $0xe0] sm:$0xff]  }
  0x69   :  { %v2204_v46 = vpack.c.bf16 %v1236_v37, %v1235_v33  ;;  %v1110_v48 = vadd.f32 %v982_v39, %v462_v34  ;;  %v464_v50 = vadd.f32 %v2658_v4, %v332_v41  ;;  %v852_v51 = vmul.f32 %v2666_v8, %v1934_v43  ;;  %v2501_v43 = vld [vmem:[%s3798_s3 + $0xe0] sm:$0xff]  }
  0x6a   :  { %v1682_v52 = vunpack.c.h.bf16 %v2435_v32  ;;  %v333_v53 = vmul.f32 %v2653_v1, %v1681_v44  ;;  %v1237_v55 = vmax.f32 %v1109_v47, 0.0  ;;  %v983_v57 = vadd.f32 %v2673_v11, %v851_v49 }
  0x6b   :  { %2558 = vst [vmem:[%s3801_s6 + $0xb0] sm:$0xff] %v2204_v46   ;;  %v1238_v56 = vmax.f32 %v1110_v48, 0.0  ;;  %v1937_v58 = vunpack.c.l.bf16 %v2498_v45  ;;  %v984_v59 = vadd.f32 %v2673_v11, %v852_v51  ;;  %v1938_v62 = vunpack.c.h.bf16 %v2498_v45  ;;  %v2439_v48 = vld [vmem:[%s3795_s0 + $0xe8] sm:$0xff]  }
  0x6c   :  { %v334_v60 = vmul.f32 %v2653_v1, %v1682_v52  ;;  %v465_v61 = vadd.f32 %v2658_v4, %v333_v53  ;;  %v1111_v2 = vadd.f32 %v983_v57, %v463_v42  ;;  %v1685_v5 = vunpack.c.l.bf16 %v2436_v54  ;;  %v2437_v1 = vld [vmem:[%s3795_s0 + $0xd8] sm:$0xff]  }
  0x6d   :  { %v2209_v0 = vpack.c.bf16 %v1238_v56, %v1237_v55  ;;  %v853_v3 = vmul.f32 %v2666_v8, %v1937_v58  ;;  %v1112_v6 = vadd.f32 %v984_v59, %v464_v50  ;;  %v854_v9 = vmul.f32 %v2666_v8, %v1938_v62 }
  0x6e   :  { %v466_v7 = vadd.f32 %v2658_v4, %v334_v60  ;;  %v1686_v10 = vunpack.c.h.bf16 %v2436_v54  ;;  %v1239_v12 = vmax.f32 %v1111_v2, 0.0  ;;  %v335_v4 = vmul.f32 %v3114_v14, %v1685_v5 }
  0x6f   :  { %2559 = vst [vmem:[%s3801_s6 + $0xb8] sm:$0xff] %v2209_v0   ;;  %v985_v13 = vadd.f32 %v2673_v11, %v853_v3  ;;  %v1941_v8 = vunpack.c.l.bf16 %v2499_v63  ;;  %v1240_v15 = vmax.f32 %v1112_v6, 0.0  ;;  %v986_v17 = vadd.f32 %v3120_v16, %v854_v9  ;;  %v2440_v9 = vld [vmem:[%s3795_s0 + $0xf0] sm:$0xff]  }
  0x70   :  { %v336_v18 = vmul.f32 %v3114_v14, %v1686_v10  ;;  %v1942_v19 = vunpack.c.h.bf16 %v2499_v63  ;;  %v467_v21 = vadd.f32 %v3127_v20, %v335_v4  ;;  %v1689_v24 = vunpack.c.l.bf16 %v2437_v1 }
  0x71   :  { %v1113_v11 = vadd.f32 %v985_v13, %v465_v61  ;;  %v855_v23 = vmul.f32 %v3133_v22, %v1941_v8  ;;  %v2214_v26 = vpack.c.bf16 %v1240_v15, %v1239_v12  ;;  %v1114_v27 = vadd.f32 %v986_v17, %v466_v7  ;;  %v2502_v61 = vld [vmem:[%s3798_s3 + $0xe8] sm:$0xff]  }
  0x72   :  { %v468_v28 = vadd.f32 %v3127_v20, %v336_v18  ;;  %v856_v29 = vmul.f32 %v3133_v22, %v1942_v19  ;;  %v1690_v33 = vunpack.c.h.bf16 %v2437_v1  ;;  %v337_v34 = vmul.f32 %v3114_v14, %v1689_v24  ;;  %v2503_v18 = vld [vmem:[%s3798_s3 + $0xf0] sm:$0xff]  }
  0x73   :  { %v1241_v31 = vmax.f32 %v1113_v11, 0.0  ;;  %v987_v32 = vadd.f32 %v3120_v16, %v855_v23  ;;  %2560 = vst [vmem:[%s3801_s6 + $0xc0] sm:$0xff] %v2214_v26   ;;  %v1242_v35 = vmax.f32 %v1114_v27, 0.0  ;;  %v1945_v37 = vunpack.c.l.bf16 %v2500_v25 }
  0x74   :  { %v988_v36 = vadd.f32 %v3120_v16, %v856_v29  ;;  %v1946_v38 = vunpack.c.h.bf16 %v2500_v25  ;;  %v338_v40 = vmul.f32 %v3114_v14, %v1690_v33  ;;  %v469_v41 = vadd.f32 %v3127_v20, %v337_v34 }
  0x75   :  { %v1115_v39 = vadd.f32 %v987_v32, %v467_v21  ;;  %v1693_v42 = vunpack.c.l.bf16 %v2438_v30  ;;  %v2219_v44 = vpack.c.bf16 %v1242_v35, %v1241_v31  ;;  %v857_v46 = vmul.f32 %v3133_v22, %v1945_v37 }
  0x76   :  { %v1116_v45 = vadd.f32 %v988_v36, %v468_v28  ;;  %v858_v47 = vmul.f32 %v3133_v22, %v1946_v38  ;;  %v470_v50 = vadd.f32 %v3127_v20, %v338_v40  ;;  %v1694_v51 = vunpack.c.h.bf16 %v2438_v30  ;;  %v2441_v28 = vld [vmem:[%s3795_s0 + $0xf8] sm:$0xff]  }
  0x77   :  { %v1243_v49 = vmax.f32 %v1115_v39, 0.0  ;;  %v339_v52 = vmul.f32 %v3114_v14, %v1693_v42  ;;  %2561 = vst [vmem:[%s3801_s6 + $0xc8] sm:$0xff] %v2219_v44   ;;  %v989_v54 = vadd.f32 %v3120_v16, %v857_v46  ;;  %v1949_v56 = vunpack.c.l.bf16 %v2501_v43  ;;  %v2442_v46 = vld [vmem:[%s3795_s0 + $0x100] sm:$0xff]  }
  0x78   :  { %v1244_v53 = vmax.f32 %v1116_v45, 0.0  ;;  %v990_v55 = vadd.f32 %v3120_v16, %v858_v47  ;;  %v340_v57 = vmul.f32 %v3114_v14, %v1694_v51  ;;  %v1950_v59 = vunpack.c.h.bf16 %v2501_v43 }
  0x79   :  { %v471_v58 = vadd.f32 %v3127_v20, %v339_v52  ;;  %v1697_v60 = vunpack.c.l.bf16 %v2439_v48  ;;  %v1117_v63 = vadd.f32 %v989_v54, %v469_v41  ;;  %v859_v2 = vmul.f32 %v3133_v22, %v1949_v56  ;;  %v2504_v41 = vld [vmem:[%s3798_s3 + $0xf8] sm:$0xff]  }
  0x7a   :  { %v2224_v62 = vpack.c.bf16 %v1244_v53, %v1243_v49  ;;  %v1118_v0 = vadd.f32 %v990_v55, %v470_v50  ;;  %v472_v3 = vadd.f32 %v3127_v20, %v340_v57  ;;  %v860_v5 = vmul.f32 %v3133_v22, %v1950_v59  ;;  %v2505_v59 = vld [vmem:[%s3798_s3 + $0x100] sm:$0xff]  }
  0x7b   :  { %v1698_v6 = vunpack.c.h.bf16 %v2439_v48  ;;  %v341_v7 = vmul.f32 %v3114_v14, %v1697_v60  ;;  %v1245_v10 = vmax.f32 %v1117_v63, 0.0  ;;  %v991_v12 = vadd.f32 %v3120_v16, %v859_v2 }
  0x7c   :  { %2562 = vst [vmem:[%s3801_s6 + $0xd0] sm:$0xff] %v2224_v62   ;;  %v1246_v1 = vmax.f32 %v1118_v0, 0.0  ;;  %v1953_v13 = vunpack.c.l.bf16 %v2502_v61  ;;  %v992_v4 = vadd.f32 %v3120_v16, %v860_v5  ;;  %v1954_v17 = vunpack.c.h.bf16 %v2502_v61  ;;  %v2443_v0 = vld [vmem:[%s3795_s0 + $0x108] sm:$0xff]  }
  0x7d   :  { %v342_v8 = vmul.f32 %v3114_v14, %v1698_v6  ;;  %v473_v15 = vadd.f32 %v3127_v20, %v341_v7  ;;  %v1119_v11 = vadd.f32 %v991_v12, %v471_v58  ;;  %v1701_v23 = vunpack.c.l.bf16 %v2440_v9 }
  0x7e   :  { %v2229_v19 = vpack.c.bf16 %v1246_v1, %v1245_v10  ;;  %v861_v21 = vmul.f32 %v3133_v22, %v1953_v13  ;;  %v1120_v24 = vadd.f32 %v992_v4, %v472_v3  ;;  %v862_v26 = vmul.f32 %v3133_v22, %v1954_v17 }
  0x7f   :  { %v474_v25 = vadd.f32 %v3127_v20, %v342_v8  ;;  %v1702_v27 = vunpack.c.h.bf16 %v2440_v9  ;;  %v1247_v29 = vmax.f32 %v1119_v11, 0.0  ;;  %v343_v31 = vmul.f32 %v3114_v14, %v1701_v23 }
  0x80   :  { %2563 = vst [vmem:[%s3801_s6 + $0xd8] sm:$0xff] %v2229_v19   ;;  %v993_v30 = vadd.f32 %v3120_v16, %v861_v21  ;;  %v1957_v32 = vunpack.c.l.bf16 %v2503_v18  ;;  %v1248_v33 = vmax.f32 %v1120_v24, 0.0  ;;  %v994_v34 = vadd.f32 %v3120_v16, %v862_v26  ;;  %v2444_v26 = vld [vmem:[%s3795_s0 + $0x110] sm:$0xff]  }
  0x81   :  { %v344_v35 = vmul.f32 %v3114_v14, %v1702_v27  ;;  %v1958_v36 = vunpack.c.h.bf16 %v2503_v18  ;;  %v475_v38 = vadd.f32 %v3127_v20, %v343_v31  ;;  %v1705_v40 = vunpack.c.l.bf16 %v2441_v28 }
  0x82   :  { %v1121_v37 = vadd.f32 %v993_v30, %v473_v15  ;;  %v863_v39 = vmul.f32 %v3133_v22, %v1957_v32  ;;  %v2234_v42 = vpack.c.bf16 %v1248_v33, %v1247_v29  ;;  %v1122_v43 = vadd.f32 %v994_v34, %v474_v25  ;;  %v2506_v15 = vld [vmem:[%s3798_s3 + $0x108] sm:$0xff]  }
  0x83   :  { %v476_v44 = vadd.f32 %v3127_v20, %v344_v35  ;;  %v864_v45 = vmul.f32 %v3133_v22, %v1958_v36  ;;  %v1706_v49 = vunpack.c.h.bf16 %v2441_v28  ;;  %v345_v50 = vmul.f32 %v3114_v14, %v1705_v40  ;;  %v2507_v35 = vld [vmem:[%s3798_s3 + $0x110] sm:$0xff]  }
  0x84   :  { %v1249_v47 = vmax.f32 %v1121_v37, 0.0  ;;  %v995_v48 = vadd.f32 %v3120_v16, %v863_v39  ;;  %2564 = vst [vmem:[%s3801_s6 + $0xe0] sm:$0xff] %v2234_v42   ;;  %v1250_v51 = vmax.f32 %v1122_v43, 0.0  ;;  %v1961_v53 = vunpack.c.l.bf16 %v2504_v41 }
  0x85   :  { %v996_v52 = vadd.f32 %v3120_v16, %v864_v45  ;;  %v1962_v54 = vunpack.c.h.bf16 %v2504_v41  ;;  %v346_v56 = vmul.f32 %v3114_v14, %v1706_v49  ;;  %v477_v57 = vadd.f32 %v3127_v20, %v345_v50 }
  0x86   :  { %v1123_v55 = vadd.f32 %v995_v48, %v475_v38  ;;  %v1709_v58 = vunpack.c.l.bf16 %v2442_v46  ;;  %v2239_v60 = vpack.c.bf16 %v1250_v51, %v1249_v47  ;;  %v865_v62 = vmul.f32 %v3133_v22, %v1961_v53 }
  0x87   :  { %v1124_v61 = vadd.f32 %v996_v52, %v476_v44  ;;  %v866_v63 = vmul.f32 %v3133_v22, %v1962_v54  ;;  %v478_v3 = vadd.f32 %v3127_v20, %v346_v56  ;;  %v1710_v5 = vunpack.c.h.bf16 %v2442_v46  ;;  %v2445_v44 = vld [vmem:[%s3795_s0 + $0x118] sm:$0xff]  }
  0x88   :  { %v1251_v2 = vmax.f32 %v1123_v55, 0.0  ;;  %v347_v6 = vmul.f32 %v3114_v14, %v1709_v58  ;;  %2565 = vst [vmem:[%s3801_s6 + $0xe8] sm:$0xff] %v2239_v60   ;;  %v997_v9 = vadd.f32 %v3120_v16, %v865_v62  ;;  %v1965_v1 = vunpack.c.l.bf16 %v2505_v59  ;;  %v2446_v62 = vld [vmem:[%s3795_s0 + $0x120] sm:$0xff]  }
  0x89   :  { %v1252_v7 = vmax.f32 %v1124_v61, 0.0  ;;  %v998_v10 = vadd.f32 %v3120_v16, %v866_v63  ;;  %v348_v12 = vmul.f32 %v3114_v14, %v1710_v5  ;;  %v1966_v4 = vunpack.c.h.bf16 %v2505_v59 }
  0x8a   :  { %v479_v13 = vadd.f32 %v3127_v20, %v347_v6  ;;  %v1713_v8 = vunpack.c.l.bf16 %v2443_v0  ;;  %v1125_v18 = vadd.f32 %v997_v9, %v477_v57  ;;  %v867_v11 = vmul.f32 %v3133_v22, %v1965_v1  ;;  %v2508_v57 = vld [vmem:[%s3798_s3 + $0x118] sm:$0xff]  }
  0x8b   :  { %v2244_v17 = vpack.c.bf16 %v1252_v7, %v1251_v2  ;;  %v1126_v19 = vadd.f32 %v998_v10, %v478_v3  ;;  %v480_v21 = vadd.f32 %v3127_v20, %v348_v12  ;;  %v868_v23 = vmul.f32 %v3133_v22, %v1966_v4  ;;  %v2509_v4 = vld [vmem:[%s3798_s3 + $0x120] sm:$0xff]  }
  0x8c   :  { %v1714_v24 = vunpack.c.h.bf16 %v2443_v0  ;;  %v349_v25 = vmul.f32 %v3114_v14, %v1713_v8  ;;  %v1253_v27 = vmax.f32 %v1125_v18, 0.0  ;;  %v999_v29 = vadd.f32 %v3120_v16, %v867_v11 }
  0x8d   :  { %2566 = vst [vmem:[%s3801_s6 + $0xf0] sm:$0xff] %v2244_v17   ;;  %v1254_v28 = vmax.f32 %v1126_v19, 0.0  ;;  %v1969_v30 = vunpack.c.l.bf16 %v2506_v15  ;;  %v1000_v31 = vadd.f32 %v3120_v16, %v868_v23  ;;  %v1970_v34 = vunpack.c.h.bf16 %v2506_v15  ;;  %v2447_v19 = vld [vmem:[%s3795_s0 + $0x128] sm:$0xff]  }
  0x8e   :  { %v350_v32 = vmul.f32 %v3114_v14, %v1714_v24  ;;  %v481_v33 = vadd.f32 %v3127_v20, %v349_v25  ;;  %v1127_v37 = vadd.f32 %v999_v29, %v479_v13  ;;  %v1717_v39 = vunpack.c.l.bf16 %v2444_v26 }
  0x8f   :  { %v2249_v36 = vpack.c.bf16 %v1254_v28, %v1253_v27  ;;  %v869_v38 = vmul.f32 %v3133_v22, %v1969_v30  ;;  %v1128_v40 = vadd.f32 %v1000_v31, %v480_v21  ;;  %v870_v42 = vmul.f32 %v3133_v22, %v1970_v34 }
  0x90   :  { %v482_v41 = vadd.f32 %v3127_v20, %v350_v32  ;;  %v1718_v43 = vunpack.c.h.bf16 %v2444_v26  ;;  %v1255_v45 = vmax.f32 %v1127_v37, 0.0  ;;  %v351_v47 = vmul.f32 %v3114_v14, %v1717_v39 }
  0x91   :  { %2567 = vst [vmem:[%s3801_s6 + $0xf8] sm:$0xff] %v2249_v36   ;;  %v1001_v46 = vadd.f32 %v3120_v16, %v869_v38  ;;  %v1973_v48 = vunpack.c.l.bf16 %v2507_v35  ;;  %v1256_v49 = vmax.f32 %v1128_v40, 0.0  ;;  %v1002_v50 = vadd.f32 %v3120_v16, %v870_v42  ;;  %v2448_v42 = vld [vmem:[%s3795_s0 + $0x130] sm:$0xff]  }
  0x92   :  { %v352_v51 = vmul.f32 %v3114_v14, %v1718_v43  ;;  %v1974_v52 = vunpack.c.h.bf16 %v2507_v35  ;;  %v483_v54 = vadd.f32 %v3127_v20, %v351_v47  ;;  %v1721_v56 = vunpack.c.l.bf16 %v2445_v44 }
  0x93   :  { %v1129_v53 = vadd.f32 %v1001_v46, %v481_v33  ;;  %v871_v55 = vmul.f32 %v3133_v22, %v1973_v48  ;;  %v2254_v58 = vpack.c.bf16 %v1256_v49, %v1255_v45  ;;  %v1130_v59 = vadd.f32 %v1002_v50, %v482_v41  ;;  %v2510_v33 = vld [vmem:[%s3798_s3 + $0x128] sm:$0xff]  }
  0x94   :  { %v484_v60 = vadd.f32 %v3127_v20, %v352_v51  ;;  %v872_v61 = vmul.f32 %v3133_v22, %v1974_v52  ;;  %v1722_v2 = vunpack.c.h.bf16 %v2445_v44  ;;  %v353_v3 = vmul.f32 %v3114_v14, %v1721_v56  ;;  %v2511_v51 = vld [vmem:[%s3798_s3 + $0x130] sm:$0xff]  }
  0x95   :  { %v1257_v63 = vmax.f32 %v1129_v53, 0.0  ;;  %v1003_v0 = vadd.f32 %v3120_v16, %v871_v55  ;;  %2568 = vst [vmem:[%s3801_s6 + $0x100] sm:$0xff] %v2254_v58   ;;  %v1258_v5 = vmax.f32 %v1130_v59, 0.0  ;;  %v1977_v7 = vunpack.c.l.bf16 %v2508_v57 }
  0x96   :  { %v1004_v6 = vadd.f32 %v3120_v16, %v872_v61  ;;  %v1978_v9 = vunpack.c.h.bf16 %v2508_v57  ;;  %v354_v1 = vmul.f32 %v3114_v14, %v1722_v2  ;;  %v485_v12 = vadd.f32 %v3127_v20, %v353_v3 }
  0x97   :  { %v1131_v10 = vadd.f32 %v1003_v0, %v483_v54  ;;  %v1725_v13 = vunpack.c.l.bf16 %v2446_v62  ;;  %v2259_v8 = vpack.c.bf16 %v1258_v5, %v1257_v63  ;;  %v873_v17 = vmul.f32 %v3133_v22, %v1977_v7 }
  0x98   :  { %v1132_v15 = vadd.f32 %v1004_v6, %v484_v60  ;;  %v874_v18 = vmul.f32 %v3133_v22, %v1978_v9  ;;  %v486_v21 = vadd.f32 %v3127_v20, %v354_v1  ;;  %v1726_v23 = vunpack.c.h.bf16 %v2446_v62  ;;  %v2449_v60 = vld [vmem:[%s3795_s0 + $0x138] sm:$0xff]  }
  0x99   :  { %v1259_v11 = vmax.f32 %v1131_v10, 0.0  ;;  %v355_v24 = vmul.f32 %v3114_v14, %v1725_v13  ;;  %2569 = vst [vmem:[%s3801_s6 + $0x108] sm:$0xff] %v2259_v8   ;;  %v1005_v26 = vadd.f32 %v3120_v16, %v873_v17  ;;  %v1981_v28 = vunpack.c.l.bf16 %v2509_v4  ;;  %v2450_v17 = vld [vmem:[%s3795_s0 + $0x140] sm:$0xff]  }
  0x9a   :  { %v1260_v25 = vmax.f32 %v1132_v15, 0.0  ;;  %v1006_v27 = vadd.f32 %v3120_v16, %v874_v18  ;;  %v356_v29 = vmul.f32 %v3114_v14, %v1726_v23  ;;  %v1982_v31 = vunpack.c.h.bf16 %v2509_v4 }
  0x9b   :  { %v487_v30 = vadd.f32 %v3127_v20, %v355_v24  ;;  %v1729_v32 = vunpack.c.l.bf16 %v2447_v19  ;;  %v1133_v35 = vadd.f32 %v1005_v26, %v485_v12  ;;  %v875_v37 = vmul.f32 %v3133_v22, %v1981_v28  ;;  %v2512_v12 = vld [vmem:[%s3798_s3 + $0x138] sm:$0xff]  }
  0x9c   :  { %v2264_v34 = vpack.c.bf16 %v1260_v25, %v1259_v11  ;;  %v1134_v36 = vadd.f32 %v1006_v27, %v486_v21  ;;  %v488_v38 = vadd.f32 %v3127_v20, %v356_v29  ;;  %v876_v39 = vmul.f32 %v3133_v22, %v1982_v31  ;;  %v2513_v31 = vld [vmem:[%s3798_s3 + $0x140] sm:$0xff]  }
  0x9d   :  { %v1730_v40 = vunpack.c.h.bf16 %v2447_v19  ;;  %v357_v41 = vmul.f32 %v3114_v14, %v1729_v32  ;;  %v1261_v43 = vmax.f32 %v1133_v35, 0.0  ;;  %v1007_v45 = vadd.f32 %v3120_v16, %v875_v37 }
  0x9e   :  { %2570 = vst [vmem:[%s3801_s6 + $0x110] sm:$0xff] %v2264_v34   ;;  %v1262_v44 = vmax.f32 %v1134_v36, 0.0  ;;  %v1985_v46 = vunpack.c.l.bf16 %v2510_v33  ;;  %v1008_v47 = vadd.f32 %v3120_v16, %v876_v39  ;;  %v1986_v50 = vunpack.c.h.bf16 %v2510_v33  ;;  %v2451_v36 = vld [vmem:[%s3795_s0 + $0x148] sm:$0xff]  }
  0x9f   :  { %v358_v48 = vmul.f32 %v3114_v14, %v1730_v40  ;;  %v489_v49 = vadd.f32 %v3127_v20, %v357_v41  ;;  %v1135_v53 = vadd.f32 %v1007_v45, %v487_v30  ;;  %v1733_v55 = vunpack.c.l.bf16 %v2448_v42 }
  0xa0   :  { %v2269_v52 = vpack.c.bf16 %v1262_v44, %v1261_v43  ;;  %v877_v54 = vmul.f32 %v3133_v22, %v1985_v46  ;;  %v1136_v56 = vadd.f32 %v1008_v47, %v488_v38  ;;  %v878_v58 = vmul.f32 %v3133_v22, %v1986_v50 }
  0xa1   :  { %v490_v57 = vadd.f32 %v3127_v20, %v358_v48  ;;  %v1734_v59 = vunpack.c.h.bf16 %v2448_v42  ;;  %v1263_v61 = vmax.f32 %v1135_v53, 0.0  ;;  %v359_v63 = vmul.f32 %v3114_v14, %v1733_v55 }
  0xa2   :  { %2571 = vst [vmem:[%s3801_s6 + $0x118] sm:$0xff] %v2269_v52   ;;  %v1009_v62 = vadd.f32 %v3120_v16, %v877_v54  ;;  %v1989_v0 = vunpack.c.l.bf16 %v2511_v51  ;;  %v1264_v2 = vmax.f32 %v1136_v56, 0.0  ;;  %v1010_v3 = vadd.f32 %v3120_v16, %v878_v58  ;;  %v2452_v58 = vld [vmem:[%s3795_s0 + $0x150] sm:$0xff]  }
  0xa3   :  { %v360_v5 = vmul.f32 %v3114_v14, %v1734_v59  ;;  %v1990_v6 = vunpack.c.h.bf16 %v2511_v51  ;;  %v491_v9 = vadd.f32 %v3127_v20, %v359_v63  ;;  %v1737_v1 = vunpack.c.l.bf16 %v2449_v60 }
  0xa4   :  { %v1137_v7 = vadd.f32 %v1009_v62, %v489_v49  ;;  %v879_v10 = vmul.f32 %v3133_v22, %v1989_v0  ;;  %v2274_v13 = vpack.c.bf16 %v1264_v2, %v1263_v61  ;;  %v1138_v4 = vadd.f32 %v1010_v3, %v490_v57  ;;  %v2514_v49 = vld [vmem:[%s3798_s3 + $0x148] sm:$0xff]  }
  0xa5   :  { %v492_v8 = vadd.f32 %v3127_v20, %v360_v5  ;;  %v880_v15 = vmul.f32 %v3133_v22, %v1990_v6  ;;  %v1738_v11 = vunpack.c.h.bf16 %v2449_v60  ;;  %v361_v21 = vmul.f32 %v3114_v14, %v1737_v1  ;;  %v2515_v5 = vld [vmem:[%s3798_s3 + $0x150] sm:$0xff]  }
  0xa6   :  { %v1265_v18 = vmax.f32 %v1137_v7, 0.0  ;;  %v1011_v19 = vadd.f32 %v3120_v16, %v879_v10  ;;  %2572 = vst [vmem:[%s3801_s6 + $0x120] sm:$0xff] %v2274_v13   ;;  %v1266_v23 = vmax.f32 %v1138_v4, 0.0  ;;  %v1993_v25 = vunpack.c.l.bf16 %v2512_v12 }
  0xa7   :  { %v1012_v24 = vadd.f32 %v3120_v16, %v880_v15  ;;  %v1994_v26 = vunpack.c.h.bf16 %v2512_v12  ;;  %v362_v28 = vmul.f32 %v3114_v14, %v1738_v11  ;;  %v493_v29 = vadd.f32 %v3127_v20, %v361_v21 }
  0xa8   :  { %v1139_v27 = vadd.f32 %v1011_v19, %v491_v9  ;;  %v1741_v30 = vunpack.c.l.bf16 %v2450_v17  ;;  %v2279_v32 = vpack.c.bf16 %v1266_v23, %v1265_v18  ;;  %v881_v34 = vmul.f32 %v3133_v22, %v1993_v25 }
  0xa9   :  { %v1140_v33 = vadd.f32 %v1012_v24, %v492_v8  ;;  %v882_v35 = vmul.f32 %v3133_v22, %v1994_v26  ;;  %v494_v38 = vadd.f32 %v3127_v20, %v362_v28  ;;  %v1742_v39 = vunpack.c.h.bf16 %v2450_v17  ;;  %v2453_v8 = vld [vmem:[%s3795_s0 + $0x158] sm:$0xff]  }
  0xaa   :  { %v1267_v37 = vmax.f32 %v1139_v27, 0.0  ;;  %v363_v40 = vmul.f32 %v3114_v14, %v1741_v30  ;;  %2573 = vst [vmem:[%s3801_s6 + $0x128] sm:$0xff] %v2279_v32   ;;  %v1013_v42 = vadd.f32 %v3120_v16, %v881_v34  ;;  %v1997_v44 = vunpack.c.l.bf16 %v2513_v31  ;;  %v2454_v34 = vld [vmem:[%s3795_s0 + $0x160] sm:$0xff]  }
  0xab   :  { %v1268_v41 = vmax.f32 %v1140_v33, 0.0  ;;  %v1014_v43 = vadd.f32 %v3120_v16, %v882_v35  ;;  %v364_v45 = vmul.f32 %v3114_v14, %v1742_v39  ;;  %v1998_v47 = vunpack.c.h.bf16 %v2513_v31 }
  0xac   :  { %v495_v46 = vadd.f32 %v3127_v20, %v363_v40  ;;  %v1745_v48 = vunpack.c.l.bf16 %v2451_v36  ;;  %v1141_v51 = vadd.f32 %v1013_v42, %v493_v29  ;;  %v883_v53 = vmul.f32 %v3133_v22, %v1997_v44  ;;  %v2516_v29 = vld [vmem:[%s3798_s3 + $0x158] sm:$0xff]  }
  0xad   :  { %v2284_v50 = vpack.c.bf16 %v1268_v41, %v1267_v37  ;;  %v1142_v52 = vadd.f32 %v1014_v43, %v494_v38  ;;  %v496_v54 = vadd.f32 %v3127_v20, %v364_v45  ;;  %v884_v55 = vmul.f32 %v3133_v22, %v1998_v47  ;;  %v2517_v47 = vld [vmem:[%s3798_s3 + $0x160] sm:$0xff]  }
  0xae   :  { %v1746_v56 = vunpack.c.h.bf16 %v2451_v36  ;;  %v365_v57 = vmul.f32 %v3114_v14, %v1745_v48  ;;  %v1269_v59 = vmax.f32 %v1141_v51, 0.0  ;;  %v1015_v61 = vadd.f32 %v3120_v16, %v883_v53 }
  0xaf   :  { %2574 = vst [vmem:[%s3801_s6 + $0x130] sm:$0xff] %v2284_v50   ;;  %v1270_v60 = vmax.f32 %v1142_v52, 0.0  ;;  %v2001_v62 = vunpack.c.l.bf16 %v2514_v49  ;;  %v1016_v63 = vadd.f32 %v3120_v16, %v884_v55  ;;  %v2002_v3 = vunpack.c.h.bf16 %v2514_v49  ;;  %v2455_v52 = vld [vmem:[%s3795_s0 + $0x168] sm:$0xff]  }
  0xb0   :  { %v366_v0 = vmul.f32 %v3114_v14, %v1746_v56  ;;  %v497_v2 = vadd.f32 %v3127_v20, %v365_v57  ;;  %v1143_v7 = vadd.f32 %v1015_v61, %v495_v46  ;;  %v1749_v10 = vunpack.c.l.bf16 %v2452_v58 }
  0xb1   :  { %v2289_v6 = vpack.c.bf16 %v1270_v60, %v1269_v59  ;;  %v885_v9 = vmul.f32 %v3133_v22, %v2001_v62  ;;  %v1144_v1 = vadd.f32 %v1016_v63, %v496_v54  ;;  %v886_v13 = vmul.f32 %v3133_v22, %v2002_v3 }
  0xb2   :  { %v498_v12 = vadd.f32 %v3127_v20, %v366_v0  ;;  %v1750_v4 = vunpack.c.h.bf16 %v2452_v58  ;;  %v1271_v15 = vmax.f32 %v1143_v7, 0.0  ;;  %v367_v18 = vmul.f32 %v3114_v14, %v1749_v10 }
  0xb3   :  { %2575 = vst [vmem:[%s3801_s6 + $0x138] sm:$0xff] %v2289_v6   ;;  %v1017_v17 = vadd.f32 %v3120_v16, %v885_v9  ;;  %v2005_v19 = vunpack.c.l.bf16 %v2515_v5  ;;  %v1272_v11 = vmax.f32 %v1144_v1, 0.0  ;;  %v1018_v21 = vadd.f32 %v3120_v16, %v886_v13  ;;  %v2456_v13 = vld [vmem:[%s3795_s0 + $0x170] sm:$0xff]  }
  0xb4   :  { %v368_v23 = vmul.f32 %v3114_v14, %v1750_v4  ;;  %v2006_v24 = vunpack.c.h.bf16 %v2515_v5  ;;  %v499_v26 = vadd.f32 %v3127_v20, %v367_v18  ;;  %v1753_v28 = vunpack.c.l.bf16 %v2453_v8 }
  0xb5   :  { %v1145_v25 = vadd.f32 %v1017_v17, %v497_v2  ;;  %v887_v27 = vmul.f32 %v3133_v22, %v2005_v19  ;;  %v2294_v30 = vpack.c.bf16 %v1272_v11, %v1271_v15  ;;  %v1146_v31 = vadd.f32 %v1018_v21, %v498_v12  ;;  %v2518_v2 = vld [vmem:[%s3798_s3 + $0x168] sm:$0xff]  }
  0xb6   :  { %v500_v32 = vadd.f32 %v3127_v20, %v368_v23  ;;  %v888_v33 = vmul.f32 %v3133_v22, %v2006_v24  ;;  %v1754_v37 = vunpack.c.h.bf16 %v2453_v8  ;;  %v369_v38 = vmul.f32 %v3114_v14, %v1753_v28  ;;  %v2519_v23 = vld [vmem:[%s3798_s3 + $0x170] sm:$0xff]  }
  0xb7   :  { %v1273_v35 = vmax.f32 %v1145_v25, 0.0  ;;  %v1019_v36 = vadd.f32 %v3120_v16, %v887_v27  ;;  %2576 = vst [vmem:[%s3801_s6 + $0x140] sm:$0xff] %v2294_v30   ;;  %v1274_v39 = vmax.f32 %v1146_v31, 0.0  ;;  %v2009_v41 = vunpack.c.l.bf16 %v2516_v29 }
  0xb8   :  { %v1020_v40 = vadd.f32 %v3120_v16, %v888_v33  ;;  %v2010_v42 = vunpack.c.h.bf16 %v2516_v29  ;;  %v370_v44 = vmul.f32 %v3114_v14, %v1754_v37  ;;  %v501_v45 = vadd.f32 %v3127_v20, %v369_v38 }
  0xb9   :  { %v1147_v43 = vadd.f32 %v1019_v36, %v499_v26  ;;  %v1757_v46 = vunpack.c.l.bf16 %v2454_v34  ;;  %v2299_v48 = vpack.c.bf16 %v1274_v39, %v1273_v35  ;;  %v889_v50 = vmul.f32 %v3133_v22, %v2009_v41 }
  0xba   :  { %v1148_v49 = vadd.f32 %v1020_v40, %v500_v32  ;;  %v890_v51 = vmul.f32 %v3133_v22, %v2010_v42  ;;  %v502_v54 = vadd.f32 %v3127_v20, %v370_v44  ;;  %v1758_v55 = vunpack.c.h.bf16 %v2454_v34  ;;  %v2457_v32 = vld [vmem:[%s3795_s0 + $0x178] sm:$0xff]  }
  0xbb   :  { %v1275_v53 = vmax.f32 %v1147_v43, 0.0  ;;  %v371_v56 = vmul.f32 %v3114_v14, %v1757_v46  ;;  %2577 = vst [vmem:[%s3801_s6 + $0x148] sm:$0xff] %v2299_v48   ;;  %v1021_v58 = vadd.f32 %v3120_v16, %v889_v50  ;;  %v2013_v60 = vunpack.c.l.bf16 %v2517_v47  ;;  %v2458_v50 = vld [vmem:[%s3795_s0 + $0x180] sm:$0xff]  }
  0xbc   :  { %v1276_v57 = vmax.f32 %v1148_v49, 0.0  ;;  %v1022_v59 = vadd.f32 %v3120_v16, %v890_v51  ;;  %v372_v61 = vmul.f32 %v3114_v14, %v1758_v55  ;;  %v2014_v63 = vunpack.c.h.bf16 %v2517_v47 }
  0xbd   :  { %v503_v62 = vadd.f32 %v3127_v20, %v371_v56  ;;  %v1761_v0 = vunpack.c.l.bf16 %v2455_v52  ;;  %v1149_v5 = vadd.f32 %v1021_v58, %v501_v45  ;;  %v891_v7 = vmul.f32 %v3133_v22, %v2013_v60  ;;  %v2520_v45 = vld [vmem:[%s3798_s3 + $0x178] sm:$0xff]  }
  0xbe   :  { %v2304_v3 = vpack.c.bf16 %v1276_v57, %v1275_v53  ;;  %v1150_v6 = vadd.f32 %v1022_v59, %v502_v54  ;;  %v504_v9 = vadd.f32 %v3127_v20, %v372_v61  ;;  %v892_v10 = vmul.f32 %v3133_v22, %v2014_v63  ;;  %v2521_v63 = vld [vmem:[%s3798_s3 + $0x180] sm:$0xff]  }
  0xbf   :  { %v1762_v1 = vunpack.c.h.bf16 %v2455_v52  ;;  %v373_v12 = vmul.f32 %v3114_v14, %v1761_v0  ;;  %v1277_v4 = vmax.f32 %v1149_v5, 0.0  ;;  %v1023_v15 = vadd.f32 %v3120_v16, %v891_v7 }
  0xc0   :  { %2578 = vst [vmem:[%s3801_s6 + $0x150] sm:$0xff] %v2304_v3   ;;  %v1278_v8 = vmax.f32 %v1150_v6, 0.0  ;;  %v2017_v17 = vunpack.c.l.bf16 %v2518_v2  ;;  %v1024_v18 = vadd.f32 %v3120_v16, %v892_v10  ;;  %v2018_v21 = vunpack.c.h.bf16 %v2518_v2  ;;  %v2459_v6 = vld [vmem:[%s3795_s0 + $0x188] sm:$0xff]  }
  0xc1   :  { %v374_v19 = vmul.f32 %v3114_v14, %v1762_v1  ;;  %v505_v11 = vadd.f32 %v3127_v20, %v373_v12  ;;  %v1151_v25 = vadd.f32 %v1023_v15, %v503_v62  ;;  %v1765_v27 = vunpack.c.l.bf16 %v2456_v13 }
  0xc2   :  { %v2309_v24 = vpack.c.bf16 %v1278_v8, %v1277_v4  ;;  %v893_v26 = vmul.f32 %v3133_v22, %v2017_v17  ;;  %v1152_v28 = vadd.f32 %v1024_v18, %v504_v9  ;;  %v894_v30 = vmul.f32 %v3133_v22, %v2018_v21 }
  0xc3   :  { %v506_v29 = vadd.f32 %v3127_v20, %v374_v19  ;;  %v1766_v31 = vunpack.c.h.bf16 %v2456_v13  ;;  %v1279_v33 = vmax.f32 %v1151_v25, 0.0  ;;  %v375_v35 = vmul.f32 %v3114_v14, %v1765_v27 }
  0xc4   :  { %2579 = vst [vmem:[%s3801_s6 + $0x158] sm:$0xff] %v2309_v24   ;;  %v1025_v34 = vadd.f32 %v3120_v16, %v893_v26  ;;  %v2021_v36 = vunpack.c.l.bf16 %v2519_v23  ;;  %v1280_v37 = vmax.f32 %v1152_v28, 0.0  ;;  %v1026_v38 = vadd.f32 %v3120_v16, %v894_v30  ;;  %v2460_v30 = vld [vmem:[%s3795_s0 + $0x190] sm:$0xff]  }
  0xc5   :  { %v376_v39 = vmul.f32 %v3114_v14, %v1766_v31  ;;  %v2022_v40 = vunpack.c.h.bf16 %v2519_v23  ;;  %v507_v42 = vadd.f32 %v3127_v20, %v375_v35  ;;  %v1769_v44 = vunpack.c.l.bf16 %v2457_v32 }
  0xc6   :  { %v1153_v41 = vadd.f32 %v1025_v34, %v505_v11  ;;  %v895_v43 = vmul.f32 %v3133_v22, %v2021_v36  ;;  %v2314_v46 = vpack.c.bf16 %v1280_v37, %v1279_v33  ;;  %v1154_v47 = vadd.f32 %v1026_v38, %v506_v29  ;;  %v2522_v11 = vld [vmem:[%s3798_s3 + $0x188] sm:$0xff]  }
  0xc7   :  { %v508_v48 = vadd.f32 %v3127_v20, %v376_v39  ;;  %v896_v49 = vmul.f32 %v3133_v22, %v2022_v40  ;;  %v1770_v53 = vunpack.c.h.bf16 %v2457_v32  ;;  %v377_v54 = vmul.f32 %v3114_v14, %v1769_v44  ;;  %v2523_v39 = vld [vmem:[%s3798_s3 + $0x190] sm:$0xff]  }
  0xc8   :  { %v1281_v51 = vmax.f32 %v1153_v41, 0.0  ;;  %v1027_v52 = vadd.f32 %v3120_v16, %v895_v43  ;;  %2580 = vst [vmem:[%s3801_s6 + $0x160] sm:$0xff] %v2314_v46   ;;  %v1282_v55 = vmax.f32 %v1154_v47, 0.0  ;;  %v2025_v57 = vunpack.c.l.bf16 %v2520_v45 }
  0xc9   :  { %v1028_v56 = vadd.f32 %v3120_v16, %v896_v49  ;;  %v2026_v58 = vunpack.c.h.bf16 %v2520_v45  ;;  %v378_v60 = vmul.f32 %v3114_v14, %v1770_v53  ;;  %v509_v61 = vadd.f32 %v3127_v20, %v377_v54 }
  0xca   :  { %v1155_v59 = vadd.f32 %v1027_v52, %v507_v42  ;;  %v1773_v62 = vunpack.c.l.bf16 %v2458_v50  ;;  %v2319_v0 = vpack.c.bf16 %v1282_v55, %v1281_v51  ;;  %v897_v3 = vmul.f32 %v3133_v22, %v2025_v57 }
  0xcb   :  { %v1156_v2 = vadd.f32 %v1028_v56, %v508_v48  ;;  %v898_v5 = vmul.f32 %v3133_v22, %v2026_v58  ;;  %v510_v9 = vadd.f32 %v3127_v20, %v378_v60  ;;  %v1774_v10 = vunpack.c.h.bf16 %v2458_v50  ;;  %v2461_v48 = vld [vmem:[%s3795_s0 + $0x198] sm:$0xff]  }
  0xcc   :  { %v1283_v7 = vmax.f32 %v1155_v59, 0.0  ;;  %v379_v1 = vmul.f32 %v3114_v14, %v1773_v62  ;;  %2581 = vst [vmem:[%s3801_s6 + $0x168] sm:$0xff] %v2319_v0   ;;  %v1029_v13 = vadd.f32 %v3120_v16, %v897_v3  ;;  %v2029_v8 = vunpack.c.l.bf16 %v2521_v63  ;;  %v2462_v3 = vld [vmem:[%s3795_s0 + $0x1a0] sm:$0xff]  }
  0xcd   :  { %v1284_v12 = vmax.f32 %v1156_v2, 0.0  ;;  %v1030_v4 = vadd.f32 %v3120_v16, %v898_v5  ;;  %v380_v15 = vmul.f32 %v3114_v14, %v1774_v10  ;;  %v2030_v18 = vunpack.c.h.bf16 %v2521_v63 }
  0xce   :  { %v511_v17 = vadd.f32 %v3127_v20, %v379_v1  ;;  %v1777_v19 = vunpack.c.l.bf16 %v2459_v6  ;;  %v1157_v23 = vadd.f32 %v1029_v13, %v509_v61  ;;  %v899_v25 = vmul.f32 %v3133_v22, %v2029_v8  ;;  %v2524_v61 = vld [vmem:[%s3798_s3 + $0x198] sm:$0xff]  }
  0xcf   :  { %v2324_v21 = vpack.c.bf16 %v1284_v12, %v1283_v7  ;;  %v1158_v24 = vadd.f32 %v1030_v4, %v510_v9  ;;  %v512_v26 = vadd.f32 %v3127_v20, %v380_v15  ;;  %v900_v27 = vmul.f32 %v3133_v22, %v2030_v18  ;;  %v2525_v18 = vld [vmem:[%s3798_s3 + $0x1a0] sm:$0xff]  }
  0xd0   :  { %v1778_v28 = vunpack.c.h.bf16 %v2459_v6  ;;  %v381_v29 = vmul.f32 %v3114_v14, %v1777_v19  ;;  %v1285_v31 = vmax.f32 %v1157_v23, 0.0  ;;  %v1031_v33 = vadd.f32 %v3120_v16, %v899_v25 }
  0xd1   :  { %2582 = vst [vmem:[%s3801_s6 + $0x170] sm:$0xff] %v2324_v21   ;;  %v1286_v32 = vmax.f32 %v1158_v24, 0.0  ;;  %v2033_v34 = vunpack.c.l.bf16 %v2522_v11  ;;  %v1032_v35 = vadd.f32 %v3120_v16, %v900_v27  ;;  %v2034_v38 = vunpack.c.h.bf16 %v2522_v11 }
  0xd2   :  { %v382_v36 = vmul.f32 %v3114_v14, %v1778_v28  ;;  %v513_v37 = vadd.f32 %v3127_v20, %v381_v29  ;;  %v1159_v41 = vadd.f32 %v1031_v33, %v511_v17  ;;  %v1781_v43 = vunpack.c.l.bf16 %v2460_v30  ;;  %v3581_v28 = vld [vmem:[%s3800_s5] ss:$0 sm:$0xff] }
  0xd3   :  { %v2329_v40 = vpack.c.bf16 %v1286_v32, %v1285_v31  ;;  %v901_v42 = vmul.f32 %v3133_v22, %v2033_v34  ;;  %v1160_v44 = vadd.f32 %v1032_v35, %v512_v26  ;;  %v902_v46 = vmul.f32 %v3133_v22, %v2034_v38  ;;  %v3572_v26 = vld [vmem:[%s3796_s1] ss:$0 sm:$0xff] }
  0xd4   :  { %v514_v45 = vadd.f32 %v3127_v20, %v382_v36  ;;  %v1782_v47 = vunpack.c.h.bf16 %v2460_v30  ;;  %v1287_v49 = vmax.f32 %v1159_v41, 0.0  ;;  %v383_v51 = vmul.f32 %v3114_v14, %v1781_v43  ;;  %v3589_v32 = vld [vmem:[%s3797_s2] ss:$0 sm:$0xff]  ;;  %v2526_v36 = vld [vmem:[%s3798_s3 + $0x1a8] sm:$0xff]  }
  0xd5   :  { %2583 = vst [vmem:[%s3801_s6 + $0x178] sm:$0xff] %v2329_v40   ;;  %v1033_v50 = vadd.f32 %v3120_v16, %v901_v42  ;;  %v2037_v52 = vunpack.c.l.bf16 %v2523_v39  ;;  %v1288_v53 = vmax.f32 %v1160_v44, 0.0  ;;  %v1034_v54 = vadd.f32 %v3120_v16, %v902_v46  ;;  %v3598_v40 = vld [vmem:[%s3799_s4] ss:$0 sm:$0xff]  ;;  %v2464_v46 = vld [vmem:[%s3795_s0 + $0x1b0] sm:$0xff]  }
  0xd6   :  { %v384_v55 = vmul.f32 %v3114_v14, %v1782_v47  ;;  %v2038_v56 = vunpack.c.h.bf16 %v2523_v39  ;;  %v515_v58 = vadd.f32 %v3127_v20, %v383_v51  ;;  %v1785_v60 = vunpack.c.l.bf16 %v2461_v48 }
  0xd7   :  { %v1161_v57 = vadd.f32 %v1033_v50, %v513_v37  ;;  %v903_v59 = vmul.f32 %v3133_v22, %v2037_v52  ;;  %v2334_v62 = vpack.c.bf16 %v1288_v53, %v1287_v49  ;;  %v1162_v63 = vadd.f32 %v1034_v54, %v514_v45 }
  0xd8   :  { %v516_v0 = vadd.f32 %v3127_v20, %v384_v55  ;;  %v904_v2 = vmul.f32 %v3133_v22, %v2038_v56  ;;  %v1786_v7 = vunpack.c.h.bf16 %v2461_v48  ;;  %v385_v9 = vmul.f32 %v3114_v14, %v1785_v60  ;;  %v2527_v55 = vld [vmem:[%s3798_s3 + $0x1b0] sm:$0xff]  }
  0xd9   :  { %v1289_v5 = vmax.f32 %v1161_v57, 0.0  ;;  %v1035_v6 = vadd.f32 %v3120_v16, %v903_v59  ;;  %2584 = vst [vmem:[%s3801_s6 + $0x180] sm:$0xff] %v2334_v62   ;;  %v1290_v10 = vmax.f32 %v1162_v63, 0.0  ;;  %v2041_v12 = vunpack.c.l.bf16 %v2524_v61 }
  0xda   :  { %v1036_v1 = vadd.f32 %v3120_v16, %v904_v2  ;;  %v2042_v13 = vunpack.c.h.bf16 %v2524_v61  ;;  %v386_v8 = vmul.f32 %v3114_v14, %v1786_v7  ;;  %v517_v15 = vadd.f32 %v3127_v20, %v385_v9  ;;  %v2463_v16 = vld [vmem:[%s3795_s0 + $0x1a8] sm:$0xff]  }
  0xdb   :  { %v1163_v4 = vadd.f32 %v1035_v6, %v515_v58  ;;  %v1789_v17 = vunpack.c.l.bf16 %v2462_v3  ;;  %v2339_v19 = vpack.c.bf16 %v1290_v10, %v1289_v5  ;;  %v905_v21 = vmul.f32 %v3133_v22, %v2041_v12 }
  0xdc   :  { %v1164_v11 = vadd.f32 %v1036_v1, %v516_v0  ;;  %v906_v23 = vmul.f32 %v3133_v22, %v2042_v13  ;;  %v518_v14 = vadd.f32 %v3127_v20, %v386_v8  ;;  %v1790_v25 = vunpack.c.h.bf16 %v2462_v3  ;;  %v2465_v0 = vld [vmem:[%s3795_s0 + $0x1b8] sm:$0xff]  }
  0xdd   :  { %v1291_v24 = vmax.f32 %v1163_v4, 0.0  ;;  %v387_v27 = vmul.f32 %v3572_v26, %v1789_v17  ;;  %2585 = vst [vmem:[%s3801_s6 + $0x188] sm:$0xff] %v2339_v19   ;;  %v1037_v20 = vadd.f32 %v3581_v28, %v905_v21  ;;  %v2045_v30 = vunpack.c.l.bf16 %v2525_v18  ;;  %v2466_v21 = vld [vmem:[%s3795_s0 + $0x1c0] sm:$0xff]  }
  0xde   :  { %v1292_v22 = vmax.f32 %v1164_v11, 0.0  ;;  %v1038_v29 = vadd.f32 %v3581_v28, %v906_v23  ;;  %v388_v31 = vmul.f32 %v3572_v26, %v1790_v25  ;;  %v2046_v34 = vunpack.c.h.bf16 %v2525_v18 }
  0xdf   :  { %v519_v33 = vadd.f32 %v3589_v32, %v387_v27  ;;  %v1793_v35 = vunpack.c.l.bf16 %v2463_v16  ;;  %v1165_v38 = vadd.f32 %v1037_v20, %v517_v15  ;;  %v907_v41 = vmul.f32 %v3598_v40, %v2045_v30  ;;  %v2528_v15 = vld [vmem:[%s3798_s3 + $0x1b8] sm:$0xff]  }
  0xe0   :  { %v2344_v37 = vpack.c.bf16 %v1292_v22, %v1291_v24  ;;  %v1166_v39 = vadd.f32 %v1038_v29, %v518_v14  ;;  %v520_v42 = vadd.f32 %v3589_v32, %v388_v31  ;;  %v908_v43 = vmul.f32 %v3598_v40, %v2046_v34  ;;  %v2529_v34 = vld [vmem:[%s3798_s3 + $0x1c0] sm:$0xff]  }
  0xe1   :  { %v1794_v44 = vunpack.c.h.bf16 %v2463_v16  ;;  %v389_v45 = vmul.f32 %v3572_v26, %v1793_v35  ;;  %v1293_v47 = vmax.f32 %v1165_v38, 0.0  ;;  %v1039_v49 = vadd.f32 %v3581_v28, %v907_v41 }
  0xe2   :  { %2586 = vst [vmem:[%s3801_s6 + $0x190] sm:$0xff] %v2344_v37   ;;  %v1294_v48 = vmax.f32 %v1166_v39, 0.0  ;;  %v2049_v50 = vunpack.c.l.bf16 %v2526_v36  ;;  %v1040_v51 = vadd.f32 %v3581_v28, %v908_v43  ;;  %v2050_v54 = vunpack.c.h.bf16 %v2526_v36  ;;  %v2467_v39 = vld [vmem:[%s3795_s0 + $0x1c8] sm:$0xff]  }
  0xe3   :  { %v390_v52 = vmul.f32 %v3572_v26, %v1794_v44  ;;  %v521_v53 = vadd.f32 %v3589_v32, %v389_v45  ;;  %v1167_v57 = vadd.f32 %v1039_v49, %v519_v33  ;;  %v1797_v59 = vunpack.c.l.bf16 %v2464_v46 }
  0xe4   :  { %v2349_v56 = vpack.c.bf16 %v1294_v48, %v1293_v47  ;;  %v909_v58 = vmul.f32 %v3598_v40, %v2049_v50  ;;  %v1168_v60 = vadd.f32 %v1040_v51, %v520_v42  ;;  %v910_v62 = vmul.f32 %v3598_v40, %v2050_v54 }
  0xe5   :  { %v522_v61 = vadd.f32 %v3589_v32, %v390_v52  ;;  %v1798_v63 = vunpack.c.h.bf16 %v2464_v46  ;;  %v1295_v2 = vmax.f32 %v1167_v57, 0.0  ;;  %v391_v5 = vmul.f32 %v3572_v26, %v1797_v59 }
  0xe6   :  { %2587 = vst [vmem:[%s3801_s6 + $0x198] sm:$0xff] %v2349_v56   ;;  %v1041_v3 = vadd.f32 %v3581_v28, %v909_v58  ;;  %v2053_v6 = vunpack.c.l.bf16 %v2527_v55  ;;  %v1296_v7 = vmax.f32 %v1168_v60, 0.0  ;;  %v1042_v9 = vadd.f32 %v3581_v28, %v910_v62  ;;  %v2468_v62 = vld [vmem:[%s3795_s0 + $0x1d0] sm:$0xff]  }
  0xe7   :  { %v392_v10 = vmul.f32 %v3572_v26, %v1798_v63  ;;  %v2054_v1 = vunpack.c.h.bf16 %v2527_v55  ;;  %v523_v13 = vadd.f32 %v3589_v32, %v391_v5  ;;  %v1801_v8 = vunpack.c.l.bf16 %v2465_v0 }
  0xe8   :  { %v1169_v12 = vadd.f32 %v1041_v3, %v521_v53  ;;  %v911_v4 = vmul.f32 %v3598_v40, %v2053_v6  ;;  %v2354_v17 = vpack.c.bf16 %v1296_v7, %v1295_v2  ;;  %v1170_v18 = vadd.f32 %v1042_v9, %v522_v61  ;;  %v2530_v53 = vld [vmem:[%s3798_s3 + $0x1c8] sm:$0xff]  }
  0xe9   :  { %v524_v19 = vadd.f32 %v3589_v32, %v392_v10  ;;  %v912_v11 = vmul.f32 %v3598_v40, %v2054_v1  ;;  %v1802_v24 = vunpack.c.h.bf16 %v2465_v0  ;;  %v393_v14 = vmul.f32 %v3572_v26, %v1801_v8  ;;  %v2531_v10 = vld [vmem:[%s3798_s3 + $0x1d0] sm:$0xff]  }
  0xea   :  { %v1297_v23 = vmax.f32 %v1169_v12, 0.0  ;;  %v1043_v16 = vadd.f32 %v3581_v28, %v911_v4  ;;  %2588 = vst [vmem:[%s3801_s6 + $0x1a0] sm:$0xff] %v2354_v17   ;;  %v1298_v25 = vmax.f32 %v1170_v18, 0.0  ;;  %v2057_v22 = vunpack.c.l.bf16 %v2528_v15 }
  0xeb   :  { %v1044_v27 = vadd.f32 %v3581_v28, %v912_v11  ;;  %v2058_v20 = vunpack.c.h.bf16 %v2528_v15  ;;  %v394_v30 = vmul.f32 %v3572_v26, %v1802_v24  ;;  %v525_v31 = vadd.f32 %v3589_v32, %v393_v14 }
  0xec   :  { %v1171_v29 = vadd.f32 %v1043_v16, %v523_v13  ;;  %v1805_v33 = vunpack.c.l.bf16 %v2466_v21  ;;  %v2359_v35 = vpack.c.bf16 %v1298_v25, %v1297_v23  ;;  %v913_v37 = vmul.f32 %v3598_v40, %v2057_v22 }
  0xed   :  { %v1172_v36 = vadd.f32 %v1044_v27, %v524_v19  ;;  %v914_v38 = vmul.f32 %v3598_v40, %v2058_v20  ;;  %v526_v42 = vadd.f32 %v3589_v32, %v394_v30  ;;  %v1806_v43 = vunpack.c.h.bf16 %v2466_v21  ;;  %v2469_v19 = vld [vmem:[%s3795_s0 + $0x1d8] sm:$0xff]  }
  0xee   :  { %v1299_v41 = vmax.f32 %v1171_v29, 0.0  ;;  %v395_v44 = vmul.f32 %v3572_v26, %v1805_v33  ;;  %2589 = vst [vmem:[%s3801_s6 + $0x1a8] sm:$0xff] %v2359_v35   ;;  %v1045_v46 = vadd.f32 %v3581_v28, %v913_v37  ;;  %v2061_v48 = vunpack.c.l.bf16 %v2529_v34  ;;  %v2470_v37 = vld [vmem:[%s3795_s0 + $0x1e0] sm:$0xff]  }
  0xef   :  { %v1300_v45 = vmax.f32 %v1172_v36, 0.0  ;;  %v1046_v47 = vadd.f32 %v3581_v28, %v914_v38  ;;  %v396_v49 = vmul.f32 %v3572_v26, %v1806_v43  ;;  %v2062_v51 = vunpack.c.h.bf16 %v2529_v34 }
  0xf0   :  { %v527_v50 = vadd.f32 %v3589_v32, %v395_v44  ;;  %v1809_v52 = vunpack.c.l.bf16 %v2467_v39  ;;  %v1173_v55 = vadd.f32 %v1045_v46, %v525_v31  ;;  %v915_v57 = vmul.f32 %v3598_v40, %v2061_v48  ;;  %v2532_v31 = vld [vmem:[%s3798_s3 + $0x1d8] sm:$0xff]  }
  0xf1   :  { %v2364_v54 = vpack.c.bf16 %v1300_v45, %v1299_v41  ;;  %v1174_v56 = vadd.f32 %v1046_v47, %v526_v42  ;;  %v528_v58 = vadd.f32 %v3589_v32, %v396_v49  ;;  %v916_v59 = vmul.f32 %v3598_v40, %v2062_v51  ;;  %v2533_v51 = vld [vmem:[%s3798_s3 + $0x1e0] sm:$0xff]  }
  0xf2   :  { %v1810_v60 = vunpack.c.h.bf16 %v2467_v39  ;;  %v397_v61 = vmul.f32 %v3572_v26, %v1809_v52  ;;  %v1301_v63 = vmax.f32 %v1173_v55, 0.0  ;;  %v1047_v2 = vadd.f32 %v3581_v28, %v915_v57 }
  0xf3   :  { %2590 = vst [vmem:[%s3801_s6 + $0x1b0] sm:$0xff] %v2364_v54   ;;  %v1302_v0 = vmax.f32 %v1174_v56, 0.0  ;;  %v2065_v3 = vunpack.c.l.bf16 %v2530_v53  ;;  %v1048_v5 = vadd.f32 %v3581_v28, %v916_v59  ;;  %v2066_v9 = vunpack.c.h.bf16 %v2530_v53  ;;  %v2471_v56 = vld [vmem:[%s3795_s0 + $0x1e8] sm:$0xff]  }
  0xf4   :  { %v398_v6 = vmul.f32 %v3572_v26, %v1810_v60  ;;  %v529_v7 = vadd.f32 %v3589_v32, %v397_v61  ;;  %v1175_v12 = vadd.f32 %v1047_v2, %v527_v50  ;;  %v1813_v4 = vunpack.c.l.bf16 %v2468_v62 }
  0xf5   :  { %v2369_v1 = vpack.c.bf16 %v1302_v0, %v1301_v63  ;;  %v917_v13 = vmul.f32 %v3598_v40, %v2065_v3  ;;  %v1176_v8 = vadd.f32 %v1048_v5, %v528_v58  ;;  %v918_v17 = vmul.f32 %v3598_v40, %v2066_v9 }
  0xf6   :  { %v530_v15 = vadd.f32 %v3589_v32, %v398_v6  ;;  %v1814_v18 = vunpack.c.h.bf16 %v2468_v62  ;;  %v1303_v11 = vmax.f32 %v1175_v12, 0.0  ;;  %v399_v23 = vmul.f32 %v3572_v26, %v1813_v4 }
  0xf7   :  { %2591 = vst [vmem:[%s3801_s6 + $0x1b8] sm:$0xff] %v2369_v1   ;;  %v1049_v21 = vadd.f32 %v3581_v28, %v917_v13  ;;  %v2069_v16 = vunpack.c.l.bf16 %v2531_v10  ;;  %v1304_v24 = vmax.f32 %v1176_v8, 0.0  ;;  %v1050_v14 = vadd.f32 %v3581_v28, %v918_v17  ;;  %v2472_v17 = vld [vmem:[%s3795_s0 + $0x1f0] sm:$0xff]  }
  0xf8   :  { %v400_v25 = vmul.f32 %v3572_v26, %v1814_v18  ;;  %v2070_v27 = vunpack.c.h.bf16 %v2531_v10  ;;  %v531_v20 = vadd.f32 %v3589_v32, %v399_v23  ;;  %v1817_v30 = vunpack.c.l.bf16 %v2469_v19 }
  0xf9   :  { %v1177_v22 = vadd.f32 %v1049_v21, %v529_v7  ;;  %v919_v29 = vmul.f32 %v3598_v40, %v2069_v16  ;;  %v2374_v33 = vpack.c.bf16 %v1304_v24, %v1303_v11  ;;  %v1178_v34 = vadd.f32 %v1050_v14, %v530_v15  ;;  %v2534_v7 = vld [vmem:[%s3798_s3 + $0x1e8] sm:$0xff]  }
  0xfa   :  { %v532_v35 = vadd.f32 %v3589_v32, %v400_v25  ;;  %v920_v36 = vmul.f32 %v3598_v40, %v2070_v27  ;;  %v1818_v41 = vunpack.c.h.bf16 %v2469_v19  ;;  %v401_v42 = vmul.f32 %v3572_v26, %v1817_v30  ;;  %v2535_v25 = vld [vmem:[%s3798_s3 + $0x1f0] sm:$0xff]  }
  0xfb   :  { %v1305_v38 = vmax.f32 %v1177_v22, 0.0  ;;  %v1051_v39 = vadd.f32 %v3581_v28, %v919_v29  ;;  %2592 = vst [vmem:[%s3801_s6 + $0x1c0] sm:$0xff] %v2374_v33   ;;  %v1306_v43 = vmax.f32 %v1178_v34, 0.0  ;;  %v2073_v45 = vunpack.c.l.bf16 %v2532_v31 }
  0xfc   :  { %v1052_v44 = vadd.f32 %v3581_v28, %v920_v36  ;;  %v2074_v46 = vunpack.c.h.bf16 %v2532_v31  ;;  %v402_v48 = vmul.f32 %v3572_v26, %v1818_v41  ;;  %v533_v49 = vadd.f32 %v3589_v32, %v401_v42 }
  0xfd   :  { %v1179_v47 = vadd.f32 %v1051_v39, %v531_v20  ;;  %v1821_v50 = vunpack.c.l.bf16 %v2470_v37  ;;  %v2379_v52 = vpack.c.bf16 %v1306_v43, %v1305_v38  ;;  %v921_v54 = vmul.f32 %v3598_v40, %v2073_v45 }
  0xfe   :  { %v1180_v53 = vadd.f32 %v1052_v44, %v532_v35  ;;  %v922_v55 = vmul.f32 %v3598_v40, %v2074_v46  ;;  %v534_v58 = vadd.f32 %v3589_v32, %v402_v48  ;;  %v1822_v59 = vunpack.c.h.bf16 %v2470_v37  ;;  %v2473_v35 = vld [vmem:[%s3795_s0 + $0x1f8] sm:$0xff]  }
  0xff   :  { %v1307_v57 = vmax.f32 %v1179_v47, 0.0  ;;  %v403_v60 = vmul.f32 %v3572_v26, %v1821_v50  ;;  %2593 = vst [vmem:[%s3801_s6 + $0x1c8] sm:$0xff] %v2379_v52   ;;  %v1053_v62 = vadd.f32 %v3581_v28, %v921_v54  ;;  %v2077_v0 = vunpack.c.l.bf16 %v2533_v51 }
 0x100   :  { %v1308_v61 = vmax.f32 %v1180_v53, 0.0  ;;  %v1054_v63 = vadd.f32 %v3581_v28, %v922_v55  ;;  %v404_v2 = vmul.f32 %v3572_v26, %v1822_v59  ;;  %v2078_v5 = vunpack.c.h.bf16 %v2533_v51 }
 0x101   :  { %v535_v3 = vadd.f32 %v3589_v32, %v403_v60  ;;  %v1825_v6 = vunpack.c.l.bf16 %v2471_v56  ;;  %v1181_v10 = vadd.f32 %v1053_v62, %v533_v49  ;;  %v923_v12 = vmul.f32 %v3598_v40, %v2077_v0  ;;  %v2536_v49 = vld [vmem:[%s3798_s3 + $0x1f8] sm:$0xff]  }
 0x102   :  { %v2384_v9 = vpack.c.bf16 %v1308_v61, %v1307_v57  ;;  %v1182_v1 = vadd.f32 %v1054_v63, %v534_v58  ;;  %v536_v13 = vadd.f32 %v3589_v32, %v404_v2  ;;  %v924_v4 = vmul.f32 %v3598_v40, %v2078_v5 }
 0x103   :  { %v1826_v8 = vunpack.c.h.bf16 %v2471_v56  ;;  %v405_v15 = vmul.f32 %v3572_v26, %v1825_v6  ;;  %v1309_v18 = vmax.f32 %v1181_v10, 0.0  ;;  %v1055_v11 = vadd.f32 %v3581_v28, %v923_v12 }
 0x104   :  { %2594 = vst [vmem:[%s3801_s6 + $0x1d0] sm:$0xff] %v2384_v9   ;;  %v1310_v19 = vmax.f32 %v1182_v1, 0.0  ;;  %v2081_v21 = vunpack.c.l.bf16 %v2534_v7  ;;  %v1056_v23 = vadd.f32 %v3581_v28, %v924_v4  ;;  %v2082_v14 = vunpack.c.h.bf16 %v2534_v7 }
 0x105   :  { %v406_v16 = vmul.f32 %v3572_v26, %v1826_v8  ;;  %v537_v24 = vadd.f32 %v3589_v32, %v405_v15  ;;  %v1183_v22 = vadd.f32 %v1055_v11, %v535_v3  ;;  %v1829_v29 = vunpack.c.l.bf16 %v2472_v17 }
 0x106   :  { %v2389_v27 = vpack.c.bf16 %v1310_v19, %v1309_v18  ;;  %v925_v20 = vmul.f32 %v3598_v40, %v2081_v21  ;;  %v1184_v30 = vadd.f32 %v1056_v23, %v536_v13  ;;  %v926_v33 = vmul.f32 %v3598_v40, %v2082_v14 }
 0x107   :  { %v538_v31 = vadd.f32 %v3589_v32, %v406_v16  ;;  %v1830_v34 = vunpack.c.h.bf16 %v2472_v17  ;;  %v1311_v36 = vmax.f32 %v1183_v22, 0.0  ;;  %v407_v38 = vmul.f32 %v3572_v26, %v1829_v29 }
 0x108   :  { %2595 = vst [vmem:[%s3801_s6 + $0x1d8] sm:$0xff] %v2389_v27   ;;  %v1057_v37 = vadd.f32 %v3581_v28, %v925_v20  ;;  %v2085_v39 = vunpack.c.l.bf16 %v2535_v25  ;;  %v1312_v41 = vmax.f32 %v1184_v30, 0.0  ;;  %v1058_v42 = vadd.f32 %v3581_v28, %v926_v33 }
 0x109   :  { %v408_v43 = vmul.f32 %v3572_v26, %v1830_v34  ;;  %v2086_v44 = vunpack.c.h.bf16 %v2535_v25  ;;  %v539_v46 = vadd.f32 %v3589_v32, %v407_v38  ;;  %v1833_v48 = vunpack.c.l.bf16 %v2473_v35 }
 0x10a   :  { %v1185_v45 = vadd.f32 %v1057_v37, %v537_v24  ;;  %v927_v47 = vmul.f32 %v3598_v40, %v2085_v39  ;;  %v2394_v50 = vpack.c.bf16 %v1312_v41, %v1311_v36  ;;  %v1186_v51 = vadd.f32 %v1058_v42, %v538_v31 }
 0x10b   :  { %v540_v52 = vadd.f32 %v3589_v32, %v408_v43  ;;  %v928_v53 = vmul.f32 %v3598_v40, %v2086_v44  ;;  %v1834_v56 = vunpack.c.h.bf16 %v2473_v35  ;;  %v409_v57 = vmul.f32 %v3572_v26, %v1833_v48 }
 0x10c   :  { %v1313_v54 = vmax.f32 %v1185_v45, 0.0  ;;  %v1059_v55 = vadd.f32 %v3581_v28, %v927_v47  ;;  %2596 = vst [vmem:[%s3801_s6 + $0x1e0] sm:$0xff] %v2394_v50   ;;  %v1314_v58 = vmax.f32 %v1186_v51, 0.0  ;;  %v2089_v60 = vunpack.c.l.bf16 %v2536_v49 }
 0x10d   :  { %v1060_v59 = vadd.f32 %v3581_v28, %v928_v53  ;;  %v2090_v61 = vunpack.c.h.bf16 %v2536_v49  ;;  %v410_v63 = vmul.f32 %v3572_v26, %v1834_v56  ;;  %v541_v0 = vadd.f32 %v3589_v32, %v409_v57 }
 0x10e   :  { %v1187_v62 = vadd.f32 %v1059_v55, %v539_v46  ;;  %v2399_v2 = vpack.c.bf16 %v1314_v58, %v1313_v54  ;;  %v929_v5 = vmul.f32 %v3598_v40, %v2089_v60 }
 0x10f   :  { %v1188_v3 = vadd.f32 %v1060_v59, %v540_v52  ;;  %v930_v6 = vmul.f32 %v3598_v40, %v2090_v61  ;;  %v542_v9 = vadd.f32 %v3589_v32, %v410_v63 }
 0x110   :  { %v1315_v7 = vmax.f32 %v1187_v62, 0.0  ;;  %2597 = vst [vmem:[%s3801_s6 + $0x1e8] sm:$0xff] %v2399_v2   ;;  %v1061_v1 = vadd.f32 %v3581_v28, %v929_v5 }
 0x111   :  { %v1316_v10 = vmax.f32 %v1188_v3, 0.0  ;;  %v1062_v26 = vadd.f32 %v3581_v28, %v930_v6 }
 0x112   :  { %v1189_v13 = vadd.f32 %v1061_v1, %v541_v0 }
 0x113   :  { %v2404_v12 = vpack.c.bf16 %v1316_v10, %v1315_v7  ;;  %v1190_v4 = vadd.f32 %v1062_v26, %v542_v9 }
 0x114   :  { %v1317_v40 = vmax.f32 %v1189_v13, 0.0 }
 0x115   :  { %2598 = vst [vmem:[%s3801_s6 + $0x1f0] sm:$0xff] %v2404_v12   ;;  %v1318_v8 = vmax.f32 %v1190_v4, 0.0 }
 0x117   :  { %v2409_v15 = vpack.c.bf16 %v1318_v8, %v1317_v40 }
 0x119   :  { %2599 = vst [vmem:[%s3801_s6 + $0x1f8] sm:$0xff] %v2409_v15  }

// kernel: bottleneck_forward.5
= control target key start
LH: loop header
LB: loop body
LE: loop exit
PB: predicated region body
PF: predicated region fallthrough
CT: control target
= control target key end

     0   :  { %s9203_s27 = smov 0   ;;  %s11200_s0 = inlined_call_operand.vmem [shape: bf16[2,568,128], index: 0, kind: input, shape index: {}]   ;;  %s11201_s1 = inlined_call_operand.vmem [shape: f32[1,128], index: 1, kind: input, shape index: {}]   ;;  %s11202_s2 = inlined_call_operand.vmem [shape: f32[1,128], index: 2, kind: input, shape index: {}]   ;;  %s11203_s3 = inlined_call_operand.vmem [shape: f32[568,1], index: 3, kind: input, shape index: {}]   ;;  %s11204_s4 = inlined_call_operand.vmem [shape: bf16[9,128,128], index: 4, kind: input, shape index: {}]   ;;  %s11205_s5 = inlined_call_operand.vmem [shape: f32[512,1], index: 5, kind: input, shape index: {}]   ;;  %s11206_s6 = inlined_call_operand.vmem [shape: bf16[2,512,128], index: 6, kind: output, shape index: {0}]   ;;  %s11207_s7 = inlined_call_operand.vmem [shape: f32[2,1,128], index: 7, kind: output, shape index: {1}]   ;;  %s11208_s8 = inlined_call_operand.vmem [shape: f32[2,1,128], index: 8, kind: output, shape index: {2}]  }
   0x1 LB: > { %s7172_s28 = sadd.s32 4294967295, %s9155_s27   ;;  %p7176_p0 = scmp.ge.s32.totalorder %s9155_s27, 1  ;;  %s9155_s27 = sphi %s9203_s27, %s19_s27  }
   0x2   : > { %p267_p1 = scmp.lt.s32.totalorder %s9155_s27, 3 }
   0x4   : > { %p268_p2 = pnand %p7176_p0, %p267_p1 }
   0x6   : > { %271 = sbr.rel (%p268_p2) target bundleno = 1510 (0x5e6), region = 44 }
   0xb   : > { %v734_v0 = vld [vmem:[%s11203_s3 + $0x180] sm:$0xff]  ;;  %v720_v1 = vld [vmem:[%s11203_s3 + $0x110] sm:$0xff]  ;;  %v9157_v3 = vmov 0   ;;  %v735_v4 = vld [vmem:[%s11203_s3 + $0x188] sm:$0xff]  ;;  %p307_p3 = scmp.lt.s32.totalorder %s7172_s28, 1  ;;  %vm2366_vm1 = vcmask 1046528  }
   0xc   : > { %v718_v2 = vld [vmem:[%s11203_s3 + $0x100] sm:$0xff]  ;;  %9081 = vset.pattern.permute.xlu2 %v9157_v3  ;;  %9080 = vset.pattern.permute.xlu1 %v9157_v3  ;;  %v721_v5 = vld [vmem:[%s11203_s3 + $0x118] sm:$0xff]  ;;  %v719_v6 = vld [vmem:[%s11203_s3 + $0x108] sm:$0xff]  ;;  %vm1586_vm0 = vsmask.f32 7424 }
   0xd   : > { %9079 = vset.pattern.permute.xlu0 %v9157_v3  ;;  %999 = vperm.xlu2 %9081, %v734_v0   ;;  %v736_v7 = vld [vmem:[%s11203_s3 + $0x190] sm:$0xff]  ;;  %v703_v8 = vld [vmem:[%s11203_s3 + $0x88] sm:$0xff]  ;;  %v702_v9 = vld [vmem:[%s11203_s3 + $0x80] sm:$0xff]  ;;  %s11324_s28 = smov (!%p307_p3, %s7172_s28), 1 }
   0xe   : > { %929 = vperm.xlu1 %9080, %v720_v1   ;;  %919 = vperm.xlu0 %9079, %v718_v2   ;;  %v705_v10 = vld [vmem:[%s11203_s3 + $0x98] sm:$0xff]  ;;  %v704_v11 = vld [vmem:[%s11203_s3 + $0x90] sm:$0xff]  ;;  %v687_v14 = vld [vmem:[%s11203_s3 + $0x8] sm:$0xff]  ;;  %s9069_s29 = smul.u32 284, %s11324_s28  ;;  %s319_s10 = scalar_lea.vmem %s11207_s7, %s11324_s28 }
   0xf   : > { %v737_v12 = vld [vmem:[%s11203_s3 + $0x198] sm:$0xff]  ;;  %v688_v13 = vld [vmem:[%s11203_s3 + $0x10] sm:$0xff]  ;;  %v686_v15 = vld [vmem:[%s11203_s3] sm:$0xff]  ;;  %s322_s14 = scalar_lea.vmem %s11208_s8, %s11324_s28 }
  0x10   : > { %v723_v16 = vld [vmem:[%s11203_s3 + $0x128] sm:$0xff]  ;;  %v722_v17 = vld [vmem:[%s11203_s3 + $0x120] sm:$0xff]  ;;  %v689_v18 = vld [vmem:[%s11203_s3 + $0x18] sm:$0xff]  ;;  %s9314_s12 = scalar_lea.vmem %s11200_s0, %s9069_s29 }
  0x11   : > { %v706_v19 = vld [vmem:[%s11203_s3 + $0xa0] sm:$0xff]  ;;  %v739_v20 = vld [vmem:[%s11203_s3 + $0x1a8] sm:$0xff]  ;;  %v740_v25 = vld [vmem:[%s11203_s3 + $0x1b0] sm:$0xff] }
  0x12   : > { %v738_v21 = vld [vmem:[%s11203_s3 + $0x1a0] sm:$0xff]  ;;  %v691_v22 = vld [vmem:[%s11203_s3 + $0x28] sm:$0xff]  ;;  %v725_v26 = vld [vmem:[%s11203_s3 + $0x138] sm:$0xff] }
  0x13   : > { %v690_v23 = vld [vmem:[%s11203_s3 + $0x20] sm:$0xff]  ;;  %v707_v24 = vld [vmem:[%s11203_s3 + $0xa8] sm:$0xff]  ;;  %v724_v27 = vld [vmem:[%s11203_s3 + $0x130] sm:$0xff] }
  0x14   : > { %v709_v28 = vld [vmem:[%s11203_s3 + $0xb8] sm:$0xff]  ;;  %v708_v29 = vld [vmem:[%s11203_s3 + $0xb0] sm:$0xff]  ;;  %v726_v31 = vld [vmem:[%s11203_s3 + $0x140] sm:$0xff] }
  0x15   : > { %1004 = vperm.xlu2 %9081, %v735_v4   ;;  %v741_v30 = vld [vmem:[%s11203_s3 + $0x1b8] sm:$0xff]  ;;  %v692_v33 = vld [vmem:[%s11203_s3 + $0x30] sm:$0xff]  ;;  %v8962_v34 = vld [vmem:[%s9314_s12 + $0xc0] sm:$0xff]  }
  0x16   : > { %934 = vperm.xlu1 %9080, %v721_v5   ;;  %924 = vperm.xlu0 %9079, %v719_v6   ;;  %v693_v32 = vld [vmem:[%s11203_s3 + $0x38] sm:$0xff]  ;;  %v8554_v36 = vunpack.c.l.bf16 %v8962_v34  ;;  %v9329_v37 = vld [vmem:[%s11201_s1] ss:$0 sm:$0xff]  ;;  %v8555_v38 = vunpack.c.h.bf16 %v8962_v34  ;;  %v8272_v39 = vld [vmem:[%s11204_s4 + $0x70] sm:$0xff] }
  0x17   : > { %v8273_v35 = vld [vmem:[%s11204_s4 + $0x78] sm:$0xff]  ;;  %v743_v40 = vld [vmem:[%s11203_s3 + $0x1c8] sm:$0xff]  ;;  %v742_v42 = vld [vmem:[%s11203_s3 + $0x1c0] sm:$0xff] }
  0x18   : > { %9046 = vmatpush.bf16.msra.mxu2 %v8273_v35  ;;  %9045 = vmatpush.bf16.msra.mxu1 %v8273_v35  ;;  %v517_v41 = vmul.f32 %v9329_v37, %v8554_v36  ;;  %v727_v43 = vld [vmem:[%s11203_s3 + $0x148] sm:$0xff]  ;;  %v9347_v44 = vld [vmem:[%s11202_s2] ss:$0 sm:$0xff]  ;;  %v518_v45 = vmul.f32 %v9329_v37, %v8555_v38  ;;  %v8269_v56 = vld [vmem:[%s11204_s4 + $0x58] sm:$0xff] }
  0x19   : > { %9047 = vmatpush.bf16.msra.mxu3 %v8273_v35  ;;  %1927 = vmatpush.bf16.msra.mxu0 %v8273_v35  ;;  %v8271_v46 = vld [vmem:[%s11204_s4 + $0x68] sm:$0xff]  ;;  %v8270_v50 = vld [vmem:[%s11204_s4 + $0x60] sm:$0xff]  ;;  %v8268_v60 = vld [vmem:[%s11204_s4 + $0x50] sm:$0xff] }
  0x1a   : > { %v592_v47 = vadd.f32 %v9347_v44, %v517_v41  ;;  %v593_v49 = vadd.f32 %v9347_v44, %v518_v45  ;;  %v694_v52 = vld [vmem:[%s11203_s3 + $0x40] sm:$0xff]  ;;  %v711_v53 = vld [vmem:[%s11203_s3 + $0xc8] sm:$0xff]  ;;  %v729_v62 = vld [vmem:[%s11203_s3 + $0x158] sm:$0xff] }
  0x1b   : > { %v710_v54 = vld [vmem:[%s11203_s3 + $0xc0] sm:$0xff]  ;;  %v728_v63 = vld [vmem:[%s11203_s3 + $0x150] sm:$0xff]  ;;  %v695_v0 = vld [vmem:[%s11203_s3 + $0x48] sm:$0xff] }
  0x1c   : > { %9049 = vmatpush.bf16.msra.mxu2 %v8272_v39  ;;  %9048 = vmatpush.bf16.msra.mxu1 %v8272_v39  ;;  %v663_v51 = vmax.f32 %v592_v47, 0.0  ;;  %v664_v55 = vmax.f32 %v593_v49, 0.0  ;;  %v8267_v1 = vld [vmem:[%s11204_s4 + $0x48] sm:$0xff]  ;;  %v8954_v3 = vld [vmem:[%s9314_s12 + $0x80] sm:$0xff]  }
  0x1d   : > { %1009 = vperm.xlu2 %9081, %v736_v7   ;;  %9050 = vmatpush.bf16.msra.mxu3 %v8272_v39  ;;  %v8955_v2 = vld [vmem:[%s9314_s12 + $0x88] sm:$0xff]   ;;  %v8522_v6 = vunpack.c.l.bf16 %v8954_v3 }
  0x1e   : > { %844 = vperm.xlu1 %9080, %v703_v8   ;;  %839 = vperm.xlu0 %9079, %v702_v9   ;;  %v8526_v5 = vunpack.c.l.bf16 %v8955_v2  ;;  %v8527_v7 = vunpack.c.h.bf16 %v8955_v2  ;;  %v8523_v8 = vunpack.c.h.bf16 %v8954_v3  ;;  %v8266_v9 = vld [vmem:[%s11204_s4 + $0x40] sm:$0xff] }
  0x1f   : > { %1928 = vmatpush.bf16.msra.mxu0 %v8272_v39 }
  0x20   : > { %9052 = vmatpush.bf16.msra.mxu2 %v8271_v46  ;;  %9051 = vmatpush.bf16.msra.mxu1 %v8271_v46 }
  0x21   : > { %9053 = vmatpush.bf16.msra.mxu3 %v8271_v46 }
  0x23   : > { %1929 = vmatpush.bf16.msra.mxu0 %v8271_v46 }
  0x24   : > { %9055 = vmatpush.bf16.msra.mxu2 %v8270_v50  ;;  %9054 = vmatpush.bf16.msra.mxu1 %v8270_v50 }
  0x25   : > { %854 = vperm.xlu2 %9081, %v705_v10   ;;  %9056 = vmatpush.bf16.msra.mxu3 %v8270_v50  ;;  %v712_v10 = vld [vmem:[%s11203_s3 + $0xd0] sm:$0xff] }
  0x26   : > { %849 = vperm.xlu1 %9080, %v704_v11   ;;  %1014 = vperm.xlu0 %9079, %v737_v12   ;;  %v745_v11 = vld [vmem:[%s11203_s3 + $0x1d8] sm:$0xff]  ;;  %v744_v12 = vld [vmem:[%s11203_s3 + $0x1d0] sm:$0xff] }
  0x27   : > { %1930 = vmatpush.bf16.msra.mxu0 %v8270_v50 }
  0x28   : > { %9058 = vmatpush.bf16.msra.mxu2 %v8269_v56  ;;  %9057 = vmatpush.bf16.msra.mxu1 %v8269_v56 }
  0x29   : > { %9059 = vmatpush.bf16.msra.mxu3 %v8269_v56 }
  0x2b   : > { %1931 = vmatpush.bf16.msra.mxu0 %v8269_v56 }
  0x2c   : > { %9061 = vmatpush.bf16.msra.mxu2 %v8268_v60  ;;  %9060 = vmatpush.bf16.msra.mxu1 %v8268_v60 }
  0x2d   : > { %769 = vperm.xlu2 %9081, %v688_v13   ;;  %9062 = vmatpush.bf16.msra.mxu3 %v8268_v60  ;;  %v503_v13 = vmul.f32 %v9329_v37, %v8526_v5 }
  0x2e   : > { %764 = vperm.xlu1 %9080, %v687_v14   ;;  %759 = vperm.xlu0 %9079, %v686_v15   ;;  %v501_v14 = vmul.f32 %v9329_v37, %v8522_v6  ;;  %v504_v15 = vmul.f32 %v9329_v37, %v8527_v7 }
  0x2f   : > { %1932 = vmatpush.bf16.msra.mxu0 %v8268_v60  ;;  %v8457_v60 = vld [vmem:[%s9314_s12] sm:$0xff]  }
  0x30   : > { %9064 = vmatpush.bf16.msra.mxu2 %v8267_v1  ;;  %9063 = vmatpush.bf16.msra.mxu1 %v8267_v1  ;;  %v8459_v3 = vunpack.c.h.bf16 %v8457_v60 }
  0x31   : > { %9065 = vmatpush.bf16.msra.mxu3 %v8267_v1 }
  0x33   : > { %1933 = vmatpush.bf16.msra.mxu0 %v8267_v1 }
  0x34   : > { %9067 = vmatpush.bf16.msra.mxu2 %v8266_v9  ;;  %9066 = vmatpush.bf16.msra.mxu1 %v8266_v9 }
  0x35   : > { %944 = vperm.xlu2 %9081, %v723_v16   ;;  %9068 = vmatpush.bf16.msra.mxu3 %v8266_v9  ;;  %v502_v16 = vmul.f32 %v9329_v37, %v8523_v8  ;;  %v8458_v8 = vunpack.c.l.bf16 %v8457_v60 }
  0x36   : > { %939 = vperm.xlu1 %9080, %v722_v17   ;;  %774 = vperm.xlu0 %9079, %v689_v18   ;;  %v8946_v17 = vld [vmem:[%s9314_s12 + $0x40] sm:$0xff]  }
  0x37   : > { %1934 = vmatpush.bf16.msra.mxu0 %v8266_v9 }
  0x3d   : > { %859 = vperm.xlu2 %9081, %v706_v19  }
  0x3e   : > { %1024 = vperm.xlu1 %9080, %v739_v20   ;;  %1019 = vperm.xlu0 %9079, %v738_v21   ;;  %v8491_v21 = vunpack.c.h.bf16 %v8946_v17 }
  0x45   : > { %784 = vperm.xlu2 %9081, %v691_v22   ;;  %v8490_v22 = vunpack.c.l.bf16 %v8946_v17  ;;  %v8956_v17 = vld [vmem:[%s9314_s12 + $0x90] sm:$0xff]  }
  0x46   : > { %779 = vperm.xlu1 %9080, %v690_v23   ;;  %864 = vperm.xlu0 %9079, %v707_v24   ;;  %v578_v23 = vadd.f32 %v9347_v44, %v503_v13  ;;  %v576_v24 = vadd.f32 %v9347_v44, %v501_v14  ;;  %v8939_v13 = vld [vmem:[%s9314_s12 + $0x8] sm:$0xff]  }
  0x47   : > { %v715_v14 = vld [vmem:[%s11203_s3 + $0xe8] sm:$0xff] }
  0x48   : > { %v649_v34 = vmax.f32 %v578_v23, 0.0  ;;  %v647_v35 = vmax.f32 %v576_v24, 0.0  ;;  %v469_v24 = vmul.f32 %v9329_v37, %v8458_v8 }
  0x4d   : > { %1029 = vperm.xlu2 %9081, %v740_v25   ;;  %v579_v25 = vadd.f32 %v9347_v44, %v504_v15 }
  0x4e   : > { %954 = vperm.xlu1 %9080, %v725_v26   ;;  %949 = vperm.xlu0 %9079, %v724_v27   ;;  %v577_v26 = vadd.f32 %v9347_v44, %v502_v16  ;;  %v697_v27 = vld [vmem:[%s11203_s3 + $0x58] sm:$0xff] }
  0x4f   : > { %v650_v36 = vmax.f32 %v579_v25, 0.0 }
  0x50   : > { %v648_v38 = vmax.f32 %v577_v26, 0.0 }
  0x55   : > { %874 = vperm.xlu2 %9081, %v709_v28   ;;  %v696_v28 = vld [vmem:[%s11203_s3 + $0x50] sm:$0xff] }
  0x56   : > { %869 = vperm.xlu1 %9080, %v708_v29   ;;  %1034 = vperm.xlu0 %9079, %v741_v30   ;;  %v713_v29 = vld [vmem:[%s11203_s3 + $0xd8] sm:$0xff]  ;;  %v8963_v30 = vld [vmem:[%s9314_s12 + $0xc8] sm:$0xff]  }
  0x57   : > { %v8558_v39 = vunpack.c.l.bf16 %v8963_v30 }
  0x5d   : > { %959 = vperm.xlu2 %9081, %v726_v31   ;;  %v8947_v31 = vld [vmem:[%s9314_s12 + $0x48] sm:$0xff]  }
  0x5e   : > { %794 = vperm.xlu1 %9080, %v693_v32   ;;  %789 = vperm.xlu0 %9079, %v692_v33   ;;  %v486_v32 = vmul.f32 %v9329_v37, %v8491_v21  ;;  %v485_v33 = vmul.f32 %v9329_v37, %v8490_v22  ;;  %v8494_v47 = vunpack.c.l.bf16 %v8947_v31  ;;  %v470_v21 = vmul.f32 %v9329_v37, %v8459_v3 }
  0x60   : > { %v561_v45 = vadd.f32 %v9347_v44, %v486_v32  ;;  %v560_v46 = vadd.f32 %v9347_v44, %v485_v33 }
  0x65   : > { %1044 = vperm.xlu2 %9081, %v743_v40   ;;  %v8495_v40 = vunpack.c.h.bf16 %v8947_v31 }
  0x66   : > { %1039 = vperm.xlu1 %9080, %v742_v42   ;;  %964 = vperm.xlu0 %9079, %v727_v43  }
  0x67   : > { %v1000_v48 = vpop.permute.xlu2 %999 }
  0x68   : > { %v1160_v57 = vmul.f32 %v1000_v48, %v663_v51  ;;  %v8559_v48 = vunpack.c.h.bf16 %v8963_v30 }
  0x6d   : > { %799 = vperm.xlu2 %9081, %v694_v52  }
  0x6e   : > { %884 = vperm.xlu1 %9080, %v711_v53   ;;  %879 = vperm.xlu0 %9079, %v710_v54   ;;  %v746_v53 = vld [vmem:[%s11203_s3 + $0x1e0] sm:$0xff]  ;;  %v519_v54 = vmul.f32 %v9329_v37, %v8558_v39  ;;  %v544_v39 = vadd.f32 %v9347_v44, %v469_v24  ;;  %v748_v24 = vld [vmem:[%s11203_s3 + $0x1f0] sm:$0xff] }
  0x6f   : > { %v1005_v58 = vpop.permute.xlu2 %1004 }
  0x70   : > { %v1161_v59 = vmul.f32 %v1005_v58, %v664_v55  ;;  %v730_v58 = vld [vmem:[%s11203_s3 + $0x160] sm:$0xff]  ;;  %v594_v1 = vadd.f32 %v9347_v44, %v519_v54  ;;  %v615_v60 = vmax.f32 %v544_v39, 0.0 }
  0x72   : > { %v8719_v61 = vpack.c.bf16 %v1161_v59, %v1160_v57  ;;  %v731_v57 = vld [vmem:[%s11203_s3 + $0x168] sm:$0xff]  ;;  %v488_v59 = vmul.f32 %v9329_v37, %v8495_v40  ;;  %v665_v15 = vmax.f32 %v594_v1, 0.0  ;;  %v8530_v40 = vunpack.c.l.bf16 %v8956_v17 }
  0x74   : > { %8996 = vst [vmem:[#allocation2 + $0xc0] sm:$0xff] %v8719_v61   ;;  %v632_v61 = vmax.f32 %v561_v45, 0.0  ;;  %v563_v5 = vadd.f32 %v9347_v44, %v488_v59 }
  0x75   : > { %974 = vperm.xlu2 %9081, %v729_v62   ;;  %v631_v62 = vmax.f32 %v560_v46, 0.0 }
  0x76   : > { %969 = vperm.xlu1 %9080, %v728_v63   ;;  %804 = vperm.xlu0 %9079, %v695_v0   ;;  %v487_v63 = vmul.f32 %v9329_v37, %v8494_v47  ;;  %v520_v0 = vmul.f32 %v9329_v37, %v8559_v48  ;;  %v634_v22 = vmax.f32 %v563_v5, 0.0 }
  0x77   : > { %v9387_v4 = vpop.permute.xlu2 %1009 }
  0x78   : > { %v1162_v30 = vmul.f32 %v9387_v4, %v665_v15  ;;  %v749_v15 = vld [vmem:[%s11203_s3 + $0x1f8] sm:$0xff] }
  0x7d   : > { %889 = vperm.xlu2 %9081, %v712_v10  }
  0x7e   : > { %1054 = vperm.xlu1 %9080, %v745_v11   ;;  %1049 = vperm.xlu0 %9079, %v744_v12   ;;  %v562_v11 = vadd.f32 %v9347_v44, %v487_v63  ;;  %v595_v12 = vadd.f32 %v9347_v44, %v520_v0 }
  0x7f   : > { %v9406_v18 = vpop.permute.xlu2 %854 }
  0x80   : > { %v930_v19 = vpop.permute.xlu1 %929  ;;  %v920_v20 = vpop.permute.xlu0 %919  ;;  %v633_v25 = vmax.f32 %v562_v11, 0.0  ;;  %v666_v26 = vmax.f32 %v595_v12, 0.0 }
  0x81   : > { %v1146_v49 = vmul.f32 %v930_v19, %v649_v34  ;;  %v1144_v50 = vmul.f32 %v920_v20, %v647_v35  ;;  %v714_v19 = vld [vmem:[%s11203_s3 + $0xe0] sm:$0xff]  ;;  %v747_v20 = vld [vmem:[%s11203_s3 + $0x1e8] sm:$0xff]  ;;  %v545_v34 = vadd.f32 %v9347_v44, %v470_v21  ;;  %v1131_v35 = vmul.f32 %v9406_v18, %v634_v22  ;;  %v732_v18 = vld [vmem:[%s11203_s3 + $0x170] sm:$0xff] }
  0x82   : > { %v8940_v21 = vld [vmem:[%s9314_s12 + $0x10] sm:$0xff]  }
  0x85   : > { %814 = vperm.xlu2 %9081, %v697_v27  }
  0x86   : > { %809 = vperm.xlu1 %9080, %v696_v28   ;;  %894 = vperm.xlu0 %9079, %v713_v29   ;;  %v8462_v28 = vunpack.c.l.bf16 %v8939_v13  ;;  %v8531_v29 = vunpack.c.h.bf16 %v8956_v17 }
  0x87   : > { %v9425_v41 = vpop.permute.xlu2 %769 }
  0x88   : > { %v935_v42 = vpop.permute.xlu1 %934  ;;  %v925_v43 = vpop.permute.xlu0 %924  ;;  %v471_v47 = vmul.f32 %v9329_v37, %v8462_v28  ;;  %v506_v48 = vmul.f32 %v9329_v37, %v8531_v29 }
  0x89   : > { %v1147_v51 = vmul.f32 %v935_v42, %v650_v36  ;;  %v1145_v52 = vmul.f32 %v925_v43, %v648_v38  ;;  %v8463_v42 = vunpack.c.h.bf16 %v8939_v13 }
  0x8a   : > { %v546_v0 = vadd.f32 %v9347_v44, %v471_v47  ;;  %v581_v1 = vadd.f32 %v9347_v44, %v506_v48 }
  0x8b   : > { %v8684_v55 = vpack.c.bf16 %v1147_v51, %v1146_v49  ;;  %v8679_v56 = vpack.c.bf16 %v1145_v52, %v1144_v50  ;;  %v8250_v49 = vld [vmem:[#allocation2 + $0xc0] sm:$0xff]  ;;  %v699_v52 = vld [vmem:[%s11203_s3 + $0x68] sm:$0xff] }
  0x8c   : > { %v1779_v63 = vshll.u32 %v8250_v49, 16  ;;  %v1783_v17 = vshrl.u32 %v8250_v49, 16 }
  0x8d   : > { %8989 = vst [vmem:[#allocation2 + $0x88] sm:$0xff] %v8684_v55   ;;  %1059 = vperm.xlu2 %9081, %v746_v53   ;;  %v698_v53 = vld [vmem:[%s11203_s3 + $0x60] sm:$0xff] }
  0x8e   : > { %8988 = vst [vmem:[#allocation2 + $0x80] sm:$0xff] %v8679_v56   ;;  %984 = vperm.xlu1 %9080, %v731_v57   ;;  %979 = vperm.xlu0 %9079, %v730_v58   ;;  %v616_v56 = vmax.f32 %v545_v34, 0.0  ;;  %v8964_v58 = vld [vmem:[%s9314_s12 + $0xd0] sm:$0xff]  }
  0x8f   : > { %v9444_v2 = vpop.permute.xlu2 %944  ;;  %v8563_v5 = vunpack.c.h.bf16 %v8964_v58 }
  0x90   : > { %v845_v6 = vpop.permute.xlu1 %844  ;;  %v840_v7 = vpop.permute.xlu0 %839 }
  0x91   : > { %v1129_v9 = vmul.f32 %v845_v6, %v632_v61  ;;  %v1128_v10 = vmul.f32 %v840_v7, %v631_v62  ;;  %v505_v61 = vmul.f32 %v9329_v37, %v8530_v40  ;;  %v472_v62 = vmul.f32 %v9329_v37, %v8463_v42 }
  0x93   : > { %v8639_v16 = vpack.c.bf16 %v1129_v9, %v1128_v10  ;;  %v8562_v9 = vunpack.c.l.bf16 %v8964_v58  ;;  %v580_v12 = vadd.f32 %v9347_v44, %v505_v61  ;;  %v547_v13 = vadd.f32 %v9347_v44, %v472_v62  ;;  %v717_v62 = vld [vmem:[%s11203_s3 + $0xf8] sm:$0xff] }
  0x94   : > { %v9461_v23 = vld [vmem:[#allocation2 + $0x88] sm:$0xff] }
  0x95   : > { %8980 = vst [vmem:[#allocation2 + $0x40] sm:$0xff] %v8639_v16   ;;  %904 = vperm.xlu2 %9081, %v715_v14   ;;  %v8242_v27 = vld [vmem:[#allocation2 + $0x80] sm:$0xff]  ;;  %v1723_v33 = vshll.u32 %v9461_v23, 16  ;;  %v8948_v14 = vld [vmem:[%s9314_s12 + $0x50] sm:$0xff]   ;;  %v9502_v16 = vrot.slane %v1779_v63, 1  ;;  %v521_v29 = vmul.f32 %v9329_v37, %v8562_v9 }
  0x96   : > { %899 = vperm.xlu1 %9080, %v714_v19   ;;  %1064 = vperm.xlu0 %9079, %v747_v20   ;;  %v1715_v32 = vshll.u32 %v8242_v27, 16  ;;  %v1719_v4 = vshrl.u32 %v8242_v27, 16  ;;  %v617_v19 = vmax.f32 %v546_v0, 0.0  ;;  %v652_v20 = vmax.f32 %v581_v1, 0.0  ;;  %v716_v63 = vld [vmem:[%s11203_s3 + $0xf0] sm:$0xff]  ;;  %v8957_v1 = vld [vmem:[%s9314_s12 + $0x98] sm:$0xff]  }
  0x97   : > { %v9465_v31 = vpop.permute.xlu2 %859  ;;  %v9485_v55 = vrot.slane %v1723_v33, 1  ;;  %v618_v33 = vmax.f32 %v547_v13, 0.0  ;;  %v1785_v39 = vor.u32 %v1783_v17, %v9502_v16 }
  0x98   : > { %v850_v36 = vpop.permute.xlu1 %849  ;;  %v1015_v38 = vpop.permute.xlu0 %1014  ;;  %v9471_v46 = vrot.slane %v1715_v32, 1  ;;  %v651_v32 = vmax.f32 %v580_v12, 0.0  ;;  %v1114_v40 = vmul.f32 %v9425_v41, %v617_v19  ;;  %v1149_v42 = vmul.f32 %v9444_v2, %v652_v20 }
  0x99   : > { %v1130_v43 = vmul.f32 %v850_v36, %v633_v25  ;;  %v1163_v45 = vmul.f32 %v1015_v38, %v666_v26  ;;  %v733_v25 = vld [vmem:[%s11203_s3 + $0x178] sm:$0xff]  ;;  %v522_v26 = vmul.f32 %v9329_v37, %v8563_v5  ;;  %v8499_v2 = vunpack.c.h.bf16 %v8948_v14 }
  0x9a   : > { %v1721_v54 = vor.u32 %v1719_v4, %v9471_v46 }
  0x9b   : > { %v8644_v50 = vpack.c.bf16 %v1131_v35, %v1130_v43  ;;  %v8724_v51 = vpack.c.bf16 %v1163_v45, %v1162_v30  ;;  %v8498_v30 = vunpack.c.l.bf16 %v8948_v14  ;;  %v8467_v35 = vunpack.c.h.bf16 %v8940_v21 }
  0x9c   : > { %v8234_v57 = vld [vmem:[#allocation2 + $0x40] sm:$0xff]  ;;  %v1726_v59 = vsel %vm1586_vm0, %v1721_v54, %v9485_v55  ;;  %v597_v4 = vadd.f32 %v9347_v44, %v522_v26  ;;  %v751_v26 = vld [vmem:[%s11203_s3 + $0x208] sm:$0xff] }
  0x9d   : > { %8981 = vst [vmem:[#allocation2 + $0x48] sm:$0xff] %v8644_v50   ;;  %989 = vperm.xlu2 %9081, %v732_v18   ;;  %2015 = vmatmul.bf16.vlgmr.msra.gmra.mxu2 %v1726_v59  ;;  %v1651_v8 = vshll.u32 %v8234_v57, 16  ;;  %v1655_v36 = vshrl.u32 %v8234_v57, 16  ;;  %v596_v50 = vadd.f32 %v9347_v44, %v521_v29  ;;  %v489_v54 = vmul.f32 %v9329_v37, %v8498_v30  ;;  %v700_v57 = vld [vmem:[%s11203_s3 + $0x70] sm:$0xff]  ;;  %v8949_v30 = vld [vmem:[%s9314_s12 + $0x58] sm:$0xff]  }
  0x9e   : > { %8997 = vst [vmem:[#allocation2 + $0xc8] sm:$0xff] %v8724_v51   ;;  %824 = vperm.xlu1 %9080, %v699_v52   ;;  %819 = vperm.xlu0 %9079, %v698_v53   ;;  %v8466_v51 = vunpack.c.l.bf16 %v8940_v21  ;;  %v474_v58 = vmul.f32 %v9329_v37, %v8467_v35  ;;  %v668_v5 = vmax.f32 %v597_v4, 0.0  ;;  %v701_v35 = vld [vmem:[%s11203_s3 + $0x78] sm:$0xff] }
  0x9f   : > { %v9494_v3 = vpop.permute.xlu2 %784  ;;  %v9516_v28 = vrot.slane %v1651_v8, 1  ;;  %v564_v8 = vadd.f32 %v9347_v44, %v489_v54 }
  0xa0   : > { %v765_v6 = vpop.permute.xlu1 %764  ;;  %v760_v7 = vpop.permute.xlu0 %759  ;;  %v473_v0 = vmul.f32 %v9329_v37, %v8466_v51  ;;  %v549_v9 = vadd.f32 %v9347_v44, %v474_v58  ;;  %v8503_v51 = vunpack.c.h.bf16 %v8949_v30 }
  0xa1   : > { %v1113_v10 = vmul.f32 %v765_v6, %v616_v56  ;;  %v1112_v11 = vmul.f32 %v760_v7, %v615_v60  ;;  %v1657_v18 = vor.u32 %v1655_v36, %v9516_v28  ;;  %v667_v6 = vmax.f32 %v596_v50, 0.0  ;;  %v8321_v50 = vld [vmem:[%s11204_s4 + $0xf8] sm:$0xff] }
  0xa2   : > { %v490_v7 = vmul.f32 %v9329_v37, %v8499_v2  ;;  %v548_v14 = vadd.f32 %v9347_v44, %v473_v0  ;;  %v620_v29 = vmax.f32 %v549_v9, 0.0  ;;  %v8265_v2 = vld [vmem:[%s11204_s4 + $0x38] sm:$0xff]  ;;  %3066 = vmatpush.bf16.msrb.mxu3 %v8321_v50 }
  0xa3   : > { %v9505_v22 = vpack.c.bf16 %v1113_v10, %v1112_v11  ;;  %v8535_v11 = vunpack.c.h.bf16 %v8957_v1  ;;  %2176 = vmatpush.bf16.msrb.mxu1 %v8265_v2 }
  0xa4   : > { %v9514_v27 = vld [vmem:[#allocation2 + $0x48] sm:$0xff]  ;;  %v565_v20 = vadd.f32 %v9347_v44, %v490_v7  ;;  %v1117_v54 = vmul.f32 %v9494_v3, %v620_v29  ;;  %v754_v7 = vld [vmem:[%s11203_s3 + $0x220] sm:$0xff] }
  0xa5   : > { %8600 = vst [vmem:[#allocation2] sm:$0xff] %v9505_v22   ;;  %1074 = vperm.xlu2 %9081, %v749_v15   ;;  %v9520_v34 = vld [vmem:[#allocation2 + $0xc8] sm:$0xff]  ;;  %v1659_v38 = vshll.u32 %v9514_v27, 16  ;;  %v8534_v15 = vunpack.c.l.bf16 %v8957_v1  ;;  %v1590_v21 = vshll.u32 %v9505_v22, 16  ;;  %v508_v36 = vmul.f32 %v9329_v37, %v8535_v11 }
  0xa6   : > { %1069 = vperm.xlu1 %9080, %v748_v24   ;;  %994 = vperm.xlu0 %9079, %v733_v25   ;;  %v1787_v45 = vshll.u32 %v9520_v34, 16  ;;  %v635_v24 = vmax.f32 %v564_v8, 0.0  ;;  %v9562_v25 = vld [vmem:[%s9314_s12 + $0xd8] sm:$0xff]   ;;  %v636_v4 = vmax.f32 %v565_v20, 0.0  ;;  %v492_v8 = vmul.f32 %v9329_v37, %v8503_v51 }
  0xa7   : > { %v9526_v43 = vpop.permute.xlu2 %1029  ;;  %v9531_v49 = vrot.slane %v1659_v38, 1  ;;  %v619_v38 = vmax.f32 %v548_v14, 0.0  ;;  %v752_v14 = vld [vmem:[%s11203_s3 + $0x210] sm:$0xff] }
  0xa8   : > { %v940_v47 = vpop.permute.xlu1 %939  ;;  %v775_v48 = vpop.permute.xlu0 %774  ;;  %v9534_v53 = vrot.slane %v1787_v45, 1  ;;  %v8566_v45 = vunpack.c.l.bf16 %v9562_v25 }
  0xa9   : > { %v1148_v52 = vmul.f32 %v940_v47, %v651_v32  ;;  %v1115_v41 = vmul.f32 %v775_v48, %v618_v33  ;;  %v1662_v56 = vsel %vm1586_vm0, %v1657_v18, %v9531_v49  ;;  %v750_v33 = vld [vmem:[%s11203_s3 + $0x200] sm:$0xff]  ;;  %v1592_v48 = vrot.slane %v1590_v21, 1  ;;  %v8281_v18 = vld [vmem:[%s11204_s4 + $0xb8] sm:$0xff] }
  0xaa   : > { %1975 = vmatmul.bf16.vlgmr.msra.gmra.mxu1 %v1662_v56  ;;  %v1790_v61 = vsel %vm1586_vm0, %v1785_v39, %v9534_v53  ;;  %2512 = vmatpush.bf16.msrb.mxu2 %v8281_v18 }
  0xab   : > { %v8689_v59 = vpack.c.bf16 %v1149_v42, %v1148_v52  ;;  %v8604_v60 = vpack.c.bf16 %v1115_v41, %v1114_v40  ;;  %2055 = vmatmul.bf16.vlgmr.msra.gmra.mxu3 %v1790_v61  ;;  %v1727_v40 = vshrl.u32 %v9461_v23, 16  ;;  %v507_v42 = vmul.f32 %v9329_v37, %v8534_v15 }
  0xac   : > { %v1132_v23 = vmul.f32 %v9465_v31, %v635_v24  ;;  %v583_v31 = vadd.f32 %v9347_v44, %v508_v36 }
  0xad   : > { %8990 = vst [vmem:[#allocation2 + $0x90] sm:$0xff] %v8689_v59   ;;  %829 = vperm.xlu2 %9081, %v700_v57   ;;  %v1729_v52 = vor.u32 %v1727_v40, %v9485_v55  ;;  %v1588_v57 = vshrl.u32 %v9505_v22, 16  ;;  %v582_v61 = vadd.f32 %v9347_v44, %v507_v42 }
  0xae   : > { %8973 = vst [vmem:[#allocation2 + $0x8] sm:$0xff] %v8604_v60   ;;  %914 = vperm.xlu1 %9080, %v717_v62   ;;  %909 = vperm.xlu0 %9079, %v716_v63   ;;  %v8502_v62 = vunpack.c.l.bf16 %v8949_v30  ;;  %v8567_v63 = vunpack.c.h.bf16 %v9562_v25  ;;  %v8360_v30 = vld [vmem:[%s11204_s4 + $0x138] sm:$0xff] }
  0xaf   : > { %v9556_v10 = vpop.permute.xlu2 %874  ;;  %v1593_v22 = vor.u32 %v1592_v48, %v1588_v57  ;;  %v653_v20 = vmax.f32 %v582_v61, 0.0  ;;  %3884 = vmatpush.bf16.msrb.mxu0 %v8360_v30  ;;  %v755_v57 = vld [vmem:[%s11203_s3 + $0x228] sm:$0xff] }
  0xb0   : > { %v1025_v12 = vpop.permute.xlu1 %1024  ;;  %v1020_v13 = vpop.permute.xlu0 %1019  ;;  %v491_v21 = vmul.f32 %v9329_v37, %v8502_v62  ;;  %v524_v24 = vmul.f32 %v9329_v37, %v8567_v63 }
  0xb1   : > { %v1165_v17 = vmul.f32 %v1025_v12, %v668_v5  ;;  %v1164_v19 = vmul.f32 %v1020_v13, %v667_v6  ;;  %v523_v5 = vmul.f32 %v9329_v37, %v8566_v45  ;;  %v753_v13 = vld [vmem:[%s11203_s3 + $0x218] sm:$0xff] }
  0xb2   : > { %v566_v48 = vadd.f32 %v9347_v44, %v491_v21  ;;  %v599_v18 = vadd.f32 %v9347_v44, %v524_v24 }
  0xb3   : > { %v8729_v32 = vpack.c.bf16 %v1165_v17, %v1164_v19  ;;  %v8941_v17 = vld [vmem:[%s9314_s12 + $0x18] sm:$0xff]   ;;  %v654_v19 = vmax.f32 %v583_v31, 0.0  ;;  %v598_v25 = vadd.f32 %v9347_v44, %v523_v5 }
  0xb4   : > { %v9575_v39 = vld [vmem:[#allocation2 + $0x90] sm:$0xff]  ;;  %v637_v62 = vmax.f32 %v566_v48, 0.0  ;;  %v670_v63 = vmax.f32 %v599_v18, 0.0 }
  0xb5   : > { %8998 = vst [vmem:[#allocation2 + $0xd0] sm:$0xff] %v8729_v32   ;;  %1084 = vperm.xlu2 %9081, %v751_v26   ;;  %v9580_v47 = vld [vmem:[#allocation2 + $0x8] sm:$0xff]  ;;  %v1731_v41 = vshll.u32 %v9575_v39, 16  ;;  %v1791_v26 = vshrl.u32 %v9520_v34, 16  ;;  %v567_v32 = vadd.f32 %v9347_v44, %v492_v8  ;;  %v8470_v34 = vunpack.c.l.bf16 %v8941_v17  ;;  %v8264_v8 = vld [vmem:[%s11204_s4 + $0x30] sm:$0xff] }
  0xb6   : > { %1079 = vperm.xlu1 %9080, %v750_v33   ;;  %834 = vperm.xlu0 %9079, %v701_v35   ;;  %v1595_v58 = vshll.u32 %v9580_v47, 16  ;;  %v8471_v35 = vunpack.c.h.bf16 %v8941_v17  ;;  %v669_v50 = vmax.f32 %v598_v25, 0.0 }
  0xb7   : > { %v9595_v56 = vpop.permute.xlu2 %959  ;;  %v9600_v60 = vrot.slane %v1731_v41, 1  ;;  %v1793_v40 = vor.u32 %v1791_v26, %v9534_v53  ;;  %v6287_v53 = vld [vmem:[%s11205_s5] sm:$0xff]  ;;  %2177 = vmatpush.bf16.msrb.mxu1 %v8264_v8 }
  0xb8   : > { %v780_v59 = vpop.permute.xlu1 %779  ;;  %v865_v55 = vpop.permute.xlu0 %864  ;;  %v9604_v1 = vrot.slane %v1595_v58, 1  ;;  %v8966_v41 = vld [vmem:[%s9314_s12 + $0xe0] sm:$0xff]   ;;  %v476_v58 = vmul.f32 %v9329_v37, %v8471_v35 }
  0xb9   : > { %v1116_v3 = vmul.f32 %v780_v59, %v619_v38  ;;  %v1133_v0 = vmul.f32 %v865_v55, %v636_v4  ;;  %v1734_v6 = vsel %vm1586_vm0, %v1729_v52, %v9600_v60  ;;  %v638_v52 = vmax.f32 %v567_v32, 0.0 }
  0xba   : > { %v1598_v12 = vsel %vm1586_vm0, %v1593_v22, %v9604_v1  ;;  %2020 = vmatmul.bf16.gmra.mxu2 %v1734_v6  ;;  %v1663_v59 = vshrl.u32 %v9514_v27, 16  ;;  %v475_v55 = vmul.f32 %v9329_v37, %v8470_v34  ;;  %v8320_v22 = vld [vmem:[%s11204_s4 + $0xf0] sm:$0xff]  ;;  %v1166_v27 = vmul.f32 %v9526_v43, %v669_v50 }
  0xbb   : > { %v8609_v9 = vpack.c.bf16 %v1117_v54, %v1116_v3  ;;  %v8649_v11 = vpack.c.bf16 %v1133_v0, %v1132_v23  ;;  %1935 = vmatmul.bf16.vlgmr.msra.gmra.mxu0 %v1598_v12  ;;  %v9641_v23 = vld [vmem:[%s9314_s12 + $0xa0] sm:$0xff]   ;;  %v756_v54 = vld [vmem:[%s11203_s3 + $0x230] sm:$0xff]  ;;  %v8571_v5 = vunpack.c.h.bf16 %v8966_v41  ;;  %v1599_v6 = vshrl.u32 %v9580_v47, 16  ;;  %3067 = vmatpush.bf16.msrb.mxu3 %v8320_v22 }
  0xbc   : > { %v9621_v15 = vld [vmem:[#allocation2 + $0xd0] sm:$0xff]  ;;  %v8538_v61 = vunpack.c.l.bf16 %v9641_v23  ;;  %v8539_v25 = vunpack.c.h.bf16 %v9641_v23  ;;  %v9721_v22 = vld [vmem:[%s9314_s12 + $0x20] sm:$0xff]  }
  0xbd   : > { %8974 = vst [vmem:[#allocation2 + $0x10] sm:$0xff] %v8609_v9   ;;  %1099 = vperm.xlu2 %9081, %v754_v7   ;;  %v1795_v29 = vshll.u32 %v9621_v15, 16  ;;  %v8280_v0 = vld [vmem:[%s11204_s4 + $0xb0] sm:$0xff]  ;;  %v1135_v9 = vmul.f32 %v9556_v10, %v638_v52  ;;  %v1601_v47 = vor.u32 %v1599_v6, %v9604_v1  ;;  %v526_v30 = vmul.f32 %v9329_v37, %v8571_v5 }
  0xbe   : > { %8982 = vst [vmem:[#allocation2 + $0x50] sm:$0xff] %v8649_v11   ;;  %1094 = vperm.xlu1 %9080, %v753_v13   ;;  %1089 = vperm.xlu0 %9079, %v752_v14   ;;  %v1665_v11 = vor.u32 %v1663_v59, %v9531_v49  ;;  %v551_v13 = vadd.f32 %v9347_v44, %v476_v58  ;;  %v8359_v52 = vld [vmem:[%s11204_s4 + $0x130] sm:$0xff] }
  0xbf   : > { %v9633_v33 = vpop.permute.xlu2 %1044  ;;  %v9636_v42 = vrot.slane %v1795_v29, 1  ;;  %2513 = vmatpush.bf16.msrb.mxu2 %v8280_v0  ;;  %v509_v26 = vmul.f32 %v9329_v37, %v8538_v61  ;;  %v6290_v29 = vld [vmem:[%s11205_s5 + $0x18] sm:$0xff]  ;;  %v510_v50 = vmul.f32 %v9329_v37, %v8539_v25  ;;  %3885 = vmatpush.bf16.msrb.mxu0 %v8359_v52 }
  0xc0   : > { %v955_v36 = vpop.permute.xlu1 %954  ;;  %v950_v38 = vpop.permute.xlu0 %949 }
  0xc1   : > { %v1151_v45 = vmul.f32 %v955_v36, %v654_v19  ;;  %v1150_v4 = vmul.f32 %v950_v38, %v653_v20  ;;  %v1798_v51 = vsel %vm1586_vm0, %v1793_v40, %v9636_v42  ;;  %v550_v19 = vadd.f32 %v9347_v44, %v475_v55  ;;  %v6289_v38 = vld [vmem:[%s11205_s5 + $0x10] sm:$0xff]  ;;  %v6288_v40 = vld [vmem:[%s11205_s5 + $0x8] sm:$0xff] }
  0xc2   : > { %2060 = vmatmul.bf16.gmra.mxu3 %v1798_v51  ;;  %v8570_v20 = vunpack.c.l.bf16 %v8966_v41  ;;  %v584_v23 = vadd.f32 %v9347_v44, %v509_v26  ;;  %v1735_v51 = vshrl.u32 %v9575_v39, 16  ;;  %v601_v41 = vadd.f32 %v9347_v44, %v526_v30  ;;  %v8263_v30 = vld [vmem:[%s11204_s4 + $0x28] sm:$0xff] }
  0xc3   : > { %v8694_v2 = vpack.c.bf16 %v1151_v45, %v1150_v4  ;;  %v8950_v45 = vld [vmem:[%s9314_s12 + $0x60] sm:$0xff]   ;;  %v622_v4 = vmax.f32 %v551_v13, 0.0  ;;  %v621_v48 = vmax.f32 %v550_v19, 0.0  ;;  %2178 = vmatpush.bf16.msrb.mxu1 %v8263_v30  ;;  %v6298_v30 = vld [vmem:[%s11205_s5 + $0x58] sm:$0xff] }
  0xc4   : > { %v9656_v31 = vld [vmem:[#allocation2 + $0x10] sm:$0xff]  ;;  %v525_v18 = vmul.f32 %v9329_v37, %v8570_v20  ;;  %v1737_v59 = vor.u32 %v1735_v51, %v9600_v60  ;;  %v655_v0 = vmax.f32 %v584_v23, 0.0  ;;  %v672_v6 = vmax.f32 %v601_v41, 0.0  ;;  %v6296_v23 = vld [vmem:[%s11205_s5 + $0x48] sm:$0xff] }
  0xc5   : > { %8991 = vst [vmem:[#allocation2 + $0x98] sm:$0xff] %v8694_v2   ;;  %6353 = vperm.xlu2 %9081, %v6287_v53   ;;  %v9661_v3 = vld [vmem:[#allocation2 + $0x50] sm:$0xff]  ;;  %v1603_v7 = vshll.u32 %v9656_v31, 16  ;;  %v8507_v2 = vunpack.c.h.bf16 %v8950_v45 }
  0xc6   : > { %1109 = vperm.xlu1 %9080, %v756_v54   ;;  %1104 = vperm.xlu0 %9079, %v755_v57   ;;  %v1667_v12 = vshll.u32 %v9661_v3, 16  ;;  %v8506_v54 = vunpack.c.l.bf16 %v8950_v45  ;;  %v6293_v60 = vld [vmem:[%s11205_s5 + $0x30] sm:$0xff]  ;;  %v1152_v25 = vmul.f32 %v9595_v56, %v655_v0  ;;  %v1671_v26 = vshrl.u32 %v9661_v3, 16  ;;  %v9802_v0 = vld [vmem:[%s11202_s2] ss:$0 sm:$0xff] }
  0xc7   : > { %v9680_v17 = vrot.slane %v1603_v7, 1  ;;  %v9683_v21 = vpop.permute.xlu2 %799 }
  0xc8   : > { %v870_v43 = vpop.permute.xlu1 %869  ;;  %v1035_v14 = vpop.permute.xlu0 %1034  ;;  %v9685_v24 = vrot.slane %v1667_v12, 1  ;;  %v494_v12 = vmul.f32 %v9329_v37, %v8507_v2  ;;  %v493_v13 = vmul.f32 %v9329_v37, %v8506_v54  ;;  %v8319_v37 = vld [vmem:[%s11204_s4 + $0xe8] sm:$0xff]  ;;  %v6295_v2 = vld [vmem:[%s11205_s5 + $0x40] sm:$0xff]  ;;  %v6294_v54 = vld [vmem:[%s11205_s5 + $0x38] sm:$0xff] }
  0xc9   : > { %v1134_v10 = vmul.f32 %v870_v43, %v637_v62  ;;  %v1167_v49 = vmul.f32 %v1035_v14, %v670_v63  ;;  %v1606_v1 = vsel %vm1586_vm0, %v1601_v47, %v9680_v17  ;;  %v600_v62 = vadd.f32 %v9347_v44, %v525_v18  ;;  %3068 = vmatpush.bf16.msrb.mxu3 %v8319_v37  ;;  %v9817_v37 = vld [vmem:[%s9314_s12 + $0x68] sm:$0xff]  }
  0xca   : > { %v1670_v36 = vsel %vm1586_vm0, %v1665_v11, %v9685_v24  ;;  %v585_v63 = vadd.f32 %v9347_v44, %v510_v50  ;;  %v6291_v11 = vld [vmem:[%s11205_s5 + $0x20] sm:$0xff]  ;;  %v8474_v14 = vunpack.c.l.bf16 %v9721_v22  ;;  %v568_v56 = vadd.f32 %v9347_v44, %v493_v13 }
  0xcb   : > { %v8654_v32 = vpack.c.bf16 %v1135_v9, %v1134_v10  ;;  %v8734_v35 = vpack.c.bf16 %v1167_v49, %v1166_v27  ;;  %1940 = vmatmul.bf16.gmra.mxu0 %v1606_v1  ;;  %1980 = vmatmul.bf16.gmra.mxu1 %v1670_v36  ;;  %v9724_v27 = vld [vmem:[%s9314_s12 + $0xa8] sm:$0xff]   ;;  %v671_v19 = vmax.f32 %v600_v62, 0.0  ;;  %v569_v36 = vadd.f32 %v9347_v44, %v494_v12  ;;  %v9775_v50 = vld [vmem:[%s11201_s1] ss:$0 sm:$0xff] }
  0xcc   : > { %v9703_v34 = vld [vmem:[#allocation2 + $0x98] sm:$0xff]  ;;  %v6292_v9 = vld [vmem:[%s11205_s5 + $0x28] sm:$0xff]  ;;  %v8543_v47 = vunpack.c.h.bf16 %v9724_v27  ;;  %v656_v20 = vmax.f32 %v585_v63, 0.0  ;;  %v8475_v44 = vunpack.c.h.bf16 %v9721_v22 }
  0xcd   : > { %8983 = vst [vmem:[#allocation2 + $0x58] sm:$0xff] %v8654_v32   ;;  %6368 = vperm.xlu2 %9081, %v6290_v29   ;;  %v1739_v53 = vshll.u32 %v9703_v34, 16  ;;  %v8279_v49 = vld [vmem:[%s11204_s4 + $0xa8] sm:$0xff]  ;;  %v1799_v29 = vshrl.u32 %v9621_v15, 16  ;;  %v1169_v32 = vmul.f32 %v9633_v33, %v672_v6 }
  0xce   : > { %8999 = vst [vmem:[#allocation2 + $0xd8] sm:$0xff] %v8734_v35   ;;  %6363 = vperm.xlu1 %9080, %v6289_v38   ;;  %6358 = vperm.xlu0 %9079, %v6288_v40   ;;  %v1673_v40 = vor.u32 %v1671_v26, %v9685_v24  ;;  %v477_v24 = vmul.f32 %v9775_v50, %v8474_v14 }
  0xcf   : > { %v9716_v55 = vrot.slane %v1739_v53, 1  ;;  %v9731_v7 = vpop.permute.xlu2 %974  ;;  %2514 = vmatpush.bf16.msrb.mxu2 %v8279_v49  ;;  %v1801_v15 = vor.u32 %v1799_v29, %v9636_v42  ;;  %v512_v51 = vmul.f32 %v9775_v50, %v8543_v47  ;;  %v478_v63 = vmul.f32 %v9775_v50, %v8475_v44 }
  0xd0   : > { %v795_v57 = vpop.permute.xlu1 %794  ;;  %v790_v58 = vpop.permute.xlu0 %789  ;;  %v552_v22 = vadd.f32 %v9802_v0, %v477_v24  ;;  %v1743_v24 = vshrl.u32 %v9703_v34, 16 }
  0xd1   : > { %v1119_v39 = vmul.f32 %v795_v57, %v622_v4  ;;  %v1118_v61 = vmul.f32 %v790_v58, %v621_v48  ;;  %v1742_v5 = vsel %vm1586_vm0, %v1737_v59, %v9716_v55  ;;  %v8542_v4 = vunpack.c.l.bf16 %v9724_v27  ;;  %v8967_v58 = vld [vmem:[%s9314_s12 + $0xe8] sm:$0xff]  }
  0xd2   : > { %2025 = vmatmul.bf16.gmra.mxu2 %v1742_v5  ;;  %v1607_v27 = vshrl.u32 %v9656_v31, 16  ;;  %v587_v6 = vadd.f32 %v9802_v0, %v512_v51  ;;  %v623_v49 = vmax.f32 %v552_v22, 0.0  ;;  %v8262_v51 = vld [vmem:[%s11204_s4 + $0x20] sm:$0xff]  ;;  %v8511_v22 = vunpack.c.h.bf16 %v9817_v37 }
  0xd3   : > { %v8614_v8 = vpack.c.bf16 %v1119_v39, %v1118_v61  ;;  %v640_v39 = vmax.f32 %v569_v36, 0.0  ;;  %v639_v61 = vmax.f32 %v568_v56, 0.0  ;;  %v511_v62 = vmul.f32 %v9775_v50, %v8542_v4  ;;  %2179 = vmatpush.bf16.msrb.mxu1 %v8262_v51  ;;  %v6304_v51 = vld [vmem:[%s11205_s5 + $0x88] sm:$0xff] }
  0xd4   : > { %v9741_v43 = vld [vmem:[#allocation2 + $0x58] sm:$0xff]  ;;  %v1609_v13 = vor.u32 %v1607_v27, %v9680_v17  ;;  %v6299_v17 = vld [vmem:[%s11205_s5 + $0x60] sm:$0xff]  ;;  %v1120_v44 = vmul.f32 %v9683_v21, %v623_v49 }
  0xd5   : > { %8975 = vst [vmem:[#allocation2 + $0x18] sm:$0xff] %v8614_v8   ;;  %6383 = vperm.xlu2 %9081, %v6293_v60   ;;  %v9745_v10 = vld [vmem:[#allocation2 + $0xd8] sm:$0xff]  ;;  %v1675_v1 = vshll.u32 %v9741_v43, 16  ;;  %v8358_v60 = vld [vmem:[%s11204_s4 + $0x128] sm:$0xff]  ;;  %v8575_v8 = vunpack.c.h.bf16 %v8967_v58 }
  0xd6   : > { %6378 = vperm.xlu1 %9080, %v6292_v9   ;;  %6373 = vperm.xlu0 %9079, %v6291_v11   ;;  %v1803_v35 = vshll.u32 %v9745_v10, 16  ;;  %v8574_v9 = vunpack.c.l.bf16 %v8967_v58 }
  0xd7   : > { %v9765_v45 = vrot.slane %v1675_v1, 1  ;;  %v9795_v59 = vpop.permute.xlu2 %889  ;;  %3886 = vmatpush.bf16.msrb.mxu0 %v8358_v60  ;;  %v658_v1 = vmax.f32 %v587_v6, 0.0 }
  0xd8   : > { %v1040_v38 = vpop.permute.xlu1 %1039  ;;  %v965_v3 = vpop.permute.xlu0 %964  ;;  %v9769_v18 = vrot.slane %v1803_v35, 1  ;;  %v528_v35 = vmul.f32 %v9775_v50, %v8575_v8  ;;  %v527_v36 = vmul.f32 %v9775_v50, %v8574_v9  ;;  %v6301_v9 = vld [vmem:[%s11205_s5 + $0x70] sm:$0xff] }
  0xd9   : > { %v1168_v33 = vmul.f32 %v1040_v38, %v671_v19  ;;  %v1153_v48 = vmul.f32 %v965_v3, %v656_v20  ;;  %v1678_v42 = vsel %vm1586_vm0, %v1673_v40, %v9765_v45  ;;  %v586_v19 = vadd.f32 %v9802_v0, %v511_v62 }
  0xda   : > { %v1806_v41 = vsel %vm1586_vm0, %v1801_v15, %v9769_v18  ;;  %v553_v20 = vadd.f32 %v9802_v0, %v478_v63  ;;  %v8510_v38 = vunpack.c.l.bf16 %v9817_v37  ;;  %v603_v21 = vadd.f32 %v9802_v0, %v528_v35 }
  0xdb   : > { %v8739_v53 = vpack.c.bf16 %v1169_v32, %v1168_v33  ;;  %v8699_v52 = vpack.c.bf16 %v1153_v48, %v1152_v25  ;;  %1985 = vmatmul.bf16.gmra.mxu1 %v1678_v42  ;;  %2065 = vmatmul.bf16.gmra.mxu3 %v1806_v41  ;;  %v9820_v25 = vld [vmem:[%s9314_s12 + $0x28] sm:$0xff]   ;;  %v6297_v32 = vld [vmem:[%s11205_s5 + $0x50] sm:$0xff]  ;;  %v657_v40 = vmax.f32 %v586_v19, 0.0  ;;  %v8278_v33 = vld [vmem:[%s11204_s4 + $0xa0] sm:$0xff]  ;;  %v1807_v42 = vshrl.u32 %v9745_v10, 16 }
  0xdc   : > { %v9792_v57 = vld [vmem:[#allocation2 + $0x18] sm:$0xff]  ;;  %v8479_v3 = vunpack.c.h.bf16 %v9820_v25  ;;  %v624_v15 = vmax.f32 %v553_v20, 0.0  ;;  %v8318_v48 = vld [vmem:[%s11204_s4 + $0xe0] sm:$0xff]  ;;  %2515 = vmatpush.bf16.msrb.mxu2 %v8278_v33  ;;  %v495_v27 = vmul.f32 %v9775_v50, %v8510_v38  ;;  %v496_v20 = vmul.f32 %v9775_v50, %v8511_v22 }
  0xdd   : > { %9000 = vst [vmem:[#allocation2 + $0xe0] sm:$0xff] %v8739_v53   ;;  %6398 = vperm.xlu2 %9081, %v6296_v23   ;;  %v1611_v5 = vshll.u32 %v9792_v57, 16  ;;  %v1155_v53 = vmul.f32 %v9731_v7, %v658_v1  ;;  %3069 = vmatpush.bf16.msrb.mxu3 %v8318_v48  ;;  %v1809_v58 = vor.u32 %v1807_v42, %v9769_v18  ;;  %v8478_v7 = vunpack.c.l.bf16 %v9820_v25  ;;  %v9903_v48 = vld [vmem:[%s9314_s12 + $0xf0] sm:$0xff]  }
  0xde   : > { %8992 = vst [vmem:[#allocation2 + $0xa0] sm:$0xff] %v8699_v52   ;;  %6393 = vperm.xlu1 %9080, %v6295_v2   ;;  %6388 = vperm.xlu0 %9079, %v6294_v54   ;;  %v602_v2 = vadd.f32 %v9802_v0, %v527_v36  ;;  %v1745_v54 = vor.u32 %v1743_v24, %v9716_v55  ;;  %v6302_v55 = vld [vmem:[%s11205_s5 + $0x78] sm:$0xff]  ;;  %v1679_v37 = vshrl.u32 %v9741_v43, 16 }
  0xdf   : > { %v9812_v14 = vrot.slane %v1611_v5, 1  ;;  %v9855_v52 = vpop.permute.xlu2 %814  ;;  %v480_v18 = vmul.f32 %v9775_v50, %v8479_v3  ;;  %v479_v19 = vmul.f32 %v9775_v50, %v8478_v7  ;;  %v570_v49 = vadd.f32 %v9802_v0, %v495_v27 }
  0xe0   : > { %v885_v11 = vpop.permute.xlu1 %884  ;;  %v880_v12 = vpop.permute.xlu0 %879  ;;  %v1681_v35 = vor.u32 %v1679_v37, %v9765_v45  ;;  %v6305_v45 = vld [vmem:[%s11205_s5 + $0x90] sm:$0xff]  ;;  %v1615_v27 = vshrl.u32 %v9792_v57, 16 }
  0xe1   : > { %v1137_v31 = vmul.f32 %v885_v11, %v640_v39  ;;  %v1136_v47 = vmul.f32 %v880_v12, %v639_v61  ;;  %v1614_v26 = vsel %vm1586_vm0, %v1609_v13, %v9812_v14  ;;  %v6300_v11 = vld [vmem:[%s11205_s5 + $0x68] sm:$0xff]  ;;  %v8960_v13 = vld [vmem:[%s9314_s12 + $0xb0] sm:$0xff]   ;;  %v641_v33 = vmax.f32 %v570_v49, 0.0 }
  0xe2   : > { %1945 = vmatmul.bf16.gmra.mxu0 %v1614_v26  ;;  %v8357_v26 = vld [vmem:[%s11204_s4 + $0x120] sm:$0xff]  ;;  %v8547_v1 = vunpack.c.h.bf16 %v8960_v13 }
  0xe3   : > { %v8659_v29 = vpack.c.bf16 %v1137_v31, %v1136_v47  ;;  %v674_v31 = vmax.f32 %v603_v21, 0.0  ;;  %v673_v47 = vmax.f32 %v602_v2, 0.0  ;;  %3887 = vmatpush.bf16.msrb.mxu0 %v8357_v26  ;;  %v1138_v22 = vmul.f32 %v9795_v59, %v641_v33 }
  0xe4   : > { %v9835_v56 = vld [vmem:[#allocation2 + $0xe0] sm:$0xff] }
  0xe5   : > { %8984 = vst [vmem:[#allocation2 + $0x60] sm:$0xff] %v8659_v29   ;;  %6413 = vperm.xlu2 %9081, %v6299_v17   ;;  %v9839_v4 = vld [vmem:[#allocation2 + $0xa0] sm:$0xff]  ;;  %v1811_v23 = vshll.u32 %v9835_v56, 16  ;;  %v555_v17 = vadd.f32 %v9802_v0, %v480_v18  ;;  %v8546_v29 = vunpack.c.l.bf16 %v8960_v13  ;;  %v8261_v18 = vld [vmem:[%s11204_s4 + $0x18] sm:$0xff] }
  0xe6   : > { %6408 = vperm.xlu1 %9080, %v6298_v30   ;;  %6403 = vperm.xlu0 %9079, %v6297_v32   ;;  %v1747_v41 = vshll.u32 %v9839_v4, 16 }
  0xe7   : > { %v9862_v39 = vrot.slane %v1811_v23, 1  ;;  %v9898_v43 = vpop.permute.xlu2 %1059  ;;  %v626_v42 = vmax.f32 %v555_v17, 0.0  ;;  %v513_v21 = vmul.f32 %v9775_v50, %v8546_v29  ;;  %2180 = vmatpush.bf16.msrb.mxu1 %v8261_v18  ;;  %v6307_v29 = vld [vmem:[%s11205_s5 + $0xa0] sm:$0xff]  ;;  %v6309_v18 = vld [vmem:[%s11205_s5 + $0xb0] sm:$0xff] }
  0xe8   : > { %v970_v34 = vpop.permute.xlu1 %969  ;;  %v805_v10 = vpop.permute.xlu0 %804  ;;  %v9865_v63 = vrot.slane %v1747_v41, 1  ;;  %v514_v41 = vmul.f32 %v9775_v50, %v8547_v1 }
  0xe9   : > { %v1154_v61 = vmul.f32 %v970_v34, %v657_v40  ;;  %v1121_v62 = vmul.f32 %v805_v10, %v624_v15  ;;  %v1814_v5 = vsel %vm1586_vm0, %v1809_v58, %v9862_v39  ;;  %v554_v40 = vadd.f32 %v9802_v0, %v479_v19 }
  0xea   : > { %v1750_v8 = vsel %vm1586_vm0, %v1745_v54, %v9865_v63  ;;  %v571_v15 = vadd.f32 %v9802_v0, %v496_v20  ;;  %v8578_v34 = vunpack.c.l.bf16 %v9903_v48  ;;  %v588_v59 = vadd.f32 %v9802_v0, %v513_v21 }
  0xeb   : > { %v8704_v60 = vpack.c.bf16 %v1155_v53, %v1154_v61  ;;  %v8619_v6 = vpack.c.bf16 %v1121_v62, %v1120_v44  ;;  %2030 = vmatmul.bf16.gmra.mxu2 %v1750_v8  ;;  %2070 = vmatmul.bf16.gmra.mxu3 %v1814_v5  ;;  %v9906_v44 = vld [vmem:[%s9314_s12 + $0x70] sm:$0xff]   ;;  %v6303_v53 = vld [vmem:[%s11205_s5 + $0x80] sm:$0xff]  ;;  %v625_v54 = vmax.f32 %v554_v40, 0.0  ;;  %v8277_v61 = vld [vmem:[%s11204_s4 + $0x98] sm:$0xff]  ;;  %v1751_v5 = vshrl.u32 %v9839_v4, 16 }
  0xec   : > { %v9883_v12 = vld [vmem:[#allocation2 + $0x60] sm:$0xff]  ;;  %v8515_v10 = vunpack.c.h.bf16 %v9906_v44  ;;  %v642_v58 = vmax.f32 %v571_v15, 0.0  ;;  %v8317_v62 = vld [vmem:[%s11204_s4 + $0xd8] sm:$0xff]  ;;  %v589_v8 = vadd.f32 %v9802_v0, %v514_v41  ;;  %2516 = vmatpush.bf16.msrb.mxu2 %v8277_v61  ;;  %v1617_v4 = vor.u32 %v1615_v27, %v9812_v14  ;;  %v6308_v14 = vld [vmem:[%s11205_s5 + $0xa8] sm:$0xff] }
  0xed   : > { %8993 = vst [vmem:[#allocation2 + $0xa8] sm:$0xff] %v8704_v60   ;;  %6428 = vperm.xlu2 %9081, %v6302_v55   ;;  %v1683_v25 = vshll.u32 %v9883_v12, 16  ;;  %v1123_v60 = vmul.f32 %v9855_v52, %v626_v42  ;;  %3070 = vmatpush.bf16.msrb.mxu3 %v8317_v62  ;;  %v8579_v20 = vunpack.c.h.bf16 %v9903_v48  ;;  %v529_v49 = vmul.f32 %v9775_v50, %v8578_v34  ;;  %v9987_v61 = vld [vmem:[%s9314_s12 + $0xb8] sm:$0xff]  }
  0xee   : > { %8976 = vst [vmem:[#allocation2 + $0x20] sm:$0xff] %v8619_v6   ;;  %6423 = vperm.xlu1 %9080, %v6301_v9   ;;  %6418 = vperm.xlu0 %9079, %v6300_v11   ;;  %v1753_v11 = vor.u32 %v1751_v5, %v9865_v63  ;;  %v1815_v48 = vshrl.u32 %v9835_v56, 16  ;;  %v9990_v62 = vld [vmem:[%s9314_s12 + $0xf8] sm:$0xff]  }
  0xef   : > { %v9896_v36 = vrot.slane %v1683_v25, 1  ;;  %v9958_v63 = vpop.permute.xlu2 %904  ;;  %v498_v25 = vmul.f32 %v9775_v50, %v8515_v10  ;;  %v530_v15 = vmul.f32 %v9775_v50, %v8579_v20  ;;  %v604_v33 = vadd.f32 %v9802_v0, %v529_v49 }
  0xf0   : > { %v1055_v30 = vpop.permute.xlu1 %1054  ;;  %v1050_v32 = vpop.permute.xlu0 %1049  ;;  %v1817_v41 = vor.u32 %v1815_v48, %v9862_v39  ;;  %v6311_v39 = vld [vmem:[%s11205_s5 + $0xc0] sm:$0xff] }
  0xf1   : > { %v1171_v38 = vmul.f32 %v1055_v30, %v674_v31  ;;  %v1170_v3 = vmul.f32 %v1050_v32, %v673_v47  ;;  %v1686_v24 = vsel %vm1586_vm0, %v1681_v35, %v9896_v36  ;;  %v8514_v31 = vunpack.c.l.bf16 %v9906_v44  ;;  %v6306_v30 = vld [vmem:[%s11205_s5 + $0x98] sm:$0xff]  ;;  %v8944_v35 = vld [vmem:[%s9314_s12 + $0x30] sm:$0xff]  }
  0xf2   : > { %1990 = vmatmul.bf16.gmra.mxu1 %v1686_v24  ;;  %v8356_v24 = vld [vmem:[%s11204_s4 + $0x118] sm:$0xff]  ;;  %v8483_v42 = vunpack.c.h.bf16 %v8944_v35 }
  0xf3   : > { %v8744_v23 = vpack.c.bf16 %v1171_v38, %v1170_v3  ;;  %v660_v38 = vmax.f32 %v589_v8, 0.0  ;;  %v659_v3 = vmax.f32 %v588_v59, 0.0  ;;  %v497_v40 = vmul.f32 %v9775_v50, %v8514_v31  ;;  %3888 = vmatpush.bf16.msrb.mxu0 %v8356_v24 }
  0xf4   : > { %v9921_v2 = vld [vmem:[#allocation2 + $0xa8] sm:$0xff] }
  0xf5   : > { %9001 = vst [vmem:[#allocation2 + $0xe8] sm:$0xff] %v8744_v23   ;;  %6443 = vperm.xlu2 %9081, %v6305_v45   ;;  %v9925_v7 = vld [vmem:[#allocation2 + $0x20] sm:$0xff]  ;;  %v1755_v55 = vshll.u32 %v9921_v2, 16  ;;  %v573_v45 = vadd.f32 %v9802_v0, %v498_v25  ;;  %v8482_v23 = vunpack.c.l.bf16 %v8944_v35  ;;  %v572_v10 = vadd.f32 %v9802_v0, %v497_v40  ;;  %v8260_v25 = vld [vmem:[%s11204_s4 + $0x10] sm:$0xff] }
  0xf6   : > { %6438 = vperm.xlu1 %9080, %v6304_v51   ;;  %6433 = vperm.xlu0 %9079, %v6303_v53   ;;  %v1619_v6 = vshll.u32 %v9925_v7, 16  ;;  %v1623_v49 = vshrl.u32 %v9925_v7, 16 }
  0xf7   : > { %v9946_v13 = vrot.slane %v1755_v55, 1  ;;  %v644_v27 = vmax.f32 %v573_v45, 0.0  ;;  %v6310_v55 = vld [vmem:[%s11205_s5 + $0xb8] sm:$0xff]  ;;  %v10007_v59 = vpop.permute.xlu2 %989  ;;  %2181 = vmatpush.bf16.msrb.mxu1 %v8260_v25  ;;  %v6316_v25 = vld [vmem:[%s11205_s5 + $0xe8] sm:$0xff] }
  0xf8   : > { %v810_v9 = vpop.permute.xlu1 %809  ;;  %v895_v57 = vpop.permute.xlu0 %894  ;;  %v9949_v19 = vrot.slane %v1619_v6, 1  ;;  %v481_v6 = vmul.f32 %v9775_v50, %v8482_v23  ;;  %v6313_v23 = vld [vmem:[%s11205_s5 + $0xd0] sm:$0xff] }
  0xf9   : > { %v1122_v52 = vmul.f32 %v810_v9, %v625_v54  ;;  %v1139_v47 = vmul.f32 %v895_v57, %v642_v58  ;;  %v1758_v37 = vsel %vm1586_vm0, %v1753_v11, %v9946_v13  ;;  %v605_v54 = vadd.f32 %v9802_v0, %v530_v15 }
  0xfa   : > { %v1622_v1 = vsel %vm1586_vm0, %v1617_v4, %v9949_v19  ;;  %v675_v58 = vmax.f32 %v604_v33, 0.0  ;;  %v8550_v9 = vunpack.c.l.bf16 %v9987_v61  ;;  %v8583_v57 = vunpack.c.h.bf16 %v9990_v62 }
  0xfb   : > { %v8624_v26 = vpack.c.bf16 %v1123_v60, %v1122_v52  ;;  %v8664_v17 = vpack.c.bf16 %v1139_v47, %v1138_v22  ;;  %1950 = vmatmul.bf16.gmra.mxu0 %v1622_v1  ;;  %2035 = vmatmul.bf16.gmra.mxu2 %v1758_v37  ;;  %v482_v60 = vmul.f32 %v9775_v50, %v8483_v42  ;;  %v643_v4 = vmax.f32 %v572_v10, 0.0  ;;  %v8276_v52 = vld [vmem:[%s11204_s4 + $0x90] sm:$0xff] }
  0xfc   : > { %v9969_v32 = vld [vmem:[#allocation2 + $0xe8] sm:$0xff]  ;;  %v676_v11 = vmax.f32 %v605_v54, 0.0  ;;  %v8316_v47 = vld [vmem:[%s11204_s4 + $0xd0] sm:$0xff]  ;;  %v1172_v20 = vmul.f32 %v9898_v43, %v675_v58  ;;  %v556_v43 = vadd.f32 %v9802_v0, %v481_v6  ;;  %2517 = vmatpush.bf16.msrb.mxu2 %v8276_v52  ;;  %v1625_v35 = vor.u32 %v1623_v49, %v9949_v19  ;;  %v6314_v19 = vld [vmem:[%s11205_s5 + $0xd8] sm:$0xff] }
  0xfd   : > { %8977 = vst [vmem:[#allocation2 + $0x28] sm:$0xff] %v8624_v26   ;;  %6458 = vperm.xlu2 %9081, %v6308_v14   ;;  %v1819_v44 = vshll.u32 %v9969_v32, 16  ;;  %v1687_v14 = vshrl.u32 %v9883_v12, 16  ;;  %v1141_v26 = vmul.f32 %v9958_v63, %v644_v27  ;;  %v557_v1 = vadd.f32 %v9802_v0, %v482_v60  ;;  %3071 = vmatpush.bf16.msrb.mxu3 %v8316_v47  ;;  %v10071_v47 = vld [vmem:[%s9314_s12 + $0x38] sm:$0xff]  }
  0xfe   : > { %8985 = vst [vmem:[#allocation2 + $0x68] sm:$0xff] %v8664_v17   ;;  %6453 = vperm.xlu1 %9080, %v6307_v29   ;;  %6448 = vperm.xlu0 %9079, %v6306_v30   ;;  %v8551_v33 = vunpack.c.h.bf16 %v9987_v61  ;;  %v515_v48 = vmul.f32 %v9775_v50, %v8550_v9  ;;  %v1759_v61 = vshrl.u32 %v9921_v2, 16 }
  0xff   : > { %v9982_v21 = vrot.slane %v1819_v44, 1  ;;  %v1689_v12 = vor.u32 %v1687_v14, %v9896_v36  ;;  %v532_v36 = vmul.f32 %v9775_v50, %v8583_v57 }
 0x100   : > { %v985_v51 = vpop.permute.xlu1 %984  ;;  %v980_v53 = vpop.permute.xlu0 %979  ;;  %v516_v54 = vmul.f32 %v9775_v50, %v8551_v33  ;;  %v590_v58 = vadd.f32 %v9802_v0, %v515_v48  ;;  %v1761_v6 = vor.u32 %v1759_v61, %v9946_v13  ;;  %v6317_v13 = vld [vmem:[%s11205_s5 + $0xf0] sm:$0xff] }
 0x101   : > { %v1157_v56 = vmul.f32 %v985_v51, %v660_v38  ;;  %v1156_v34 = vmul.f32 %v980_v53, %v659_v3  ;;  %v1822_v22 = vsel %vm1586_vm0, %v1817_v41, %v9982_v21  ;;  %v8582_v3 = vunpack.c.l.bf16 %v9990_v62  ;;  %v6312_v51 = vld [vmem:[%s11205_s5 + $0xc8] sm:$0xff]  ;;  %v8953_v41 = vld [vmem:[%s9314_s12 + $0x78] sm:$0xff]  }
 0x102   : > { %2075 = vmatmul.bf16.gmra.mxu3 %v1822_v22  ;;  %v8355_v22 = vld [vmem:[%s11204_s4 + $0x110] sm:$0xff]  ;;  %v607_v27 = vadd.f32 %v9802_v0, %v532_v36  ;;  %v661_v52 = vmax.f32 %v590_v58, 0.0  ;;  %v8259_v36 = vld [vmem:[%s11204_s4 + $0x8] sm:$0xff]  ;;  %v8487_v58 = vunpack.c.h.bf16 %v10071_v47 }
 0x103   : > { %v8709_v5 = vpack.c.bf16 %v1157_v56, %v1156_v34  ;;  %v628_v56 = vmax.f32 %v557_v1, 0.0  ;;  %v627_v34 = vmax.f32 %v556_v43, 0.0  ;;  %v531_v10 = vmul.f32 %v9775_v50, %v8582_v3  ;;  %3889 = vmatpush.bf16.msrb.mxu0 %v8355_v22  ;;  %2182 = vmatpush.bf16.msrb.mxu1 %v8259_v36 }
 0x104   : > { %v10005_v8 = vld [vmem:[#allocation2 + $0x28] sm:$0xff]  ;;  %v1158_v33 = vmul.f32 %v10007_v59, %v661_v52 }
 0x105   : > { %8994 = vst [vmem:[#allocation2 + $0xb0] sm:$0xff] %v8709_v5   ;;  %6473 = vperm.xlu2 %9081, %v6311_v39   ;;  %v10011_v31 = vld [vmem:[#allocation2 + $0x68] sm:$0xff]  ;;  %v1627_v37 = vshll.u32 %v10005_v8, 16  ;;  %v1075_v39 = vpop.permute.xlu2 %1074  ;;  %v8519_v5 = vunpack.c.h.bf16 %v8953_v41 }
 0x106   : > { %6468 = vperm.xlu1 %9080, %v6310_v55   ;;  %6463 = vperm.xlu0 %9079, %v6309_v18   ;;  %v1691_v17 = vshll.u32 %v10011_v31, 16  ;;  %v8518_v55 = vunpack.c.l.bf16 %v8953_v41  ;;  %v1695_v48 = vshrl.u32 %v10011_v31, 16 }
 0x107   : > { %v10031_v38 = vrot.slane %v1627_v37, 1  ;;  %v678_v37 = vmax.f32 %v607_v27, 0.0 }
 0x108   : > { %v900_v29 = vpop.permute.xlu1 %899  ;;  %v1065_v30 = vpop.permute.xlu0 %1064  ;;  %v10035_v15 = vrot.slane %v1691_v17, 1  ;;  %v500_v17 = vmul.f32 %v9775_v50, %v8519_v5  ;;  %v499_v1 = vmul.f32 %v9775_v50, %v8518_v55  ;;  %v6319_v55 = vld [vmem:[%s11205_s5 + $0x100] sm:$0xff] }
 0x109   : > { %v1140_v63 = vmul.f32 %v900_v29, %v643_v4  ;;  %v1173_v40 = vmul.f32 %v1065_v30, %v676_v11  ;;  %v1630_v44 = vsel %vm1586_vm0, %v1625_v35, %v10031_v38  ;;  %v606_v4 = vadd.f32 %v9802_v0, %v531_v10 }
 0x10a   : > { %v1694_v42 = vsel %vm1586_vm0, %v1689_v12, %v10035_v15  ;;  %v591_v11 = vadd.f32 %v9802_v0, %v516_v54  ;;  %v8486_v29 = vunpack.c.l.bf16 %v10071_v47  ;;  %v1697_v31 = vor.u32 %v1695_v48, %v10035_v15 }
 0x10b   : > { %v8669_v24 = vpack.c.bf16 %v1141_v26, %v1140_v63  ;;  %v8749_v45 = vpack.c.bf16 %v1173_v40, %v1172_v20  ;;  %1955 = vmatmul.bf16.gmra.mxu0 %v1630_v44  ;;  %1995 = vmatmul.bf16.gmra.mxu1 %v1694_v42  ;;  %v10074_v20 = vld [vmem:[%s9314_s12 + $0x100] sm:$0xff]   ;;  %v677_v35 = vmax.f32 %v606_v4, 0.0  ;;  %v8275_v63 = vld [vmem:[%s11204_s4 + $0x88] sm:$0xff]  ;;  %v575_v42 = vadd.f32 %v9802_v0, %v500_v17 }
 0x10c   : > { %v10053_v53 = vld [vmem:[#allocation2 + $0xb0] sm:$0xff]  ;;  %v6315_v26 = vld [vmem:[%s11205_s5 + $0xe0] sm:$0xff]  ;;  %v8587_v30 = vunpack.c.h.bf16 %v10074_v20  ;;  %v662_v12 = vmax.f32 %v591_v11, 0.0  ;;  %v8315_v40 = vld [vmem:[%s11204_s4 + $0xc8] sm:$0xff]  ;;  %2518 = vmatpush.bf16.msrb.mxu2 %v8275_v63  ;;  %v484_v11 = vmul.f32 %v9775_v50, %v8487_v58  ;;  %v1631_v47 = vshrl.u32 %v10005_v8, 16 }
 0x10d   : > { %8986 = vst [vmem:[#allocation2 + $0x70] sm:$0xff] %v8669_v24   ;;  %6488 = vperm.xlu2 %9081, %v6314_v19   ;;  %v1763_v62 = vshll.u32 %v10053_v53, 16  ;;  %v1823_v19 = vshrl.u32 %v9969_v32, 16  ;;  %v1175_v24 = vmul.f32 %v1075_v39, %v678_v37  ;;  %3072 = vmatpush.bf16.msrb.mxu3 %v8315_v40  ;;  %v10119_v61 = vpop.permute.xlu2 %829  ;;  %v8274_v63 = vld [vmem:[%s11204_s4 + $0x80] sm:$0xff]  ;;  %v393_v58 = vld [vmem:[%s9314_s12 + $0x118] sm:$0xf] }
 0x10e   : > { %9002 = vst [vmem:[#allocation2 + $0xf0] sm:$0xff] %v8749_v45   ;;  %6483 = vperm.xlu1 %9080, %v6313_v23   ;;  %6478 = vperm.xlu0 %9079, %v6312_v51   ;;  %v574_v23 = vadd.f32 %v9802_v0, %v499_v1  ;;  %v534_v22 = vmul.f32 %v9775_v50, %v8587_v30 }
 0x10f   : > { %v10066_v9 = vrot.slane %v1763_v62, 1  ;;  %v1825_v32 = vor.u32 %v1823_v19, %v9982_v21  ;;  %v483_v62 = vmul.f32 %v9775_v50, %v8486_v29  ;;  %v6320_v21 = vld [vmem:[%s11205_s5 + $0x108] sm:$0xff]  ;;  %v1633_v17 = vor.u32 %v1631_v47, %v10031_v38  ;;  %v6323_v38 = vld [vmem:[%s11205_s5 + $0x120] sm:$0xff] }
 0x110   : > { %v825_v18 = vpop.permute.xlu1 %824  ;;  %v820_v60 = vpop.permute.xlu0 %819  ;;  %2519 = vmatpush.bf16.msrb.mxu2 %v8274_v63 }
 0x111   : > { %v1125_v2 = vmul.f32 %v825_v18, %v628_v56  ;;  %v1124_v57 = vmul.f32 %v820_v60, %v627_v34  ;;  %v1766_v49 = vsel %vm1586_vm0, %v1761_v6, %v10066_v9  ;;  %v8586_v56 = vunpack.c.l.bf16 %v10074_v20  ;;  %v6318_v18 = vld [vmem:[%s11205_s5 + $0xf8] sm:$0xff]  ;;  %v8971_v6 = vld [vmem:[%s9314_s12 + $0x108] sm:$0xff]  }
 0x112   : > { %2040 = vmatmul.bf16.gmra.mxu2 %v1766_v49  ;;  %v558_v52 = vadd.f32 %v9802_v0, %v483_v62  ;;  %v8354_v49 = vld [vmem:[%s11204_s4 + $0x108] sm:$0xff]  ;;  %v8591_v37 = vunpack.c.h.bf16 %v8971_v6 }
 0x113   : > { %v8629_v14 = vpack.c.bf16 %v1125_v2, %v1124_v57  ;;  %v646_v2 = vmax.f32 %v575_v42, 0.0  ;;  %v645_v57 = vmax.f32 %v574_v23, 0.0  ;;  %v533_v4 = vmul.f32 %v9775_v50, %v8586_v56  ;;  %3890 = vmatpush.bf16.msrb.mxu0 %v8354_v49  ;;  %v8314_v23 = vld [vmem:[%s11204_s4 + $0xc0] sm:$0xff] }
 0x114   : > { %v10089_v43 = vld [vmem:[#allocation2 + $0x70] sm:$0xff]  ;;  %v629_v40 = vmax.f32 %v558_v52, 0.0  ;;  %3073 = vmatpush.bf16.msrb.mxu3 %v8314_v23 }
 0x115   : > { %8978 = vst [vmem:[#allocation2 + $0x30] sm:$0xff] %v8629_v14   ;;  %6503 = vperm.xlu2 %9081, %v6317_v13   ;;  %v10093_v3 = vld [vmem:[#allocation2 + $0xf0] sm:$0xff]  ;;  %v1699_v44 = vshll.u32 %v10089_v43, 16  ;;  %v609_v13 = vadd.f32 %v9802_v0, %v534_v22  ;;  %v8590_v14 = vunpack.c.l.bf16 %v8971_v6 }
 0x116   : > { %6498 = vperm.xlu1 %9080, %v6316_v25   ;;  %6493 = vperm.xlu0 %9079, %v6315_v26   ;;  %v1827_v45 = vshll.u32 %v10093_v3, 16  ;;  %v1126_v62 = vmul.f32 %v10119_v61, %v629_v40 }
 0x117   : > { %v10112_v41 = vrot.slane %v1699_v44, 1  ;;  %v6322_v44 = vld [vmem:[%s11205_s5 + $0x118] sm:$0xff]  ;;  %v680_v19 = vmax.f32 %v609_v13, 0.0  ;;  %v535_v42 = vmul.f32 %v9775_v50, %v8590_v14 }
 0x118   : > { %v1070_v59 = vpop.permute.xlu1 %1069  ;;  %v995_v51 = vpop.permute.xlu0 %994  ;;  %v10116_v54 = vrot.slane %v1827_v45, 1  ;;  %v536_v45 = vmul.f32 %v9775_v50, %v8591_v37  ;;  %v6324_v37 = vld [vmem:[%s11205_s5 + $0x128] sm:$0xff] }
 0x119   : > { %v1174_v34 = vmul.f32 %v1070_v59, %v677_v35  ;;  %v1159_v10 = vmul.f32 %v995_v51, %v662_v12  ;;  %v1702_v15 = vsel %vm1586_vm0, %v1697_v31, %v10112_v41  ;;  %v608_v35 = vadd.f32 %v9802_v0, %v533_v4  ;;  %v8258_v59 = vld [vmem:[%s11204_s4] sm:$0xff]  ;;  %v1085_v51 = vpop.permute.xlu2 %1084 }
 0x11a   : > { %v1830_v5 = vsel %vm1586_vm0, %v1825_v32, %v10116_v54  ;;  %v559_v12 = vadd.f32 %v9802_v0, %v484_v11  ;;  %2183 = vmatpush.bf16.msrb.mxu1 %v8258_v59  ;;  %v8447_v59 = vld [vmem:[%s11204_s4 + $0x1f8] sm:$0xff] }
 0x11b   : > { %v8754_v39 = vpack.c.bf16 %v1175_v24, %v1174_v34  ;;  %v8714_v27 = vpack.c.bf16 %v1159_v10, %v1158_v33  ;;  %2000 = vmatmul.bf16.gmra.mxu1 %v1702_v15  ;;  %2080 = vmatmul.bf16.gmra.mxu3 %v1830_v5  ;;  %v8972_v33 = vld [vmem:[%s9314_s12 + $0x110] sm:$0xff]   ;;  %v679_v56 = vmax.f32 %v608_v35, 0.0  ;;  %v1767_v15 = vshrl.u32 %v10053_v53, 16  ;;  %s8226_s12 = sshll.u32 %s11324_s28, 8 }
 0x11c   : > { %v10136_v60 = vld [vmem:[#allocation2 + $0x30] sm:$0xff]  ;;  %v8594_v32 = vunpack.c.l.bf16 %v8972_v33  ;;  %v630_v34 = vmax.f32 %v559_v12, 0.0  ;;  %v611_v5 = vadd.f32 %v9802_v0, %v536_v45  ;;  %v464_v53 = vunpack.c.l.bf16 %v393_v58  ;;  %5655 = vmatpush.bf16.msra.mxu3 %v8447_v59  ;;  %s10917_s29 = scalar_lea.vmem %s11206_s6, %s8226_s12 }
 0x11d   : > { %9003 = vst [vmem:[#allocation2 + $0xf8] sm:$0xff] %v8754_v39   ;;  %6518 = vperm.xlu2 %9081, %v6320_v21   ;;  %v1635_v20 = vshll.u32 %v10136_v60, 16  ;;  %v6321_v24 = vld [vmem:[%s11205_s5 + $0x110] sm:$0xff]  ;;  %v1831_v21 = vshrl.u32 %v10093_v3, 16  ;;  %v1177_v39 = vmul.f32 %v1085_v51, %v680_v19  ;;  %v1769_v61 = vor.u32 %v1767_v15, %v10066_v9 }
 0x11e   : > { %8995 = vst [vmem:[#allocation2 + $0xb8] sm:$0xff] %v8714_v27   ;;  %6513 = vperm.xlu1 %9080, %v6319_v55   ;;  %6508 = vperm.xlu0 %9079, %v6318_v18   ;;  %v610_v55 = vadd.f32 %v9802_v0, %v535_v42  ;;  %v8595_v52 = vunpack.c.h.bf16 %v8972_v33  ;;  %v537_v14 = vmul.f32 %v9775_v50, %v8594_v32  ;;  %v1703_v12 = vshrl.u32 %v10089_v43, 16  ;;  %v8408_v43 = vld [vmem:[%s11204_s4 + $0x1b8] sm:$0xff]  ;;  %v6329_v42 = vld [vmem:[%s11205_s5 + $0x150] sm:$0xff] }
 0x11f   : > { %v10149_v1 = vrot.slane %v1635_v20, 1  ;;  %v6326_v20 = vld [vmem:[%s11205_s5 + $0x138] sm:$0xff]  ;;  %4837 = vmatpush.bf16.msra.mxu2 %v8408_v43  ;;  %v6337_v59 = vld [vmem:[%s11205_s5 + $0x190] sm:$0xff] }
 0x120   : > { %v915_v25 = vpop.permute.xlu1 %914  ;;  %v910_v26 = vpop.permute.xlu0 %909  ;;  %v538_v35 = vmul.f32 %v9775_v50, %v8595_v52  ;;  %v612_v40 = vadd.f32 %v9802_v0, %v537_v14 }
 0x121   : > { %v1143_v29 = vmul.f32 %v915_v25, %v646_v2  ;;  %v1142_v30 = vmul.f32 %v910_v26, %v645_v57  ;;  %v1638_v48 = vsel %vm1586_vm0, %v1633_v17, %v10149_v1  ;;  %v1833_v2 = vor.u32 %v1831_v21, %v10116_v54  ;;  %v6325_v54 = vld [vmem:[%s11205_s5 + $0x130] sm:$0xff]  ;;  %v8353_v26 = vld [vmem:[%s11204_s4 + $0x100] sm:$0xff] }
 0x122   : > { %1960 = vmatmul.bf16.gmra.mxu0 %v1638_v48  ;;  %v682_v17 = vmax.f32 %v611_v5, 0.0  ;;  %v683_v51 = vmax.f32 %v612_v40, 0.0  ;;  %v6334_v40 = vld [vmem:[%s11205_s5 + $0x178] sm:$0xff] }
 0x123   : > { %v8674_v36 = vpack.c.bf16 %v1143_v29, %v1142_v30  ;;  %v681_v29 = vmax.f32 %v610_v55, 0.0  ;;  %v539_v30 = vmul.f32 %v9775_v50, %v464_v53  ;;  %3891 = vmatpush.bf16.msrb.mxu0 %v8353_v26  ;;  %v613_v50 = vadd.f32 %v9802_v0, %v538_v35  ;;  %v10265_v26 = vpop.f32.mrf.mxu2  ;;  %v9007_v35 = vld [vmem:[#allocation2] sm:$0xf0] }
 0x124   : > { %v10176_v31 = vld [vmem:[#allocation2 + $0xf8] sm:$0xff] }
 0x125   : > { %8987 = vst [vmem:[#allocation2 + $0x78] sm:$0xff] %v8674_v36   ;;  %6533 = vperm.xlu2 %9081, %v6323_v38   ;;  %v10178_v10 = vld [vmem:[#allocation2 + $0xb8] sm:$0xff]  ;;  %v1835_v22 = vshll.u32 %v10176_v31, 16  ;;  %v1705_v38 = vor.u32 %v1703_v12, %v10112_v41  ;;  %v6328_v41 = vld [vmem:[%s11205_s5 + $0x148] sm:$0xff]  ;;  %v9008_v12 = vld [vmem:[#allocation2] sm:$0xe] }
 0x126   : > { %6528 = vperm.xlu1 %9080, %v6322_v44   ;;  %6523 = vperm.xlu0 %9079, %v6321_v24   ;;  %v1771_v27 = vshll.u32 %v10178_v10, 16  ;;  %v614_v24 = vadd.f32 %v9802_v0, %v539_v30  ;;  %v6327_v0 = vld [vmem:[%s11205_s5 + $0x140] sm:$0xff]  ;;  %v1775_v32 = vshrl.u32 %v10178_v10, 16 }
 0x127   : > { %v10190_v57 = vrot.slane %v1835_v22, 1  ;;  %v1639_v22 = vshrl.u32 %v10136_v60, 16  ;;  %v6335_v30 = vld [vmem:[%s11205_s5 + $0x180] sm:$0xff] }
 0x128   : > { %v1080_v18 = vpop.permute.xlu1 %1079  ;;  %v835_v6 = vpop.permute.xlu0 %834  ;;  %v1773_v11 = vrot.slane %v1771_v27, 1  ;;  %v685_v58 = vmax.f32 %v614_v24, 0.0  ;;  %v8368_v27 = vld [vmem:[%s11204_s4 + $0x178] sm:$0xff] }
 0x129   : > { %v1176_v3 = vmul.f32 %v1080_v18, %v679_v56  ;;  %v1127_v4 = vmul.f32 %v835_v6, %v630_v34  ;;  %v1838_v47 = vsel %vm1586_vm0, %v1833_v2, %v10190_v57  ;;  %v1100_v34 = vpop.permute.xlu2 %1099  ;;  %v1839_v2 = vshrl.u32 %v10176_v31, 16  ;;  %4283 = vmatpush.bf16.msra.mxu1 %v8368_v27  ;;  %v6331_v31 = vld [vmem:[%s11205_s5 + $0x160] sm:$0xff]  ;;  %v6340_v27 = vld [vmem:[%s11205_s5 + $0x1a8] sm:$0xff] }
 0x12a   : > { %v1774_v9 = vsel %vm1586_vm0, %v1769_v61, %v1773_v11  ;;  %v1180_v55 = vmul.f32 %v1100_v34, %v683_v51  ;;  %v1641_v61 = vor.u32 %v1639_v22, %v10149_v1  ;;  %v6336_v51 = vld [vmem:[%s11205_s5 + $0x188] sm:$0xff] }
 0x12b   : > { %v8759_v49 = vpack.c.bf16 %v1177_v39, %v1176_v3  ;;  %v8634_v13 = vpack.c.bf16 %v1127_v4, %v1126_v62  ;;  %2045 = vmatmul.bf16.gmra.mxu2 %v1774_v9  ;;  %2085 = vmatmul.bf16.gmra.mxu3 %v1838_v47  ;;  %v684_v62 = vmax.f32 %v613_v50, 0.0  ;;  %v1777_v39 = vor.u32 %v1775_v32, %v1773_v11  ;;  %v6332_v47 = vld [vmem:[%s11205_s5 + $0x168] sm:$0xff]  ;;  %v6330_v9 = vld [vmem:[%s11205_s5 + $0x158] sm:$0xff] }
 0x12c   : > { %v10205_v25 = vld [vmem:[#allocation2 + $0x78] sm:$0xff] }
 0x12d   : > { %9004 = vst [vmem:[#allocation2 + $0x100] sm:$0xff] %v8759_v49   ;;  %6548 = vperm.xlu2 %9081, %v6326_v20   ;;  %v1707_v63 = vshll.u32 %v10205_v25, 16  ;;  %v1782_v52 = vsel %vm1586_vm0, %v1777_v39, %v9502_v16  ;;  %v1841_v20 = vor.u32 %v1839_v2, %v10190_v57  ;;  %v1711_v16 = vshrl.u32 %v10205_v25, 16  ;;  %v8455_v57 = vld [vmem:[%s11204_s4 + $0x238] sm:$0xff]  ;;  %v9087_v39 = vld [vmem:[#allocation2] sm:$0xff] }
 0x12e   : > { %8979 = vst [vmem:[#allocation2 + $0x38] sm:$0xff] %v8634_v13   ;;  %6543 = vperm.xlu1 %9080, %v6325_v54   ;;  %6538 = vperm.xlu0 %9079, %v6324_v37  }
 0x12f   : > { %v1709_v44 = vrot.slane %v1707_v63, 1  ;;  %6054 = vmatpush.bf16.msra.mxu0 %v8455_v57  ;;  %v10274_v63 = vpop.f32.mrf.mxu3  ;;  %v6347_v57 = vld [vmem:[%s11205_s5 + $0x1e0] sm:$0xff] }
 0x130   : > { %v1095_v33 = vpop.permute.xlu1 %1094  ;;  %v1090_v48 = vpop.permute.xlu0 %1089  ;;  %11212 = vst [vmem:[#allocation4_spill] sm:$0xff] %v10274_v63 }
 0x131   : > { %v1179_v19 = vmul.f32 %v1095_v33, %v682_v17  ;;  %v1178_v36 = vmul.f32 %v1090_v48, %v681_v29  ;;  %v1710_v45 = vsel %vm1586_vm0, %v1705_v38, %v1709_v44  ;;  %v1713_v14 = vor.u32 %v1711_v16, %v1709_v44  ;;  %v10267_v17 = vpop.f32.mrf.mxu1  ;;  %v6333_v33 = vld [vmem:[%s11205_s5 + $0x170] sm:$0xff]  ;;  %v8323_v16 = vld [vmem:[#allocation2 + $0x1c] sm:$0xff] }
 0x132   : > { %2005 = vmatmul.bf16.gmra.mxu1 %v1710_v45  ;;  %v9009_v48 = vor.u32 %v9008_v12, %v9007_v35  ;;  %v3299_v38 = vld [vmem:[#allocation2 + $0xc] sm:$0xff]   ;;  %v10287_v45 = vpop.f32.mrf.mxu2 }
 0x133   : > { %v8764_v23 = vpack.c.bf16 %v1179_v19, %v1178_v36  ;;  %v1718_v29 = vsel %vm1586_vm0, %v1713_v14, %v9471_v46  ;;  %v10283_v44 = vld [vmem:[#allocation2 + $0xc] sm:$0xf0]  ;;  %v9086_v36 = vld [vmem:[#allocation2 + $0x8] sm:$0xff]  ;;  %v3547_v34 = vshll.u32 %v3299_v38, 16 }
 0x134   : > { %v1405_v56 = vld [vmem:[#allocation2 + $0x100] sm:$0x1]  ;;  %11213 = vst [vmem:[#allocation5_spill] sm:$0xff] %v10283_v44  ;;  %v2368_v24 = vrot.slane %v9086_v36, 1  ;;  %v2367_v43 = vrot.slane %v9009_v48, 1  ;;  %v6345_v14 = vld [vmem:[%s11205_s5 + $0x1d0] sm:$0xff] }
 0x135   : > { %9005 = vst [vmem:[#allocation2 + $0x108] sm:$0xff] %v8764_v23   ;;  %6563 = vperm.xlu2 %9081, %v6329_v42   ;;  %v10235_v15 = vld [vmem:[#allocation2 + $0x38] sm:$0xff]  ;;  %v1552_v21 = vunpack.c.l.b16 %v1405_v56  ;;  %v8282_v56 = vld [vmem:[#allocation2 + $0xc] sm:$0xff] }
 0x136   : > { %6558 = vperm.xlu1 %9080, %v6328_v41   ;;  %6553 = vperm.xlu0 %9079, %v6327_v0   ;;  %v1643_v10 = vshll.u32 %v10235_v15, 16  ;;  %v1647_v46 = vshrl.u32 %v10235_v15, 16  ;;  %v6338_v42 = vld [vmem:[%s11205_s5 + $0x198] sm:$0xff]  ;;  %v2369_v0 = vsel %vm2366_vm1, %v2367_v43, %v2368_v24 }
 0x137   : > { %v10242_v5 = vpack.c.b16 %v1552_v21, %v1552_v21  ;;  %v10303_v32 = vpop.f32.mrf.mxu3  ;;  %v6341_v21 = vld [vmem:[%s11205_s5 + $0x1b0] sm:$0xff] }
 0x138   : > { %v1110_v18 = vpop.permute.xlu1 %1109  ;;  %v1105_v6 = vpop.permute.xlu0 %1104  ;;  %v1645_v4 = vrot.slane %v1643_v10, 1  ;;  %11214 = vst [vmem:[#allocation6_spill] sm:$0xff] %v10303_v32  ;;  %v6339_v10 = vld [vmem:[%s11205_s5 + $0x1a0] sm:$0xff] }
 0x139   : > { %11211 = vst [vmem:[#allocation3_spill] sm:$0xff] %v10242_v5  ;;  %v1182_v53 = vmul.f32 %v1110_v18, %v685_v58  ;;  %v1181_v3 = vmul.f32 %v1105_v6, %v684_v62  ;;  %v1843_v11 = vshll.u32 %v10242_v5, 16  ;;  %v10285_v50 = vpop.f32.mrf.mxu0  ;;  %v10292_v23 = vpop.f32.mrf.mxu1  ;;  %v3549_v6 = vrot.slane %v3547_v34, 1 }
 0x13a   : > { %v1646_v1 = vsel %vm1586_vm0, %v1641_v61, %v1645_v4  ;;  %v1649_v19 = vor.u32 %v1647_v46, %v1645_v4  ;;  %v9088_v61 = vld [vmem:[#allocation2 + $0x10] sm:$0xff] }
 0x13b   : > { %v1253_v49 = vpack.c.bf16 %v1182_v53, %v1182_v53  ;;  %v8769_v13 = vpack.c.bf16 %v1181_v3, %v1180_v55  ;;  %v1845_v54 = vrot.slane %v1843_v11, 1  ;;  %1965 = vmatmul.bf16.gmra.mxu0 %v1646_v1  ;;  %2050 = vmatmul.bf16.gmra.mxu2 %v1782_v52  ;;  %v2370_v2 = vrot.slane %v9088_v61, 1  ;;  %v6344_v11 = vld [vmem:[%s11205_s5 + $0x1c8] sm:$0xff] }
 0x13c   : > { %v1654_v41 = vsel %vm1586_vm0, %v1649_v19, %v9516_v28  ;;  %v8322_v28 = vld [vmem:[#allocation2 + $0x14] sm:$0xff]  ;;  %v3545_v53 = vshrl.u32 %v3299_v38, 16 }
 0x13d   : > { %1324 = vst [vmem:[#allocation2 + $0x118] sm:$0xf] %v1253_v49  ;;  %6578 = vperm.xlu2 %9081, %v6332_v47   ;;  %v1846_v37 = vsel %vm1586_vm0, %v1841_v20, %v1845_v54  ;;  %v10305_v58 = vpop.f32.mrf.mxu2  ;;  %v3552_v55 = vshll.u32 %v8322_v28, 16  ;;  %v2371_v52 = vsel %vm2366_vm1, %v2368_v24, %v2370_v2  ;;  %v6343_v20 = vld [vmem:[%s11205_s5 + $0x1c0] sm:$0xff]  ;;  %v6342_v49 = vld [vmem:[%s11205_s5 + $0x1b8] sm:$0xff]  ;;  %v3556_v48 = vshrl.u32 %v8322_v28, 16 }
 0x13e   : > { %9006 = vst [vmem:[#allocation2 + $0x110] sm:$0xff] %v8769_v13   ;;  %6573 = vperm.xlu1 %9080, %v6331_v31   ;;  %6568 = vperm.xlu0 %9079, %v6330_v9   ;;  %v3550_v4 = vor.u32 %v3549_v6, %v3545_v53  ;;  %v8283_v9 = vld [vmem:[#allocation2 + $0x14] sm:$0xff]  ;;  %v2374_v6 = vrot.slane %v9925_v7, 1  ;;  %v8285_v7 = vld [vmem:[#allocation2 + $0x24] sm:$0xff] }
 0x13f   : > { %2090 = vmatmul.bf16.gmra.mxu3 %v1846_v37  ;;  %v3554_v3 = vrot.slane %v3552_v55, 1  ;;  %v6346_v37 = vld [vmem:[%s11205_s5 + $0x1d8] sm:$0xff] }
 0x141   : > { %v10307_v62 = vpop.f32.mrf.mxu0  ;;  %v3555_v47 = vsel %vm1586_vm0, %v3550_v4, %v3554_v3  ;;  %v3558_v19 = vor.u32 %v3556_v48, %v3554_v3 }
 0x142   : > { %2010 = vmatmul.bf16.gmra.mxu1 %v1718_v29  ;;  %v3560_v29 = vshll.u32 %v8323_v16, 16 }
 0x144   : > { %v3562_v38 = vrot.slane %v3560_v29, 1  ;;  %v2376_v29 = vrot.slane %v10005_v8, 1 }
 0x145   : > { %6593 = vperm.xlu2 %9081, %v6335_v30   ;;  %v10320_v18 = vpop.f32.mrf.mxu3  ;;  %v10333_v13 = vpop.f32.mrf.mxu2 }
 0x146   : > { %6588 = vperm.xlu1 %9080, %v6334_v40   ;;  %6583 = vperm.xlu0 %9079, %v6333_v33   ;;  %11215 = vst [vmem:[#allocation7_spill] sm:$0xff] %v10320_v18  ;;  %v9089_v33 = vld [vmem:[#allocation2 + $0x18] sm:$0xff]  ;;  %v3563_v43 = vsel %vm1586_vm0, %v3558_v19, %v3562_v38 }
 0x147   : > { %v2372_v46 = vrot.slane %v9089_v33, 1 }
 0x148   : > { %v10312_v22 = vpop.f32.mrf.mxu1 }
 0x149   : > { %v10335_v1 = vpop.f32.mrf.mxu0  ;;  %v2373_v24 = vsel %vm2366_vm1, %v2370_v2, %v2372_v46  ;;  %v3564_v2 = vshrl.u32 %v8323_v16, 16 }
 0x14b   : > { %1970 = vmatmul.bf16.gmra.mxu0 %v1654_v41  ;;  %2520 = vmatmul.bf16.vlgmr.msrb.gmra.mxu2 %v2369_v0  ;;  %v6348_v41 = vld [vmem:[%s11205_s5 + $0x1e8] sm:$0xff]  ;;  %v8284_v0 = vld [vmem:[#allocation2 + $0x1c] sm:$0xff]  ;;  %v3566_v4 = vor.u32 %v3564_v2, %v3562_v38 }
 0x14d   : > { %6608 = vperm.xlu2 %9081, %v6338_v42   ;;  %v10339_v54 = vpop.f32.mrf.mxu3  ;;  %v6349_v42 = vld [vmem:[%s11205_s5 + $0x1f0] sm:$0xff] }
 0x14e   : > { %6603 = vperm.xlu1 %9080, %v6337_v59   ;;  %6598 = vperm.xlu0 %9079, %v6336_v51   ;;  %11216 = vst [vmem:[#allocation8_spill] sm:$0xff] %v10339_v54  ;;  %v8329_v54 = vld [vmem:[#allocation2 + $0x4c] sm:$0xff] }
 0x14f   : > { %3074 = vmatmul.bf16.vlgmr.msrb.gmra.mxu3 %v8282_v56  ;;  %v8324_v56 = vld [vmem:[#allocation2 + $0x24] sm:$0xff] }
 0x150   : > { %v10337_v31 = vpop.f32.mrf.mxu1 }
 0x151   : > { %v10352_v35 = vpop.f32.mrf.mxu0 }
 0x152   : > { %2184 = vmatmul.bf16.vlgmr.msrb.gmra.mxu1 %v9087_v39  ;;  %v3568_v39 = vshll.u32 %v8324_v56, 16 }
 0x154   : > { %v3570_v53 = vrot.slane %v3568_v39, 1 }
 0x155   : > { %6623 = vperm.xlu2 %9081, %v6341_v21   ;;  %v10350_v30 = vpop.f32.mrf.mxu2  ;;  %v8407_v21 = vld [vmem:[%s11204_s4 + $0x1b0] sm:$0xff] }
 0x156   : > { %6618 = vperm.xlu1 %9080, %v6340_v27   ;;  %6613 = vperm.xlu0 %9079, %v6339_v10   ;;  %v8446_v27 = vld [vmem:[%s11204_s4 + $0x1f0] sm:$0xff] }
 0x157   : > { %v8367_v10 = vld [vmem:[%s11204_s4 + $0x170] sm:$0xff]  ;;  %4838 = vmatpush.bf16.msra.mxu2 %v8407_v21  ;;  %5656 = vmatpush.bf16.msra.mxu3 %v8446_v27 }
 0x158   : > { %v10354_v12 = vpop.f32.mrf.mxu1  ;;  %4284 = vmatpush.bf16.msra.mxu1 %v8367_v10 }
 0x15b   : > { %2525 = vmatmul.bf16.gmra.mxu2 %v2371_v52  ;;  %3892 = vmatmul.bf16.vlgmr.msrb.gmra.mxu0 %v3555_v47  ;;  %v2375_v52 = vsel %vm2366_vm1, %v2372_v46, %v2374_v6  ;;  %v3571_v47 = vsel %vm1586_vm0, %v3566_v4, %v3570_v53  ;;  %v3572_v46 = vshrl.u32 %v8324_v56, 16  ;;  %v9090_v56 = vld [vmem:[#allocation2 + $0x20] sm:$0xff] }
 0x15d   : > { %6638 = vperm.xlu2 %9081, %v6344_v11   ;;  %v10369_v59 = vpop.f32.mrf.mxu2  ;;  %v3574_v38 = vor.u32 %v3572_v46, %v3570_v53 }
 0x15e   : > { %6633 = vperm.xlu1 %9080, %v6343_v20   ;;  %6628 = vperm.xlu0 %9079, %v6342_v49   ;;  %v10356_v40 = vpop.f32.mrf.mxu3  ;;  %v8454_v20 = vld [vmem:[%s11204_s4 + $0x230] sm:$0xff] }
 0x15f   : > { %3079 = vmatmul.bf16.gmra.mxu3 %v8283_v9  ;;  %11217 = vst [vmem:[#allocation9_spill] sm:$0xff] %v10356_v40  ;;  %v10371_v51 = vpop.f32.mrf.mxu0  ;;  %6055 = vmatpush.bf16.msra.mxu0 %v8454_v20  ;;  %v8325_v49 = vld [vmem:[#allocation2 + $0x2c] sm:$0xff] }
 0x160   : > { %v10373_v28 = vpop.f32.mrf.mxu1  ;;  %v3580_v53 = vshrl.u32 %v8325_v49, 16 }
 0x162   : > { %2189 = vmatmul.bf16.gmra.mxu1 %v9086_v36  ;;  %v6350_v36 = vld [vmem:[%s11205_s5 + $0x1f8] sm:$0xff] }
 0x165   : > { %6653 = vperm.xlu2 %9081, %v6347_v57  }
 0x166   : > { %6648 = vperm.xlu1 %9080, %v6346_v37   ;;  %6643 = vperm.xlu0 %9079, %v6345_v14   ;;  %v10375_v34 = vpop.f32.mrf.mxu3  ;;  %v3576_v37 = vshll.u32 %v8325_v49, 16 }
 0x167   : > { %11218 = vst [vmem:[#allocation10_spill] sm:$0xff] %v10375_v34  ;;  %v10389_v3 = vpop.f32.mrf.mxu0  ;;  %v8289_v34 = vld [vmem:[#allocation2 + $0x44] sm:$0xff] }
 0x168   : > { %v3578_v48 = vrot.slane %v3576_v37, 1  ;;  %v8287_v37 = vld [vmem:[#allocation2 + $0x34] sm:$0xff] }
 0x16b   : > { %2530 = vmatmul.bf16.gmra.mxu2 %v2373_v24  ;;  %3897 = vmatmul.bf16.gmra.mxu0 %v3563_v43  ;;  %v2377_v43 = vsel %vm2366_vm1, %v2374_v6, %v2376_v29  ;;  %v2378_v6 = vrot.slane %v10136_v60, 1 }
 0x16d   : > { %6668 = vperm.xlu2 %9081, %v6350_v36  }
 0x16e   : > { %6663 = vperm.xlu1 %9080, %v6349_v42   ;;  %6658 = vperm.xlu0 %9079, %v6348_v41   ;;  %v10386_v55 = vpop.f32.mrf.mxu2  ;;  %v10393_v11 = vpop.f32.mrf.mxu3  ;;  %v3579_v42 = vsel %vm1586_vm0, %v3574_v38, %v3578_v48  ;;  %v8286_v41 = vld [vmem:[#allocation2 + $0x2c] sm:$0xff] }
 0x16f   : > { %3084 = vmatmul.bf16.gmra.mxu3 %v8284_v0  ;;  %11219 = vst [vmem:[#allocation11_spill] sm:$0xff] %v10386_v55  ;;  %v8326_v0 = vld [vmem:[#allocation2 + $0x34] sm:$0xff] }
 0x170   : > { %11220 = vst [vmem:[#allocation12_spill] sm:$0xff] %v10393_v11  ;;  %v3584_v21 = vshll.u32 %v8326_v0, 16  ;;  %v3588_v49 = vshrl.u32 %v8326_v0, 16 }
 0x172   : > { %2194 = vmatmul.bf16.gmra.mxu1 %v9088_v61  ;;  %v10391_v61 = vpop.f32.mrf.mxu1  ;;  %v3586_v4 = vrot.slane %v3584_v21, 1  ;;  %v2380_v21 = vrot.slane %v10235_v15, 1 }
 0x176   : > { %v10400_v9 = vpop.f32.mrf.mxu2  ;;  %v10406_v14 = vpop.f32.mrf.mxu3 }
 0x177   : > { %11221 = vst [vmem:[#allocation13_spill] sm:$0xff] %v10400_v9 }
 0x178   : > { %v10402_v16 = vpop.f32.mrf.mxu0  ;;  %11222 = vst [vmem:[#allocation14_spill] sm:$0xff] %v10406_v14 }
 0x17a   : > { %v10404_v57 = vpop.f32.mrf.mxu1 }
 0x17b   : > { %2535 = vmatmul.bf16.gmra.mxu2 %v2375_v52  ;;  %3902 = vmatmul.bf16.gmra.mxu0 %v3571_v47  ;;  %v3582_v52 = vor.u32 %v3580_v53, %v3578_v48  ;;  %v2379_v47 = vsel %vm2366_vm1, %v2376_v29, %v2378_v6  ;;  %v3590_v53 = vor.u32 %v3588_v49, %v3586_v4 }
 0x17d   : > { %v3587_v20 = vsel %vm1586_vm0, %v3582_v52, %v3586_v4  ;;  %v8328_v4 = vld [vmem:[#allocation2 + $0x44] sm:$0xff] }
 0x17e   : > { %v10409_v19 = vpop.f32.mrf.mxu2 }
 0x17f   : > { %3089 = vmatmul.bf16.gmra.mxu3 %v8285_v7  ;;  %11223 = vst [vmem:[#allocation15_spill] sm:$0xff] %v10409_v19 }
 0x180   : > { %v10411_v36 = vpop.f32.mrf.mxu0 }
 0x182   : > { %2199 = vmatmul.bf16.gmra.mxu1 %v9089_v33 }
 0x185   : > { %v10417_v33 = vpop.f32.mrf.mxu3 }
 0x186   : > { %11224 = vst [vmem:[#allocation16_spill] sm:$0xff] %v10417_v33  ;;  %v10419_v39 = vpop.f32.mrf.mxu2 }
 0x187   : > { %11225 = vst [vmem:[#allocation17_spill] sm:$0xff] %v10419_v39 }
 0x188   : > { %v10413_v24 = vpop.f32.mrf.mxu1  ;;  %v10421_v27 = vpop.f32.mrf.mxu0 }
 0x18b   : > { %2540 = vmatmul.bf16.gmra.mxu2 %v2377_v43  ;;  %3907 = vmatmul.bf16.gmra.mxu0 %v3579_v42  ;;  %v8327_v42 = vld [vmem:[#allocation2 + $0x3c] sm:$0xff] }
 0x18c   : > { %v3592_v48 = vshll.u32 %v8327_v42, 16  ;;  %v3596_v49 = vshrl.u32 %v8327_v42, 16 }
 0x18d   : > { %v10425_v2 = vpop.f32.mrf.mxu3 }
 0x18e   : > { %11226 = vst [vmem:[#allocation18_spill] sm:$0xff] %v10425_v2 }
 0x18f   : > { %3094 = vmatmul.bf16.gmra.mxu3 %v8286_v41 }
 0x190   : > { %v10423_v10 = vpop.f32.mrf.mxu1  ;;  %v10432_v46 = vpop.f32.mrf.mxu0 }
 0x192   : > { %2204 = vmatmul.bf16.gmra.mxu1 %v9090_v56 }
 0x195   : > { %v10430_v7 = vpop.f32.mrf.mxu2 }
 0x196   : > { %11227 = vst [vmem:[#allocation19_spill] sm:$0xff] %v10430_v7 }
 0x198   : > { %v10434_v38 = vpop.f32.mrf.mxu1 }
 0x19b   : > { %2545 = vmatmul.bf16.gmra.mxu2 %v2379_v47  ;;  %3912 = vmatmul.bf16.gmra.mxu0 %v3587_v20  ;;  %v3594_v47 = vrot.slane %v3592_v48, 1  ;;  %v2381_v20 = vsel %vm2366_vm1, %v2378_v6, %v2380_v21  ;;  %v3600_v48 = vshll.u32 %v8328_v4, 16 }
 0x19d   : > { %v10439_v29 = vpop.f32.mrf.mxu2  ;;  %v3602_v33 = vrot.slane %v3600_v48, 1  ;;  %v8453_v48 = vld [vmem:[%s11204_s4 + $0x228] sm:$0xff] }
 0x19e   : > { %v10436_v43 = vpop.f32.mrf.mxu3  ;;  %11229 = vst [vmem:[#allocation21_spill] sm:$0xff] %v10439_v29  ;;  %6056 = vmatpush.bf16.msra.mxu0 %v8453_v48 }
 0x19f   : > { %3099 = vmatmul.bf16.gmra.mxu3 %v8287_v37  ;;  %11228 = vst [vmem:[#allocation20_spill] sm:$0xff] %v10436_v43  ;;  %v10441_v41 = vpop.f32.mrf.mxu0  ;;  %v3595_v37 = vsel %vm1586_vm0, %v3590_v53, %v3594_v47  ;;  %v3598_v53 = vor.u32 %v3596_v49, %v3594_v47 }
 0x1a0   : > { %v10446_v52 = vpop.f32.mrf.mxu1 }
 0x1a1   : > { %v3603_v11 = vsel %vm1586_vm0, %v3598_v53, %v3602_v33  ;;  %v3604_v53 = vshrl.u32 %v8328_v4, 16 }
 0x1a2   : > { %2209 = vmatmul.bf16.gmra.mxu1 %v10005_v8  ;;  %v8288_v8 = vld [vmem:[#allocation2 + $0x3c] sm:$0xff] }
 0x1a3   : > { %v3606_v32 = vor.u32 %v3604_v53, %v3602_v33 }
 0x1a6   : > { %v10443_v56 = vpop.f32.mrf.mxu3 }
 0x1a7   : > { %11230 = vst [vmem:[#allocation22_spill] sm:$0xff] %v10443_v56  ;;  %v10454_v2 = vpop.f32.mrf.mxu0 }
 0x1ab   : > { %2550 = vmatmul.bf16.gmra.mxu2 %v2381_v20  ;;  %3917 = vmatmul.bf16.gmra.mxu0 %v3595_v37  ;;  %v8406_v20 = vld [vmem:[%s11204_s4 + $0x1a8] sm:$0xff] }
 0x1ac   : > { %v8445_v37 = vld [vmem:[%s11204_s4 + $0x1e8] sm:$0xff]  ;;  %4839 = vmatpush.bf16.msra.mxu2 %v8406_v20 }
 0x1ad   : > { %5657 = vmatpush.bf16.msra.mxu3 %v8445_v37 }
 0x1ae   : > { %v10450_v0 = vpop.f32.mrf.mxu2  ;;  %v10452_v43 = vpop.f32.mrf.mxu3 }
 0x1af   : > { %3104 = vmatmul.bf16.gmra.mxu3 %v8288_v8  ;;  %11231 = vst [vmem:[#allocation23_spill] sm:$0xff] %v10450_v0  ;;  %v10456_v56 = vpop.f32.mrf.mxu1  ;;  %v8366_v8 = vld [vmem:[%s11204_s4 + $0x168] sm:$0xff] }
 0x1b0   : > { %11232 = vst [vmem:[#allocation24_spill] sm:$0xff] %v10452_v43  ;;  %4285 = vmatpush.bf16.msra.mxu1 %v8366_v8 }
 0x1b2   : > { %2214 = vmatmul.bf16.gmra.mxu1 %v10136_v60  ;;  %v9091_v60 = vld [vmem:[#allocation2 + $0x40] sm:$0xff] }
 0x1b3   : > { %v2382_v42 = vrot.slane %v9091_v60, 1 }
 0x1b5   : > { %v2383_v14 = vsel %vm2366_vm1, %v2380_v21, %v2382_v42 }
 0x1b6   : > { %v10459_v6 = vpop.f32.mrf.mxu2  ;;  %v10472_v47 = vpop.f32.mrf.mxu3 }
 0x1b7   : > { %11233 = vst [vmem:[#allocation25_spill] sm:$0xff] %v10459_v6  ;;  %v10474_v49 = vpop.f32.mrf.mxu1 }
 0x1b8   : > { %v10470_v43 = vpop.f32.mrf.mxu0  ;;  %11234 = vst [vmem:[#allocation26_spill] sm:$0xff] %v10472_v47 }
 0x1bb   : > { %2555 = vmatmul.bf16.gmra.mxu2 %v2383_v14  ;;  %3922 = vmatmul.bf16.gmra.mxu0 %v3603_v11  ;;  %v3608_v14 = vshll.u32 %v8329_v54, 16 }
 0x1bd   : > { %v3610_v47 = vrot.slane %v3608_v14, 1 }
 0x1be   : > { %v10478_v40 = vpop.f32.mrf.mxu2 }
 0x1bf   : > { %3109 = vmatmul.bf16.gmra.mxu3 %v8289_v34  ;;  %11235 = vst [vmem:[#allocation27_spill] sm:$0xff] %v10478_v40  ;;  %v10485_v37 = vpop.f32.mrf.mxu1  ;;  %v9092_v34 = vld [vmem:[#allocation2 + $0x48] sm:$0xff]  ;;  %v8330_v40 = vld [vmem:[#allocation2 + $0x54] sm:$0xff] }
 0x1c0   : > { %v10483_v20 = vpop.f32.mrf.mxu0  ;;  %v2384_v21 = vrot.slane %v9092_v34, 1  ;;  %v3616_v53 = vshll.u32 %v8330_v40, 16 }
 0x1c2   : > { %v10487_v8 = vpop.f32.mrf.mxu3  ;;  %2219 = vmatmul.bf16.gmra.mxu1 %v10235_v15  ;;  %v2385_v48 = vsel %vm2366_vm1, %v2382_v42, %v2384_v21  ;;  %v8290_v15 = vld [vmem:[#allocation2 + $0x4c] sm:$0xff] }
 0x1c3   : > { %11236 = vst [vmem:[#allocation28_spill] sm:$0xff] %v10487_v8  ;;  %v3611_v8 = vsel %vm1586_vm0, %v3606_v32, %v3610_v47  ;;  %v9093_v42 = vld [vmem:[#allocation2 + $0x50] sm:$0xff]  ;;  %v3612_v32 = vshrl.u32 %v8329_v54, 16 }
 0x1c4   : > { %v2386_v29 = vrot.slane %v9093_v42, 1 }
 0x1c5   : > { %v3614_v7 = vor.u32 %v3612_v32, %v3610_v47 }
 0x1c6   : > { %v10490_v11 = vpop.f32.mrf.mxu2  ;;  %v2387_v55 = vsel %vm2366_vm1, %v2384_v21, %v2386_v29 }
 0x1c7   : > { %11237 = vst [vmem:[#allocation29_spill] sm:$0xff] %v10490_v11  ;;  %v10494_v63 = vpop.f32.mrf.mxu1 }
 0x1c8   : > { %v10492_v18 = vpop.f32.mrf.mxu0 }
 0x1ca   : > { %v10496_v44 = vpop.f32.mrf.mxu3 }
 0x1cb   : > { %11238 = vst [vmem:[#allocation30_spill] sm:$0xff] %v10496_v44  ;;  %2560 = vmatmul.bf16.gmra.mxu2 %v2385_v48  ;;  %3927 = vmatmul.bf16.gmra.mxu0 %v3611_v8  ;;  %v3618_v48 = vrot.slane %v3616_v53, 1 }
 0x1ce   : > { %v2521_v11 = vpop.f32.mrf.mxu2 }
 0x1cf   : > { %3114 = vmatmul.bf16.gmra.mxu3 %v8290_v15  ;;  %v2185_v4 = vpop.f32.mrf.mxu1 }
 0x1d0   : > { %v10500_v6 = vpop.f32.mrf.mxu0  ;;  %v2186_v33 = vadd.f32 %v2185_v4, %v10285_v50  ;;  %v3619_v50 = vsel %vm1586_vm0, %v3614_v7, %v3618_v48  ;;  %v8331_v4 = vld [vmem:[#allocation2 + $0x5c] sm:$0xff] }
 0x1d2   : > { %v3075_v14 = vpop.f32.mrf.mxu3  ;;  %2224 = vmatmul.bf16.gmra.mxu1 %v9091_v60  ;;  %v2681_v5 = vadd.f32 %v2521_v11, %v2186_v33  ;;  %v8291_v60 = vld [vmem:[#allocation2 + $0x54] sm:$0xff] }
 0x1d4   : > { %v3235_v44 = vadd.f32 %v3075_v14, %v2681_v5 }
 0x1d6   : > { %v2523_v0 = vpop.f32.mrf.mxu2 }
 0x1d7   : > { %v2187_v15 = vpop.f32.mrf.mxu1 }
 0x1d8   : > { %v3893_v8 = vpop.f32.mrf.mxu0  ;;  %v2188_v9 = vadd.f32 %v2187_v15, %v10307_v62  ;;  %v3624_v62 = vshll.u32 %v8331_v4, 16 }
 0x1d9   : > { %v10503_v19 = vadd.f32 %v3893_v8, %v3235_v44 }
 0x1da   : > { %v3077_v39 = vpop.f32.mrf.mxu3  ;;  %v2682_v5 = vadd.f32 %v2523_v0, %v2188_v9  ;;  %v3626_v0 = vrot.slane %v3624_v62, 1 }
 0x1db   : > { %2565 = vmatmul.bf16.gmra.mxu2 %v2387_v55  ;;  %3932 = vmatmul.bf16.gmra.mxu0 %v3619_v50  ;;  %v10511_v55 = vld [vmem:[#allocation2 + $0x58] sm:$0xff] }
 0x1dc   : > { %v3236_v11 = vadd.f32 %v3077_v39, %v2682_v5  ;;  %v2388_v9 = vrot.slane %v10511_v55, 1  ;;  %v3620_v39 = vshrl.u32 %v8330_v40, 16 }
 0x1de   : > { %v2526_v54 = vpop.f32.mrf.mxu2  ;;  %v3622_v15 = vor.u32 %v3620_v39, %v3618_v48 }
 0x1df   : > { %3119 = vmatmul.bf16.gmra.mxu3 %v8291_v60  ;;  %v2190_v47 = vpop.f32.mrf.mxu1 }
 0x1e0   : > { %v3895_v14 = vpop.f32.mrf.mxu0  ;;  %v2191_v44 = vadd.f32 %v2190_v47, %v10335_v1  ;;  %v2389_v1 = vsel %vm2366_vm1, %v2386_v29, %v2388_v9 }
 0x1e1   : > { %v10508_v53 = vadd.f32 %v3895_v14, %v3236_v11  ;;  %v8292_v14 = vld [vmem:[#allocation2 + $0x5c] sm:$0xff] }
 0x1e2   : > { %v3080_v33 = vpop.f32.mrf.mxu3  ;;  %2229 = vmatmul.bf16.gmra.mxu1 %v9092_v34  ;;  %v2683_v21 = vadd.f32 %v2526_v54, %v2191_v44  ;;  %v3627_v34 = vsel %vm1586_vm0, %v3622_v15, %v3626_v0  ;;  %v10522_v15 = vld [vmem:[#allocation2 + $0x60] sm:$0xff] }
 0x1e4   : > { %v3237_v32 = vadd.f32 %v3080_v33, %v2683_v21  ;;  %v8332_v33 = vld [vmem:[#allocation2 + $0x64] sm:$0xff] }
 0x1e6   : > { %v2528_v7 = vpop.f32.mrf.mxu2 }
 0x1e7   : > { %v2192_v50 = vpop.f32.mrf.mxu1 }
 0x1e8   : > { %v3898_v8 = vpop.f32.mrf.mxu0  ;;  %v2193_v11 = vadd.f32 %v2192_v50, %v10352_v35  ;;  %v3632_v35 = vshll.u32 %v8332_v33, 16  ;;  %v3628_v50 = vshrl.u32 %v8331_v4, 16 }
 0x1e9   : > { %v10514_v60 = vadd.f32 %v3898_v8, %v3237_v32 }
 0x1ea   : > { %v3082_v5 = vpop.f32.mrf.mxu3  ;;  %v2684_v54 = vadd.f32 %v2528_v7, %v2193_v11  ;;  %v2390_v7 = vrot.slane %v10522_v15, 1  ;;  %v8405_v11 = vld [vmem:[%s11204_s4 + $0x1a0] sm:$0xff] }
 0x1eb   : > { %2570 = vmatmul.bf16.gmra.mxu2 %v2389_v1  ;;  %3937 = vmatmul.bf16.gmra.mxu0 %v3627_v34  ;;  %v8444_v1 = vld [vmem:[%s11204_s4 + $0x1e0] sm:$0xff]  ;;  %v3630_v34 = vor.u32 %v3628_v50, %v3626_v0 }
 0x1ec   : > { %v3238_v47 = vadd.f32 %v3082_v5, %v2684_v54  ;;  %v3634_v5 = vrot.slane %v3632_v35, 1  ;;  %4840 = vmatpush.bf16.msra.mxu2 %v8405_v11  ;;  %5658 = vmatpush.bf16.msra.mxu3 %v8444_v1  ;;  %v8333_v35 = vld [vmem:[#allocation2 + $0x6c] sm:$0xff] }
 0x1ee   : > { %v2531_v40 = vpop.f32.mrf.mxu2 }
 0x1ef   : > { %3124 = vmatmul.bf16.gmra.mxu3 %v8292_v14  ;;  %v2195_v48 = vpop.f32.mrf.mxu1 }
 0x1f0   : > { %v3900_v44 = vpop.f32.mrf.mxu0  ;;  %v2196_v32 = vadd.f32 %v2195_v48, %v10371_v51  ;;  %v8365_v51 = vld [vmem:[%s11204_s4 + $0x160] sm:$0xff] }
 0x1f1   : > { %v10519_v21 = vadd.f32 %v3900_v44, %v3238_v47  ;;  %4286 = vmatpush.bf16.msra.mxu1 %v8365_v51  ;;  %v3635_v44 = vsel %vm1586_vm0, %v3630_v34, %v3634_v5  ;;  %v9096_v34 = vld [vmem:[#allocation2 + $0x68] sm:$0xff] }
 0x1f2   : > { %v3085_v62 = vpop.f32.mrf.mxu3  ;;  %2234 = vmatmul.bf16.gmra.mxu1 %v9093_v42  ;;  %v2685_v29 = vadd.f32 %v2531_v40, %v2196_v32  ;;  %v2391_v40 = vsel %vm2366_vm1, %v2388_v9, %v2390_v7 }
 0x1f4   : > { %v3239_v39 = vadd.f32 %v3085_v62, %v2685_v29  ;;  %v8293_v62 = vld [vmem:[#allocation2 + $0x64] sm:$0xff] }
 0x1f5   : > { %v8452_v29 = vld [vmem:[%s11204_s4 + $0x220] sm:$0xff] }
 0x1f6   : > { %v2533_v8 = vpop.f32.mrf.mxu2  ;;  %6057 = vmatpush.bf16.msra.mxu0 %v8452_v29 }
 0x1f7   : > { %v2197_v54 = vpop.f32.mrf.mxu1 }
 0x1f8   : > { %v3903_v42 = vpop.f32.mrf.mxu0  ;;  %v2198_v47 = vadd.f32 %v2197_v54, %v10389_v3  ;;  %v2392_v54 = vrot.slane %v9096_v34, 1 }
 0x1f9   : > { %v10534_v4 = vadd.f32 %v3903_v42, %v3239_v39 }
 0x1fa   : > { %v3087_v14 = vpop.f32.mrf.mxu3  ;;  %v2686_v48 = vadd.f32 %v2533_v8, %v2198_v47  ;;  %v3640_v8 = vshll.u32 %v8333_v35, 16 }
 0x1fb   : > { %2575 = vmatmul.bf16.gmra.mxu2 %v2391_v40  ;;  %3942 = vmatmul.bf16.gmra.mxu0 %v3635_v44 }
 0x1fc   : > { %v3240_v32 = vadd.f32 %v3087_v14, %v2686_v48  ;;  %v3636_v14 = vshrl.u32 %v8332_v33, 16  ;;  %v3642_v47 = vrot.slane %v3640_v8, 1 }
 0x1fe   : > { %v2536_v0 = vpop.f32.mrf.mxu2  ;;  %v3638_v44 = vor.u32 %v3636_v14, %v3634_v5 }
 0x1ff   : > { %3129 = vmatmul.bf16.gmra.mxu3 %v8293_v62  ;;  %v2200_v50 = vpop.f32.mrf.mxu1 }
 0x200   : > { %v3905_v39 = vpop.f32.mrf.mxu0  ;;  %v2201_v9 = vadd.f32 %v2200_v50, %v10402_v16  ;;  %v2393_v16 = vsel %vm2366_vm1, %v2390_v7, %v2392_v54 }
 0x201   : > { %v10542_v11 = vadd.f32 %v3905_v39, %v3240_v32  ;;  %v8294_v39 = vld [vmem:[#allocation2 + $0x6c] sm:$0xff] }
 0x202   : > { %v3090_v3 = vpop.f32.mrf.mxu3  ;;  %2239 = vmatmul.bf16.gmra.mxu1 %v10511_v55  ;;  %v2687_v1 = vadd.f32 %v2536_v0, %v2201_v9  ;;  %v3643_v55 = vsel %vm1586_vm0, %v3638_v44, %v3642_v47  ;;  %v9097_v44 = vld [vmem:[#allocation2 + $0x70] sm:$0xff] }
 0x204   : > { %v3241_v51 = vadd.f32 %v3090_v3, %v2687_v1  ;;  %v8334_v3 = vld [vmem:[#allocation2 + $0x74] sm:$0xff] }
 0x206   : > { %v2538_v42 = vpop.f32.mrf.mxu2 }
 0x207   : > { %v2202_v48 = vpop.f32.mrf.mxu1 }
 0x208   : > { %v3908_v40 = vpop.f32.mrf.mxu0  ;;  %v2203_v32 = vadd.f32 %v2202_v48, %v10411_v36  ;;  %v3648_v36 = vshll.u32 %v8334_v3, 16  ;;  %v3644_v48 = vshrl.u32 %v8333_v35, 16 }
 0x209   : > { %v10546_v29 = vadd.f32 %v3908_v40, %v3241_v51 }
 0x20a   : > { %v3092_v62 = vpop.f32.mrf.mxu3  ;;  %v2688_v0 = vadd.f32 %v2538_v42, %v2203_v32  ;;  %v2394_v42 = vrot.slane %v9097_v44, 1 }
 0x20b   : > { %2580 = vmatmul.bf16.gmra.mxu2 %v2393_v16  ;;  %3947 = vmatmul.bf16.gmra.mxu0 %v3643_v55  ;;  %v3646_v16 = vor.u32 %v3644_v48, %v3642_v47 }
 0x20c   : > { %v3242_v50 = vadd.f32 %v3092_v62, %v2688_v0  ;;  %v3650_v62 = vrot.slane %v3648_v36, 1 }
 0x20e   : > { %v2541_v33 = vpop.f32.mrf.mxu2 }
 0x20f   : > { %3134 = vmatmul.bf16.gmra.mxu3 %v8294_v39  ;;  %v2205_v5 = vpop.f32.mrf.mxu1 }
 0x210   : > { %v3910_v9 = vpop.f32.mrf.mxu0  ;;  %v2206_v51 = vadd.f32 %v2205_v5, %v10421_v27  ;;  %v2395_v27 = vsel %vm2366_vm1, %v2392_v54, %v2394_v42  ;;  %v3652_v54 = vshrl.u32 %v8334_v3, 16  ;;  %v8296_v3 = vld [vmem:[#allocation2 + $0x7c] sm:$0xff] }
 0x211   : > { %v10551_v1 = vadd.f32 %v3910_v9, %v3242_v50  ;;  %v8295_v9 = vld [vmem:[#allocation2 + $0x74] sm:$0xff] }
 0x212   : > { %v3095_v8 = vpop.f32.mrf.mxu3  ;;  %2244 = vmatmul.bf16.gmra.mxu1 %v10522_v15  ;;  %v2689_v7 = vadd.f32 %v2541_v33, %v2206_v51  ;;  %v3651_v15 = vsel %vm1586_vm0, %v3646_v16, %v3650_v62  ;;  %v8335_v51 = vld [vmem:[#allocation2 + $0x7c] sm:$0xff] }
 0x213   : > { %v3656_v48 = vshll.u32 %v8335_v51, 16 }
 0x214   : > { %v3243_v14 = vadd.f32 %v3095_v8, %v2689_v7 }
 0x216   : > { %v2543_v40 = vpop.f32.mrf.mxu2 }
 0x217   : > { %v2207_v55 = vpop.f32.mrf.mxu1 }
 0x218   : > { %v3913_v32 = vpop.f32.mrf.mxu0  ;;  %v2208_v50 = vadd.f32 %v2207_v55, %v10432_v46  ;;  %v3654_v55 = vor.u32 %v3652_v54, %v3650_v62 }
 0x219   : > { %v10555_v39 = vadd.f32 %v3913_v32, %v3243_v14 }
 0x21a   : > { %v3097_v0 = vpop.f32.mrf.mxu3  ;;  %v2690_v33 = vadd.f32 %v2543_v40, %v2208_v50  ;;  %v2396_v40 = vrot.slane %v10205_v25, 1  ;;  %v3658_v50 = vrot.slane %v3656_v48, 1 }
 0x21b   : > { %2585 = vmatmul.bf16.gmra.mxu2 %v2395_v27  ;;  %3952 = vmatmul.bf16.gmra.mxu0 %v3651_v15 }
 0x21c   : > { %v3244_v5 = vadd.f32 %v3097_v0, %v2690_v33 }
 0x21e   : > { %v2546_v35 = vpop.f32.mrf.mxu2 }
 0x21f   : > { %3139 = vmatmul.bf16.gmra.mxu3 %v8295_v9  ;;  %v2210_v47 = vpop.f32.mrf.mxu1 }
 0x220   : > { %v3915_v8 = vpop.f32.mrf.mxu0  ;;  %v2211_v14 = vadd.f32 %v2210_v47, %v10441_v41  ;;  %v3659_v41 = vsel %vm1586_vm0, %v3654_v55, %v3658_v50 }
 0x221   : > { %v10560_v7 = vadd.f32 %v3915_v8, %v3244_v5  ;;  %v2397_v5 = vsel %vm2366_vm1, %v2394_v42, %v2396_v40  ;;  %v8336_v8 = vld [vmem:[#allocation2 + $0x84] sm:$0xff]  ;;  %v3660_v42 = vshrl.u32 %v8335_v51, 16 }
 0x222   : > { %v3100_v36 = vpop.f32.mrf.mxu3  ;;  %2249 = vmatmul.bf16.gmra.mxu1 %v9096_v34  ;;  %v2691_v46 = vadd.f32 %v2546_v35, %v2211_v14  ;;  %v3664_v54 = vshll.u32 %v8336_v8, 16 }
 0x223   : > { %v3662_v55 = vor.u32 %v3660_v42, %v3658_v50 }
 0x224   : > { %v3245_v32 = vadd.f32 %v3100_v36, %v2691_v46  ;;  %v3666_v51 = vrot.slane %v3664_v54, 1 }
 0x226   : > { %v2548_v16 = vpop.f32.mrf.mxu2 }
 0x227   : > { %v2212_v27 = vpop.f32.mrf.mxu1 }
 0x228   : > { %v3918_v0 = vpop.f32.mrf.mxu0  ;;  %v2213_v9 = vadd.f32 %v2212_v27, %v10454_v2  ;;  %v8364_v27 = vld [vmem:[%s11204_s4 + $0x158] sm:$0xff] }
 0x229   : > { %v10564_v33 = vadd.f32 %v3918_v0, %v3245_v32  ;;  %v8443_v0 = vld [vmem:[%s11204_s4 + $0x1d8] sm:$0xff]  ;;  %4287 = vmatpush.bf16.msra.mxu1 %v8364_v27  ;;  %v9100_v27 = vld [vmem:[#allocation2 + $0x88] sm:$0xff] }
 0x22a   : > { %v3102_v15 = vpop.f32.mrf.mxu3  ;;  %v2692_v34 = vadd.f32 %v2548_v16, %v2213_v9  ;;  %v8404_v16 = vld [vmem:[%s11204_s4 + $0x198] sm:$0xff]  ;;  %5659 = vmatpush.bf16.msra.mxu3 %v8443_v0 }
 0x22b   : > { %2590 = vmatmul.bf16.gmra.mxu2 %v2397_v5  ;;  %3957 = vmatmul.bf16.gmra.mxu0 %v3659_v41 }
 0x22c   : > { %v3246_v35 = vadd.f32 %v3102_v15, %v2692_v34  ;;  %4841 = vmatpush.bf16.msra.mxu2 %v8404_v16 }
 0x22e   : > { %v2551_v25 = vpop.f32.mrf.mxu2 }
 0x22f   : > { %3144 = vmatmul.bf16.gmra.mxu3 %v8296_v3  ;;  %v2215_v47 = vpop.f32.mrf.mxu1  ;;  %v3667_v3 = vsel %vm1586_vm0, %v3662_v55, %v3666_v51 }
 0x230   : > { %v3920_v62 = vpop.f32.mrf.mxu0  ;;  %v2216_v46 = vadd.f32 %v2215_v47, %v10470_v43 }
 0x231   : > { %v10569_v14 = vadd.f32 %v3920_v62, %v3246_v35 }
 0x232   : > { %v3105_v36 = vpop.f32.mrf.mxu3  ;;  %2254 = vmatmul.bf16.gmra.mxu1 %v9097_v44  ;;  %v2693_v2 = vadd.f32 %v2551_v25, %v2216_v46  ;;  %v9098_v44 = vld [vmem:[#allocation2 + $0x80] sm:$0xff]  ;;  %v8451_v46 = vld [vmem:[%s11204_s4 + $0x218] sm:$0xff] }
 0x233   : > { %v2398_v15 = vrot.slane %v9098_v44, 1  ;;  %v8297_v25 = vld [vmem:[#allocation2 + $0x84] sm:$0xff]  ;;  %6058 = vmatpush.bf16.msra.mxu0 %v8451_v46 }
 0x234   : > { %v3247_v48 = vadd.f32 %v3105_v36, %v2693_v2  ;;  %v8337_v36 = vld [vmem:[#allocation2 + $0x8c] sm:$0xff] }
 0x235   : > { %v2399_v34 = vsel %vm2366_vm1, %v2396_v40, %v2398_v15 }
 0x236   : > { %v2553_v32 = vpop.f32.mrf.mxu2 }
 0x237   : > { %v2217_v9 = vpop.f32.mrf.mxu1 }
 0x238   : > { %v3923_v43 = vpop.f32.mrf.mxu0  ;;  %v2218_v41 = vadd.f32 %v2217_v9, %v10483_v20  ;;  %v3668_v9 = vshrl.u32 %v8336_v8, 16 }
 0x239   : > { %v10581_v5 = vadd.f32 %v3923_v43, %v3247_v48  ;;  %v9099_v48 = vld [vmem:[#allocation2 + $0x78] sm:$0xff]  ;;  %v2400_v43 = vrot.slane %v9100_v27, 1 }
 0x23a   : > { %v3107_v50 = vpop.f32.mrf.mxu3  ;;  %v2694_v35 = vadd.f32 %v2553_v32, %v2218_v41  ;;  %v3672_v32 = vshll.u32 %v8337_v36, 16 }
 0x23b   : > { %2595 = vmatmul.bf16.gmra.mxu2 %v2399_v34  ;;  %3962 = vmatmul.bf16.gmra.mxu0 %v3667_v3  ;;  %v3670_v34 = vor.u32 %v3668_v9, %v3666_v51 }
 0x23c   : > { %v3248_v62 = vadd.f32 %v3107_v50, %v2694_v35  ;;  %v3674_v50 = vrot.slane %v3672_v32, 1 }
 0x23e   : > { %v2556_v47 = vpop.f32.mrf.mxu2  ;;  %v3675_v46 = vsel %vm1586_vm0, %v3670_v34, %v3674_v50 }
 0x23f   : > { %3149 = vmatmul.bf16.gmra.mxu3 %v8297_v25  ;;  %v2220_v42 = vpop.f32.mrf.mxu1 }
 0x240   : > { %v3925_v2 = vpop.f32.mrf.mxu0  ;;  %v2221_v40 = vadd.f32 %v2220_v42, %v10492_v18  ;;  %v2401_v18 = vsel %vm2366_vm1, %v2398_v15, %v2400_v43 }
 0x241   : > { %v10589_v54 = vadd.f32 %v3925_v2, %v3248_v62  ;;  %v8298_v2 = vld [vmem:[#allocation2 + $0x8c] sm:$0xff] }
 0x242   : > { %v3110_v20 = vpop.f32.mrf.mxu3  ;;  %2259 = vmatmul.bf16.gmra.mxu1 %v9099_v48  ;;  %v2695_v55 = vadd.f32 %v2556_v47, %v2221_v40 }
 0x244   : > { %v3249_v16 = vadd.f32 %v3110_v20, %v2695_v55  ;;  %v8338_v20 = vld [vmem:[#allocation2 + $0x94] sm:$0xff] }
 0x246   : > { %v2558_v0 = vpop.f32.mrf.mxu2 }
 0x247   : > { %v2222_v3 = vpop.f32.mrf.mxu1 }
 0x248   : > { %v3928_v41 = vpop.f32.mrf.mxu0  ;;  %v2223_v62 = vadd.f32 %v2222_v3, %v10500_v6  ;;  %v3680_v6 = vshll.u32 %v8338_v20, 16 }
 0x249   : > { %v10592_v25 = vadd.f32 %v3928_v41, %v3249_v16  ;;  %v9101_v41 = vld [vmem:[#allocation2 + $0x90] sm:$0xff] }
 0x24a   : > { %v3112_v35 = vpop.f32.mrf.mxu3  ;;  %v2696_v47 = vadd.f32 %v2558_v0, %v2223_v62  ;;  %v2402_v34 = vrot.slane %v9101_v41, 1  ;;  %v3676_v0 = vshrl.u32 %v8337_v36, 16  ;;  %v3682_v3 = vrot.slane %v3680_v6, 1 }
 0x24b   : > { %2600 = vmatmul.bf16.gmra.mxu2 %v2401_v18  ;;  %3967 = vmatmul.bf16.gmra.mxu0 %v3675_v46 }
 0x24c   : > { %v3250_v42 = vadd.f32 %v3112_v35, %v2696_v47  ;;  %v3678_v62 = vor.u32 %v3676_v0, %v3674_v50 }
 0x24e   : > { %v2561_v8 = vpop.f32.mrf.mxu2 }
 0x24f   : > { %3154 = vmatmul.bf16.gmra.mxu3 %v8298_v2  ;;  %v2225_v51 = vpop.f32.mrf.mxu1 }
 0x250   : > { %v3930_v40 = vpop.f32.mrf.mxu0  ;;  %v2226_v55 = vadd.f32 %v2225_v51, %v10267_v17  ;;  %v3683_v17 = vsel %vm1586_vm0, %v3678_v62, %v3682_v3  ;;  %v8339_v51 = vld [vmem:[#allocation2 + $0x9c] sm:$0xff]  ;;  %v3684_v62 = vshrl.u32 %v8338_v20, 16 }
 0x251   : > { %v10597_v32 = vadd.f32 %v3930_v40, %v3250_v42  ;;  %v2403_v42 = vsel %vm2366_vm1, %v2400_v43, %v2402_v34 }
 0x252   : > { %v3115_v48 = vpop.f32.mrf.mxu3  ;;  %2264 = vmatmul.bf16.gmra.mxu1 %v9098_v44  ;;  %v2697_v15 = vadd.f32 %v2561_v8, %v2226_v55  ;;  %v8299_v8 = vld [vmem:[#allocation2 + $0x94] sm:$0xff] }
 0x254   : > { %v3251_v16 = vadd.f32 %v3115_v48, %v2697_v15 }
 0x256   : > { %v2563_v9 = vpop.f32.mrf.mxu2 }
 0x257   : > { %v2227_v18 = vpop.f32.mrf.mxu1 }
 0x258   : > { %v3933_v35 = vpop.f32.mrf.mxu0  ;;  %v2228_v2 = vadd.f32 %v2227_v18, %v10292_v23  ;;  %v3688_v23 = vshll.u32 %v8339_v51, 16 }
 0x259   : > { %v10600_v47 = vadd.f32 %v3933_v35, %v3251_v16  ;;  %v10608_v35 = vld [vmem:[#allocation2 + $0x98] sm:$0xff] }
 0x25a   : > { %v3117_v46 = vpop.f32.mrf.mxu3  ;;  %v2698_v44 = vadd.f32 %v2563_v9, %v2228_v2  ;;  %v2404_v9 = vrot.slane %v10608_v35, 1  ;;  %v3690_v18 = vrot.slane %v3688_v23, 1  ;;  %v3686_v2 = vor.u32 %v3684_v62, %v3682_v3 }
 0x25b   : > { %2605 = vmatmul.bf16.gmra.mxu2 %v2403_v42  ;;  %3972 = vmatmul.bf16.gmra.mxu0 %v3683_v17 }
 0x25c   : > { %v3252_v40 = vadd.f32 %v3117_v46, %v2698_v44 }
 0x25e   : > { %v2566_v36 = vpop.f32.mrf.mxu2 }
 0x25f   : > { %3159 = vmatmul.bf16.gmra.mxu3 %v8299_v8  ;;  %v2230_v50 = vpop.f32.mrf.mxu1 }
 0x260   : > { %v3935_v48 = vpop.f32.mrf.mxu0  ;;  %v2231_v15 = vadd.f32 %v2230_v50, %v10312_v22  ;;  %v2405_v22 = vsel %vm2366_vm1, %v2402_v34, %v2404_v9  ;;  %v8340_v50 = vld [vmem:[#allocation2 + $0xa4] sm:$0xff] }
 0x261   : > { %v10605_v6 = vadd.f32 %v3935_v48, %v3252_v40 }
 0x262   : > { %v3120_v55 = vpop.f32.mrf.mxu3  ;;  %2269 = vmatmul.bf16.gmra.mxu1 %v9100_v27  ;;  %v2699_v43 = vadd.f32 %v2566_v36, %v2231_v15  ;;  %v3691_v27 = vsel %vm1586_vm0, %v3686_v2, %v3690_v18  ;;  %v8300_v36 = vld [vmem:[#allocation2 + $0x9c] sm:$0xff]  ;;  %v3692_v2 = vshrl.u32 %v8339_v51, 16 }
 0x264   : > { %v3253_v16 = vadd.f32 %v3120_v55, %v2699_v43 }
 0x266   : > { %v2568_v0 = vpop.f32.mrf.mxu2 }
 0x267   : > { %v2232_v42 = vpop.f32.mrf.mxu1 }
 0x268   : > { %v3938_v46 = vpop.f32.mrf.mxu0  ;;  %v2233_v8 = vadd.f32 %v2232_v42, %v10337_v31  ;;  %v3696_v31 = vshll.u32 %v8340_v50, 16 }
 0x269   : > { %v10611_v44 = vadd.f32 %v3938_v46, %v3253_v16  ;;  %v10619_v46 = vld [vmem:[#allocation2 + $0xa0] sm:$0xff] }
 0x26a   : > { %v3122_v17 = vpop.f32.mrf.mxu3  ;;  %v2700_v40 = vadd.f32 %v2568_v0, %v2233_v8  ;;  %v2406_v0 = vrot.slane %v10619_v46, 1  ;;  %v3698_v42 = vrot.slane %v3696_v31, 1  ;;  %v8442_v8 = vld [vmem:[%s11204_s4 + $0x1d0] sm:$0xff] }
 0x26b   : > { %2610 = vmatmul.bf16.gmra.mxu2 %v2405_v22  ;;  %3977 = vmatmul.bf16.gmra.mxu0 %v3691_v27  ;;  %v3694_v22 = vor.u32 %v3692_v2, %v3690_v18  ;;  %v8450_v31 = vld [vmem:[%s11204_s4 + $0x210] sm:$0xff] }
 0x26c   : > { %v3254_v48 = vadd.f32 %v3122_v17, %v2700_v40  ;;  %v8403_v17 = vld [vmem:[%s11204_s4 + $0x190] sm:$0xff]  ;;  %5660 = vmatpush.bf16.msra.mxu3 %v8442_v8  ;;  %6059 = vmatpush.bf16.msra.mxu0 %v8450_v31 }
 0x26d   : > { %4842 = vmatpush.bf16.msra.mxu2 %v8403_v17  ;;  %v8302_v31 = vld [vmem:[#allocation2 + $0xac] sm:$0xff] }
 0x26e   : > { %v2571_v20 = vpop.f32.mrf.mxu2 }
 0x26f   : > { %3164 = vmatmul.bf16.gmra.mxu3 %v8300_v36  ;;  %v2235_v3 = vpop.f32.mrf.mxu1 }
 0x270   : > { %v3940_v55 = vpop.f32.mrf.mxu0  ;;  %v2236_v43 = vadd.f32 %v2235_v3, %v10354_v12  ;;  %v8363_v12 = vld [vmem:[%s11204_s4 + $0x150] sm:$0xff]  ;;  %v8301_v3 = vld [vmem:[#allocation2 + $0xa4] sm:$0xff] }
 0x271   : > { %v10616_v23 = vadd.f32 %v3940_v55, %v3254_v48  ;;  %4288 = vmatpush.bf16.msra.mxu1 %v8363_v12  ;;  %v2407_v48 = vsel %vm2366_vm1, %v2404_v9, %v2406_v0 }
 0x272   : > { %v3125_v15 = vpop.f32.mrf.mxu3  ;;  %2274 = vmatmul.bf16.gmra.mxu1 %v9101_v41  ;;  %v2701_v34 = vadd.f32 %v2571_v20, %v2236_v43  ;;  %v3699_v20 = vsel %vm1586_vm0, %v3694_v22, %v3698_v42  ;;  %v8341_v43 = vld [vmem:[#allocation2 + $0xac] sm:$0xff] }
 0x274   : > { %v3255_v16 = vadd.f32 %v3125_v15, %v2701_v34 }
 0x276   : > { %v2573_v62 = vpop.f32.mrf.mxu2 }
 0x277   : > { %v2237_v27 = vpop.f32.mrf.mxu1 }
 0x278   : > { %v3943_v41 = vpop.f32.mrf.mxu0  ;;  %v2238_v36 = vadd.f32 %v2237_v27, %v10373_v28  ;;  %v3700_v27 = vshrl.u32 %v8340_v50, 16 }
 0x279   : > { %v10631_v51 = vadd.f32 %v3943_v41, %v3255_v16  ;;  %v9104_v41 = vld [vmem:[#allocation2 + $0xa8] sm:$0xff] }
 0x27a   : > { %v3127_v40 = vpop.f32.mrf.mxu3  ;;  %v2702_v55 = vadd.f32 %v2573_v62, %v2238_v36  ;;  %v3704_v62 = vshll.u32 %v8341_v43, 16  ;;  %v2408_v22 = vrot.slane %v9104_v41, 1 }
 0x27b   : > { %2615 = vmatmul.bf16.gmra.mxu2 %v2407_v48  ;;  %3982 = vmatmul.bf16.gmra.mxu0 %v3699_v20  ;;  %v3702_v48 = vor.u32 %v3700_v27, %v3698_v42 }
 0x27c   : > { %v3256_v15 = vadd.f32 %v3127_v40, %v2702_v55  ;;  %v3706_v40 = vrot.slane %v3704_v62, 1 }
 0x27e   : > { %v2576_v18 = vpop.f32.mrf.mxu2 }
 0x27f   : > { %3169 = vmatmul.bf16.gmra.mxu3 %v8301_v3  ;;  %v2240_v16 = vpop.f32.mrf.mxu1 }
 0x280   : > { %v3945_v34 = vpop.f32.mrf.mxu0  ;;  %v2241_v9 = vadd.f32 %v2240_v16, %v10391_v61  ;;  %v2409_v61 = vsel %vm2366_vm1, %v2406_v0, %v2408_v22  ;;  %v8342_v16 = vld [vmem:[#allocation2 + $0xb4] sm:$0xff] }
 0x281   : > { %v10639_v2 = vadd.f32 %v3945_v34, %v3256_v15 }
 0x282   : > { %v3130_v28 = vpop.f32.mrf.mxu3  ;;  %2279 = vmatmul.bf16.gmra.mxu1 %v10608_v35  ;;  %v2703_v17 = vadd.f32 %v2576_v18, %v2241_v9  ;;  %v3707_v35 = vsel %vm1586_vm0, %v3702_v48, %v3706_v40  ;;  %v3708_v48 = vshrl.u32 %v8341_v43, 16 }
 0x284   : > { %v3257_v8 = vadd.f32 %v3130_v28, %v2703_v17 }
 0x286   : > { %v2578_v12 = vpop.f32.mrf.mxu2 }
 0x287   : > { %v2242_v20 = vpop.f32.mrf.mxu1 }
 0x288   : > { %v3948_v36 = vpop.f32.mrf.mxu0  ;;  %v2243_v15 = vadd.f32 %v2242_v20, %v10404_v57  ;;  %v3712_v57 = vshll.u32 %v8342_v16, 16 }
 0x289   : > { %v10643_v3 = vadd.f32 %v3948_v36, %v3257_v8  ;;  %v9105_v36 = vld [vmem:[#allocation2 + $0xb0] sm:$0xff] }
 0x28a   : > { %v3132_v55 = vpop.f32.mrf.mxu3  ;;  %v2704_v18 = vadd.f32 %v2578_v12, %v2243_v15  ;;  %v2410_v12 = vrot.slane %v9105_v36, 1  ;;  %v3714_v20 = vrot.slane %v3712_v57, 1  ;;  %v3710_v15 = vor.u32 %v3708_v48, %v3706_v40 }
 0x28b   : > { %2620 = vmatmul.bf16.gmra.mxu2 %v2409_v61  ;;  %3987 = vmatmul.bf16.gmra.mxu0 %v3707_v35 }
 0x28c   : > { %v3258_v34 = vadd.f32 %v3132_v55, %v2704_v18 }
 0x28e   : > { %v2581_v50 = vpop.f32.mrf.mxu2 }
 0x28f   : > { %3174 = vmatmul.bf16.gmra.mxu3 %v8302_v31  ;;  %v2245_v42 = vpop.f32.mrf.mxu1 }
 0x290   : > { %v3950_v28 = vpop.f32.mrf.mxu0  ;;  %v2246_v17 = vadd.f32 %v2245_v42, %v10413_v24  ;;  %v2411_v24 = vsel %vm2366_vm1, %v2408_v22, %v2410_v12  ;;  %v3716_v22 = vshrl.u32 %v8342_v16, 16  ;;  %v8304_v16 = vld [vmem:[#allocation2 + $0xbc] sm:$0xff] }
 0x291   : > { %v10648_v62 = vadd.f32 %v3950_v28, %v3258_v34 }
 0x292   : > { %v3135_v9 = vpop.f32.mrf.mxu3  ;;  %2284 = vmatmul.bf16.gmra.mxu1 %v10619_v46  ;;  %v2705_v0 = vadd.f32 %v2581_v50, %v2246_v17  ;;  %v3715_v46 = vsel %vm1586_vm0, %v3710_v15, %v3714_v20  ;;  %v8303_v50 = vld [vmem:[#allocation2 + $0xb4] sm:$0xff] }
 0x293   : > { %v9106_v15 = vld [vmem:[#allocation2 + $0xb8] sm:$0xff] }
 0x294   : > { %v3259_v8 = vadd.f32 %v3135_v9, %v2705_v0  ;;  %v8343_v9 = vld [vmem:[#allocation2 + $0xbc] sm:$0xff] }
 0x296   : > { %v2583_v27 = vpop.f32.mrf.mxu2 }
 0x297   : > { %v2247_v61 = vpop.f32.mrf.mxu1 }
 0x298   : > { %v3953_v55 = vpop.f32.mrf.mxu0  ;;  %v2248_v31 = vadd.f32 %v2247_v61, %v10423_v10  ;;  %v3718_v61 = vor.u32 %v3716_v22, %v3714_v20 }
 0x299   : > { %v10652_v18 = vadd.f32 %v3953_v55, %v3259_v8  ;;  %v3720_v8 = vshll.u32 %v8343_v9, 16 }
 0x29a   : > { %v3137_v35 = vpop.f32.mrf.mxu3  ;;  %v2706_v34 = vadd.f32 %v2583_v27, %v2248_v31  ;;  %v2412_v27 = vrot.slane %v9106_v15, 1 }
 0x29b   : > { %2625 = vmatmul.bf16.gmra.mxu2 %v2411_v24  ;;  %3992 = vmatmul.bf16.gmra.mxu0 %v3715_v46  ;;  %v3722_v31 = vrot.slane %v3720_v8, 1 }
 0x29c   : > { %v3260_v28 = vadd.f32 %v3137_v35, %v2706_v34 }
 0x29e   : > { %v2586_v43 = vpop.f32.mrf.mxu2 }
 0x29f   : > { %3179 = vmatmul.bf16.gmra.mxu3 %v8303_v50  ;;  %v2250_v40 = vpop.f32.mrf.mxu1 }
 0x2a0   : > { %v3955_v42 = vpop.f32.mrf.mxu0  ;;  %v2251_v0 = vadd.f32 %v2250_v40, %v10434_v38  ;;  %v3723_v38 = vsel %vm1586_vm0, %v3718_v61, %v3722_v31  ;;  %v8344_v40 = vld [vmem:[#allocation2 + $0xc4] sm:$0xff] }
 0x2a1   : > { %v10657_v57 = vadd.f32 %v3955_v42, %v3260_v28  ;;  %v2413_v28 = vsel %vm2366_vm1, %v2410_v12, %v2412_v27  ;;  %v3724_v12 = vshrl.u32 %v8343_v9, 16  ;;  %v3728_v8 = vshll.u32 %v8344_v40, 16 }
 0x2a2   : > { %v3140_v17 = vpop.f32.mrf.mxu3  ;;  %2289 = vmatmul.bf16.gmra.mxu1 %v9104_v41  ;;  %v2707_v10 = vadd.f32 %v2586_v43, %v2251_v0 }
 0x2a3   : > { %v3730_v9 = vrot.slane %v3728_v8, 1 }
 0x2a4   : > { %v3261_v48 = vadd.f32 %v3140_v17, %v2707_v10 }
 0x2a6   : > { %v2588_v55 = vpop.f32.mrf.mxu2 }
 0x2a7   : > { %v2252_v24 = vpop.f32.mrf.mxu1 }
 0x2a8   : > { %v3958_v35 = vpop.f32.mrf.mxu0  ;;  %v2253_v50 = vadd.f32 %v2252_v24, %v10446_v52  ;;  %v8441_v24 = vld [vmem:[%s11204_s4 + $0x1c8] sm:$0xff] }
 0x2a9   : > { %v10660_v34 = vadd.f32 %v3958_v35, %v3261_v48  ;;  %v3726_v35 = vor.u32 %v3724_v12, %v3722_v31  ;;  %5661 = vmatpush.bf16.msra.mxu3 %v8441_v24 }
 0x2aa   : > { %v3142_v46 = vpop.f32.mrf.mxu3  ;;  %v2708_v41 = vadd.f32 %v2588_v55, %v2253_v50  ;;  %v8402_v55 = vld [vmem:[%s11204_s4 + $0x188] sm:$0xff] }
 0x2ab   : > { %2630 = vmatmul.bf16.gmra.mxu2 %v2413_v28  ;;  %3997 = vmatmul.bf16.gmra.mxu0 %v3723_v38 }
 0x2ac   : > { %v3262_v43 = vadd.f32 %v3142_v46, %v2708_v41  ;;  %v8362_v46 = vld [vmem:[%s11204_s4 + $0x148] sm:$0xff]  ;;  %4843 = vmatpush.bf16.msra.mxu2 %v8402_v55 }
 0x2ad   : > { %4289 = vmatpush.bf16.msra.mxu1 %v8362_v46  ;;  %v9108_v46 = vld [vmem:[#allocation2 + $0xc8] sm:$0xff] }
 0x2ae   : > { %v2591_v42 = vpop.f32.mrf.mxu2 }
 0x2af   : > { %3184 = vmatmul.bf16.gmra.mxu3 %v8304_v16  ;;  %v2255_v17 = vpop.f32.mrf.mxu1 }
 0x2b0   : > { %v3960_v20 = vpop.f32.mrf.mxu0  ;;  %v2256_v22 = vadd.f32 %v2255_v17, %v10456_v56 }
 0x2b1   : > { %v10665_v10 = vadd.f32 %v3960_v20, %v3262_v43  ;;  %v3731_v43 = vsel %vm1586_vm0, %v3726_v35, %v3730_v9  ;;  %v8305_v20 = vld [vmem:[#allocation2 + $0xc4] sm:$0xff] }
 0x2b2   : > { %v3145_v0 = vpop.f32.mrf.mxu3  ;;  %2294 = vmatmul.bf16.gmra.mxu1 %v9105_v36  ;;  %v2709_v52 = vadd.f32 %v2591_v42, %v2256_v22  ;;  %v9107_v36 = vld [vmem:[#allocation2 + $0xc0] sm:$0xff]  ;;  %v8345_v22 = vld [vmem:[#allocation2 + $0xcc] sm:$0xff] }
 0x2b3   : > { %v2414_v50 = vrot.slane %v9107_v36, 1  ;;  %v3736_v35 = vshll.u32 %v8345_v22, 16 }
 0x2b4   : > { %v3263_v48 = vadd.f32 %v3145_v0, %v2709_v52  ;;  %v8449_v52 = vld [vmem:[%s11204_s4 + $0x208] sm:$0xff] }
 0x2b5   : > { %v2415_v16 = vsel %vm2366_vm1, %v2412_v27, %v2414_v50  ;;  %6060 = vmatpush.bf16.msra.mxu0 %v8449_v52 }
 0x2b6   : > { %v2593_v61 = vpop.f32.mrf.mxu2 }
 0x2b7   : > { %v2257_v28 = vpop.f32.mrf.mxu1 }
 0x2b8   : > { %v3963_v56 = vpop.f32.mrf.mxu0  ;;  %v2258_v41 = vadd.f32 %v2257_v28, %v10474_v49  ;;  %v3732_v28 = vshrl.u32 %v8344_v40, 16 }
 0x2b9   : > { %v10677_v38 = vadd.f32 %v3963_v56, %v3263_v48  ;;  %v2416_v56 = vrot.slane %v9108_v46, 1 }
 0x2ba   : > { %v3147_v31 = vpop.f32.mrf.mxu3  ;;  %v2710_v42 = vadd.f32 %v2593_v61, %v2258_v41 }
 0x2bb   : > { %2635 = vmatmul.bf16.gmra.mxu2 %v2415_v16  ;;  %4002 = vmatmul.bf16.gmra.mxu0 %v3731_v43  ;;  %v3734_v16 = vor.u32 %v3732_v28, %v3730_v9  ;;  %v2417_v52 = vsel %vm2366_vm1, %v2414_v50, %v2416_v56 }
 0x2bc   : > { %v3264_v17 = vadd.f32 %v3147_v31, %v2710_v42  ;;  %v3738_v31 = vrot.slane %v3736_v35, 1 }
 0x2be   : > { %v2596_v0 = vpop.f32.mrf.mxu2 }
 0x2bf   : > { %3189 = vmatmul.bf16.gmra.mxu3 %v8305_v20  ;;  %v2260_v8 = vpop.f32.mrf.mxu1 }
 0x2c0   : > { %v3965_v12 = vpop.f32.mrf.mxu0  ;;  %v2261_v27 = vadd.f32 %v2260_v8, %v10485_v37  ;;  %v3739_v37 = vsel %vm1586_vm0, %v3734_v16, %v3738_v31  ;;  %v8346_v8 = vld [vmem:[#allocation2 + $0xd4] sm:$0xff] }
 0x2c1   : > { %v10685_v48 = vadd.f32 %v3965_v12, %v3264_v17 }
 0x2c2   : > { %v3150_v49 = vpop.f32.mrf.mxu3  ;;  %2299 = vmatmul.bf16.gmra.mxu1 %v9106_v15  ;;  %v2711_v61 = vadd.f32 %v2596_v0, %v2261_v27  ;;  %v8306_v0 = vld [vmem:[#allocation2 + $0xcc] sm:$0xff] }
 0x2c4   : > { %v3265_v55 = vadd.f32 %v3150_v49, %v2711_v61 }
 0x2c6   : > { %v2598_v24 = vpop.f32.mrf.mxu2 }
 0x2c7   : > { %v2262_v43 = vpop.f32.mrf.mxu1 }
 0x2c8   : > { %v3968_v41 = vpop.f32.mrf.mxu0  ;;  %v2263_v17 = vadd.f32 %v2262_v43, %v10494_v63  ;;  %v3744_v63 = vshll.u32 %v8346_v8, 16 }
 0x2c9   : > { %v10688_v20 = vadd.f32 %v3968_v41, %v3265_v55  ;;  %v9109_v41 = vld [vmem:[#allocation2 + $0xd0] sm:$0xff] }
 0x2ca   : > { %v3152_v42 = vpop.f32.mrf.mxu3  ;;  %v2712_v15 = vadd.f32 %v2598_v24, %v2263_v17  ;;  %v2418_v16 = vrot.slane %v9109_v41, 1  ;;  %v3740_v24 = vshrl.u32 %v8345_v22, 16  ;;  %v3746_v43 = vrot.slane %v3744_v63, 1 }
 0x2cb   : > { %2640 = vmatmul.bf16.gmra.mxu2 %v2417_v52  ;;  %4007 = vmatmul.bf16.gmra.mxu0 %v3739_v37 }
 0x2cc   : > { %v3266_v12 = vadd.f32 %v3152_v42, %v2712_v15  ;;  %v3742_v17 = vor.u32 %v3740_v24, %v3738_v31 }
 0x2ce   : > { %v2601_v40 = vpop.f32.mrf.mxu2 }
 0x2cf   : > { %3194 = vmatmul.bf16.gmra.mxu3 %v8306_v0  ;;  %v2265_v9 = vpop.f32.mrf.mxu1 }
 0x2d0   : > { %v3970_v49 = vpop.f32.mrf.mxu0  ;;  %v2266_v61 = vadd.f32 %v2265_v9, %v10265_v26  ;;  %v3747_v26 = vsel %vm1586_vm0, %v3742_v17, %v3746_v43  ;;  %v8347_v9 = vld [vmem:[#allocation2 + $0xdc] sm:$0xff]  ;;  %v3748_v17 = vshrl.u32 %v8346_v8, 16 }
 0x2d1   : > { %v10693_v35 = vadd.f32 %v3970_v49, %v3266_v12  ;;  %v2419_v12 = vsel %vm2366_vm1, %v2416_v56, %v2418_v16 }
 0x2d2   : > { %v3155_v27 = vpop.f32.mrf.mxu3  ;;  %2304 = vmatmul.bf16.gmra.mxu1 %v9107_v36  ;;  %v2713_v50 = vadd.f32 %v2601_v40, %v2266_v61  ;;  %v8307_v40 = vld [vmem:[#allocation2 + $0xd4] sm:$0xff] }
 0x2d4   : > { %v3267_v55 = vadd.f32 %v3155_v27, %v2713_v50 }
 0x2d6   : > { %v2603_v28 = vpop.f32.mrf.mxu2 }
 0x2d7   : > { %v2267_v52 = vpop.f32.mrf.mxu1 }
 0x2d8   : > { %v3973_v42 = vpop.f32.mrf.mxu0  ;;  %v2268_v0 = vadd.f32 %v2267_v52, %v10287_v45  ;;  %v3752_v45 = vshll.u32 %v8347_v9, 16 }
 0x2d9   : > { %v10696_v15 = vadd.f32 %v3973_v42, %v3267_v55  ;;  %v10704_v42 = vld [vmem:[#allocation2 + $0xd8] sm:$0xff] }
 0x2da   : > { %v3157_v37 = vpop.f32.mrf.mxu3  ;;  %v2714_v36 = vadd.f32 %v2603_v28, %v2268_v0  ;;  %v2420_v28 = vrot.slane %v10704_v42, 1  ;;  %v3754_v52 = vrot.slane %v3752_v45, 1  ;;  %v3750_v0 = vor.u32 %v3748_v17, %v3746_v43 }
 0x2db   : > { %2645 = vmatmul.bf16.gmra.mxu2 %v2419_v12  ;;  %4012 = vmatmul.bf16.gmra.mxu0 %v3747_v26 }
 0x2dc   : > { %v3268_v49 = vadd.f32 %v3157_v37, %v2714_v36 }
 0x2de   : > { %v2606_v22 = vpop.f32.mrf.mxu2 }
 0x2df   : > { %3199 = vmatmul.bf16.gmra.mxu3 %v8307_v40  ;;  %v2270_v31 = vpop.f32.mrf.mxu1 }
 0x2e0   : > { %v3975_v27 = vpop.f32.mrf.mxu0  ;;  %v2271_v50 = vadd.f32 %v2270_v31, %v10305_v58  ;;  %v2421_v58 = vsel %vm2366_vm1, %v2418_v16, %v2420_v28  ;;  %v8348_v31 = vld [vmem:[#allocation2 + $0xe4] sm:$0xff] }
 0x2e1   : > { %v10701_v63 = vadd.f32 %v3975_v27, %v3268_v49 }
 0x2e2   : > { %v3160_v61 = vpop.f32.mrf.mxu3  ;;  %2309 = vmatmul.bf16.gmra.mxu1 %v9108_v46  ;;  %v2715_v56 = vadd.f32 %v2606_v22, %v2271_v50  ;;  %v3755_v46 = vsel %vm1586_vm0, %v3750_v0, %v3754_v52  ;;  %v8308_v22 = vld [vmem:[#allocation2 + $0xdc] sm:$0xff]  ;;  %v3756_v0 = vshrl.u32 %v8347_v9, 16 }
 0x2e4   : > { %v3269_v55 = vadd.f32 %v3160_v61, %v2715_v56 }
 0x2e6   : > { %v2608_v24 = vpop.f32.mrf.mxu2 }
 0x2e7   : > { %v2272_v12 = vpop.f32.mrf.mxu1 }
 0x2e8   : > { %v3978_v37 = vpop.f32.mrf.mxu0  ;;  %v2273_v40 = vadd.f32 %v2272_v12, %v10333_v13  ;;  %v3760_v13 = vshll.u32 %v8348_v31, 16 }
 0x2e9   : > { %v10707_v36 = vadd.f32 %v3978_v37, %v3269_v55  ;;  %v10715_v37 = vld [vmem:[#allocation2 + $0xe0] sm:$0xff] }
 0x2ea   : > { %v3162_v26 = vpop.f32.mrf.mxu3  ;;  %v2716_v49 = vadd.f32 %v2608_v24, %v2273_v40  ;;  %v2422_v24 = vrot.slane %v10715_v37, 1  ;;  %v3762_v12 = vrot.slane %v3760_v13, 1  ;;  %v8440_v40 = vld [vmem:[%s11204_s4 + $0x1c0] sm:$0xff] }
 0x2eb   : > { %2650 = vmatmul.bf16.gmra.mxu2 %v2421_v58  ;;  %4017 = vmatmul.bf16.gmra.mxu0 %v3755_v46  ;;  %v3758_v58 = vor.u32 %v3756_v0, %v3754_v52  ;;  %v8448_v13 = vld [vmem:[%s11204_s4 + $0x200] sm:$0xff] }
 0x2ec   : > { %v3270_v27 = vadd.f32 %v3162_v26, %v2716_v49  ;;  %v8401_v26 = vld [vmem:[%s11204_s4 + $0x180] sm:$0xff]  ;;  %5662 = vmatpush.bf16.msra.mxu3 %v8440_v40  ;;  %6061 = vmatpush.bf16.msra.mxu0 %v8448_v13 }
 0x2ed   : > { %4844 = vmatpush.bf16.msra.mxu2 %v8401_v26 }
 0x2ee   : > { %v2611_v8 = vpop.f32.mrf.mxu2 }
 0x2ef   : > { %3204 = vmatmul.bf16.gmra.mxu3 %v8308_v22  ;;  %v2275_v43 = vpop.f32.mrf.mxu1 }
 0x2f0   : > { %v3980_v61 = vpop.f32.mrf.mxu0  ;;  %v2276_v56 = vadd.f32 %v2275_v43, %v10350_v30  ;;  %v8361_v30 = vld [vmem:[%s11204_s4 + $0x140] sm:$0xff] }
 0x2f1   : > { %v10712_v45 = vadd.f32 %v3980_v61, %v3270_v27  ;;  %4290 = vmatpush.bf16.msra.mxu1 %v8361_v30  ;;  %v2423_v27 = vsel %vm2366_vm1, %v2420_v28, %v2422_v24  ;;  %v8309_v43 = vld [vmem:[#allocation2 + $0xe4] sm:$0xff]  ;;  %v11241_v28 = vld [vmem:[#allocation11_spill] sm:$0xff] }
 0x2f2   : > { %v3165_v50 = vpop.f32.mrf.mxu3  ;;  %2314 = vmatmul.bf16.gmra.mxu1 %v9109_v41  ;;  %v2717_v16 = vadd.f32 %v2611_v8, %v2276_v56  ;;  %v3763_v8 = vsel %vm1586_vm0, %v3758_v58, %v3762_v12  ;;  %v8349_v56 = vld [vmem:[#allocation2 + $0xec] sm:$0xff] }
 0x2f3   : > { %v9112_v58 = vld [vmem:[#allocation2 + $0xe8] sm:$0xff] }
 0x2f4   : > { %v3271_v55 = vadd.f32 %v3165_v50, %v2717_v16 }
 0x2f6   : > { %v2613_v17 = vpop.f32.mrf.mxu2 }
 0x2f7   : > { %v2277_v46 = vpop.f32.mrf.mxu1 }
 0x2f8   : > { %v3983_v41 = vpop.f32.mrf.mxu0  ;;  %v2278_v22 = vadd.f32 %v2277_v46, %v10369_v59  ;;  %v2424_v46 = vrot.slane %v9112_v58, 1 }
 0x2f9   : > { %v10727_v9 = vadd.f32 %v3983_v41, %v3271_v55 }
 0x2fa   : > { %v3167_v49 = vpop.f32.mrf.mxu3  ;;  %v2718_v61 = vadd.f32 %v2613_v17, %v2278_v22  ;;  %v3768_v17 = vshll.u32 %v8349_v56, 16 }
 0x2fb   : > { %11239 = vst [vmem:[#allocation31_spill] sm:$0xff] %v10727_v9  ;;  %2655 = vmatmul.bf16.gmra.mxu2 %v2423_v27  ;;  %4022 = vmatmul.bf16.gmra.mxu0 %v3763_v8  ;;  %v11251_v9 = vld [vmem:[#allocation21_spill] sm:$0xff] }
 0x2fc   : > { %v3272_v50 = vadd.f32 %v3167_v49, %v2718_v61  ;;  %v3764_v49 = vshrl.u32 %v8348_v31, 16  ;;  %v3770_v22 = vrot.slane %v3768_v17, 1 }
 0x2fe   : > { %v2616_v52 = vpop.f32.mrf.mxu2  ;;  %v3766_v8 = vor.u32 %v3764_v49, %v3762_v12 }
 0x2ff   : > { %3209 = vmatmul.bf16.gmra.mxu3 %v8309_v43  ;;  %v2280_v55 = vpop.f32.mrf.mxu1 }
 0x300   : > { %v3985_v16 = vpop.f32.mrf.mxu0  ;;  %v2281_v26 = vadd.f32 %v2280_v55, %v11241_v28  ;;  %v2425_v55 = vsel %vm2366_vm1, %v2422_v24, %v2424_v46 }
 0x301   : > { %v10735_v0 = vadd.f32 %v3985_v16, %v3272_v50  ;;  %v11243_v50 = vld [vmem:[#allocation13_spill] sm:$0xff] }
 0x302   : > { %v3170_v59 = vpop.f32.mrf.mxu3  ;;  %2319 = vmatmul.bf16.gmra.mxu1 %v10704_v42  ;;  %v2719_v40 = vadd.f32 %v2616_v52, %v2281_v26  ;;  %v3771_v42 = vsel %vm1586_vm0, %v3766_v8, %v3770_v22  ;;  %v8350_v26 = vld [vmem:[#allocation2 + $0xf4] sm:$0xff] }
 0x303   : > { %11240 = vst [vmem:[#allocation32_spill] sm:$0xff] %v10735_v0  ;;  %v3776_v24 = vshll.u32 %v8350_v26, 16 }
 0x304   : > { %v3273_v30 = vadd.f32 %v3170_v59, %v2719_v40  ;;  %v8310_v59 = vld [vmem:[#allocation2 + $0xec] sm:$0xff] }
 0x306   : > { %v2618_v41 = vpop.f32.mrf.mxu2 }
 0x307   : > { %v2282_v61 = vpop.f32.mrf.mxu1 }
 0x308   : > { %v3988_v27 = vpop.f32.mrf.mxu0  ;;  %v2283_v16 = vadd.f32 %v2282_v61, %v11243_v50 }
 0x309   : > { %v10739_v13 = vadd.f32 %v3988_v27, %v3273_v30  ;;  %v11245_v30 = vld [vmem:[#allocation15_spill] sm:$0xff] }
 0x30a   : > { %v3172_v43 = vpop.f32.mrf.mxu3  ;;  %v2720_v52 = vadd.f32 %v2618_v41, %v2283_v16  ;;  %v3772_v16 = vshrl.u32 %v8349_v56, 16 }
 0x30b   : > { %11242 = vst [vmem:[#allocation11_spill] sm:$0xff] %v10739_v13  ;;  %2660 = vmatmul.bf16.gmra.mxu2 %v2425_v55  ;;  %4027 = vmatmul.bf16.gmra.mxu0 %v3771_v42  ;;  %v9113_v55 = vld [vmem:[#allocation2 + $0xf0] sm:$0xff] }
 0x30c   : > { %v3274_v28 = vadd.f32 %v3172_v43, %v2720_v52  ;;  %v2426_v41 = vrot.slane %v9113_v55, 1  ;;  %v3778_v43 = vrot.slane %v3776_v24, 1  ;;  %v3774_v52 = vor.u32 %v3772_v16, %v3770_v22 }
 0x30e   : > { %v2621_v31 = vpop.f32.mrf.mxu2 }
 0x30f   : > { %3214 = vmatmul.bf16.gmra.mxu3 %v8310_v59  ;;  %v2285_v12 = vpop.f32.mrf.mxu1 }
 0x310   : > { %v3990_v17 = vpop.f32.mrf.mxu0  ;;  %v2286_v27 = vadd.f32 %v2285_v12, %v11245_v30  ;;  %v2427_v12 = vsel %vm2366_vm1, %v2424_v46, %v2426_v41 }
 0x311   : > { %v10744_v49 = vadd.f32 %v3990_v17, %v3274_v28  ;;  %v11247_v28 = vld [vmem:[#allocation17_spill] sm:$0xff] }
 0x312   : > { %v3175_v40 = vpop.f32.mrf.mxu3  ;;  %2324 = vmatmul.bf16.gmra.mxu1 %v10715_v37  ;;  %v2721_v61 = vadd.f32 %v2621_v31, %v2286_v27  ;;  %v3779_v37 = vsel %vm1586_vm0, %v3774_v52, %v3778_v43  ;;  %v8351_v27 = vld [vmem:[#allocation2 + $0xfc] sm:$0xff] }
 0x313   : > { %11244 = vst [vmem:[#allocation13_spill] sm:$0xff] %v10744_v49 }
 0x314   : > { %v3275_v8 = vadd.f32 %v3175_v40, %v2721_v61  ;;  %v8311_v40 = vld [vmem:[#allocation2 + $0xf4] sm:$0xff] }
 0x316   : > { %v2623_v50 = vpop.f32.mrf.mxu2 }
 0x317   : > { %v2287_v59 = vpop.f32.mrf.mxu1 }
 0x318   : > { %v3993_v42 = vpop.f32.mrf.mxu0  ;;  %v2288_v17 = vadd.f32 %v2287_v59, %v11247_v28  ;;  %v3784_v59 = vshll.u32 %v8351_v27, 16 }
 0x319   : > { %v10748_v0 = vadd.f32 %v3993_v42, %v3275_v8  ;;  %v11249_v8 = vld [vmem:[#allocation19_spill] sm:$0xff] }
 0x31a   : > { %v3177_v13 = vpop.f32.mrf.mxu3  ;;  %v2722_v31 = vadd.f32 %v2623_v50, %v2288_v17  ;;  %v3780_v50 = vshrl.u32 %v8350_v26, 16  ;;  %v3786_v17 = vrot.slane %v3784_v59, 1 }
 0x31b   : > { %11246 = vst [vmem:[#allocation15_spill] sm:$0xff] %v10748_v0  ;;  %2665 = vmatmul.bf16.gmra.mxu2 %v2427_v12  ;;  %4032 = vmatmul.bf16.gmra.mxu0 %v3779_v37  ;;  %v9114_v12 = vld [vmem:[#allocation2 + $0xf8] sm:$0xff] }
 0x31c   : > { %v3276_v30 = vadd.f32 %v3177_v13, %v2722_v31  ;;  %v2428_v37 = vrot.slane %v9114_v12, 1  ;;  %v3782_v31 = vor.u32 %v3780_v50, %v3778_v43 }
 0x31e   : > { %v2626_v56 = vpop.f32.mrf.mxu2 }
 0x31f   : > { %3219 = vmatmul.bf16.gmra.mxu3 %v8311_v40  ;;  %v2290_v22 = vpop.f32.mrf.mxu1 }
 0x320   : > { %v3995_v24 = vpop.f32.mrf.mxu0  ;;  %v2291_v42 = vadd.f32 %v2290_v22, %v11249_v8  ;;  %v8312_v22 = vld [vmem:[#allocation2 + $0xfc] sm:$0xff]  ;;  %v8352_v8 = vld [vmem:[#allocation2 + $0x104] sm:$0xff] }
 0x321   : > { %v10753_v16 = vadd.f32 %v3995_v24, %v3276_v30  ;;  %v2429_v24 = vsel %vm2366_vm1, %v2426_v41, %v2428_v37 }
 0x322   : > { %v3180_v61 = vpop.f32.mrf.mxu3  ;;  %2329 = vmatmul.bf16.gmra.mxu1 %v9112_v58  ;;  %v2723_v46 = vadd.f32 %v2626_v56, %v2291_v42  ;;  %v3787_v58 = vsel %vm1586_vm0, %v3782_v31, %v3786_v17 }
 0x323   : > { %11248 = vst [vmem:[#allocation17_spill] sm:$0xff] %v10753_v16 }
 0x324   : > { %v3277_v28 = vadd.f32 %v3180_v61, %v2723_v46 }
 0x326   : > { %v2628_v52 = vpop.f32.mrf.mxu2 }
 0x327   : > { %v2292_v40 = vpop.f32.mrf.mxu1 }
 0x328   : > { %v3998_v13 = vpop.f32.mrf.mxu0  ;;  %v2293_v30 = vadd.f32 %v2292_v40, %v11251_v9  ;;  %v3792_v9 = vshll.u32 %v8352_v8, 16  ;;  %v11253_v40 = vld [vmem:[#allocation3_spill] sm:$0xff] }
 0x329   : > { %v10756_v49 = vadd.f32 %v3998_v13, %v3277_v28  ;;  %v11252_v28 = vld [vmem:[#allocation23_spill] sm:$0xff] }
 0x32a   : > { %v3182_v0 = vpop.f32.mrf.mxu3  ;;  %v2724_v56 = vadd.f32 %v2628_v52, %v2293_v30  ;;  %v3788_v52 = vshrl.u32 %v8351_v27, 16  ;;  %v3794_v30 = vrot.slane %v3792_v9, 1 }
 0x32b   : > { %11250 = vst [vmem:[#allocation19_spill] sm:$0xff] %v10756_v49  ;;  %2670 = vmatmul.bf16.gmra.mxu2 %v2429_v24  ;;  %4037 = vmatmul.bf16.gmra.mxu0 %v3787_v58  ;;  %v2430_v24 = vrot.slane %v11253_v40, 1 }
 0x32c   : > { %v3278_v61 = vadd.f32 %v3182_v0, %v2724_v56  ;;  %v3363_v0 = vld [vmem:[#allocation2 + $0x10c] sm:$0x1]  ;;  %v3790_v56 = vor.u32 %v3788_v52, %v3786_v17 }
 0x32e   : > { %v2631_v26 = vpop.f32.mrf.mxu2 }
 0x32f   : > { %3224 = vmatmul.bf16.gmra.mxu3 %v8312_v22  ;;  %v2295_v43 = vpop.f32.mrf.mxu1 }
 0x330   : > { %v4000_v42 = vpop.f32.mrf.mxu0  ;;  %v2296_v50 = vadd.f32 %v2295_v43, %v11252_v28  ;;  %v2431_v43 = vsel %vm2366_vm1, %v2428_v37, %v2430_v24  ;;  %v8313_v28 = vld [vmem:[#allocation2 + $0x104] sm:$0xff]  ;;  %v11258_v37 = vld [vmem:[#allocation27_spill] sm:$0xff] }
 0x331   : > { %v10761_v46 = vadd.f32 %v4000_v42, %v3278_v61  ;;  %v11255_v61 = vld [vmem:[#allocation25_spill] sm:$0xff] }
 0x332   : > { %v3185_v59 = vpop.f32.mrf.mxu3  ;;  %2334 = vmatmul.bf16.gmra.mxu1 %v9113_v55  ;;  %v2725_v41 = vadd.f32 %v2631_v26, %v2296_v50  ;;  %v3795_v55 = vsel %vm1586_vm0, %v3790_v56, %v3794_v30  ;;  %v3510_v26 = vunpack.c.l.b16 %v3363_v0 }
 0x334   : > { %v3279_v13 = vadd.f32 %v3185_v59, %v2725_v41  ;;  %v10770_v9 = vpack.c.b16 %v3510_v26, %v3510_v26  ;;  %v9010_v41 = vld [vmem:[#allocation2 + $0x18] sm:$0xff]   ;;  %v9147_v26 = vld [vmem:[#allocation2 + $0xc] sm:$0xe] }
 0x336   : > { %v2633_v31 = vpop.f32.mrf.mxu2  ;;  %11256 = vst [vmem:[#allocation23_spill] sm:$0xff] %v10770_v9  ;;  %v3800_v0 = vshll.u32 %v10770_v9, 16  ;;  %v11260_v9 = vld [vmem:[#allocation29_spill] sm:$0xff] }
 0x337   : > { %v2297_v22 = vpop.f32.mrf.mxu1 }
 0x338   : > { %v4003_v58 = vpop.f32.mrf.mxu0  ;;  %v2298_v42 = vadd.f32 %v2297_v22, %v11255_v61 }
 0x339   : > { %v10765_v16 = vadd.f32 %v4003_v58, %v3279_v13  ;;  %v10774_v58 = vld [vmem:[#allocation2 + $0x20] sm:$0xff] }
 0x33a   : > { %v3187_v49 = vpop.f32.mrf.mxu3  ;;  %v2726_v59 = vadd.f32 %v2633_v31, %v2298_v42  ;;  %v5318_v31 = vshll.u32 %v9010_v41, 16  ;;  %v5323_v22 = vshll.u32 %v10774_v58, 16 }
 0x33b   : > { %11254 = vst [vmem:[#allocation21_spill] sm:$0xff] %v10765_v16  ;;  %2675 = vmatmul.bf16.gmra.mxu2 %v2431_v43  ;;  %4042 = vmatmul.bf16.gmra.mxu0 %v3795_v55  ;;  %v3802_v55 = vrot.slane %v3800_v0, 1 }
 0x33c   : > { %v3280_v27 = vadd.f32 %v3187_v49, %v2726_v59  ;;  %v3796_v49 = vshrl.u32 %v8352_v8, 16  ;;  %v5320_v59 = vrot.slane %v5318_v31, 1  ;;  %v9115_v31 = vld [vmem:[#allocation2 + $0x14] sm:$0xff] }
 0x33e   : > { %v2636_v50 = vpop.f32.mrf.mxu2  ;;  %v3798_v43 = vor.u32 %v3796_v49, %v3794_v30 }
 0x33f   : > { %3229 = vmatmul.bf16.gmra.mxu3 %v8313_v28  ;;  %v2300_v13 = vpop.f32.mrf.mxu1 }
 0x340   : > { %v4005_v17 = vpop.f32.mrf.mxu0  ;;  %v2301_v24 = vadd.f32 %v2300_v13, %v11258_v37  ;;  %v8369_v13 = vld [vmem:[#allocation2 + $0x18] sm:$0xff]  ;;  %v5325_v37 = vrot.slane %v5323_v22, 1  ;;  %v3803_v8 = vsel %vm1586_vm0, %v3798_v43, %v3802_v55 }
 0x341   : > { %v10772_v52 = vadd.f32 %v4005_v17, %v3280_v27  ;;  %v9011_v55 = vld [vmem:[#allocation2 + $0x18] sm:$0xf0] }
 0x342   : > { %v3190_v40 = vpop.f32.mrf.mxu3  ;;  %2339 = vmatmul.bf16.gmra.mxu1 %v9114_v12  ;;  %v2727_v56 = vadd.f32 %v2636_v50, %v2301_v24  ;;  %v5316_v12 = vshrl.u32 %v9010_v41, 16 }
 0x343   : > { %11257 = vst [vmem:[#allocation3_spill] sm:$0xff] %v10772_v52 }
 0x344   : > { %v3281_v61 = vadd.f32 %v3190_v40, %v2727_v56  ;;  %v5321_v50 = vor.u32 %v5320_v59, %v5316_v12  ;;  %v11261_v40 = vld [vmem:[#allocation5_spill] sm:$0xff]  ;;  %v4139_v56 = vrot.slane %v9115_v31, 1  ;;  %v9012_v59 = vld [vmem:[#allocation2 + $0x18] sm:$0xe] }
 0x345   : > { %v9148_v30 = vor.u32 %v9147_v26, %v11261_v40 }
 0x346   : > { %v2638_v42 = vpop.f32.mrf.mxu2  ;;  %v5326_v0 = vsel %vm1586_vm0, %v5321_v50, %v5325_v37  ;;  %v5910_v50 = vrot.slane %v10774_v58, 1 }
 0x347   : > { %v2302_v27 = vpop.f32.mrf.mxu1 }
 0x348   : > { %v4008_v28 = vpop.f32.mrf.mxu0  ;;  %v2303_v16 = vadd.f32 %v2302_v27, %v11260_v9  ;;  %v10788_v27 = vld [vmem:[#allocation2 + $0x28] sm:$0xff] }
 0x349   : > { %v10779_v52 = vadd.f32 %v4008_v28, %v3281_v61  ;;  %v4138_v28 = vrot.slane %v9148_v30, 1 }
 0x34a   : > { %v3192_v17 = vpop.f32.mrf.mxu3  ;;  %v2728_v24 = vadd.f32 %v2638_v42, %v2303_v16  ;;  %v11263_v16 = vld [vmem:[#allocation4_spill] sm:$0xff] }
 0x34b   : > { %11259 = vst [vmem:[#allocation25_spill] sm:$0xff] %v10779_v52  ;;  %4047 = vmatmul.bf16.gmra.mxu0 %v3803_v8  ;;  %4845 = vmatmul.bf16.vlgmr.msra.gmra.mxu2 %v8369_v13  ;;  %v4140_v43 = vsel %vm2366_vm1, %v4138_v28, %v4139_v56  ;;  %v9013_v13 = vor.u32 %v9012_v59, %v9011_v55  ;;  %v5327_v28 = vshrl.u32 %v10774_v58, 16 }
 0x34c   : > { %v3282_v49 = vadd.f32 %v3192_v17, %v2728_v24  ;;  %v5331_v17 = vshll.u32 %v10788_v27, 16 }
 0x34d   : > { %v5909_v30 = vrot.slane %v9013_v13, 1 }
 0x34e   : > { %v2641_v61 = vpop.f32.mrf.mxu2 }
 0x34f   : > { %5663 = vmatmul.bf16.vlgmr.msra.gmra.mxu3 %v5326_v0  ;;  %v2305_v22 = vpop.f32.mrf.mxu1 }
 0x350   : > { %v4010_v41 = vpop.f32.mrf.mxu0  ;;  %v2306_v42 = vadd.f32 %v2305_v22, %v11263_v16  ;;  %v11265_v22 = vld [vmem:[#allocation6_spill] sm:$0xff]  ;;  %v9116_v16 = vld [vmem:[#allocation2 + $0x1c] sm:$0xff] }
 0x351   : > { %v10785_v9 = vadd.f32 %v4010_v41, %v3282_v49  ;;  %v8370_v49 = vld [vmem:[#allocation2 + $0x20] sm:$0xff]  ;;  %v5333_v41 = vrot.slane %v5331_v17, 1 }
 0x352   : > { %v3195_v52 = vpop.f32.mrf.mxu3  ;;  %4291 = vmatmul.bf16.vlgmr.msra.gmra.mxu1 %v4140_v43  ;;  %v2729_v26 = vadd.f32 %v2641_v61, %v2306_v42  ;;  %v5911_v61 = vsel %vm2366_vm1, %v5909_v30, %v5910_v50  ;;  %v4141_v42 = vrot.slane %v9116_v16, 1  ;;  %v11267_v30 = vld [vmem:[#allocation7_spill] sm:$0xff] }
 0x353   : > { %11262 = vst [vmem:[#allocation27_spill] sm:$0xff] %v10785_v9 }
 0x354   : > { %v3283_v12 = vadd.f32 %v3195_v52, %v2729_v26  ;;  %v5329_v52 = vor.u32 %v5327_v28, %v5325_v37  ;;  %v4142_v17 = vsel %vm2366_vm1, %v4139_v56, %v4141_v42  ;;  %v5335_v56 = vshrl.u32 %v10788_v27, 16 }
 0x356   : > { %v2643_v8 = vpop.f32.mrf.mxu2  ;;  %v5334_v59 = vsel %vm1586_vm0, %v5329_v52, %v5333_v41 }
 0x357   : > { %v2307_v24 = vpop.f32.mrf.mxu1 }
 0x358   : > { %v4013_v40 = vpop.f32.mrf.mxu0  ;;  %v2308_v43 = vadd.f32 %v2307_v24, %v11265_v22  ;;  %v10802_v24 = vld [vmem:[#allocation2 + $0x30] sm:$0xff] }
 0x359   : > { %v10793_v31 = vadd.f32 %v4013_v40, %v3283_v12 }
 0x35a   : > { %v3197_v0 = vpop.f32.mrf.mxu3  ;;  %v2730_v55 = vadd.f32 %v2643_v8, %v2308_v43  ;;  %v5339_v8 = vshll.u32 %v10802_v24, 16 }
 0x35b   : > { %11264 = vst [vmem:[#allocation29_spill] sm:$0xff] %v10793_v31  ;;  %4850 = vmatmul.bf16.gmra.mxu2 %v8370_v49  ;;  %6062 = vmatmul.bf16.vlgmr.msra.gmra.mxu0 %v5911_v61 }
 0x35c   : > { %v3284_v26 = vadd.f32 %v3197_v0, %v2730_v55  ;;  %v5912_v0 = vrot.slane %v10788_v27, 1  ;;  %v5341_v16 = vrot.slane %v5339_v8, 1 }
 0x35e   : > { %v2646_v13 = vpop.f32.mrf.mxu2 }
 0x35f   : > { %5668 = vmatmul.bf16.gmra.mxu3 %v5334_v59  ;;  %v2310_v40 = vpop.f32.mrf.mxu1  ;;  %v8371_v59 = vld [vmem:[#allocation2 + $0x28] sm:$0xff] }
 0x360   : > { %v4015_v12 = vpop.f32.mrf.mxu0  ;;  %v2311_v49 = vadd.f32 %v2310_v40, %v11267_v30  ;;  %v5913_v40 = vsel %vm2366_vm1, %v5910_v50, %v5912_v0  ;;  %v9117_v30 = vld [vmem:[#allocation2 + $0x24] sm:$0xff]  ;;  %v11271_v50 = vld [vmem:[#allocation9_spill] sm:$0xff] }
 0x361   : > { %v10799_v58 = vadd.f32 %v4015_v12, %v3284_v26  ;;  %v11269_v26 = vld [vmem:[#allocation8_spill] sm:$0xff] }
 0x362   : > { %v3200_v31 = vpop.f32.mrf.mxu3  ;;  %4296 = vmatmul.bf16.gmra.mxu1 %v4142_v17  ;;  %v2731_v37 = vadd.f32 %v2646_v13, %v2311_v49  ;;  %v5337_v13 = vor.u32 %v5335_v56, %v5333_v41  ;;  %v4143_v49 = vrot.slane %v9117_v30, 1 }
 0x363   : > { %11266 = vst [vmem:[#allocation5_spill] sm:$0xff] %v10799_v58 }
 0x364   : > { %v3285_v28 = vadd.f32 %v3200_v31, %v2731_v37  ;;  %v5342_v17 = vsel %vm1586_vm0, %v5337_v13, %v5341_v16  ;;  %v4144_v8 = vsel %vm2366_vm1, %v4141_v42, %v4143_v49  ;;  %v5343_v42 = vshrl.u32 %v10802_v24, 16 }
 0x366   : > { %v2648_v22 = vpop.f32.mrf.mxu2 }
 0x367   : > { %v2312_v61 = vpop.f32.mrf.mxu1 }
 0x368   : > { %v4018_v43 = vpop.f32.mrf.mxu0  ;;  %v2313_v12 = vadd.f32 %v2312_v61, %v11269_v26  ;;  %v10816_v61 = vld [vmem:[#allocation2 + $0x38] sm:$0xff] }
 0x369   : > { %v10807_v55 = vadd.f32 %v4018_v43, %v3285_v28 }
 0x36a   : > { %v3202_v52 = vpop.f32.mrf.mxu3  ;;  %v2732_v31 = vadd.f32 %v2648_v22, %v2313_v12  ;;  %v5347_v22 = vshll.u32 %v10816_v61, 16 }
 0x36b   : > { %11268 = vst [vmem:[#allocation4_spill] sm:$0xff] %v10807_v55  ;;  %4855 = vmatmul.bf16.gmra.mxu2 %v8371_v59  ;;  %6067 = vmatmul.bf16.gmra.mxu0 %v5913_v40 }
 0x36c   : > { %v3286_v37 = vadd.f32 %v3202_v52, %v2732_v31  ;;  %v5914_v52 = vrot.slane %v10802_v24, 1  ;;  %v5349_v30 = vrot.slane %v5347_v22, 1 }
 0x36e   : > { %v2651_v28 = vpop.f32.mrf.mxu2 }
 0x36f   : > { %5673 = vmatmul.bf16.gmra.mxu3 %v5342_v17  ;;  %v2315_v55 = vpop.f32.mrf.mxu1  ;;  %v8372_v17 = vld [vmem:[#allocation2 + $0x30] sm:$0xff] }
 0x370   : > { %v4020_v43 = vpop.f32.mrf.mxu0  ;;  %v2316_v59 = vadd.f32 %v2315_v55, %v11271_v50  ;;  %v5915_v55 = vsel %vm2366_vm1, %v5912_v0, %v5914_v52  ;;  %v9118_v50 = vld [vmem:[#allocation2 + $0x2c] sm:$0xff] }
 0x371   : > { %v10813_v27 = vadd.f32 %v4020_v43, %v3286_v37  ;;  %v11273_v37 = vld [vmem:[#allocation10_spill] sm:$0xff] }
 0x372   : > { %v3205_v58 = vpop.f32.mrf.mxu3  ;;  %4301 = vmatmul.bf16.gmra.mxu1 %v4144_v8  ;;  %v2733_v41 = vadd.f32 %v2651_v28, %v2316_v59  ;;  %v5345_v28 = vor.u32 %v5343_v42, %v5341_v16  ;;  %v4145_v59 = vrot.slane %v9118_v50, 1 }
 0x373   : > { %11270 = vst [vmem:[#allocation6_spill] sm:$0xff] %v10813_v27 }
 0x374   : > { %v3287_v56 = vadd.f32 %v3205_v58, %v2733_v41  ;;  %v5350_v8 = vsel %vm1586_vm0, %v5345_v28, %v5349_v30  ;;  %v4146_v22 = vsel %vm2366_vm1, %v4143_v49, %v4145_v59  ;;  %v8373_v49 = vld [vmem:[#allocation2 + $0x38] sm:$0xff] }
 0x376   : > { %v2653_v26 = vpop.f32.mrf.mxu2 }
 0x377   : > { %v2317_v40 = vpop.f32.mrf.mxu1 }
 0x378   : > { %v4023_v12 = vpop.f32.mrf.mxu0  ;;  %v2318_v43 = vadd.f32 %v2317_v40, %v11273_v37  ;;  %v11275_v40 = vld [vmem:[#allocation12_spill] sm:$0xff]  ;;  %v5916_v37 = vrot.slane %v10816_v61, 1 }
 0x379   : > { %v10821_v31 = vadd.f32 %v4023_v12, %v3287_v56 }
 0x37a   : > { %v3207_v13 = vpop.f32.mrf.mxu3  ;;  %v2734_v58 = vadd.f32 %v2653_v26, %v2318_v43 }
 0x37b   : > { %11272 = vst [vmem:[#allocation7_spill] sm:$0xff] %v10821_v31  ;;  %4860 = vmatmul.bf16.gmra.mxu2 %v8372_v17  ;;  %6072 = vmatmul.bf16.gmra.mxu0 %v5915_v55  ;;  %v10831_v17 = vld [vmem:[#allocation2 + $0x40] sm:$0xff] }
 0x37c   : > { %v3288_v41 = vadd.f32 %v3207_v13, %v2734_v58  ;;  %v5351_v13 = vshrl.u32 %v10816_v61, 16  ;;  %v5355_v43 = vshll.u32 %v10831_v17, 16  ;;  %v9119_v61 = vld [vmem:[#allocation2 + $0x34] sm:$0xff] }
 0x37e   : > { %v2656_v56 = vpop.f32.mrf.mxu2  ;;  %v5353_v50 = vor.u32 %v5351_v13, %v5349_v30  ;;  %v10844_v13 = vld [vmem:[#allocation2 + $0x48] sm:$0xff] }
 0x37f   : > { %5678 = vmatmul.bf16.gmra.mxu3 %v5350_v8  ;;  %v2320_v31 = vpop.f32.mrf.mxu1 }
 0x380   : > { %v4025_v12 = vpop.f32.mrf.mxu0  ;;  %v2321_v0 = vadd.f32 %v2320_v31, %v11275_v40  ;;  %v11277_v31 = vld [vmem:[#allocation14_spill] sm:$0xff]  ;;  %v4147_v40 = vrot.slane %v9119_v61, 1 }
 0x381   : > { %v10827_v24 = vadd.f32 %v4025_v12, %v3288_v41  ;;  %v5917_v12 = vsel %vm2366_vm1, %v5914_v52, %v5916_v37  ;;  %v11279_v52 = vld [vmem:[#allocation16_spill] sm:$0xff]  ;;  %v11281_v61 = vld [vmem:[#allocation18_spill] sm:$0xff] }
 0x382   : > { %v3210_v27 = vpop.f32.mrf.mxu3  ;;  %4306 = vmatmul.bf16.gmra.mxu1 %v4146_v22  ;;  %v2735_v16 = vadd.f32 %v2656_v56, %v2321_v0  ;;  %v4148_v30 = vsel %vm2366_vm1, %v4145_v59, %v4147_v40  ;;  %v5359_v59 = vshrl.u32 %v10831_v17, 16 }
 0x383   : > { %11274 = vst [vmem:[#allocation8_spill] sm:$0xff] %v10827_v24 }
 0x384   : > { %v3289_v26 = vadd.f32 %v3210_v27, %v2735_v16  ;;  %v5357_v27 = vrot.slane %v5355_v43, 1  ;;  %v5363_v43 = vshll.u32 %v10844_v13, 16 }
 0x386   : > { %v2658_v42 = vpop.f32.mrf.mxu2  ;;  %v5358_v22 = vsel %vm1586_vm0, %v5353_v50, %v5357_v27 }
 0x387   : > { %v2322_v28 = vpop.f32.mrf.mxu1 }
 0x388   : > { %v4028_v55 = vpop.f32.mrf.mxu0  ;;  %v2323_v41 = vadd.f32 %v2322_v28, %v11277_v31  ;;  %v5918_v31 = vrot.slane %v10831_v17, 1 }
 0x389   : > { %v10836_v8 = vadd.f32 %v4028_v55, %v3289_v26 }
 0x38a   : > { %v3212_v58 = vpop.f32.mrf.mxu3  ;;  %v2736_v56 = vadd.f32 %v2658_v42, %v2323_v41 }
 0x38b   : > { %11276 = vst [vmem:[#allocation9_spill] sm:$0xff] %v10836_v8  ;;  %4865 = vmatmul.bf16.gmra.mxu2 %v8373_v49  ;;  %6077 = vmatmul.bf16.gmra.mxu0 %v5917_v12 }
 0x38c   : > { %v3290_v0 = vadd.f32 %v3212_v58, %v2736_v56 }
 0x38e   : > { %v2661_v16 = vpop.f32.mrf.mxu2 }
 0x38f   : > { %5683 = vmatmul.bf16.gmra.mxu3 %v5358_v22  ;;  %v2325_v26 = vpop.f32.mrf.mxu1  ;;  %v5365_v22 = vrot.slane %v5363_v43, 1 }
 0x390   : > { %v4030_v24 = vpop.f32.mrf.mxu0  ;;  %v2326_v28 = vadd.f32 %v2325_v26, %v11279_v52  ;;  %v5919_v26 = vsel %vm2366_vm1, %v5916_v37, %v5918_v31  ;;  %v9120_v52 = vld [vmem:[#allocation2 + $0x3c] sm:$0xff]  ;;  %v11283_v37 = vld [vmem:[#allocation20_spill] sm:$0xff] }
 0x391   : > { %v10841_v8 = vadd.f32 %v4030_v24, %v3290_v0  ;;  %v8374_v24 = vld [vmem:[#allocation2 + $0x40] sm:$0xff] }
 0x392   : > { %v3215_v55 = vpop.f32.mrf.mxu3  ;;  %4311 = vmatmul.bf16.gmra.mxu1 %v4148_v30  ;;  %v2737_v42 = vadd.f32 %v2661_v16, %v2326_v28  ;;  %v5361_v16 = vor.u32 %v5359_v59, %v5357_v27  ;;  %v4149_v28 = vrot.slane %v9120_v52, 1 }
 0x393   : > { %11278 = vst [vmem:[#allocation10_spill] sm:$0xff] %v10841_v8 }
 0x394   : > { %v3291_v49 = vadd.f32 %v3215_v55, %v2737_v42  ;;  %v5366_v30 = vsel %vm1586_vm0, %v5361_v16, %v5365_v22  ;;  %v4150_v43 = vsel %vm2366_vm1, %v4147_v40, %v4149_v28  ;;  %v5367_v40 = vshrl.u32 %v10844_v13, 16 }
 0x396   : > { %v2663_v50 = vpop.f32.mrf.mxu2 }
 0x397   : > { %v2327_v41 = vpop.f32.mrf.mxu1 }
 0x398   : > { %v4033_v58 = vpop.f32.mrf.mxu0  ;;  %v2328_v0 = vadd.f32 %v2327_v41, %v11281_v61  ;;  %v10858_v41 = vld [vmem:[#allocation2 + $0x50] sm:$0xff] }
 0x399   : > { %v10849_v56 = vadd.f32 %v4033_v58, %v3291_v49 }
 0x39a   : > { %v3217_v12 = vpop.f32.mrf.mxu3  ;;  %v2738_v55 = vadd.f32 %v2663_v50, %v2328_v0  ;;  %v5371_v50 = vshll.u32 %v10858_v41, 16 }
 0x39b   : > { %11280 = vst [vmem:[#allocation12_spill] sm:$0xff] %v10849_v56  ;;  %4870 = vmatmul.bf16.gmra.mxu2 %v8374_v24  ;;  %6082 = vmatmul.bf16.gmra.mxu0 %v5919_v26 }
 0x39c   : > { %v3292_v42 = vadd.f32 %v3217_v12, %v2738_v55  ;;  %v5920_v12 = vrot.slane %v10844_v13, 1  ;;  %v5373_v52 = vrot.slane %v5371_v50, 1 }
 0x39e   : > { %v2666_v49 = vpop.f32.mrf.mxu2 }
 0x39f   : > { %5688 = vmatmul.bf16.gmra.mxu3 %v5366_v30  ;;  %v2330_v56 = vpop.f32.mrf.mxu1  ;;  %v8375_v30 = vld [vmem:[#allocation2 + $0x48] sm:$0xff] }
 0x3a0   : > { %v4035_v58 = vpop.f32.mrf.mxu0  ;;  %v2331_v24 = vadd.f32 %v2330_v56, %v11283_v37  ;;  %v5921_v56 = vsel %vm2366_vm1, %v5918_v31, %v5920_v12  ;;  %v11287_v31 = vld [vmem:[#allocation24_spill] sm:$0xff] }
 0x3a1   : > { %v10855_v17 = vadd.f32 %v4035_v58, %v3292_v42  ;;  %v11285_v42 = vld [vmem:[#allocation22_spill] sm:$0xff] }
 0x3a2   : > { %v3220_v8 = vpop.f32.mrf.mxu3  ;;  %4316 = vmatmul.bf16.gmra.mxu1 %v4150_v43  ;;  %v2739_v27 = vadd.f32 %v2666_v49, %v2331_v24  ;;  %v5369_v49 = vor.u32 %v5367_v40, %v5365_v22 }
 0x3a3   : > { %11282 = vst [vmem:[#allocation14_spill] sm:$0xff] %v10855_v17 }
 0x3a4   : > { %v3293_v59 = vadd.f32 %v3220_v8, %v2739_v27  ;;  %v5374_v43 = vsel %vm1586_vm0, %v5369_v49, %v5373_v52  ;;  %v9121_v27 = vld [vmem:[#allocation2 + $0x44] sm:$0xff] }
 0x3a6   : > { %v2668_v61 = vpop.f32.mrf.mxu2 }
 0x3a7   : > { %v2332_v26 = vpop.f32.mrf.mxu1 }
 0x3a8   : > { %v4038_v0 = vpop.f32.mrf.mxu0  ;;  %v2333_v58 = vadd.f32 %v2332_v26, %v11285_v42  ;;  %v10872_v26 = vld [vmem:[#allocation2 + $0x58] sm:$0xff]  ;;  %v5922_v42 = vrot.slane %v10858_v41, 1 }
 0x3a9   : > { %v10863_v55 = vadd.f32 %v4038_v0, %v3293_v59  ;;  %v4151_v59 = vrot.slane %v9121_v27, 1  ;;  %v11289_v27 = vld [vmem:[#allocation26_spill] sm:$0xff] }
 0x3aa   : > { %v3222_v16 = vpop.f32.mrf.mxu3  ;;  %v2740_v8 = vadd.f32 %v2668_v61, %v2333_v58  ;;  %v5379_v61 = vshll.u32 %v10872_v26, 16 }
 0x3ab   : > { %11284 = vst [vmem:[#allocation16_spill] sm:$0xff] %v10863_v55  ;;  %4875 = vmatmul.bf16.gmra.mxu2 %v8375_v30  ;;  %6087 = vmatmul.bf16.gmra.mxu0 %v5921_v56  ;;  %v4152_v50 = vsel %vm2366_vm1, %v4149_v28, %v4151_v59  ;;  %v5375_v28 = vshrl.u32 %v10858_v41, 16 }
 0x3ac   : > { %v3294_v37 = vadd.f32 %v3222_v16, %v2740_v8 }
 0x3ae   : > { %v2671_v24 = vpop.f32.mrf.mxu2 }
 0x3af   : > { %5693 = vmatmul.bf16.gmra.mxu3 %v5374_v43  ;;  %v2335_v55 = vpop.f32.mrf.mxu1  ;;  %v8376_v43 = vld [vmem:[#allocation2 + $0x50] sm:$0xff] }
 0x3b0   : > { %v4040_v0 = vpop.f32.mrf.mxu0  ;;  %v2336_v30 = vadd.f32 %v2335_v55, %v11287_v31  ;;  %v5923_v55 = vsel %vm2366_vm1, %v5920_v12, %v5922_v42  ;;  %v9122_v31 = vld [vmem:[#allocation2 + $0x4c] sm:$0xff]  ;;  %v11291_v12 = vld [vmem:[#allocation28_spill] sm:$0xff] }
 0x3b1   : > { %v10869_v13 = vadd.f32 %v4040_v0, %v3294_v37  ;;  %v5381_v37 = vrot.slane %v5379_v61, 1 }
 0x3b2   : > { %v3225_v17 = vpop.f32.mrf.mxu3  ;;  %4321 = vmatmul.bf16.gmra.mxu1 %v4152_v50  ;;  %v2741_v22 = vadd.f32 %v2671_v24, %v2336_v30  ;;  %v5377_v24 = vor.u32 %v5375_v28, %v5373_v52  ;;  %v4153_v30 = vrot.slane %v9122_v31, 1 }
 0x3b3   : > { %11286 = vst [vmem:[#allocation18_spill] sm:$0xff] %v10869_v13 }
 0x3b4   : > { %v3295_v16 = vadd.f32 %v3225_v17, %v2741_v22  ;;  %v5382_v50 = vsel %vm1586_vm0, %v5377_v24, %v5381_v37  ;;  %v4154_v61 = vsel %vm2366_vm1, %v4151_v59, %v4153_v30  ;;  %v5383_v59 = vshrl.u32 %v10872_v26, 16 }
 0x3b6   : > { %v2673_v40 = vpop.f32.mrf.mxu2 }
 0x3b7   : > { %v2337_v56 = vpop.f32.mrf.mxu1 }
 0x3b8   : > { %v4043_v58 = vpop.f32.mrf.mxu0  ;;  %v2338_v0 = vadd.f32 %v2337_v56, %v11289_v27  ;;  %v10886_v56 = vld [vmem:[#allocation2 + $0x60] sm:$0xff] }
 0x3b9   : > { %v10877_v8 = vadd.f32 %v4043_v58, %v3295_v16 }
 0x3ba   : > { %v3227_v49 = vpop.f32.mrf.mxu3  ;;  %v2742_v17 = vadd.f32 %v2673_v40, %v2338_v0  ;;  %v5387_v40 = vshll.u32 %v10886_v56, 16 }
 0x3bb   : > { %11288 = vst [vmem:[#allocation20_spill] sm:$0xff] %v10877_v8  ;;  %4880 = vmatmul.bf16.gmra.mxu2 %v8376_v43  ;;  %6092 = vmatmul.bf16.gmra.mxu0 %v5923_v55 }
 0x3bc   : > { %v3296_v22 = vadd.f32 %v3227_v49, %v2742_v17  ;;  %v5924_v49 = vrot.slane %v10872_v26, 1  ;;  %v5389_v31 = vrot.slane %v5387_v40, 1 }
 0x3be   : > { %v2676_v16 = vpop.f32.mrf.mxu2 }
 0x3bf   : > { %5698 = vmatmul.bf16.gmra.mxu3 %v5382_v50  ;;  %v2340_v8 = vpop.f32.mrf.mxu1  ;;  %v8377_v50 = vld [vmem:[#allocation2 + $0x58] sm:$0xff] }
 0x3c0   : > { %v4045_v58 = vpop.f32.mrf.mxu0  ;;  %v2341_v43 = vadd.f32 %v2340_v8, %v11291_v12  ;;  %v5925_v8 = vsel %vm2366_vm1, %v5922_v42, %v5924_v49  ;;  %v9123_v12 = vld [vmem:[#allocation2 + $0x54] sm:$0xff] }
 0x3c1   : > { %v10883_v41 = vadd.f32 %v4045_v58, %v3296_v22  ;;  %v11293_v22 = vld [vmem:[#allocation30_spill] sm:$0xff] }
 0x3c2   : > { %v3230_v13 = vpop.f32.mrf.mxu3  ;;  %4326 = vmatmul.bf16.gmra.mxu1 %v4154_v61  ;;  %v2743_v52 = vadd.f32 %v2676_v16, %v2341_v43  ;;  %v5385_v16 = vor.u32 %v5383_v59, %v5381_v37  ;;  %v4155_v43 = vrot.slane %v9123_v12, 1 }
 0x3c3   : > { %11290 = vst [vmem:[#allocation22_spill] sm:$0xff] %v10883_v41 }
 0x3c4   : > { %v3297_v28 = vadd.f32 %v3230_v13, %v2743_v52  ;;  %v5390_v61 = vsel %vm1586_vm0, %v5385_v16, %v5389_v31  ;;  %v8378_v16 = vld [vmem:[#allocation2 + $0x60] sm:$0xff] }
 0x3c6   : > { %v2678_v27 = vpop.f32.mrf.mxu2 }
 0x3c7   : > { %v2342_v55 = vpop.f32.mrf.mxu1 }
 0x3c8   : > { %v4048_v0 = vpop.f32.mrf.mxu0  ;;  %v2343_v58 = vadd.f32 %v2342_v55, %v11293_v22  ;;  %v4156_v55 = vsel %vm2366_vm1, %v4153_v30, %v4155_v43  ;;  %v10900_v22 = vld [vmem:[#allocation2 + $0x68] sm:$0xff] }
 0x3c9   : > { %v10891_v17 = vadd.f32 %v4048_v0, %v3297_v28  ;;  %v5395_v37 = vshll.u32 %v10900_v22, 16 }
 0x3ca   : > { %v3232_v24 = vpop.f32.mrf.mxu3  ;;  %v2744_v13 = vadd.f32 %v2678_v27, %v2343_v58 }
 0x3cb   : > { %11292 = vst [vmem:[#allocation24_spill] sm:$0xff] %v10891_v17  ;;  %4885 = vmatmul.bf16.gmra.mxu2 %v8377_v50  ;;  %6097 = vmatmul.bf16.gmra.mxu0 %v5925_v8  ;;  %v5926_v50 = vrot.slane %v10886_v56, 1 }
 0x3cc   : > { %v3298_v52 = vadd.f32 %v3232_v24, %v2744_v13  ;;  %v5391_v13 = vshrl.u32 %v10886_v56, 16  ;;  %v6354_v56 = vpop.permute.xlu2 %6353 }
 0x3cd   : > { %v5927_v12 = vsel %vm2366_vm1, %v5924_v49, %v5926_v50 }
 0x3ce   : > { %v4846_v28 = vpop.f32.mrf.mxu2 }
 0x3cf   : > { %5703 = vmatmul.bf16.gmra.mxu3 %v5390_v61  ;;  %v4292_v26 = vpop.f32.mrf.mxu1  ;;  %v5397_v61 = vrot.slane %v5395_v37, 1 }
 0x3d0   : > { %v4050_v0 = vpop.f32.mrf.mxu0  ;;  %v4452_v42 = vadd.f32 %v4292_v26, %v10503_v19  ;;  %v5393_v19 = vor.u32 %v5391_v13, %v5389_v31  ;;  %v6359_v31 = vpop.permute.xlu0 %6358 }
 0x3d1   : > { %v10897_v17 = vadd.f32 %v4050_v0, %v3298_v52 }
 0x3d2   : > { %v5664_v40 = vpop.f32.mrf.mxu3  ;;  %4331 = vmatmul.bf16.gmra.mxu1 %v4156_v55  ;;  %v5006_v24 = vadd.f32 %v4846_v28, %v4452_v42  ;;  %v5398_v28 = vsel %vm1586_vm0, %v5393_v19, %v5397_v61  ;;  %v9124_v55 = vld [vmem:[#allocation2 + $0x5c] sm:$0xff] }
 0x3d3   : > { %11294 = vst [vmem:[#allocation26_spill] sm:$0xff] %v10897_v17  ;;  %v4157_v42 = vrot.slane %v9124_v55, 1 }
 0x3d4   : > { %v5824_v52 = vadd.f32 %v5664_v40, %v5006_v24  ;;  %v10911_v24 = vld [vmem:[#allocation2 + $0x70] sm:$0xff] }
 0x3d5   : > { %v4158_v40 = vsel %vm2366_vm1, %v4155_v43, %v4157_v42  ;;  %v5403_v43 = vshll.u32 %v10911_v24, 16 }
 0x3d6   : > { %v4848_v27 = vpop.f32.mrf.mxu2 }
 0x3d7   : > { %v4294_v58 = vpop.f32.mrf.mxu1 }
 0x3d8   : > { %v6063_v59 = vpop.f32.mrf.mxu0  ;;  %v4453_v30 = vadd.f32 %v4294_v58, %v10508_v53 }
 0x3d9   : > { %v6223_v26 = vadd.f32 %v6063_v59, %v5824_v52  ;;  %v5928_v52 = vrot.slane %v10900_v22, 1 }
 0x3da   : > { %v5666_v8 = vpop.f32.mrf.mxu3  ;;  %v5007_v0 = vadd.f32 %v4848_v27, %v4453_v30 }
 0x3db   : > { %4890 = vmatmul.bf16.gmra.mxu2 %v8378_v16  ;;  %6102 = vmatmul.bf16.gmra.mxu0 %v5927_v12  ;;  %v6671_v9 = vmul.f32 %v6354_v56, %v6223_v26 }
 0x3dc   : > { %v5825_v41 = vadd.f32 %v5666_v8, %v5007_v0 }
 0x3dd   : > { %v6805_v13 = vmul.f32 %v6671_v9, %v6223_v26 }
 0x3de   : > { %v4851_v17 = vpop.f32.mrf.mxu2 }
 0x3df   : > { %5708 = vmatmul.bf16.gmra.mxu3 %v5398_v28  ;;  %v4297_v53 = vpop.f32.mrf.mxu1 }
 0x3e0   : > { %v6065_v37 = vpop.f32.mrf.mxu0  ;;  %v4454_v27 = vadd.f32 %v4297_v53, %v10514_v60  ;;  %v5399_v53 = vshrl.u32 %v10900_v22, 16 }
 0x3e1   : > { %v6224_v49 = vadd.f32 %v6065_v37, %v5825_v41  ;;  %v8379_v37 = vld [vmem:[#allocation2 + $0x68] sm:$0xff] }
 0x3e2   : > { %v5669_v58 = vpop.f32.mrf.mxu3  ;;  %4336 = vmatmul.bf16.gmra.mxu1 %v4158_v40  ;;  %v5008_v16 = vadd.f32 %v4851_v17, %v4454_v27  ;;  %v5405_v40 = vrot.slane %v5403_v43, 1  ;;  %v6364_v17 = vpop.permute.xlu1 %6363 }
 0x3e3   : > { %v6672_v59 = vmul.f32 %v6359_v31, %v6224_v49  ;;  %v8782_v8 = vpack.c.bf16 %v6224_v49, %v6223_v26  ;;  %v5929_v26 = vsel %vm2366_vm1, %v5926_v50, %v5928_v52  ;;  %v5401_v31 = vor.u32 %v5399_v53, %v5397_v61  ;;  %v6369_v61 = vpop.permute.xlu2 %6368 }
 0x3e4   : > { %v5826_v60 = vadd.f32 %v5669_v58, %v5008_v16  ;;  %v9125_v16 = vld [vmem:[#allocation2 + $0x64] sm:$0xff] }
 0x3e5   : > { %v6735_v30 = vadd.f32 %v6672_v59, %v6671_v9  ;;  %v6806_v41 = vmul.f32 %v6672_v59, %v6224_v49  ;;  %8783 = vst [vmem:[%s10917_s29] sm:$0xff] %v8782_v8   ;;  %v5406_v8 = vsel %vm1586_vm0, %v5401_v31, %v5405_v40 }
 0x3e6   : > { %v4853_v12 = vpop.f32.mrf.mxu2 }
 0x3e7   : > { %v6869_v19 = vadd.f32 %v6806_v41, %v6805_v13  ;;  %v4299_v28 = vpop.f32.mrf.mxu1  ;;  %v4159_v13 = vrot.slane %v9125_v16, 1 }
 0x3e8   : > { %v6068_v0 = vpop.f32.mrf.mxu0  ;;  %v4455_v9 = vadd.f32 %v4299_v28, %v10519_v21 }
 0x3e9   : > { %v6225_v56 = vadd.f32 %v6068_v0, %v5826_v60  ;;  %v4160_v28 = vsel %vm2366_vm1, %v4157_v42, %v4159_v13 }
 0x3ea   : > { %v5671_v55 = vpop.f32.mrf.mxu3  ;;  %v5009_v27 = vadd.f32 %v4853_v12, %v4455_v9 }
 0x3eb   : > { %v6673_v49 = vmul.f32 %v6364_v17, %v6225_v56  ;;  %4895 = vmatmul.bf16.gmra.mxu2 %v8379_v37  ;;  %6107 = vmatmul.bf16.gmra.mxu0 %v5929_v26  ;;  %v10927_v37 = vld [vmem:[#allocation2 + $0x78] sm:$0xff] }
 0x3ec   : > { %v5827_v22 = vadd.f32 %v5671_v55, %v5009_v27 }
 0x3ed   : > { %v6736_v58 = vadd.f32 %v6735_v30, %v6673_v49  ;;  %v6807_v59 = vmul.f32 %v6673_v49, %v6225_v56  ;;  %v5930_v49 = vrot.slane %v10911_v24, 1 }
 0x3ee   : > { %v4856_v41 = vpop.f32.mrf.mxu2 }
 0x3ef   : > { %5713 = vmatmul.bf16.gmra.mxu3 %v5406_v8  ;;  %v6870_v43 = vadd.f32 %v6869_v19, %v6807_v59  ;;  %v4302_v21 = vpop.f32.mrf.mxu1  ;;  %v5411_v19 = vshll.u32 %v10927_v37, 16 }
 0x3f0   : > { %v6070_v60 = vpop.f32.mrf.mxu0  ;;  %v4456_v30 = vadd.f32 %v4302_v21, %v10534_v4  ;;  %v5407_v4 = vshrl.u32 %v10911_v24, 16 }
 0x3f1   : > { %v6226_v50 = vadd.f32 %v6070_v60, %v5827_v22  ;;  %v8380_v22 = vld [vmem:[#allocation2 + $0x70] sm:$0xff]  ;;  %v5413_v60 = vrot.slane %v5411_v19, 1 }
 0x3f2   : > { %v5674_v0 = vpop.f32.mrf.mxu3  ;;  %4341 = vmatmul.bf16.gmra.mxu1 %v4160_v28  ;;  %v5010_v17 = vadd.f32 %v4856_v41, %v4456_v30  ;;  %v5931_v41 = vsel %vm2366_vm1, %v5928_v52, %v5930_v49  ;;  %v9126_v30 = vld [vmem:[#allocation2 + $0x6c] sm:$0xff] }
 0x3f3   : > { %v6674_v12 = vmul.f32 %v6369_v61, %v6226_v50  ;;  %v8787_v53 = vpack.c.bf16 %v6226_v50, %v6225_v56  ;;  %v6374_v56 = vpop.permute.xlu0 %6373 }
 0x3f4   : > { %v5828_v31 = vadd.f32 %v5674_v0, %v5010_v17 }
 0x3f5   : > { %v6737_v9 = vadd.f32 %v6736_v58, %v6674_v12  ;;  %v6808_v26 = vmul.f32 %v6674_v12, %v6226_v50  ;;  %9014 = vst [vmem:[%s10917_s29 + $0x8] sm:$0xff] %v8787_v53   ;;  %v5409_v50 = vor.u32 %v5407_v4, %v5405_v40  ;;  %v4161_v12 = vrot.slane %v9126_v30, 1  ;;  %v6384_v30 = vpop.permute.xlu2 %6383 }
 0x3f6   : > { %v4858_v55 = vpop.f32.mrf.mxu2 }
 0x3f7   : > { %v6871_v27 = vadd.f32 %v6870_v43, %v6808_v26  ;;  %v4304_v59 = vpop.f32.mrf.mxu1  ;;  %v5414_v61 = vsel %vm1586_vm0, %v5409_v50, %v5413_v60 }
 0x3f8   : > { %v6073_v42 = vpop.f32.mrf.mxu0  ;;  %v4457_v58 = vadd.f32 %v4304_v59, %v10542_v11  ;;  %v10939_v59 = vld [vmem:[#allocation2 + $0x80] sm:$0xff] }
 0x3f9   : > { %v6227_v16 = vadd.f32 %v6073_v42, %v5828_v31  ;;  %v4162_v31 = vsel %vm2366_vm1, %v4159_v13, %v4161_v12  ;;  %v6379_v42 = vpop.permute.xlu1 %6378  ;;  %v5419_v13 = vshll.u32 %v10939_v59, 16 }
 0x3fa   : > { %v5676_v8 = vpop.f32.mrf.mxu3  ;;  %v5011_v28 = vadd.f32 %v4858_v55, %v4457_v58 }
 0x3fb   : > { %v6675_v21 = vmul.f32 %v6374_v56, %v6227_v16  ;;  %4900 = vmatmul.bf16.gmra.mxu2 %v8380_v22  ;;  %6112 = vmatmul.bf16.gmra.mxu0 %v5931_v41 }
 0x3fc   : > { %v5829_v24 = vadd.f32 %v5676_v8, %v5011_v28 }
 0x3fd   : > { %v6738_v0 = vadd.f32 %v6737_v9, %v6675_v21  ;;  %v6809_v43 = vmul.f32 %v6675_v21, %v6227_v16  ;;  %v5415_v21 = vshrl.u32 %v10927_v37, 16 }
 0x3fe   : > { %v4861_v53 = vpop.f32.mrf.mxu2 }
 0x3ff   : > { %5718 = vmatmul.bf16.gmra.mxu3 %v5414_v61  ;;  %v6872_v17 = vadd.f32 %v6871_v27, %v6809_v43  ;;  %v4307_v11 = vpop.f32.mrf.mxu1  ;;  %v5932_v27 = vrot.slane %v10927_v37, 1  ;;  %v5417_v61 = vor.u32 %v5415_v21, %v5413_v60  ;;  %v10950_v21 = vld [vmem:[#allocation2 + $0x88] sm:$0xff] }
 0x400   : > { %v6075_v26 = vpop.f32.mrf.mxu0  ;;  %v4458_v40 = vadd.f32 %v4307_v11, %v10546_v29 }
 0x401   : > { %v6228_v52 = vadd.f32 %v6075_v26, %v5829_v24  ;;  %v5421_v26 = vrot.slane %v5419_v13, 1 }
 0x402   : > { %v5679_v19 = vpop.f32.mrf.mxu3  ;;  %4346 = vmatmul.bf16.gmra.mxu1 %v4162_v31  ;;  %v5012_v22 = vadd.f32 %v4861_v53, %v4458_v40  ;;  %v5933_v53 = vsel %vm2366_vm1, %v5930_v49, %v5932_v27 }
 0x403   : > { %v6676_v9 = vmul.f32 %v6379_v42, %v6228_v52  ;;  %v8792_v55 = vpack.c.bf16 %v6228_v52, %v6227_v16  ;;  %v8381_v16 = vld [vmem:[#allocation2 + $0x78] sm:$0xff] }
 0x404   : > { %v5830_v58 = vadd.f32 %v5679_v19, %v5012_v22  ;;  %v5422_v19 = vsel %vm1586_vm0, %v5417_v61, %v5421_v26  ;;  %v5423_v61 = vshrl.u32 %v10939_v59, 16 }
 0x405   : > { %v6739_v4 = vadd.f32 %v6738_v0, %v6676_v9  ;;  %v6810_v56 = vmul.f32 %v6676_v9, %v6228_v52  ;;  %9015 = vst [vmem:[%s10917_s29 + $0x10] sm:$0xff] %v8792_v55   ;;  %v9127_v52 = vld [vmem:[#allocation2 + $0x74] sm:$0xff] }
 0x406   : > { %v4863_v8 = vpop.f32.mrf.mxu2  ;;  %v4163_v31 = vrot.slane %v9127_v52, 1 }
 0x407   : > { %v6873_v41 = vadd.f32 %v6872_v17, %v6810_v56  ;;  %v4309_v29 = vpop.f32.mrf.mxu1  ;;  %v6389_v56 = vpop.permute.xlu0 %6388 }
 0x408   : > { %v6078_v50 = vpop.f32.mrf.mxu0  ;;  %v4459_v0 = vadd.f32 %v4309_v29, %v10551_v1  ;;  %v4164_v22 = vsel %vm2366_vm1, %v4161_v12, %v4163_v31 }
 0x409   : > { %v6229_v43 = vadd.f32 %v6078_v50, %v5830_v58 }
 0x40a   : > { %v5681_v28 = vpop.f32.mrf.mxu3  ;;  %v5013_v17 = vadd.f32 %v4863_v8, %v4459_v0  ;;  %v5934_v0 = vrot.slane %v10939_v59, 1  ;;  %v9128_v59 = vld [vmem:[#allocation2 + $0x7c] sm:$0xff] }
 0x40b   : > { %v6677_v24 = vmul.f32 %v6384_v30, %v6229_v43  ;;  %4905 = vmatmul.bf16.gmra.mxu2 %v8381_v16  ;;  %6117 = vmatmul.bf16.gmra.mxu0 %v5933_v53  ;;  %v5427_v30 = vshll.u32 %v10950_v21, 16 }
 0x40c   : > { %v5831_v40 = vadd.f32 %v5681_v28, %v5013_v17  ;;  %v5425_v17 = vor.u32 %v5423_v61, %v5421_v26 }
 0x40d   : > { %v6740_v11 = vadd.f32 %v6739_v4, %v6677_v24  ;;  %v6811_v37 = vmul.f32 %v6677_v24, %v6229_v43 }
 0x40e   : > { %v4866_v42 = vpop.f32.mrf.mxu2 }
 0x40f   : > { %5723 = vmatmul.bf16.gmra.mxu3 %v5422_v19  ;;  %v6874_v60 = vadd.f32 %v6873_v41, %v6811_v37  ;;  %v4312_v1 = vpop.f32.mrf.mxu1  ;;  %v6394_v37 = vpop.permute.xlu1 %6393  ;;  %v5935_v19 = vsel %vm2366_vm1, %v5932_v27, %v5934_v0 }
 0x410   : > { %v6080_v9 = vpop.f32.mrf.mxu0  ;;  %v4460_v8 = vadd.f32 %v4312_v1, %v10555_v39 }
 0x411   : > { %v6230_v49 = vadd.f32 %v6080_v9, %v5831_v40 }
 0x412   : > { %v5684_v55 = vpop.f32.mrf.mxu3  ;;  %4351 = vmatmul.bf16.gmra.mxu1 %v4164_v22  ;;  %v5014_v13 = vadd.f32 %v4866_v42, %v4460_v8  ;;  %v5429_v42 = vrot.slane %v5427_v30, 1 }
 0x413   : > { %v6678_v4 = vmul.f32 %v6389_v56, %v6230_v49  ;;  %v8797_v58 = vpack.c.bf16 %v6230_v49, %v6229_v43  ;;  %v8382_v43 = vld [vmem:[#allocation2 + $0x80] sm:$0xff] }
 0x414   : > { %v5832_v41 = vadd.f32 %v5684_v55, %v5014_v13  ;;  %v5430_v1 = vsel %vm1586_vm0, %v5425_v17, %v5429_v42  ;;  %v4165_v55 = vrot.slane %v9128_v59, 1  ;;  %v6399_v13 = vpop.permute.xlu2 %6398 }
 0x415   : > { %v6741_v50 = vadd.f32 %v6740_v11, %v6678_v4  ;;  %v6812_v29 = vmul.f32 %v6678_v4, %v6230_v49  ;;  %9016 = vst [vmem:[%s10917_s29 + $0x18] sm:$0xff] %v8797_v58   ;;  %v10960_v58 = vld [vmem:[#allocation2 + $0x90] sm:$0xff] }
 0x416   : > { %v4868_v28 = vpop.f32.mrf.mxu2  ;;  %v4166_v4 = vsel %vm2366_vm1, %v4163_v31, %v4165_v55 }
 0x417   : > { %v6875_v16 = vadd.f32 %v6874_v60, %v6812_v29  ;;  %v4314_v39 = vpop.f32.mrf.mxu1 }
 0x418   : > { %v6083_v12 = vpop.f32.mrf.mxu0  ;;  %v4461_v11 = vadd.f32 %v4314_v39, %v10560_v7  ;;  %v5936_v39 = vrot.slane %v10950_v21, 1 }
 0x419   : > { %v6231_v24 = vadd.f32 %v6083_v12, %v5832_v41 }
 0x41a   : > { %v5686_v53 = vpop.f32.mrf.mxu3  ;;  %v5015_v40 = vadd.f32 %v4868_v28, %v4461_v11 }
 0x41b   : > { %v6679_v52 = vmul.f32 %v6394_v37, %v6231_v24  ;;  %4910 = vmatmul.bf16.gmra.mxu2 %v8382_v43  ;;  %6122 = vmatmul.bf16.gmra.mxu0 %v5935_v19  ;;  %v8383_v19 = vld [vmem:[#allocation2 + $0x88] sm:$0xff] }
 0x41c   : > { %v5833_v22 = vadd.f32 %v5686_v53, %v5015_v40 }
 0x41d   : > { %v6742_v60 = vadd.f32 %v6741_v50, %v6679_v52  ;;  %v6813_v9 = vmul.f32 %v6679_v52, %v6231_v24 }
 0x41e   : > { %v4871_v49 = vpop.f32.mrf.mxu2 }
 0x41f   : > { %5728 = vmatmul.bf16.gmra.mxu3 %v5430_v1  ;;  %v6876_v26 = vadd.f32 %v6875_v16, %v6813_v9  ;;  %v4317_v7 = vpop.f32.mrf.mxu1  ;;  %v5435_v16 = vshll.u32 %v10960_v58, 16 }
 0x420   : > { %v6085_v56 = vpop.f32.mrf.mxu0  ;;  %v4462_v50 = vadd.f32 %v4317_v7, %v10564_v33  ;;  %v5431_v33 = vshrl.u32 %v10950_v21, 16  ;;  %v9129_v21 = vld [vmem:[#allocation2 + $0x84] sm:$0xff] }
 0x421   : > { %v6232_v27 = vadd.f32 %v6085_v56, %v5833_v22  ;;  %v5437_v52 = vrot.slane %v5435_v16, 1 }
 0x422   : > { %v5689_v8 = vpop.f32.mrf.mxu3  ;;  %4356 = vmatmul.bf16.gmra.mxu1 %v4166_v4  ;;  %v5016_v41 = vadd.f32 %v4871_v49, %v4462_v50  ;;  %v5433_v1 = vor.u32 %v5431_v33, %v5429_v42  ;;  %v6409_v42 = vpop.permute.xlu1 %6408 }
 0x423   : > { %v6680_v29 = vmul.f32 %v6399_v13, %v6232_v27  ;;  %v8802_v28 = vpack.c.bf16 %v6232_v27, %v6231_v24  ;;  %v6404_v24 = vpop.permute.xlu0 %6403 }
 0x424   : > { %v5834_v53 = vadd.f32 %v5689_v8, %v5016_v41 }
 0x425   : > { %v6743_v61 = vadd.f32 %v6742_v60, %v6680_v29  ;;  %v6814_v30 = vmul.f32 %v6680_v29, %v6232_v27  ;;  %9017 = vst [vmem:[%s10917_s29 + $0x20] sm:$0xff] %v8802_v28   ;;  %v5937_v60 = vsel %vm2366_vm1, %v5934_v0, %v5936_v39  ;;  %v4167_v27 = vrot.slane %v9129_v21, 1  ;;  %v10971_v29 = vld [vmem:[#allocation2 + $0x98] sm:$0xff] }
 0x426   : > { %v4873_v12 = vpop.f32.mrf.mxu2 }
 0x427   : > { %v6877_v43 = vadd.f32 %v6876_v26, %v6814_v30  ;;  %v4319_v17 = vpop.f32.mrf.mxu1  ;;  %v5438_v26 = vsel %vm1586_vm0, %v5433_v1, %v5437_v52  ;;  %v4168_v50 = vsel %vm2366_vm1, %v4165_v55, %v4167_v27 }
 0x428   : > { %v6088_v31 = vpop.f32.mrf.mxu0  ;;  %v4463_v40 = vadd.f32 %v4319_v17, %v10569_v14 }
 0x429   : > { %v6233_v11 = vadd.f32 %v6088_v31, %v5834_v53  ;;  %v5443_v53 = vshll.u32 %v10971_v29, 16  ;;  %v5938_v31 = vrot.slane %v10960_v58, 1 }
 0x42a   : > { %v5691_v37 = vpop.f32.mrf.mxu3  ;;  %v5017_v59 = vadd.f32 %v4873_v12, %v4463_v40  ;;  %v8384_v40 = vld [vmem:[#allocation2 + $0x90] sm:$0xff] }
 0x42b   : > { %v6681_v9 = vmul.f32 %v6404_v24, %v6233_v11  ;;  %4915 = vmatmul.bf16.gmra.mxu2 %v8383_v19  ;;  %6127 = vmatmul.bf16.gmra.mxu0 %v5937_v60  ;;  %v5445_v60 = vrot.slane %v5443_v53, 1  ;;  %v5939_v1 = vsel %vm2366_vm1, %v5936_v39, %v5938_v31 }
 0x42c   : > { %v5835_v7 = vadd.f32 %v5691_v37, %v5017_v59 }
 0x42d   : > { %v6744_v49 = vadd.f32 %v6743_v61, %v6681_v9  ;;  %v6815_v22 = vmul.f32 %v6681_v9, %v6233_v11 }
 0x42e   : > { %v4876_v56 = vpop.f32.mrf.mxu2 }
 0x42f   : > { %5733 = vmatmul.bf16.gmra.mxu3 %v5438_v26  ;;  %v6878_v8 = vadd.f32 %v6877_v43, %v6815_v22  ;;  %v4322_v14 = vpop.f32.mrf.mxu1 }
 0x430   : > { %v6090_v4 = vpop.f32.mrf.mxu0  ;;  %v4464_v28 = vadd.f32 %v4322_v14, %v10581_v5  ;;  %v5439_v5 = vshrl.u32 %v10960_v58, 16 }
 0x431   : > { %v6234_v0 = vadd.f32 %v6090_v4, %v5835_v7 }
 0x432   : > { %v5694_v13 = vpop.f32.mrf.mxu3  ;;  %4361 = vmatmul.bf16.gmra.mxu1 %v4168_v50  ;;  %v5018_v30 = vadd.f32 %v4876_v56, %v4464_v28 }
 0x433   : > { %v6682_v41 = vmul.f32 %v6409_v42, %v6234_v0  ;;  %v8807_v61 = vpack.c.bf16 %v6234_v0, %v6233_v11  ;;  %v6414_v11 = vpop.permute.xlu2 %6413  ;;  %v10982_v42 = vld [vmem:[#allocation2 + $0xa0] sm:$0xff] }
 0x434   : > { %v5836_v17 = vadd.f32 %v5694_v13, %v5018_v30  ;;  %v5451_v53 = vshll.u32 %v10982_v42, 16 }
 0x435   : > { %v6745_v16 = vadd.f32 %v6744_v49, %v6682_v41  ;;  %v6816_v12 = vmul.f32 %v6682_v41, %v6234_v0  ;;  %9018 = vst [vmem:[%s10917_s29 + $0x28] sm:$0xff] %v8807_v61   ;;  %v5441_v49 = vor.u32 %v5439_v5, %v5437_v52  ;;  %v6419_v52 = vpop.permute.xlu0 %6418  ;;  %v8385_v5 = vld [vmem:[#allocation2 + $0x98] sm:$0xff] }
 0x436   : > { %v4878_v43 = vpop.f32.mrf.mxu2 }
 0x437   : > { %v6879_v37 = vadd.f32 %v6878_v8, %v6816_v12  ;;  %v4324_v19 = vpop.f32.mrf.mxu1  ;;  %v5446_v7 = vsel %vm1586_vm0, %v5441_v49, %v5445_v60  ;;  %v9130_v8 = vld [vmem:[#allocation2 + $0x8c] sm:$0xff] }
 0x438   : > { %v6093_v55 = vpop.f32.mrf.mxu0  ;;  %v4465_v9 = vadd.f32 %v4324_v19, %v10589_v54  ;;  %v4169_v21 = vrot.slane %v9130_v8, 1  ;;  %v9131_v8 = vld [vmem:[#allocation2 + $0x94] sm:$0xff] }
 0x439   : > { %v6235_v24 = vadd.f32 %v6093_v55, %v5836_v17  ;;  %v5940_v17 = vrot.slane %v10971_v29, 1 }
 0x43a   : > { %v5696_v33 = vpop.f32.mrf.mxu3  ;;  %v5019_v22 = vadd.f32 %v4878_v43, %v4465_v9  ;;  %v4170_v50 = vsel %vm2366_vm1, %v4167_v27, %v4169_v21 }
 0x43b   : > { %v6683_v59 = vmul.f32 %v6414_v11, %v6235_v24  ;;  %4920 = vmatmul.bf16.gmra.mxu2 %v8384_v40  ;;  %6132 = vmatmul.bf16.gmra.mxu0 %v5939_v1  ;;  %v5453_v11 = vrot.slane %v5451_v53, 1  ;;  %v5941_v1 = vsel %vm2366_vm1, %v5938_v31, %v5940_v17  ;;  %v5942_v53 = vrot.slane %v10982_v42, 1 }
 0x43c   : > { %v5837_v58 = vadd.f32 %v5696_v33, %v5019_v22 }
 0x43d   : > { %v6746_v26 = vadd.f32 %v6745_v16, %v6683_v59  ;;  %v6817_v56 = vmul.f32 %v6683_v59, %v6235_v24 }
 0x43e   : > { %v4881_v4 = vpop.f32.mrf.mxu2 }
 0x43f   : > { %5738 = vmatmul.bf16.gmra.mxu3 %v5446_v7  ;;  %v6880_v14 = vadd.f32 %v6879_v37, %v6817_v56  ;;  %v4327_v54 = vpop.f32.mrf.mxu1 }
 0x440   : > { %v6095_v13 = vpop.f32.mrf.mxu0  ;;  %v4466_v28 = vadd.f32 %v4327_v54, %v10592_v25  ;;  %v5447_v25 = vshrl.u32 %v10971_v29, 16 }
 0x441   : > { %v6236_v39 = vadd.f32 %v6095_v13, %v5837_v58 }
 0x442   : > { %v5699_v0 = vpop.f32.mrf.mxu3  ;;  %4366 = vmatmul.bf16.gmra.mxu1 %v4170_v50  ;;  %v5020_v30 = vadd.f32 %v4881_v4, %v4466_v28  ;;  %v5449_v49 = vor.u32 %v5447_v25, %v5445_v60  ;;  %v4171_v4 = vrot.slane %v9131_v8, 1  ;;  %v6429_v60 = vpop.permute.xlu2 %6428 }
 0x443   : > { %v6684_v41 = vmul.f32 %v6419_v52, %v6236_v39  ;;  %v8812_v61 = vpack.c.bf16 %v6236_v39, %v6235_v24  ;;  %v6424_v24 = vpop.permute.xlu1 %6423 }
 0x444   : > { %v5838_v37 = vadd.f32 %v5699_v0, %v5020_v30  ;;  %v5454_v7 = vsel %vm1586_vm0, %v5449_v49, %v5453_v11  ;;  %v4172_v0 = vsel %vm2366_vm1, %v4169_v21, %v4171_v4 }
 0x445   : > { %v6747_v16 = vadd.f32 %v6746_v26, %v6684_v41  ;;  %v6818_v12 = vmul.f32 %v6684_v41, %v6236_v39  ;;  %9019 = vst [vmem:[%s10917_s29 + $0x30] sm:$0xff] %v8812_v61   ;;  %v10993_v39 = vld [vmem:[#allocation2 + $0xa8] sm:$0xff] }
 0x446   : > { %v4883_v43 = vpop.f32.mrf.mxu2 }
 0x447   : > { %v6881_v55 = vadd.f32 %v6880_v14, %v6818_v12  ;;  %v4329_v19 = vpop.f32.mrf.mxu1 }
 0x448   : > { %v6098_v27 = vpop.f32.mrf.mxu0  ;;  %v4467_v9 = vadd.f32 %v4329_v19, %v10597_v32 }
 0x449   : > { %v6237_v40 = vadd.f32 %v6098_v27, %v5838_v37 }
 0x44a   : > { %v5701_v33 = vpop.f32.mrf.mxu3  ;;  %v5021_v22 = vadd.f32 %v4883_v43, %v4467_v9 }
 0x44b   : > { %v6685_v59 = vmul.f32 %v6424_v24, %v6237_v40  ;;  %4925 = vmatmul.bf16.gmra.mxu2 %v8385_v5  ;;  %6137 = vmatmul.bf16.gmra.mxu0 %v5941_v1  ;;  %v5943_v24 = vsel %vm2366_vm1, %v5940_v17, %v5942_v53 }
 0x44c   : > { %v5839_v29 = vadd.f32 %v5701_v33, %v5021_v22  ;;  %v8386_v33 = vld [vmem:[#allocation2 + $0xa0] sm:$0xff] }
 0x44d   : > { %v6748_v26 = vadd.f32 %v6747_v16, %v6685_v59  ;;  %v6819_v56 = vmul.f32 %v6685_v59, %v6237_v40  ;;  %v5459_v16 = vshll.u32 %v10993_v39, 16 }
 0x44e   : > { %v4886_v58 = vpop.f32.mrf.mxu2 }
 0x44f   : > { %5743 = vmatmul.bf16.gmra.mxu3 %v5454_v7  ;;  %v6882_v14 = vadd.f32 %v6881_v55, %v6819_v56  ;;  %v4332_v32 = vpop.f32.mrf.mxu1  ;;  %v5461_v5 = vrot.slane %v5459_v16, 1  ;;  %v9132_v56 = vld [vmem:[#allocation2 + $0x9c] sm:$0xff] }
 0x450   : > { %v6100_v13 = vpop.f32.mrf.mxu0  ;;  %v4468_v50 = vadd.f32 %v4332_v32, %v10600_v47  ;;  %v5455_v47 = vshrl.u32 %v10982_v42, 16  ;;  %v4173_v7 = vrot.slane %v9132_v56, 1  ;;  %v11004_v32 = vld [vmem:[#allocation2 + $0xb0] sm:$0xff] }
 0x451   : > { %v6238_v31 = vadd.f32 %v6100_v13, %v5839_v29 }
 0x452   : > { %v5704_v54 = vpop.f32.mrf.mxu3  ;;  %4371 = vmatmul.bf16.gmra.mxu1 %v4172_v0  ;;  %v5022_v41 = vadd.f32 %v4886_v58, %v4468_v50  ;;  %v5457_v1 = vor.u32 %v5455_v47, %v5453_v11  ;;  %v4174_v13 = vsel %vm2366_vm1, %v4171_v4, %v4173_v7  ;;  %v6439_v11 = vpop.permute.xlu1 %6438 }
 0x453   : > { %v6686_v52 = vmul.f32 %v6429_v60, %v6238_v31  ;;  %v8817_v28 = vpack.c.bf16 %v6238_v31, %v6237_v40  ;;  %v6434_v40 = vpop.permute.xlu0 %6433 }
 0x454   : > { %v5840_v43 = vadd.f32 %v5704_v54, %v5022_v41 }
 0x455   : > { %v6749_v61 = vadd.f32 %v6748_v26, %v6686_v52  ;;  %v6820_v30 = vmul.f32 %v6686_v52, %v6238_v31  ;;  %9020 = vst [vmem:[%s10917_s29 + $0x38] sm:$0xff] %v8817_v28   ;;  %v5462_v26 = vsel %vm1586_vm0, %v5457_v1, %v5461_v5  ;;  %v5467_v28 = vshll.u32 %v11004_v32, 16 }
 0x456   : > { %v4888_v12 = vpop.f32.mrf.mxu2 }
 0x457   : > { %v6883_v37 = vadd.f32 %v6882_v14, %v6820_v30  ;;  %v4334_v55 = vpop.f32.mrf.mxu1 }
 0x458   : > { %v6103_v21 = vpop.f32.mrf.mxu0  ;;  %v4469_v25 = vadd.f32 %v4334_v55, %v10605_v6  ;;  %v5469_v55 = vrot.slane %v5467_v28, 1 }
 0x459   : > { %v6239_v19 = vadd.f32 %v6103_v21, %v5840_v43  ;;  %v8387_v21 = vld [vmem:[#allocation2 + $0xa8] sm:$0xff] }
 0x45a   : > { %v5706_v27 = vpop.f32.mrf.mxu3  ;;  %v5023_v59 = vadd.f32 %v4888_v12, %v4469_v25 }
 0x45b   : > { %v6687_v9 = vmul.f32 %v6434_v40, %v6239_v19  ;;  %4930 = vmatmul.bf16.gmra.mxu2 %v8386_v33  ;;  %6142 = vmatmul.bf16.gmra.mxu0 %v5943_v24 }
 0x45c   : > { %v5841_v42 = vadd.f32 %v5706_v27, %v5023_v59  ;;  %v6444_v27 = vpop.permute.xlu2 %6443  ;;  %v9133_v59 = vld [vmem:[#allocation2 + $0xa4] sm:$0xff] }
 0x45d   : > { %v6750_v49 = vadd.f32 %v6749_v61, %v6687_v9  ;;  %v6821_v22 = vmul.f32 %v6687_v9, %v6239_v19  ;;  %v5944_v61 = vrot.slane %v10993_v39, 1 }
 0x45e   : > { %v4891_v8 = vpop.f32.mrf.mxu2 }
 0x45f   : > { %5748 = vmatmul.bf16.gmra.mxu3 %v5462_v26  ;;  %v6884_v58 = vadd.f32 %v6883_v37, %v6821_v22  ;;  %v4337_v6 = vpop.f32.mrf.mxu1  ;;  %v5945_v33 = vsel %vm2366_vm1, %v5942_v53, %v5944_v61 }
 0x460   : > { %v6105_v29 = vpop.f32.mrf.mxu0  ;;  %v4470_v54 = vadd.f32 %v4337_v6, %v10611_v44  ;;  %v5463_v44 = vshrl.u32 %v10993_v39, 16 }
 0x461   : > { %v6240_v17 = vadd.f32 %v6105_v29, %v5841_v42 }
 0x462   : > { %v5709_v14 = vpop.f32.mrf.mxu3  ;;  %4376 = vmatmul.bf16.gmra.mxu1 %v4174_v13  ;;  %v5024_v60 = vadd.f32 %v4891_v8, %v4470_v54  ;;  %v5465_v40 = vor.u32 %v5463_v44, %v5461_v5  ;;  %v6449_v5 = vpop.permute.xlu0 %6448 }
 0x463   : > { %v6688_v31 = vmul.f32 %v6439_v11, %v6240_v17  ;;  %v8822_v0 = vpack.c.bf16 %v6240_v17, %v6239_v19 }
 0x464   : > { %v5842_v30 = vadd.f32 %v5709_v14, %v5024_v60  ;;  %v5470_v1 = vsel %vm1586_vm0, %v5465_v40, %v5469_v55 }
 0x465   : > { %v6751_v50 = vadd.f32 %v6750_v49, %v6688_v31  ;;  %v6822_v52 = vmul.f32 %v6688_v31, %v6240_v17  ;;  %9021 = vst [vmem:[%s10917_s29 + $0x40] sm:$0xff] %v8822_v0   ;;  %v4175_v49 = vrot.slane %v9133_v59, 1  ;;  %v5946_v0 = vrot.slane %v11004_v32, 1 }
 0x466   : > { %v4893_v41 = vpop.f32.mrf.mxu2 }
 0x467   : > { %v6885_v16 = vadd.f32 %v6884_v58, %v6822_v52  ;;  %v4339_v12 = vpop.f32.mrf.mxu1  ;;  %v4176_v42 = vsel %vm2366_vm1, %v4173_v7, %v4175_v49  ;;  %v11015_v58 = vld [vmem:[#allocation2 + $0xb8] sm:$0xff] }
 0x468   : > { %v6108_v4 = vpop.f32.mrf.mxu0  ;;  %v4471_v19 = vadd.f32 %v4339_v12, %v10616_v23  ;;  %v5475_v54 = vshll.u32 %v11015_v58, 16 }
 0x469   : > { %v6241_v37 = vadd.f32 %v6108_v4, %v5842_v30  ;;  %v8388_v30 = vld [vmem:[#allocation2 + $0xb0] sm:$0xff]  ;;  %v6454_v4 = vpop.permute.xlu1 %6453 }
 0x46a   : > { %v5711_v43 = vpop.f32.mrf.mxu3  ;;  %v5025_v25 = vadd.f32 %v4893_v41, %v4471_v19 }
 0x46b   : > { %v6689_v47 = vmul.f32 %v6444_v27, %v6241_v37  ;;  %4935 = vmatmul.bf16.gmra.mxu2 %v8387_v21  ;;  %6147 = vmatmul.bf16.gmra.mxu0 %v5945_v33 }
 0x46c   : > { %v5843_v39 = vadd.f32 %v5711_v43, %v5025_v25  ;;  %v5947_v43 = vsel %vm2366_vm1, %v5944_v61, %v5946_v0 }
 0x46d   : > { %v6752_v24 = vadd.f32 %v6751_v50, %v6689_v47  ;;  %v6823_v9 = vmul.f32 %v6689_v47, %v6241_v37  ;;  %v9134_v47 = vld [vmem:[#allocation2 + $0xac] sm:$0xff] }
 0x46e   : > { %v4896_v22 = vpop.f32.mrf.mxu2  ;;  %v4177_v40 = vrot.slane %v9134_v47, 1 }
 0x46f   : > { %5753 = vmatmul.bf16.gmra.mxu3 %v5470_v1  ;;  %v6886_v26 = vadd.f32 %v6885_v16, %v6823_v9  ;;  %v4342_v23 = vpop.f32.mrf.mxu1  ;;  %v5477_v16 = vrot.slane %v5475_v54, 1  ;;  %v8389_v54 = vld [vmem:[#allocation2 + $0xb8] sm:$0xff] }
 0x470   : > { %v6110_v56 = vpop.f32.mrf.mxu0  ;;  %v4472_v29 = vadd.f32 %v4342_v23, %v10631_v51  ;;  %v5471_v51 = vshrl.u32 %v11004_v32, 16  ;;  %v4178_v59 = vsel %vm2366_vm1, %v4175_v49, %v4177_v40 }
 0x471   : > { %v6242_v53 = vadd.f32 %v6110_v56, %v5843_v39  ;;  %v11027_v56 = vld [vmem:[#allocation2 + $0xc0] sm:$0xff] }
 0x472   : > { %v5714_v8 = vpop.f32.mrf.mxu3  ;;  %4381 = vmatmul.bf16.gmra.mxu1 %v4176_v42  ;;  %v5026_v17 = vadd.f32 %v4896_v22, %v4472_v29  ;;  %v5473_v21 = vor.u32 %v5471_v51, %v5469_v55  ;;  %v6459_v22 = vpop.permute.xlu2 %6458  ;;  %v5483_v49 = vshll.u32 %v11027_v56, 16 }
 0x473   : > { %v6690_v6 = vmul.f32 %v6449_v5, %v6242_v53  ;;  %v8827_v14 = vpack.c.bf16 %v6242_v53, %v6241_v37  ;;  %v5948_v5 = vrot.slane %v11015_v58, 1 }
 0x474   : > { %v5844_v60 = vadd.f32 %v5714_v8, %v5026_v17  ;;  %v5478_v33 = vsel %vm1586_vm0, %v5473_v21, %v5477_v16 }
 0x475   : > { %v6753_v13 = vadd.f32 %v6752_v24, %v6690_v6  ;;  %v6824_v11 = vmul.f32 %v6690_v6, %v6242_v53  ;;  %9022 = vst [vmem:[%s10917_s29 + $0x48] sm:$0xff] %v8827_v14   ;;  %v5479_v14 = vshrl.u32 %v11015_v58, 16 }
 0x476   : > { %v4898_v31 = vpop.f32.mrf.mxu2 }
 0x477   : > { %v6887_v50 = vadd.f32 %v6886_v26, %v6824_v11  ;;  %v4344_v52 = vpop.f32.mrf.mxu1 }
 0x478   : > { %v6113_v7 = vpop.f32.mrf.mxu0  ;;  %v4473_v12 = vadd.f32 %v4344_v52, %v10639_v2 }
 0x479   : > { %v6243_v41 = vadd.f32 %v6113_v7, %v5844_v60  ;;  %v6464_v60 = vpop.permute.xlu0 %6463  ;;  %v5949_v7 = vsel %vm2366_vm1, %v5946_v0, %v5948_v5 }
 0x47a   : > { %v5716_v28 = vpop.f32.mrf.mxu3  ;;  %v5027_v44 = vadd.f32 %v4898_v31, %v4473_v12  ;;  %v5481_v31 = vor.u32 %v5479_v14, %v5477_v16 }
 0x47b   : > { %v6691_v37 = vmul.f32 %v6454_v4, %v6243_v41  ;;  %4940 = vmatmul.bf16.gmra.mxu2 %v8388_v30  ;;  %6152 = vmatmul.bf16.gmra.mxu0 %v5947_v43  ;;  %v9135_v4 = vld [vmem:[#allocation2 + $0xb4] sm:$0xff] }
 0x47c   : > { %v5845_v32 = vadd.f32 %v5716_v28, %v5027_v44  ;;  %v5485_v28 = vrot.slane %v5483_v49, 1  ;;  %v4179_v12 = vrot.slane %v9135_v4, 1 }
 0x47d   : > { %v6754_v27 = vadd.f32 %v6753_v13, %v6691_v37  ;;  %v6825_v19 = vmul.f32 %v6691_v37, %v6243_v41 }
 0x47e   : > { %v4901_v25 = vpop.f32.mrf.mxu2  ;;  %v5486_v51 = vsel %vm1586_vm0, %v5481_v31, %v5485_v28 }
 0x47f   : > { %5758 = vmatmul.bf16.gmra.mxu3 %v5478_v33  ;;  %v6888_v24 = vadd.f32 %v6887_v50, %v6825_v19  ;;  %v4347_v2 = vpop.f32.mrf.mxu1  ;;  %v11037_v19 = vld [vmem:[#allocation2 + $0xc8] sm:$0xff]  ;;  %v6469_v33 = vpop.permute.xlu1 %6468 }
 0x480   : > { %v6115_v9 = vpop.f32.mrf.mxu0  ;;  %v4474_v55 = vadd.f32 %v4347_v2, %v10643_v3 }
 0x481   : > { %v6244_v61 = vadd.f32 %v6115_v9, %v5845_v32 }
 0x482   : > { %v5719_v1 = vpop.f32.mrf.mxu3  ;;  %4386 = vmatmul.bf16.gmra.mxu1 %v4178_v59  ;;  %v5028_v23 = vadd.f32 %v4901_v25, %v4474_v55  ;;  %v5487_v55 = vshrl.u32 %v11027_v56, 16 }
 0x483   : > { %v6692_v39 = vmul.f32 %v6459_v22, %v6244_v61  ;;  %v8832_v26 = vpack.c.bf16 %v6244_v61, %v6243_v41 }
 0x484   : > { %v5846_v29 = vadd.f32 %v5719_v1, %v5028_v23  ;;  %v5491_v1 = vshll.u32 %v11037_v19, 16  ;;  %v5489_v49 = vor.u32 %v5487_v55, %v5485_v28  ;;  %v6479_v28 = vpop.permute.xlu0 %6478 }
 0x485   : > { %v6755_v8 = vadd.f32 %v6754_v27, %v6692_v39  ;;  %v6826_v53 = vmul.f32 %v6692_v39, %v6244_v61  ;;  %9023 = vst [vmem:[%s10917_s29 + $0x50] sm:$0xff] %v8832_v26   ;;  %v4180_v27 = vsel %vm2366_vm1, %v4177_v40, %v4179_v12  ;;  %v5950_v39 = vrot.slane %v11027_v56, 1  ;;  %v9136_v56 = vld [vmem:[#allocation2 + $0xbc] sm:$0xff] }
 0x486   : > { %v4903_v42 = vpop.f32.mrf.mxu2 }
 0x487   : > { %v6889_v6 = vadd.f32 %v6888_v24, %v6826_v53  ;;  %v4349_v3 = vpop.f32.mrf.mxu1  ;;  %v5493_v53 = vrot.slane %v5491_v1, 1 }
 0x488   : > { %v6118_v17 = vpop.f32.mrf.mxu0  ;;  %v4475_v50 = vadd.f32 %v4349_v3, %v10648_v62 }
 0x489   : > { %v6245_v11 = vadd.f32 %v6118_v17, %v5846_v29 }
 0x48a   : > { %v5721_v13 = vpop.f32.mrf.mxu3  ;;  %v5029_v41 = vadd.f32 %v4903_v42, %v4475_v50  ;;  %v6474_v42 = vpop.permute.xlu2 %6473 }
 0x48b   : > { %v6693_v52 = vmul.f32 %v6464_v60, %v6245_v11  ;;  %4945 = vmatmul.bf16.gmra.mxu2 %v8389_v54  ;;  %6157 = vmatmul.bf16.gmra.mxu0 %v5949_v7  ;;  %v4181_v54 = vrot.slane %v9136_v56, 1 }
 0x48c   : > { %v5847_v37 = vadd.f32 %v5721_v13, %v5029_v41 }
 0x48d   : > { %v6756_v30 = vadd.f32 %v6755_v8, %v6693_v52  ;;  %v6827_v58 = vmul.f32 %v6693_v52, %v6245_v11  ;;  %v8390_v8 = vld [vmem:[#allocation2 + $0xc0] sm:$0xff]  ;;  %v4182_v41 = vsel %vm2366_vm1, %v4179_v12, %v4181_v54 }
 0x48e   : > { %v4906_v43 = vpop.f32.mrf.mxu2 }
 0x48f   : > { %5763 = vmatmul.bf16.gmra.mxu3 %v5486_v51  ;;  %v6890_v16 = vadd.f32 %v6889_v6, %v6827_v58  ;;  %v4352_v62 = vpop.f32.mrf.mxu1  ;;  %v5951_v6 = vsel %vm2366_vm1, %v5948_v5, %v5950_v39 }
 0x490   : > { %v6120_v21 = vpop.f32.mrf.mxu0  ;;  %v4476_v47 = vadd.f32 %v4352_v62, %v10652_v18 }
 0x491   : > { %v6246_v0 = vadd.f32 %v6120_v21, %v5847_v37 }
 0x492   : > { %v5724_v44 = vpop.f32.mrf.mxu3  ;;  %4391 = vmatmul.bf16.gmra.mxu1 %v4180_v27  ;;  %v5030_v24 = vadd.f32 %v4906_v43, %v4476_v47 }
 0x493   : > { %v6694_v25 = vmul.f32 %v6469_v33, %v6246_v0  ;;  %v8837_v32 = vpack.c.bf16 %v6246_v0, %v6245_v11  ;;  %v5494_v11 = vsel %vm1586_vm0, %v5489_v49, %v5493_v53  ;;  %v11059_v49 = vld [vmem:[#allocation2 + $0xd8] sm:$0xff] }
 0x494   : > { %v5848_v59 = vadd.f32 %v5724_v44, %v5030_v24  ;;  %v5952_v44 = vrot.slane %v11037_v19, 1 }
 0x495   : > { %v6757_v9 = vadd.f32 %v6756_v30, %v6694_v25  ;;  %v6828_v2 = vmul.f32 %v6694_v25, %v6246_v0  ;;  %9024 = vst [vmem:[%s10917_s29 + $0x58] sm:$0xff] %v8837_v32   ;;  %v11048_v30 = vld [vmem:[#allocation2 + $0xd0] sm:$0xff]  ;;  %v8391_v32 = vld [vmem:[#allocation2 + $0xc8] sm:$0xff] }
 0x496   : > { %v4908_v61 = vpop.f32.mrf.mxu2  ;;  %v5499_v21 = vshll.u32 %v11048_v30, 16  ;;  %v5953_v1 = vsel %vm2366_vm1, %v5950_v39, %v5952_v44 }
 0x497   : > { %v6891_v22 = vadd.f32 %v6890_v16, %v6828_v2  ;;  %v4354_v26 = vpop.f32.mrf.mxu1 }
 0x498   : > { %v6123_v40 = vpop.f32.mrf.mxu0  ;;  %v4477_v29 = vadd.f32 %v4354_v26, %v10657_v57  ;;  %v5501_v24 = vrot.slane %v5499_v21, 1 }
 0x499   : > { %v6247_v18 = vadd.f32 %v6123_v40, %v5848_v59 }
 0x49a   : > { %v5726_v23 = vpop.f32.mrf.mxu3  ;;  %v5031_v17 = vadd.f32 %v4908_v61, %v4477_v29 }
 0x49b   : > { %v6695_v14 = vmul.f32 %v6474_v42, %v6247_v18  ;;  %4950 = vmatmul.bf16.gmra.mxu2 %v8390_v8  ;;  %6162 = vmatmul.bf16.gmra.mxu0 %v5951_v6 }
 0x49c   : > { %v5849_v60 = vadd.f32 %v5726_v23, %v5031_v17 }
 0x49d   : > { %v6758_v3 = vadd.f32 %v6757_v9, %v6695_v14  ;;  %v6829_v13 = vmul.f32 %v6695_v14, %v6247_v18  ;;  %v6484_v9 = vpop.permute.xlu1 %6483 }
 0x49e   : > { %v4911_v31 = vpop.f32.mrf.mxu2 }
 0x49f   : > { %5768 = vmatmul.bf16.gmra.mxu3 %v5494_v11  ;;  %v6892_v50 = vadd.f32 %v6891_v22, %v6829_v13  ;;  %v4357_v57 = vpop.f32.mrf.mxu1 }
 0x4a0   : > { %v6125_v7 = vpop.f32.mrf.mxu0  ;;  %v4478_v58 = vadd.f32 %v4357_v57, %v10660_v34  ;;  %v5495_v34 = vshrl.u32 %v11037_v19, 16  ;;  %v9137_v19 = vld [vmem:[#allocation2 + $0xc4] sm:$0xff] }
 0x4a1   : > { %v6248_v5 = vadd.f32 %v6125_v7, %v5849_v60  ;;  %v4183_v42 = vrot.slane %v9137_v19, 1  ;;  %v5507_v60 = vshll.u32 %v11059_v49, 16  ;;  %v5954_v7 = vrot.slane %v11048_v30, 1 }
 0x4a2   : > { %v5729_v52 = vpop.f32.mrf.mxu3  ;;  %4396 = vmatmul.bf16.gmra.mxu1 %v4182_v41  ;;  %v5032_v43 = vadd.f32 %v4911_v31, %v4478_v58  ;;  %v5497_v59 = vor.u32 %v5495_v34, %v5493_v53  ;;  %v6489_v53 = vpop.permute.xlu2 %6488  ;;  %v8392_v58 = vld [vmem:[#allocation2 + $0xd0] sm:$0xff] }
 0x4a3   : > { %v6696_v51 = vmul.f32 %v6479_v28, %v6248_v5  ;;  %v8842_v4 = vpack.c.bf16 %v6248_v5, %v6247_v18  ;;  %v4184_v14 = vsel %vm2366_vm1, %v4181_v54, %v4183_v42 }
 0x4a4   : > { %v5850_v0 = vadd.f32 %v5729_v52, %v5032_v43  ;;  %v5502_v26 = vsel %vm1586_vm0, %v5497_v59, %v5501_v24 }
 0x4a5   : > { %v6759_v37 = vadd.f32 %v6758_v3, %v6696_v51  ;;  %v6830_v16 = vmul.f32 %v6696_v51, %v6248_v5  ;;  %9025 = vst [vmem:[%s10917_s29 + $0x60] sm:$0xff] %v8842_v4   ;;  %v5509_v51 = vrot.slane %v5507_v60, 1  ;;  %v6494_v4 = vpop.permute.xlu0 %6493 }
 0x4a6   : > { %v4913_v62 = vpop.f32.mrf.mxu2 }
 0x4a7   : > { %v6893_v27 = vadd.f32 %v6892_v50, %v6830_v16  ;;  %v4359_v33 = vpop.f32.mrf.mxu1 }
 0x4a8   : > { %v6128_v12 = vpop.f32.mrf.mxu0  ;;  %v4479_v2 = vadd.f32 %v4359_v33, %v10665_v10  ;;  %v9138_v33 = vld [vmem:[#allocation2 + $0xcc] sm:$0xff] }
 0x4a9   : > { %v6249_v25 = vadd.f32 %v6128_v12, %v5850_v0 }
 0x4aa   : > { %v5731_v47 = vpop.f32.mrf.mxu3  ;;  %v5033_v22 = vadd.f32 %v4913_v62, %v4479_v2 }
 0x4ab   : > { %v6697_v61 = vmul.f32 %v6484_v9, %v6249_v25  ;;  %4955 = vmatmul.bf16.gmra.mxu2 %v8391_v32  ;;  %6167 = vmatmul.bf16.gmra.mxu0 %v5953_v1  ;;  %v11070_v1 = vld [vmem:[#allocation2 + $0xe0] sm:$0xff] }
 0x4ac   : > { %v5851_v18 = vadd.f32 %v5731_v47, %v5033_v22  ;;  %v4185_v47 = vrot.slane %v9138_v33, 1  ;;  %v5958_v33 = vrot.slane %v11070_v1, 1 }
 0x4ad   : > { %v6760_v55 = vadd.f32 %v6759_v37, %v6697_v61  ;;  %v6831_v40 = vmul.f32 %v6697_v61, %v6249_v25  ;;  %v5955_v37 = vsel %vm2366_vm1, %v5952_v44, %v5954_v7 }
 0x4ae   : > { %v4916_v23 = vpop.f32.mrf.mxu2  ;;  %v4186_v2 = vsel %vm2366_vm1, %v4183_v42, %v4185_v47 }
 0x4af   : > { %5773 = vmatmul.bf16.gmra.mxu3 %v5502_v26  ;;  %v6894_v8 = vadd.f32 %v6893_v27, %v6831_v40  ;;  %v4362_v10 = vpop.f32.mrf.mxu1 }
 0x4b0   : > { %v6130_v29 = vpop.f32.mrf.mxu0  ;;  %v4480_v17 = vadd.f32 %v4362_v10, %v10677_v38  ;;  %v5503_v38 = vshrl.u32 %v11048_v30, 16 }
 0x4b1   : > { %v6250_v39 = vadd.f32 %v6130_v29, %v5851_v18 }
 0x4b2   : > { %v5734_v6 = vpop.f32.mrf.mxu3  ;;  %4401 = vmatmul.bf16.gmra.mxu1 %v4184_v14  ;;  %v5034_v11 = vadd.f32 %v4916_v23, %v4480_v17  ;;  %v5505_v21 = vor.u32 %v5503_v38, %v5501_v24  ;;  %v6499_v24 = vpop.permute.xlu1 %6498  ;;  %v5515_v23 = vshll.u32 %v11070_v1, 16  ;;  %v8393_v14 = vld [vmem:[#allocation2 + $0xd8] sm:$0xff] }
 0x4b3   : > { %v6698_v3 = vmul.f32 %v6489_v53, %v6250_v39  ;;  %v8847_v13 = vpack.c.bf16 %v6250_v39, %v6249_v25  ;;  %v6504_v17 = vpop.permute.xlu2 %6503 }
 0x4b4   : > { %v5852_v57 = vadd.f32 %v5734_v6, %v5034_v11  ;;  %v5510_v12 = vsel %vm1586_vm0, %v5505_v21, %v5509_v51  ;;  %v5517_v53 = vrot.slane %v5515_v23, 1 }
 0x4b5   : > { %v6761_v56 = vadd.f32 %v6760_v55, %v6698_v3  ;;  %v6832_v31 = vmul.f32 %v6698_v3, %v6250_v39  ;;  %9026 = vst [vmem:[%s10917_s29 + $0x68] sm:$0xff] %v8847_v13  }
 0x4b6   : > { %v4918_v50 = vpop.f32.mrf.mxu2 }
 0x4b7   : > { %v6895_v52 = vadd.f32 %v6894_v8, %v6832_v31  ;;  %v4364_v5 = vpop.f32.mrf.mxu1  ;;  %v5956_v8 = vrot.slane %v11059_v49, 1 }
 0x4b8   : > { %v6133_v54 = vpop.f32.mrf.mxu0  ;;  %v4481_v43 = vadd.f32 %v4364_v5, %v10685_v48 }
 0x4b9   : > { %v6251_v28 = vadd.f32 %v6133_v54, %v5852_v57  ;;  %v5957_v13 = vsel %vm2366_vm1, %v5954_v7, %v5956_v8 }
 0x4ba   : > { %v5736_v41 = vpop.f32.mrf.mxu3  ;;  %v5035_v62 = vadd.f32 %v4918_v50, %v4481_v43 }
 0x4bb   : > { %v6699_v16 = vmul.f32 %v6494_v4, %v6251_v28  ;;  %4960 = vmatmul.bf16.gmra.mxu2 %v8392_v58  ;;  %6172 = vmatmul.bf16.gmra.mxu0 %v5955_v37  ;;  %v11081_v4 = vld [vmem:[#allocation2 + $0xe8] sm:$0xff] }
 0x4bc   : > { %v5853_v30 = vadd.f32 %v5736_v41, %v5035_v62 }
 0x4bd   : > { %v6762_v0 = vadd.f32 %v6761_v56, %v6699_v16  ;;  %v6833_v27 = vmul.f32 %v6699_v16, %v6251_v28 }
 0x4be   : > { %v4921_v25 = vpop.f32.mrf.mxu2 }
 0x4bf   : > { %5778 = vmatmul.bf16.gmra.mxu3 %v5510_v12  ;;  %v6896_v32 = vadd.f32 %v6895_v52, %v6833_v27  ;;  %v4367_v48 = vpop.f32.mrf.mxu1  ;;  %v9139_v52 = vld [vmem:[#allocation2 + $0xd4] sm:$0xff]  ;;  %v5523_v27 = vshll.u32 %v11081_v4, 16 }
 0x4c0   : > { %v6135_v34 = vpop.f32.mrf.mxu0  ;;  %v4482_v61 = vadd.f32 %v4367_v48, %v10688_v20  ;;  %v5511_v20 = vshrl.u32 %v11059_v49, 16  ;;  %v4187_v54 = vrot.slane %v9139_v52, 1 }
 0x4c1   : > { %v6252_v44 = vadd.f32 %v6135_v34, %v5853_v30 }
 0x4c2   : > { %v5739_v9 = vpop.f32.mrf.mxu3  ;;  %4406 = vmatmul.bf16.gmra.mxu1 %v4186_v2  ;;  %v5036_v55 = vadd.f32 %v4921_v25, %v4482_v61  ;;  %v5513_v56 = vor.u32 %v5511_v20, %v5509_v51  ;;  %v4188_v38 = vsel %vm2366_vm1, %v4185_v47, %v4187_v54  ;;  %v6509_v51 = vpop.permute.xlu0 %6508  ;;  %v5959_v61 = vsel %vm2366_vm1, %v5956_v8, %v5958_v33 }
 0x4c3   : > { %v6700_v59 = vmul.f32 %v6499_v24, %v6252_v44  ;;  %v8852_v22 = vpack.c.bf16 %v6252_v44, %v6251_v28  ;;  %v6514_v2 = vpop.permute.xlu1 %6513  ;;  %v6519_v20 = vpop.permute.xlu2 %6518 }
 0x4c4   : > { %v5854_v19 = vadd.f32 %v5739_v9, %v5036_v55  ;;  %v5518_v57 = vsel %vm1586_vm0, %v5513_v56, %v5517_v53  ;;  %v8394_v9 = vld [vmem:[#allocation2 + $0xe0] sm:$0xff] }
 0x4c5   : > { %v6763_v40 = vadd.f32 %v6762_v0, %v6700_v59  ;;  %v6834_v26 = vmul.f32 %v6700_v59, %v6252_v44  ;;  %9027 = vst [vmem:[%s10917_s29 + $0x70] sm:$0xff] %v8852_v22   ;;  %v5525_v44 = vrot.slane %v5523_v27, 1 }
 0x4c6   : > { %v4923_v18 = vpop.f32.mrf.mxu2 }
 0x4c7   : > { %v6897_v29 = vadd.f32 %v6896_v32, %v6834_v26  ;;  %v4369_v10 = vpop.f32.mrf.mxu1 }
 0x4c8   : > { %v6138_v42 = vpop.f32.mrf.mxu0  ;;  %v4483_v3 = vadd.f32 %v4369_v10, %v10693_v35 }
 0x4c9   : > { %v6253_v39 = vadd.f32 %v6138_v42, %v5854_v19 }
 0x4ca   : > { %v5741_v6 = vpop.f32.mrf.mxu3  ;;  %v5037_v31 = vadd.f32 %v4923_v18, %v4483_v3  ;;  %v9140_v18 = vld [vmem:[#allocation2 + $0xdc] sm:$0xff] }
 0x4cb   : > { %v6701_v11 = vmul.f32 %v6504_v17, %v6253_v39  ;;  %4965 = vmatmul.bf16.gmra.mxu2 %v8393_v14  ;;  %6177 = vmatmul.bf16.gmra.mxu0 %v5957_v13  ;;  %v4189_v19 = vrot.slane %v9140_v18, 1  ;;  %v11092_v14 = vld [vmem:[#allocation2 + $0xf0] sm:$0xff] }
 0x4cc   : > { %v5855_v49 = vadd.f32 %v5741_v6, %v5037_v31  ;;  %v5531_v31 = vshll.u32 %v11092_v14, 16 }
 0x4cd   : > { %v6764_v60 = vadd.f32 %v6763_v40, %v6701_v11  ;;  %v6835_v50 = vmul.f32 %v6701_v11, %v6253_v39 }
 0x4ce   : > { %v4926_v5 = vpop.f32.mrf.mxu2 }
 0x4cf   : > { %5783 = vmatmul.bf16.gmra.mxu3 %v5518_v57  ;;  %v6898_v41 = vadd.f32 %v6897_v29, %v6835_v50  ;;  %v4372_v35 = vpop.f32.mrf.mxu1  ;;  %v5960_v50 = vrot.slane %v11081_v4, 1 }
 0x4d0   : > { %v6140_v28 = vpop.f32.mrf.mxu0  ;;  %v4484_v43 = vadd.f32 %v4372_v35, %v10696_v15  ;;  %v5519_v15 = vshrl.u32 %v11070_v1, 16  ;;  %v5533_v35 = vrot.slane %v5531_v31, 1  ;;  %v9142_v31 = vld [vmem:[#allocation2 + $0xec] sm:$0xff] }
 0x4d1   : > { %v6254_v7 = vadd.f32 %v6140_v28, %v5855_v49  ;;  %v8395_v28 = vld [vmem:[#allocation2 + $0xe8] sm:$0xff] }
 0x4d2   : > { %v5744_v58 = vpop.f32.mrf.mxu3  ;;  %4411 = vmatmul.bf16.gmra.mxu1 %v4188_v38  ;;  %v5038_v21 = vadd.f32 %v4926_v5, %v4484_v43  ;;  %v5521_v22 = vor.u32 %v5519_v15, %v5517_v53  ;;  %v5961_v38 = vsel %vm2366_vm1, %v5958_v33, %v5960_v50 }
 0x4d3   : > { %v6702_v37 = vmul.f32 %v6509_v51, %v6254_v7  ;;  %v8857_v16 = vpack.c.bf16 %v6254_v7, %v6253_v39  ;;  %v4190_v39 = vsel %vm2366_vm1, %v4187_v54, %v4189_v19 }
 0x4d4   : > { %v5856_v25 = vadd.f32 %v5744_v58, %v5038_v21  ;;  %v5526_v23 = vsel %vm1586_vm0, %v5521_v22, %v5525_v44  ;;  %v6524_v58 = vpop.permute.xlu0 %6523 }
 0x4d5   : > { %v6765_v62 = vadd.f32 %v6764_v60, %v6702_v37  ;;  %v6836_v0 = vmul.f32 %v6702_v37, %v6254_v7  ;;  %9028 = vst [vmem:[%s10917_s29 + $0x78] sm:$0xff] %v8857_v16  }
 0x4d6   : > { %v4928_v12 = vpop.f32.mrf.mxu2 }
 0x4d7   : > { %v6899_v30 = vadd.f32 %v6898_v41, %v6836_v0  ;;  %v4374_v32 = vpop.f32.mrf.mxu1  ;;  %v9141_v0 = vld [vmem:[#allocation2 + $0xe4] sm:$0xff] }
 0x4d8   : > { %v6143_v47 = vpop.f32.mrf.mxu0  ;;  %v4485_v24 = vadd.f32 %v4374_v32, %v10701_v63  ;;  %v4191_v27 = vrot.slane %v9141_v0, 1 }
 0x4d9   : > { %v6255_v48 = vadd.f32 %v6143_v47, %v5856_v25 }
 0x4da   : > { %v5746_v34 = vpop.f32.mrf.mxu3  ;;  %v5039_v55 = vadd.f32 %v4928_v12, %v4485_v24  ;;  %v4192_v32 = vsel %vm2366_vm1, %v4189_v19, %v4191_v27 }
 0x4db   : > { %v6703_v59 = vmul.f32 %v6514_v2, %v6255_v48  ;;  %4970 = vmatmul.bf16.gmra.mxu2 %v8394_v9  ;;  %6182 = vmatmul.bf16.gmra.mxu0 %v5959_v61  ;;  %v11295_v9 = vld [vmem:[#allocation31_spill] sm:$0xff] }
 0x4dc   : > { %v5857_v1 = vadd.f32 %v5746_v34, %v5039_v55  ;;  %v11103_v34 = vld [vmem:[#allocation2 + $0xf8] sm:$0xff] }
 0x4dd   : > { %v6766_v40 = vadd.f32 %v6765_v62, %v6703_v59  ;;  %v6837_v26 = vmul.f32 %v6703_v59, %v6255_v48  ;;  %v5539_v22 = vshll.u32 %v11103_v34, 16 }
 0x4de   : > { %v4931_v29 = vpop.f32.mrf.mxu2 }
 0x4df   : > { %5788 = vmatmul.bf16.gmra.mxu3 %v5526_v23  ;;  %v6900_v42 = vadd.f32 %v6899_v30, %v6837_v26  ;;  %v4377_v63 = vpop.f32.mrf.mxu1 }
 0x4e0   : > { %v6145_v10 = vpop.f32.mrf.mxu0  ;;  %v4486_v53 = vadd.f32 %v4377_v63, %v10707_v36  ;;  %v5527_v36 = vshrl.u32 %v11081_v4, 16  ;;  %v5541_v63 = vrot.slane %v5539_v22, 1 }
 0x4e1   : > { %v6256_v8 = vadd.f32 %v6145_v10, %v5857_v1  ;;  %v5535_v10 = vshrl.u32 %v11092_v14, 16 }
 0x4e2   : > { %v5749_v6 = vpop.f32.mrf.mxu3  ;;  %4416 = vmatmul.bf16.gmra.mxu1 %v4190_v39  ;;  %v5040_v13 = vadd.f32 %v4931_v29, %v4486_v53  ;;  %v5529_v43 = vor.u32 %v5527_v36, %v5525_v44  ;;  %v6539_v36 = vpop.permute.xlu0 %6538 }
 0x4e3   : > { %v6704_v17 = vmul.f32 %v6519_v20, %v6256_v8  ;;  %v8862_v3 = vpack.c.bf16 %v6256_v8, %v6255_v48  ;;  %v6529_v48 = vpop.permute.xlu1 %6528 }
 0x4e4   : > { %v5858_v57 = vadd.f32 %v5749_v6, %v5040_v13  ;;  %v5534_v62 = vsel %vm1586_vm0, %v5529_v43, %v5533_v35  ;;  %v6534_v6 = vpop.permute.xlu2 %6533 }
 0x4e5   : > { %v6767_v11 = vadd.f32 %v6766_v40, %v6704_v17  ;;  %v6838_v56 = vmul.f32 %v6704_v17, %v6256_v8  ;;  %9029 = vst [vmem:[%s10917_s29 + $0x80] sm:$0xff] %v8862_v3   ;;  %v5962_v40 = vrot.slane %v11092_v14, 1  ;;  %v11296_v8 = vld [vmem:[#allocation32_spill] sm:$0xff]  ;;  %v5537_v17 = vor.u32 %v5535_v10, %v5533_v35  ;;  %v11297_v35 = vld [vmem:[#allocation11_spill] sm:$0xff] }
 0x4e6   : > { %v4933_v60 = vpop.f32.mrf.mxu2  ;;  %v11125_v10 = vld [vmem:[#allocation2 + $0x108] sm:$0xff] }
 0x4e7   : > { %v6901_v52 = vadd.f32 %v6900_v42, %v6838_v56  ;;  %v4379_v5 = vpop.f32.mrf.mxu1  ;;  %v8396_v42 = vld [vmem:[#allocation2 + $0xf0] sm:$0xff]  ;;  %v5963_v20 = vsel %vm2366_vm1, %v5960_v50, %v5962_v40  ;;  %v5542_v56 = vsel %vm1586_vm0, %v5537_v17, %v5541_v63 }
 0x4e8   : > { %v6148_v54 = vpop.f32.mrf.mxu0  ;;  %v4487_v7 = vadd.f32 %v4379_v5, %v10712_v45 }
 0x4e9   : > { %v6257_v41 = vadd.f32 %v6148_v54, %v5858_v57 }
 0x4ea   : > { %v5751_v49 = vpop.f32.mrf.mxu3  ;;  %v5041_v37 = vadd.f32 %v4933_v60, %v4487_v7  ;;  %v4193_v60 = vrot.slane %v9142_v31, 1 }
 0x4eb   : > { %v6705_v51 = vmul.f32 %v6524_v58, %v6257_v41  ;;  %4975 = vmatmul.bf16.gmra.mxu2 %v8395_v28  ;;  %6187 = vmatmul.bf16.gmra.mxu0 %v5961_v38  ;;  %v11114_v28 = vld [vmem:[#allocation2 + $0x100] sm:$0xff] }
 0x4ec   : > { %v5859_v4 = vadd.f32 %v5751_v49, %v5041_v37 }
 0x4ed   : > { %v6768_v16 = vadd.f32 %v6767_v11, %v6705_v51  ;;  %v6839_v21 = vmul.f32 %v6705_v51, %v6257_v41 }
 0x4ee   : > { %v4936_v12 = vpop.f32.mrf.mxu2 }
 0x4ef   : > { %5793 = vmatmul.bf16.gmra.mxu3 %v5534_v62  ;;  %v6902_v25 = vadd.f32 %v6901_v52, %v6839_v21  ;;  %v4382_v45 = vpop.f32.mrf.mxu1  ;;  %v5964_v62 = vrot.slane %v11103_v34, 1 }
 0x4f0   : > { %v6150_v30 = vpop.f32.mrf.mxu0  ;;  %v4488_v15 = vadd.f32 %v4382_v45, %v11295_v9  ;;  %v8397_v45 = vld [vmem:[#allocation2 + $0xf8] sm:$0xff] }
 0x4f1   : > { %v6258_v33 = vadd.f32 %v6150_v30, %v5859_v4 }
 0x4f2   : > { %v5754_v47 = vpop.f32.mrf.mxu3  ;;  %4421 = vmatmul.bf16.gmra.mxu1 %v4192_v32  ;;  %v5042_v24 = vadd.f32 %v4936_v12, %v4488_v15  ;;  %v6544_v32 = vpop.permute.xlu1 %6543  ;;  %v5965_v15 = vsel %vm2366_vm1, %v5962_v40, %v5964_v62 }
 0x4f3   : > { %v6706_v44 = vmul.f32 %v6529_v48, %v6258_v33  ;;  %v8867_v2 = vpack.c.bf16 %v6258_v33, %v6257_v41  ;;  %v4194_v41 = vsel %vm2366_vm1, %v4191_v27, %v4193_v60  ;;  %v11298_v48 = vld [vmem:[#allocation13_spill] sm:$0xff] }
 0x4f4   : > { %v5860_v26 = vadd.f32 %v5754_v47, %v5042_v24  ;;  %v5543_v47 = vshrl.u32 %v11103_v34, 16 }
 0x4f5   : > { %v6769_v61 = vadd.f32 %v6768_v16, %v6706_v44  ;;  %v6840_v59 = vmul.f32 %v6706_v44, %v6258_v33  ;;  %9030 = vst [vmem:[%s10917_s29 + $0x88] sm:$0xff] %v8867_v2   ;;  %v5547_v16 = vshll.u32 %v11114_v28, 16 }
 0x4f6   : > { %v4938_v55 = vpop.f32.mrf.mxu2  ;;  %v5545_v2 = vor.u32 %v5543_v47, %v5541_v63  ;;  %v6549_v63 = vpop.permute.xlu2 %6548  ;;  %v11136_v47 = vld [vmem:[#allocation2 + $0x110] sm:$0xff] }
 0x4f7   : > { %v6903_v23 = vadd.f32 %v6902_v25, %v6840_v59  ;;  %v4384_v19 = vpop.f32.mrf.mxu1  ;;  %v5549_v33 = vrot.slane %v5547_v16, 1 }
 0x4f8   : > { %v6153_v18 = vpop.f32.mrf.mxu0  ;;  %v4489_v39 = vadd.f32 %v4384_v19, %v11296_v8 }
 0x4f9   : > { %v6259_v1 = vadd.f32 %v6153_v18, %v5860_v26  ;;  %v5550_v22 = vsel %vm1586_vm0, %v5545_v2, %v5549_v33 }
 0x4fa   : > { %v5756_v29 = vpop.f32.mrf.mxu3  ;;  %v5043_v3 = vadd.f32 %v4938_v55, %v4489_v39  ;;  %v9143_v55 = vld [vmem:[#allocation2 + $0xf4] sm:$0xff] }
 0x4fb   : > { %v6707_v53 = vmul.f32 %v6534_v6, %v6259_v1  ;;  %4980 = vmatmul.bf16.gmra.mxu2 %v8396_v42  ;;  %6192 = vmatmul.bf16.gmra.mxu0 %v5963_v20  ;;  %v4195_v26 = vrot.slane %v9143_v55, 1  ;;  %v11299_v6 = vld [vmem:[#allocation15_spill] sm:$0xff] }
 0x4fc   : > { %v5861_v14 = vadd.f32 %v5756_v29, %v5043_v3 }
 0x4fd   : > { %v6770_v13 = vadd.f32 %v6769_v61, %v6707_v53  ;;  %v6841_v11 = vmul.f32 %v6707_v53, %v6259_v1  ;;  %v4196_v42 = vsel %vm2366_vm1, %v4193_v60, %v4195_v26 }
 0x4fe   : > { %v4941_v57 = vpop.f32.mrf.mxu2 }
 0x4ff   : > { %5798 = vmatmul.bf16.gmra.mxu3 %v5542_v56  ;;  %v6904_v52 = vadd.f32 %v6903_v23, %v6841_v11  ;;  %v4387_v5 = vpop.f32.mrf.mxu1  ;;  %v5966_v56 = vrot.slane %v11114_v28, 1 }
 0x500   : > { %v6155_v54 = vpop.f32.mrf.mxu0  ;;  %v4490_v58 = vadd.f32 %v4387_v5, %v11297_v35  ;;  %v8398_v5 = vld [vmem:[#allocation2 + $0x100] sm:$0xff] }
 0x501   : > { %v6260_v50 = vadd.f32 %v6155_v54, %v5861_v14 }
 0x502   : > { %v5759_v49 = vpop.f32.mrf.mxu3  ;;  %4426 = vmatmul.bf16.gmra.mxu1 %v4194_v41  ;;  %v5044_v51 = vadd.f32 %v4941_v57, %v4490_v58  ;;  %v6554_v41 = vpop.permute.xlu0 %6553  ;;  %v5967_v58 = vsel %vm2366_vm1, %v5964_v62, %v5966_v56 }
 0x503   : > { %v6708_v7 = vmul.f32 %v6539_v36, %v6260_v50  ;;  %v8872_v38 = vpack.c.bf16 %v6260_v50, %v6259_v1  ;;  %v11300_v36 = vld [vmem:[#allocation17_spill] sm:$0xff] }
 0x504   : > { %v5862_v0 = vadd.f32 %v5759_v49, %v5044_v51  ;;  %v5551_v49 = vshrl.u32 %v11114_v28, 16 }
 0x505   : > { %v6771_v43 = vadd.f32 %v6770_v13, %v6708_v7  ;;  %v6842_v37 = vmul.f32 %v6708_v7, %v6260_v50  ;;  %9031 = vst [vmem:[%s10917_s29 + $0x90] sm:$0xff] %v8872_v38   ;;  %v5555_v13 = vshll.u32 %v11125_v10, 16 }
 0x506   : > { %v4943_v21 = vpop.f32.mrf.mxu2  ;;  %v5553_v38 = vor.u32 %v5551_v49, %v5549_v33  ;;  %v6559_v33 = vpop.permute.xlu1 %6558 }
 0x507   : > { %v6905_v12 = vadd.f32 %v6904_v52, %v6842_v37  ;;  %v4389_v4 = vpop.f32.mrf.mxu1  ;;  %v5557_v50 = vrot.slane %v5555_v13, 1 }
 0x508   : > { %v6158_v27 = vpop.f32.mrf.mxu0  ;;  %v4491_v9 = vadd.f32 %v4389_v4, %v11298_v48 }
 0x509   : > { %v6261_v30 = vadd.f32 %v6158_v27, %v5862_v0  ;;  %v5558_v16 = vsel %vm1586_vm0, %v5553_v38, %v5557_v50 }
 0x50a   : > { %v5761_v25 = vpop.f32.mrf.mxu3  ;;  %v5045_v24 = vadd.f32 %v4943_v21, %v4491_v9  ;;  %v9144_v21 = vld [vmem:[#allocation2 + $0xfc] sm:$0xff] }
 0x50b   : > { %v6709_v44 = vmul.f32 %v6544_v32, %v6261_v30  ;;  %4985 = vmatmul.bf16.gmra.mxu2 %v8397_v45  ;;  %6197 = vmatmul.bf16.gmra.mxu0 %v5965_v15  ;;  %v4197_v0 = vrot.slane %v9144_v21, 1  ;;  %v11301_v32 = vld [vmem:[#allocation19_spill] sm:$0xff] }
 0x50c   : > { %v5863_v34 = vadd.f32 %v5761_v25, %v5045_v24 }
 0x50d   : > { %v6772_v61 = vadd.f32 %v6771_v43, %v6709_v44  ;;  %v6843_v59 = vmul.f32 %v6709_v44, %v6261_v30  ;;  %v4198_v45 = vsel %vm2366_vm1, %v4195_v26, %v4197_v0 }
 0x50e   : > { %v4946_v23 = vpop.f32.mrf.mxu2 }
 0x50f   : > { %5803 = vmatmul.bf16.gmra.mxu3 %v5550_v22  ;;  %v6906_v18 = vadd.f32 %v6905_v12, %v6843_v59  ;;  %v4392_v29 = vpop.f32.mrf.mxu1  ;;  %v5968_v22 = vrot.slane %v11125_v10, 1 }
 0x510   : > { %v6160_v19 = vpop.f32.mrf.mxu0  ;;  %v4492_v8 = vadd.f32 %v4392_v29, %v11299_v6  ;;  %v8399_v29 = vld [vmem:[#allocation2 + $0x108] sm:$0xff] }
 0x511   : > { %v6262_v40 = vadd.f32 %v6160_v19, %v5863_v34  ;;  %v5969_v6 = vsel %vm2366_vm1, %v5966_v56, %v5968_v22 }
 0x512   : > { %v5764_v1 = vpop.f32.mrf.mxu3  ;;  %4431 = vmatmul.bf16.gmra.mxu1 %v4196_v42  ;;  %v5046_v53 = vadd.f32 %v4946_v23, %v4492_v8  ;;  %v6564_v42 = vpop.permute.xlu2 %6563  ;;  %v5134_v8 = vld [vmem:[#allocation2 + $0x118] sm:$0x1] }
 0x513   : > { %v6710_v39 = vmul.f32 %v6549_v63, %v6262_v40  ;;  %v8877_v20 = vpack.c.bf16 %v6262_v40, %v6261_v30 }
 0x514   : > { %v5864_v31 = vadd.f32 %v5764_v1, %v5046_v53  ;;  %v5559_v1 = vshrl.u32 %v11125_v10, 16 }
 0x515   : > { %v6773_v17 = vadd.f32 %v6772_v61, %v6710_v39  ;;  %v6844_v3 = vmul.f32 %v6710_v39, %v6262_v40  ;;  %9032 = vst [vmem:[%s10917_s29 + $0x98] sm:$0xff] %v8877_v20   ;;  %v5563_v61 = vshll.u32 %v11136_v47, 16 }
 0x516   : > { %v4948_v11 = vpop.f32.mrf.mxu2  ;;  %v5561_v20 = vor.u32 %v5559_v1, %v5557_v50  ;;  %v6569_v50 = vpop.permute.xlu0 %6568 }
 0x517   : > { %v6907_v57 = vadd.f32 %v6906_v18, %v6844_v3  ;;  %v4394_v14 = vpop.f32.mrf.mxu1  ;;  %v5565_v40 = vrot.slane %v5563_v61, 1  ;;  %v11304_v61 = vld [vmem:[#allocation23_spill] sm:$0xff] }
 0x518   : > { %v6163_v60 = vpop.f32.mrf.mxu0  ;;  %v4493_v35 = vadd.f32 %v4394_v14, %v11300_v36 }
 0x519   : > { %v6263_v54 = vadd.f32 %v6163_v60, %v5864_v31  ;;  %v5566_v31 = vsel %vm1586_vm0, %v5561_v20, %v5565_v40 }
 0x51a   : > { %v5766_v52 = vpop.f32.mrf.mxu3  ;;  %v5047_v51 = vadd.f32 %v4948_v11, %v4493_v35  ;;  %v6579_v1 = vpop.permute.xlu2 %6578 }
 0x51b   : > { %v6711_v7 = vmul.f32 %v6554_v41, %v6263_v54  ;;  %4990 = vmatmul.bf16.gmra.mxu2 %v8398_v5  ;;  %6202 = vmatmul.bf16.gmra.mxu0 %v5967_v58  ;;  %v11302_v41 = vld [vmem:[#allocation21_spill] sm:$0xff] }
 0x51c   : > { %v5865_v28 = vadd.f32 %v5766_v52, %v5047_v51 }
 0x51d   : > { %v6774_v43 = vadd.f32 %v6773_v17, %v6711_v7  ;;  %v6845_v37 = vmul.f32 %v6711_v7, %v6263_v54  ;;  %v9145_v17 = vld [vmem:[#allocation2 + $0x104] sm:$0xff] }
 0x51e   : > { %v4951_v12 = vpop.f32.mrf.mxu2  ;;  %v4199_v3 = vrot.slane %v9145_v17, 1 }
 0x51f   : > { %5808 = vmatmul.bf16.gmra.mxu3 %v5558_v16  ;;  %v6908_v27 = vadd.f32 %v6907_v57, %v6845_v37  ;;  %v4397_v25 = vpop.f32.mrf.mxu1  ;;  %v5281_v57 = vunpack.c.l.b16 %v5134_v8  ;;  %v5970_v16 = vrot.slane %v11136_v47, 1 }
 0x520   : > { %v6165_v4 = vpop.f32.mrf.mxu0  ;;  %v4494_v48 = vadd.f32 %v4397_v25, %v11301_v32  ;;  %v4200_v5 = vsel %vm2366_vm1, %v4197_v0, %v4199_v3  ;;  %v5567_v0 = vshrl.u32 %v11136_v47, 16  ;;  %v11303_v32 = vld [vmem:[#allocation3_spill] sm:$0xff] }
 0x521   : > { %v6264_v62 = vadd.f32 %v6165_v4, %v5865_v28  ;;  %v11147_v49 = vpack.c.b16 %v5281_v57, %v5281_v57 }
 0x522   : > { %v5769_v30 = vpop.f32.mrf.mxu3  ;;  %4436 = vmatmul.bf16.gmra.mxu1 %v4198_v45  ;;  %v5048_v44 = vadd.f32 %v4951_v12, %v4494_v48 }
 0x523   : > { %v6712_v9 = vmul.f32 %v6559_v33, %v6264_v62  ;;  %v8882_v15 = vpack.c.bf16 %v6264_v62, %v6263_v54  ;;  %v6574_v33 = vpop.permute.xlu1 %6573  ;;  %v5972_v17 = vrot.slane %v11147_v49, 1 }
 0x524   : > { %v5866_v55 = vadd.f32 %v5769_v30, %v5048_v44  ;;  %v8400_v30 = vld [vmem:[#allocation2 + $0x110] sm:$0xff] }
 0x525   : > { %v6775_v2 = vadd.f32 %v6774_v43, %v6712_v9  ;;  %v6846_v24 = vmul.f32 %v6712_v9, %v6264_v62  ;;  %9033 = vst [vmem:[%s10917_s29 + $0xa0] sm:$0xff] %v8882_v15   ;;  %v5571_v43 = vshll.u32 %v11147_v49, 16  ;;  %v5569_v62 = vor.u32 %v5567_v0, %v5565_v40  ;;  %v11305_v40 = vld [vmem:[#allocation25_spill] sm:$0xff] }
 0x526   : > { %v4953_v59 = vpop.f32.mrf.mxu2  ;;  %v5971_v9 = vsel %vm2366_vm1, %v5968_v22, %v5970_v16 }
 0x527   : > { %v6909_v23 = vadd.f32 %v6908_v27, %v6846_v24  ;;  %v4399_v34 = vpop.f32.mrf.mxu1  ;;  %v5573_v45 = vrot.slane %v5571_v43, 1  ;;  %v11307_v43 = vld [vmem:[#allocation29_spill] sm:$0xff] }
 0x528   : > { %v6168_v26 = vpop.f32.mrf.mxu0  ;;  %v4495_v63 = vadd.f32 %v4399_v34, %v10761_v46 }
 0x529   : > { %v6265_v19 = vadd.f32 %v6168_v26, %v5866_v55  ;;  %v5574_v47 = vsel %vm1586_vm0, %v5569_v62, %v5573_v45 }
 0x52a   : > { %v5771_v18 = vpop.f32.mrf.mxu3  ;;  %v5049_v53 = vadd.f32 %v4953_v59, %v4495_v63  ;;  %v4201_v59 = vrot.slane %v11304_v61, 1 }
 0x52b   : > { %v6713_v39 = vmul.f32 %v6564_v42, %v6265_v19  ;;  %4995 = vmatmul.bf16.gmra.mxu2 %v8399_v29  ;;  %6207 = vmatmul.bf16.gmra.mxu0 %v5969_v6 }
 0x52c   : > { %v5867_v60 = vadd.f32 %v5771_v18, %v5049_v53  ;;  %v4202_v22 = vsel %vm2366_vm1, %v4199_v3, %v4201_v59  ;;  %v6584_v3 = vpop.permute.xlu0 %6583 }
 0x52d   : > { %v6776_v13 = vadd.f32 %v6775_v2, %v6713_v39  ;;  %v6847_v11 = vmul.f32 %v6713_v39, %v6265_v19 }
 0x52e   : > { %v4956_v10 = vpop.f32.mrf.mxu2 }
 0x52f   : > { %5813 = vmatmul.bf16.gmra.mxu3 %v5566_v31  ;;  %v6910_v46 = vadd.f32 %v6909_v23, %v6847_v11  ;;  %v4402_v56 = vpop.f32.mrf.mxu1 }
 0x530   : > { %v6170_v14 = vpop.f32.mrf.mxu0  ;;  %v4496_v36 = vadd.f32 %v4402_v56, %v11302_v41  ;;  %v5973_v56 = vsel %vm2366_vm1, %v5970_v16, %v5972_v17 }
 0x531   : > { %v6266_v54 = vadd.f32 %v6170_v14, %v5867_v60 }
 0x532   : > { %v5774_v52 = vpop.f32.mrf.mxu3  ;;  %4441 = vmatmul.bf16.gmra.mxu1 %v4200_v5  ;;  %v5050_v7 = vadd.f32 %v4956_v10, %v4496_v36 }
 0x533   : > { %v6714_v35 = vmul.f32 %v6569_v50, %v6266_v54  ;;  %v8887_v58 = vpack.c.bf16 %v6266_v54, %v6265_v19 }
 0x534   : > { %v5868_v21 = vadd.f32 %v5774_v52, %v5050_v7 }
 0x535   : > { %v6777_v38 = vadd.f32 %v6776_v13, %v6714_v35  ;;  %v6848_v51 = vmul.f32 %v6714_v35, %v6266_v54  ;;  %9034 = vst [vmem:[%s10917_s29 + $0xa8] sm:$0xff] %v8887_v58  }
 0x536   : > { %v4958_v37 = vpop.f32.mrf.mxu2 }
 0x537   : > { %v6911_v12 = vadd.f32 %v6910_v46, %v6848_v51  ;;  %v4404_v27 = vpop.f32.mrf.mxu1  ;;  %v11306_v46 = vld [vmem:[#allocation27_spill] sm:$0xff]  ;;  %v6589_v51 = vpop.permute.xlu1 %6588 }
 0x538   : > { %v6173_v28 = vpop.f32.mrf.mxu0  ;;  %v4497_v48 = vadd.f32 %v4404_v27, %v11303_v32  ;;  %v6594_v32 = vpop.permute.xlu2 %6593 }
 0x539   : > { %v6267_v25 = vadd.f32 %v6173_v28, %v5868_v21 }
 0x53a   : > { %v5776_v4 = vpop.f32.mrf.mxu3  ;;  %v5051_v44 = vadd.f32 %v4958_v37, %v4497_v48  ;;  %v11308_v48 = vld [vmem:[#allocation5_spill] sm:$0xff] }
 0x53b   : > { %v6715_v15 = vmul.f32 %v6574_v33, %v6267_v25  ;;  %5000 = vmatmul.bf16.gmra.mxu2 %v8400_v30  ;;  %6212 = vmatmul.bf16.gmra.mxu0 %v5971_v9 }
 0x53c   : > { %v5869_v23 = vadd.f32 %v5776_v4, %v5051_v44 }
 0x53d   : > { %v6778_v2 = vadd.f32 %v6777_v38, %v6715_v15  ;;  %v6849_v24 = vmul.f32 %v6715_v15, %v6267_v25 }
 0x53e   : > { %v4961_v55 = vpop.f32.mrf.mxu2 }
 0x53f   : > { %5818 = vmatmul.bf16.gmra.mxu3 %v5574_v47  ;;  %v6912_v26 = vadd.f32 %v6911_v12, %v6849_v24  ;;  %v4407_v18 = vpop.f32.mrf.mxu1 }
 0x540   : > { %v6175_v34 = vpop.f32.mrf.mxu0  ;;  %v4498_v42 = vadd.f32 %v4407_v18, %v11305_v40  ;;  %v6599_v18 = vpop.permute.xlu0 %6598 }
 0x541   : > { %v6268_v29 = vadd.f32 %v6175_v34, %v5869_v23 }
 0x542   : > { %v5779_v19 = vpop.f32.mrf.mxu3  ;;  %4446 = vmatmul.bf16.gmra.mxu1 %v4202_v22  ;;  %v5052_v8 = vadd.f32 %v4961_v55, %v4498_v42 }
 0x543   : > { %v6716_v63 = vmul.f32 %v6579_v1, %v6268_v29  ;;  %v8892_v6 = vpack.c.bf16 %v6268_v29, %v6267_v25 }
 0x544   : > { %v5870_v13 = vadd.f32 %v5779_v19, %v5052_v8  ;;  %v11309_v19 = vld [vmem:[#allocation4_spill] sm:$0xff] }
 0x545   : > { %v6779_v39 = vadd.f32 %v6778_v2, %v6716_v63  ;;  %v6850_v20 = vmul.f32 %v6716_v63, %v6268_v29  ;;  %9035 = vst [vmem:[%s10917_s29 + $0xb0] sm:$0xff] %v8892_v6  }
 0x546   : > { %v4963_v53 = vpop.f32.mrf.mxu2 }
 0x547   : > { %v6913_v11 = vadd.f32 %v6912_v26, %v6850_v20  ;;  %v4409_v57 = vpop.f32.mrf.mxu1 }
 0x548   : > { %v6178_v31 = vpop.f32.mrf.mxu0  ;;  %v4499_v14 = vadd.f32 %v4409_v57, %v11306_v46 }
 0x549   : > { %v6269_v60 = vadd.f32 %v6178_v31, %v5870_v13  ;;  %v11310_v31 = vld [vmem:[#allocation6_spill] sm:$0xff] }
 0x54a   : > { %v5781_v10 = vpop.f32.mrf.mxu3  ;;  %v5053_v54 = vadd.f32 %v4963_v53, %v4499_v14 }
 0x54b   : > { %v6717_v52 = vmul.f32 %v6584_v3, %v6269_v60  ;;  %6217 = vmatmul.bf16.gmra.mxu0 %v5973_v56 }
 0x54c   : > { %v5871_v36 = vadd.f32 %v5781_v10, %v5053_v54 }
 0x54d   : > { %v6780_v5 = vadd.f32 %v6779_v39, %v6717_v52  ;;  %v6851_v50 = vmul.f32 %v6717_v52, %v6269_v60 }
 0x54e   : > { %v4966_v41 = vpop.f32.mrf.mxu2 }
 0x54f   : > { %v6914_v49 = vadd.f32 %v6913_v11, %v6851_v50  ;;  %v4412_v58 = vpop.f32.mrf.mxu1  ;;  %v6604_v11 = vpop.permute.xlu1 %6603 }
 0x550   : > { %v6180_v35 = vpop.f32.mrf.mxu0  ;;  %v4500_v37 = vadd.f32 %v4412_v58, %v11307_v43 }
 0x551   : > { %v6270_v38 = vadd.f32 %v6180_v35, %v5871_v36  ;;  %v6609_v36 = vpop.permute.xlu2 %6608 }
 0x552   : > { %v5784_v7 = vpop.f32.mrf.mxu3  ;;  %v5054_v0 = vadd.f32 %v4966_v41, %v4500_v37 }
 0x553   : > { %v6718_v21 = vmul.f32 %v6589_v51, %v6270_v38  ;;  %v8897_v12 = vpack.c.bf16 %v6270_v38, %v6269_v60 }
 0x554   : > { %v5872_v4 = vadd.f32 %v5784_v7, %v5054_v0 }
 0x555   : > { %v6781_v16 = vadd.f32 %v6780_v5, %v6718_v21  ;;  %v6852_v28 = vmul.f32 %v6718_v21, %v6270_v38  ;;  %9036 = vst [vmem:[%s10917_s29 + $0xb8] sm:$0xff] %v8897_v12  }
 0x556   : > { %v4968_v27 = vpop.f32.mrf.mxu2 }
 0x557   : > { %v6915_v25 = vadd.f32 %v6914_v49, %v6852_v28  ;;  %v4414_v62 = vpop.f32.mrf.mxu1  ;;  %v11311_v49 = vld [vmem:[#allocation7_spill] sm:$0xff] }
 0x558   : > { %v6183_v30 = vpop.f32.mrf.mxu0  ;;  %v4501_v9 = vadd.f32 %v4414_v62, %v11308_v48 }
 0x559   : > { %v6271_v33 = vadd.f32 %v6183_v30, %v5872_v4  ;;  %v6614_v4 = vpop.permute.xlu0 %6613 }
 0x55a   : > { %v5786_v45 = vpop.f32.mrf.mxu3  ;;  %v5055_v44 = vadd.f32 %v4968_v27, %v4501_v9 }
 0x55b   : > { %v6719_v15 = vmul.f32 %v6594_v32, %v6271_v33 }
 0x55c   : > { %v5873_v61 = vadd.f32 %v5786_v45, %v5055_v44 }
 0x55d   : > { %v6782_v2 = vadd.f32 %v6781_v16, %v6719_v15  ;;  %v6853_v24 = vmul.f32 %v6719_v15, %v6271_v33 }
 0x55e   : > { %v4971_v47 = vpop.f32.mrf.mxu2 }
 0x55f   : > { %v6916_v59 = vadd.f32 %v6915_v25, %v6853_v24  ;;  %v4417_v23 = vpop.f32.mrf.mxu1  ;;  %v11312_v25 = vld [vmem:[#allocation8_spill] sm:$0xff] }
 0x560   : > { %v6185_v55 = vpop.f32.mrf.mxu0  ;;  %v4502_v29 = vadd.f32 %v4417_v23, %v11309_v19 }
 0x561   : > { %v6272_v34 = vadd.f32 %v6185_v55, %v5873_v61  ;;  %v6619_v61 = vpop.permute.xlu1 %6618 }
 0x562   : > { %v5789_v26 = vpop.f32.mrf.mxu3  ;;  %v5056_v40 = vadd.f32 %v4971_v47, %v4502_v29 }
 0x563   : > { %v6720_v22 = vmul.f32 %v6599_v18, %v6272_v34  ;;  %v8902_v1 = vpack.c.bf16 %v6272_v34, %v6271_v33 }
 0x564   : > { %v5874_v8 = vadd.f32 %v5789_v26, %v5056_v40 }
 0x565   : > { %v6783_v42 = vadd.f32 %v6782_v2, %v6720_v22  ;;  %v6854_v63 = vmul.f32 %v6720_v22, %v6272_v34  ;;  %9037 = vst [vmem:[%s10917_s29 + $0xc0] sm:$0xff] %v8902_v1  }
 0x566   : > { %v4973_v6 = vpop.f32.mrf.mxu2 }
 0x567   : > { %v6917_v39 = vadd.f32 %v6916_v59, %v6854_v63  ;;  %v4419_v53 = vpop.f32.mrf.mxu1  ;;  %v11313_v59 = vld [vmem:[#allocation9_spill] sm:$0xff] }
 0x568   : > { %v6188_v20 = vpop.f32.mrf.mxu0  ;;  %v4503_v57 = vadd.f32 %v4419_v53, %v11310_v31 }
 0x569   : > { %v6273_v13 = vadd.f32 %v6188_v20, %v5874_v8  ;;  %v6624_v8 = vpop.permute.xlu2 %6623 }
 0x56a   : > { %v5791_v17 = vpop.f32.mrf.mxu3  ;;  %v5057_v60 = vadd.f32 %v4973_v6, %v4503_v57 }
 0x56b   : > { %v6721_v10 = vmul.f32 %v6604_v11, %v6273_v13 }
 0x56c   : > { %v5875_v56 = vadd.f32 %v5791_v17, %v5057_v60 }
 0x56d   : > { %v6784_v3 = vadd.f32 %v6783_v42, %v6721_v10  ;;  %v6855_v46 = vmul.f32 %v6721_v10, %v6273_v13 }
 0x56e   : > { %v4976_v14 = vpop.f32.mrf.mxu2 }
 0x56f   : > { %v6918_v52 = vadd.f32 %v6917_v39, %v6855_v46  ;;  %v4422_v5 = vpop.f32.mrf.mxu1  ;;  %v11314_v39 = vld [vmem:[#allocation10_spill] sm:$0xff] }
 0x570   : > { %v6190_v54 = vpop.f32.mrf.mxu0  ;;  %v4504_v35 = vadd.f32 %v4422_v5, %v11311_v49 }
 0x571   : > { %v6274_v41 = vadd.f32 %v6190_v54, %v5875_v56  ;;  %v6629_v56 = vpop.permute.xlu0 %6628 }
 0x572   : > { %v5794_v50 = vpop.f32.mrf.mxu3  ;;  %v5058_v38 = vadd.f32 %v4976_v14, %v4504_v35 }
 0x573   : > { %v6722_v58 = vmul.f32 %v6609_v36, %v6274_v41  ;;  %v8907_v7 = vpack.c.bf16 %v6274_v41, %v6273_v13 }
 0x574   : > { %v5876_v21 = vadd.f32 %v5794_v50, %v5058_v38 }
 0x575   : > { %v6785_v51 = vadd.f32 %v6784_v3, %v6722_v58  ;;  %v6856_v43 = vmul.f32 %v6722_v58, %v6274_v41  ;;  %9038 = vst [vmem:[%s10917_s29 + $0xc8] sm:$0xff] %v8907_v7  }
 0x576   : > { %v4978_v37 = vpop.f32.mrf.mxu2 }
 0x577   : > { %v6919_v12 = vadd.f32 %v6918_v52, %v6856_v43  ;;  %v4424_v16 = vpop.f32.mrf.mxu1  ;;  %v11315_v52 = vld [vmem:[#allocation12_spill] sm:$0xff] }
 0x578   : > { %v6193_v0 = vpop.f32.mrf.mxu0  ;;  %v4505_v30 = vadd.f32 %v4424_v16, %v11312_v25 }
 0x579   : > { %v6275_v27 = vadd.f32 %v6193_v0, %v5876_v21  ;;  %v6634_v21 = vpop.permute.xlu1 %6633 }
 0x57a   : > { %v5796_v28 = vpop.f32.mrf.mxu3  ;;  %v5059_v45 = vadd.f32 %v4978_v37, %v4505_v30 }
 0x57b   : > { %v6723_v62 = vmul.f32 %v6614_v4, %v6275_v27 }
 0x57c   : > { %v5877_v9 = vadd.f32 %v5796_v28, %v5059_v45 }
 0x57d   : > { %v6786_v33 = vadd.f32 %v6785_v51, %v6723_v62  ;;  %v6857_v32 = vmul.f32 %v6723_v62, %v6275_v27 }
 0x57e   : > { %v4981_v48 = vpop.f32.mrf.mxu2 }
 0x57f   : > { %v6920_v15 = vadd.f32 %v6919_v12, %v6857_v32  ;;  %v4427_v2 = vpop.f32.mrf.mxu1  ;;  %v11316_v12 = vld [vmem:[#allocation14_spill] sm:$0xff] }
 0x580   : > { %v6195_v44 = vpop.f32.mrf.mxu0  ;;  %v4506_v55 = vadd.f32 %v4427_v2, %v11313_v59 }
 0x581   : > { %v6276_v47 = vadd.f32 %v6195_v44, %v5877_v9  ;;  %v6639_v9 = vpop.permute.xlu2 %6638 }
 0x582   : > { %v5799_v24 = vpop.f32.mrf.mxu3  ;;  %v5060_v34 = vadd.f32 %v4981_v48, %v4506_v55 }
 0x583   : > { %v6724_v23 = vmul.f32 %v6619_v61, %v6276_v47  ;;  %v8912_v26 = vpack.c.bf16 %v6276_v47, %v6275_v27 }
 0x584   : > { %v5878_v22 = vadd.f32 %v5799_v24, %v5060_v34 }
 0x585   : > { %v6787_v18 = vadd.f32 %v6786_v33, %v6724_v23  ;;  %v6858_v19 = vmul.f32 %v6724_v23, %v6276_v47  ;;  %9039 = vst [vmem:[%s10917_s29 + $0xd0] sm:$0xff] %v8912_v26  }
 0x586   : > { %v4983_v29 = vpop.f32.mrf.mxu2 }
 0x587   : > { %v6921_v1 = vadd.f32 %v6920_v15, %v6858_v19  ;;  %v4429_v42 = vpop.f32.mrf.mxu1  ;;  %v11317_v15 = vld [vmem:[#allocation16_spill] sm:$0xff] }
 0x588   : > { %v6198_v40 = vpop.f32.mrf.mxu0  ;;  %v4507_v20 = vadd.f32 %v4429_v42, %v11314_v39 }
 0x589   : > { %v6277_v6 = vadd.f32 %v6198_v40, %v5878_v22  ;;  %v6644_v22 = vpop.permute.xlu0 %6643 }
 0x58a   : > { %v5801_v63 = vpop.f32.mrf.mxu3  ;;  %v5061_v17 = vadd.f32 %v4983_v29, %v4507_v20 }
 0x58b   : > { %v6725_v53 = vmul.f32 %v6624_v8, %v6277_v6 }
 0x58c   : > { %v5879_v57 = vadd.f32 %v5801_v63, %v5061_v17 }
 0x58d   : > { %v6788_v13 = vadd.f32 %v6787_v18, %v6725_v53  ;;  %v6859_v11 = vmul.f32 %v6725_v53, %v6277_v6 }
 0x58e   : > { %v4986_v31 = vpop.f32.mrf.mxu2 }
 0x58f   : > { %v6922_v10 = vadd.f32 %v6921_v1, %v6859_v11  ;;  %v4432_v3 = vpop.f32.mrf.mxu1  ;;  %v11318_v1 = vld [vmem:[#allocation18_spill] sm:$0xff] }
 0x590   : > { %v6200_v60 = vpop.f32.mrf.mxu0  ;;  %v4508_v54 = vadd.f32 %v4432_v3, %v11315_v52 }
 0x591   : > { %v6278_v14 = vadd.f32 %v6200_v60, %v5879_v57  ;;  %v6649_v57 = vpop.permute.xlu1 %6648 }
 0x592   : > { %v5804_v46 = vpop.f32.mrf.mxu3  ;;  %v5062_v41 = vadd.f32 %v4986_v31, %v4508_v54 }
 0x593   : > { %v6726_v5 = vmul.f32 %v6629_v56, %v6278_v14  ;;  %v8917_v50 = vpack.c.bf16 %v6278_v14, %v6277_v6 }
 0x594   : > { %v5880_v58 = vadd.f32 %v5804_v46, %v5062_v41 }
 0x595   : > { %v6789_v36 = vadd.f32 %v6788_v13, %v6726_v5  ;;  %v6860_v49 = vmul.f32 %v6726_v5, %v6278_v14  ;;  %9040 = vst [vmem:[%s10917_s29 + $0xd8] sm:$0xff] %v8917_v50  }
 0x596   : > { %v4988_v35 = vpop.f32.mrf.mxu2 }
 0x597   : > { %v6923_v7 = vadd.f32 %v6922_v10, %v6860_v49  ;;  %v4434_v51 = vpop.f32.mrf.mxu1  ;;  %v11319_v10 = vld [vmem:[#allocation20_spill] sm:$0xff] }
 0x598   : > { %v6203_v38 = vpop.f32.mrf.mxu0  ;;  %v4509_v0 = vadd.f32 %v4434_v51, %v11316_v12 }
 0x599   : > { %v6279_v37 = vadd.f32 %v6203_v38, %v5880_v58  ;;  %v11320_v58 = vld [vmem:[#allocation22_spill] sm:$0xff] }
 0x59a   : > { %v5806_v43 = vpop.f32.mrf.mxu3  ;;  %v5063_v28 = vadd.f32 %v4988_v35, %v4509_v0  ;;  %v6654_v35 = vpop.permute.xlu2 %6653 }
 0x59b   : > { %v6727_v16 = vmul.f32 %v6634_v21, %v6279_v37 }
 0x59c   : > { %v5881_v30 = vadd.f32 %v5806_v43, %v5063_v28 }
 0x59d   : > { %v6790_v27 = vadd.f32 %v6789_v36, %v6727_v16  ;;  %v6861_v4 = vmul.f32 %v6727_v16, %v6279_v37 }
 0x59e   : > { %v4991_v25 = vpop.f32.mrf.mxu2 }
 0x59f   : > { %v6924_v62 = vadd.f32 %v6923_v7, %v6861_v4  ;;  %v4437_v33 = vpop.f32.mrf.mxu1 }
 0x5a0   : > { %v6205_v45 = vpop.f32.mrf.mxu0  ;;  %v4510_v44 = vadd.f32 %v4437_v33, %v11317_v15 }
 0x5a1   : > { %v6280_v48 = vadd.f32 %v6205_v45, %v5881_v30  ;;  %v11321_v30 = vld [vmem:[#allocation24_spill] sm:$0xff] }
 0x5a2   : > { %v5809_v32 = vpop.f32.mrf.mxu3  ;;  %v5064_v47 = vadd.f32 %v4991_v25, %v4510_v44  ;;  %v6659_v25 = vpop.permute.xlu0 %6658 }
 0x5a3   : > { %v6728_v2 = vmul.f32 %v6639_v9, %v6280_v48  ;;  %v8922_v24 = vpack.c.bf16 %v6280_v48, %v6279_v37 }
 0x5a4   : > { %v5882_v23 = vadd.f32 %v5809_v32, %v5064_v47 }
 0x5a5   : > { %v6791_v61 = vadd.f32 %v6790_v27, %v6728_v2  ;;  %v6862_v59 = vmul.f32 %v6728_v2, %v6280_v48  ;;  %9041 = vst [vmem:[%s10917_s29 + $0xe0] sm:$0xff] %v8922_v24  }
 0x5a6   : > { %v4993_v55 = vpop.f32.mrf.mxu2 }
 0x5a7   : > { %v6925_v26 = vadd.f32 %v6924_v62, %v6862_v59  ;;  %v4439_v18 = vpop.f32.mrf.mxu1  ;;  %v6664_v59 = vpop.permute.xlu1 %6663 }
 0x5a8   : > { %v6208_v34 = vpop.f32.mrf.mxu0  ;;  %v4511_v40 = vadd.f32 %v4439_v18, %v11318_v1 }
 0x5a9   : > { %v6281_v29 = vadd.f32 %v6208_v34, %v5882_v23 }
 0x5aa   : > { %v5811_v19 = vpop.f32.mrf.mxu3  ;;  %v5065_v63 = vadd.f32 %v4993_v55, %v4511_v40  ;;  %v11322_v55 = vld [vmem:[#allocation26_spill] sm:$0xff] }
 0x5ab   : > { %v6729_v42 = vmul.f32 %v6644_v22, %v6281_v29 }
 0x5ac   : > { %v5883_v20 = vadd.f32 %v5811_v19, %v5065_v63 }
 0x5ad   : > { %v6792_v6 = vadd.f32 %v6791_v61, %v6729_v42  ;;  %v6863_v8 = vmul.f32 %v6729_v42, %v6281_v29 }
 0x5ae   : > { %v4996_v39 = vpop.f32.mrf.mxu2 }
 0x5af   : > { %v6926_v53 = vadd.f32 %v6925_v26, %v6863_v8  ;;  %v4442_v13 = vpop.f32.mrf.mxu1 }
 0x5b0   : > { %v6210_v17 = vpop.f32.mrf.mxu0  ;;  %v4512_v60 = vadd.f32 %v4442_v13, %v11319_v10 }
 0x5b1   : > { %v6282_v31 = vadd.f32 %v6210_v17, %v5883_v20 }
 0x5b2   : > { %v5814_v11 = vpop.f32.mrf.mxu3  ;;  %v5066_v14 = vadd.f32 %v4996_v39, %v4512_v60 }
 0x5b3   : > { %v6730_v3 = vmul.f32 %v6649_v57, %v6282_v31  ;;  %v8927_v46 = vpack.c.bf16 %v6282_v31, %v6281_v29 }
 0x5b4   : > { %v5884_v54 = vadd.f32 %v5814_v11, %v5066_v14 }
 0x5b5   : > { %v6793_v56 = vadd.f32 %v6792_v6, %v6730_v3  ;;  %v6864_v52 = vmul.f32 %v6730_v3, %v6282_v31  ;;  %9042 = vst [vmem:[%s10917_s29 + $0xe8] sm:$0xff] %v8927_v46   ;;  %v6669_v6 = vpop.permute.xlu2 %6668 }
 0x5b6   : > { %v4998_v50 = vpop.f32.mrf.mxu2 }
 0x5b7   : > { %v6927_v5 = vadd.f32 %v6926_v53, %v6864_v52  ;;  %v4444_v36 = vpop.f32.mrf.mxu1 }
 0x5b8   : > { %v6213_v41 = vpop.f32.mrf.mxu0  ;;  %v4513_v7 = vadd.f32 %v4444_v36, %v11320_v58 }
 0x5b9   : > { %v6283_v49 = vadd.f32 %v6213_v41, %v5884_v54 }
 0x5ba   : > { %v5816_v38 = vpop.f32.mrf.mxu3  ;;  %v5067_v43 = vadd.f32 %v4998_v50, %v4513_v7 }
 0x5bb   : > { %v6731_v51 = vmul.f32 %v6654_v35, %v6283_v49 }
 0x5bc   : > { %v5885_v12 = vadd.f32 %v5816_v38, %v5067_v43 }
 0x5bd   : > { %v6794_v37 = vadd.f32 %v6793_v56, %v6731_v51  ;;  %v6865_v21 = vmul.f32 %v6731_v51, %v6283_v49 }
 0x5be   : > { %v5001_v28 = vpop.f32.mrf.mxu2 }
 0x5bf   : > { %v6928_v0 = vadd.f32 %v6927_v5, %v6865_v21  ;;  %v4447_v27 = vpop.f32.mrf.mxu1 }
 0x5c0   : > { %v6215_v16 = vpop.f32.mrf.mxu0  ;;  %v4514_v62 = vadd.f32 %v4447_v27, %v11321_v30 }
 0x5c1   : > { %v6284_v4 = vadd.f32 %v6215_v16, %v5885_v12 }
 0x5c2   : > { %v5068_v32 = vadd.f32 %v5001_v28, %v4514_v62  ;;  %v5819_v48 = vpop.f32.mrf.mxu3 }
 0x5c3   : > { %v6732_v45 = vmul.f32 %v6659_v25, %v6284_v4  ;;  %v8932_v33 = vpack.c.bf16 %v6284_v4, %v6283_v49 }
 0x5c4   : > { %v5886_v44 = vadd.f32 %v5819_v48, %v5068_v32 }
 0x5c5   : > { %v6795_v9 = vadd.f32 %v6794_v37, %v6732_v45  ;;  %v6866_v15 = vmul.f32 %v6732_v45, %v6284_v4  ;;  %9043 = vst [vmem:[%s10917_s29 + $0xf0] sm:$0xff] %v8932_v33  }
 0x5c6   : > { %v5003_v26 = vpop.f32.mrf.mxu2 }
 0x5c7   : > { %v6929_v2 = vadd.f32 %v6928_v0, %v6866_v15  ;;  %v4449_v47 = vpop.f32.mrf.mxu1 }
 0x5c8   : > { %v6218_v24 = vpop.f32.mrf.mxu0  ;;  %v4515_v23 = vadd.f32 %v4449_v47, %v11322_v55 }
 0x5c9   : > { %v6285_v61 = vadd.f32 %v6218_v24, %v5886_v44 }
 0x5ca   : > { %v5069_v18 = vadd.f32 %v5003_v26, %v4515_v23  ;;  %v5821_v22 = vpop.f32.mrf.mxu3 }
 0x5cb   : > { %v6733_v34 = vmul.f32 %v6664_v59, %v6285_v61 }
 0x5cc   : > { %v5887_v1 = vadd.f32 %v5821_v22, %v5069_v18 }
 0x5cd   : > { %v6796_v19 = vadd.f32 %v6795_v9, %v6733_v34  ;;  %v6867_v29 = vmul.f32 %v6733_v34, %v6285_v61 }
 0x5cf   : > { %v6930_v40 = vadd.f32 %v6929_v2, %v6867_v29 }
 0x5d0   : > { %v6220_v42 = vpop.f32.mrf.mxu0 }
 0x5d1   : > { %v6286_v63 = vadd.f32 %v6220_v42, %v5887_v1 }
 0x5d3   : > { %v6734_v8 = vmul.f32 %v6669_v6, %v6286_v63  ;;  %v8937_v39 = vpack.c.bf16 %v6286_v63, %v6285_v61 }
 0x5d5   : > { %v6797_v20 = vadd.f32 %v6796_v19, %v6734_v8  ;;  %v6868_v53 = vmul.f32 %v6734_v8, %v6286_v63  ;;  %9044 = vst [vmem:[%s10917_s29 + $0xf8] sm:$0xff] %v8937_v39  }
 0x5d7   : > { %v6798_v17 = vrot.slane %v6797_v20, 4  ;;  %v6931_v13 = vadd.f32 %v6930_v40, %v6868_v53 }
 0x5d9   : > { %v6799_v11 = vadd.f32 %v6798_v17, %v6797_v20  ;;  %v6932_v31 = vrot.slane %v6931_v13, 4 }
 0x5db   : > { %v6800_v57 = vrot.slane %v6799_v11, 2  ;;  %v6933_v10 = vadd.f32 %v6932_v31, %v6931_v13 }
 0x5dd   : > { %v6801_v60 = vadd.f32 %v6800_v57, %v6799_v11  ;;  %v6934_v3 = vrot.slane %v6933_v10, 2 }
 0x5df   : > { %v6802_v46 = vrot.slane %v6801_v60, 1  ;;  %v6935_v14 = vadd.f32 %v6934_v3, %v6933_v10 }
 0x5e1   : > { %v6803_v56 = vadd.f32 %v6802_v46, %v6801_v60  ;;  %v6936_v52 = vrot.slane %v6935_v14, 1 }
 0x5e3   : > { %6804 = vst [vmem:[%s319_s10] sm:$0x1] %v6803_v56  ;;  %v6937_v54 = vadd.f32 %v6936_v52, %v6935_v14 }
 0x5e5   : > { %6938 = vst [vmem:[%s322_s14] sm:$0x1] %v6937_v54 }
 0x5e6 PF: > { %s19_s27 = sadd.s32 1, %s9155_s27  }
 0x5e7   : > { %p16_p4 = scmp.ge.s32.totalorder %s19_s27, 4  }
 0x5e9   :  { %18 = sbr.rel (!%p16_p4) target bundleno = 1 (0x1), region = 106 }

</bundles_post_ra>
